<compile_context>
chip_gen: v5e
topology: v5e:2x2
jax: 0.10.0
libtpu: 0.0.40
codegen_flags: <defaults>
</compile_context>

<pallas_src>
import functools

import numpy as np
import jax
import jax.numpy as jnp
from jax import lax
from jax.experimental import pallas as pl
from jax.experimental.pallas import tpu as pltpu

# ----------------------------- geometry ------------------------------------
C0, H0, W0 = 3, 32, 32          # input (NCHW)
O1, O2, KK = 6, 16, 5           # conv channels / kernel size
HO1 = H0 - KK + 1               # 28  conv1 spatial
HP1 = HO1 // 2                  # 14  pool1 spatial
HO2 = HP1 - KK + 1              # 10  conv2 spatial
HP2 = HO2 // 2                  # 5   pool2 spatial
R0 = C0 * H0                    # 96   rows of stacked input planes
R1 = O1 * HO1                   # 168  rows of stacked conv1 output
R2 = O2 * HO2                   # 160  rows of stacked conv2 output
F1, F2 = 120, 84                # fc widths
NCP = 16                        # padded class rows (multiple of 8)
NL = 128                        # lanes per image (one full lane tile)

_CONST_KEYS = ("c1", "l1", "b1", "c2", "l2", "b2", "c3", "l3", "b3",
               "w2", "fb2", "w3", "fb3")


# ------------------------------ Pallas kernel -------------------------------
def _lenet_kernel(x_ref, c1_ref, l1_ref, b1_ref, c2_ref, l2_ref, b2_ref,
                  c3_ref, l3_ref, b3_ref, w2_ref, fb2_ref, w3_ref, fb3_ref,
                  out_ref):
    f32, bf16 = jnp.float32, jnp.bfloat16

    def stage(act, c_ref, l_ref, b_ref):
        # act: (Rin, 128) bf16 activations, one image, W on lanes.
        # c  : (128, 5*128) bf16 column shift / column-pool matrix (right mult).
        # l  : (5, Rout, Rin) bf16 banded weights (row-pool folded in).
        # b  : (Rout, 1) f32 bias.
        y = jnp.dot(act, c_ref[...], preferred_element_type=f32).astype(bf16)
        r_out = l_ref.shape[1]
        acc = jnp.zeros((r_out, NL), f32)
        for t in range(KK):                              # unrolled, 5 MXU dots
            acc = acc + jnp.dot(l_ref[t], y[:, t * NL:(t + 1) * NL],
                                preferred_element_type=f32)
        return jnp.maximum(acc + b_ref[...], 0.0)        # bias + ReLU in f32

    a1 = stage(x_ref[...], c1_ref, l1_ref, b1_ref)            # conv1 + ReLU
    a2 = stage(a1.astype(bf16), c2_ref, l2_ref, b2_ref)       # pool1 + conv2 + ReLU
    h1 = stage(a2.astype(bf16), c3_ref, l3_ref, b3_ref)       # pool2 + fc1  + ReLU
    h2 = jnp.maximum(
        jnp.dot(w2_ref[...], h1.astype(bf16), preferred_element_type=f32)
        + fb2_ref[...], 0.0)                                  # fc2 + ReLU
    out = jnp.dot(w3_ref[...], h2.astype(bf16),
                  preferred_element_type=f32) + fb3_ref[...]  # fc3
    out_ref[...] = out                                        # (16, 128) lane-dense


# -------------------- host-side structured weight build ---------------------
def init_params(key, num_classes=10):
    ks = jax.random.split(key, 10)

    def w(k, shape, scale=0.05):
        return (scale * jax.random.normal(k, shape)).astype(jnp.float32)

    return {
        "conv1_w": w(ks[0], (O1, C0, KK, KK)), "conv1_b": w(ks[1], (O1,)),
        "conv2_w": w(ks[2], (O2, O1, KK, KK)), "conv2_b": w(ks[3], (O2,)),
        "fc1_w": w(ks[4], (F1, O2 * HP2 * HP2)), "fc1_b": w(ks[5], (F1,)),
        "fc2_w": w(ks[6], (F2, F1)), "fc2_b": w(ks[7], (F2,)),
        "fc3_w": w(ks[8], (num_classes, F2)), "fc3_b": w(ks[9], (num_classes,)),
    }


def prepare_constants(params, num_classes=10):
    """Precompute (once) the structured matrices the kernel multiplies against."""
    g = lambda a: np.asarray(jax.device_get(a), np.float32)
    w1, b1 = g(params["conv1_w"]), g(params["conv1_b"])
    w2, b2 = g(params["conv2_w"]), g(params["conv2_b"])
    fw1, fb1 = g(params["fc1_w"]), g(params["fc1_b"])
    fw2, fb2 = g(params["fc2_w"]), g(params["fc2_b"])
    fw3, fb3 = g(params["fc3_w"]), g(params["fc3_b"])

    # conv1: pure lane-shift matrices (output col t of block dj reads input col t+dj).
    c1 = np.zeros((NL, KK * NL), np.float32)
    for dj in range(KK):
        for t in range(NL - dj):
            c1[t + dj, dj * NL + t] = 1.0

    # conv1: banded row weights.  out row (o, i) <- input row (c, r=i+di).
    l1 = np.zeros((KK, R1, R0), np.float32)
    for dj in range(KK):
        for o in range(O1):
            for i in range(HO1):
                for c in range(C0):
                    for di in range(KK):
                        l1[dj, o * HO1 + i, c * H0 + i + di] = w1[o, c, di, dj]
    b1r = np.repeat(b1, HO1)[:, None]

    # pool1 column pairing + conv2 column shift, folded into one right matrix.
    c2 = np.zeros((NL, KK * NL), np.float32)
    for dj in range(KK):
        for t in range(NL):
            q = t + dj
            if q < HP1:
                c2[2 * q, dj * NL + t] = 1.0
                c2[2 * q + 1, dj * NL + t] = 1.0

    # conv2 banded weights with pool1 row pairing (x0.25) folded in.
    l2 = np.zeros((KK, R2, R1), np.float32)
    for dj in range(KK):
        for o in range(O2):
            for i in range(HO2):
                for c in range(O1):
                    for di in range(KK):
                        v = 0.25 * w2[o, c, di, dj]
                        col = c * HO1 + 2 * (i + di)
                        l2[dj, o * HO2 + i, col] = v
                        l2[dj, o * HO2 + i, col + 1] = v
    b2r = np.repeat(b2, HO2)[:, None]

    # pool2 column pairing + fc1 column selection.
    c3 = np.zeros((NL, KK * NL), np.float32)
    for jp in range(KK):
        for t in range(NL):
            q = t + jp
            if q < HP2:
                c3[2 * q, jp * NL + t] = 1.0
                c3[2 * q + 1, jp * NL + t] = 1.0

    # fc1 weights with pool2 row pairing (x0.25) and NCHW flatten order folded in.
    l3 = np.zeros((KK, F1, R2), np.float32)
    for jp in range(KK):
        for n in range(F1):
            for o in range(O2):
                for ip in range(HP2):
                    v = 0.25 * fw1[n, o * HP2 * HP2 + ip * HP2 + jp]
                    col = o * HO2 + 2 * ip
                    l3[jp, n, col] = v
                    l3[jp, n, col + 1] = v

    w3p = np.zeros((NCP, F2), np.float32)
    w3p[:num_classes] = fw3
    fb3p = np.zeros((NCP, 1), np.float32)
    fb3p[:num_classes, 0] = fb3

    bf = lambda a: jnp.asarray(a, jnp.bfloat16)
    fp = lambda a: jnp.asarray(a, jnp.float32)
    return {
        "c1": bf(c1), "l1": bf(l1), "b1": fp(b1r),
        "c2": bf(c2), "l2": bf(l2), "b2": fp(b2r),
        "c3": bf(c3), "l3": bf(l3), "b3": fp(fb1[:, None]),
        "w2": bf(fw2), "fb2": fp(fb2[:, None]),
        "w3": bf(w3p), "fb3": fp(fb3p),
    }


# ------------------------------ forward wrapper ------------------------------
def lenet5_forward(consts, x, num_classes=10):
    B = x.shape[0]
    # Layout plumbing only (24 KB input): NCHW -> (C*H, B*128), W zero-padded to 128.
    xt = jnp.transpose(x, (1, 2, 0, 3))                       # (C, H, B, W)
    xt = jnp.pad(xt, ((0, 0), (0, 0), (0, 0), (0, NL - W0)))  # (C, H, B, 128)
    x0 = xt.reshape(R0, B * NL).astype(jnp.bfloat16)

    def const_spec(a):
        nd = a.ndim
        return pl.BlockSpec(a.shape, lambda b, _nd=nd: (0,) * _nd)

    in_specs = [pl.BlockSpec((R0, NL), lambda b: (0, b))]
    in_specs += [const_spec(consts[k]) for k in _CONST_KEYS]

    out = pl.pallas_call(
        _lenet_kernel,
        out_shape=jax.ShapeDtypeStruct((NCP, B * NL), jnp.float32),
        grid=(B,),
        in_specs=in_specs,
        out_specs=pl.BlockSpec((NCP, NL), lambda b: (0, b)),
        compiler_params=pltpu.CompilerParams(
            dimension_semantics=("parallel",)),   # v7x: one image per TensorCore
    )(x0, *[consts[k] for k in _CONST_KEYS])

    # Valid logits live in lane 0 of each image's 128-lane block.
    return out[:num_classes, ::NL].T


# --------------------------- pure-JAX f32 reference --------------------------
def reference_forward(params, x):
    y = lax.conv_general_dilated(x, params["conv1_w"], (1, 1), "VALID",
                                 dimension_numbers=("NCHW", "OIHW", "NCHW"))
    y = jnp.maximum(y + params["conv1_b"][None, :, None, None], 0.0)
    b = y.shape[0]
    y = y.reshape(b, O1, HP1, 2, HP1, 2).mean(axis=(3, 5))
    y = lax.conv_general_dilated(y, params["conv2_w"], (1, 1), "VALID",
                                 dimension_numbers=("NCHW", "OIHW", "NCHW"))
    y = jnp.maximum(y + params["conv2_b"][None, :, None, None], 0.0)
    y = y.reshape(b, O2, HP2, 2, HP2, 2).mean(axis=(3, 5))
    y = y.reshape(b, -1)
    y = jnp.maximum(y @ params["fc1_w"].T + params["fc1_b"], 0.0)
    y = jnp.maximum(y @ params["fc2_w"].T + params["fc2_b"], 0.0)
    return y @ params["fc3_w"].T + params["fc3_b"]


if __name__ == "__main__":
    key = jax.random.PRNGKey(0)
    kp, kx = jax.random.split(key)
    params = init_params(kp, num_classes=10)
    # LeNet-5 geometry requires 3x32x32 input so the flatten is 16*5*5 = 400.
    x = jax.random.normal(kx, (2, C0, H0, W0), dtype=jnp.float32)

    consts = prepare_constants(params, num_classes=10)
    fwd = jax.jit(functools.partial(lenet5_forward, num_classes=10))
    out = fwd(consts, x)
    jax.block_until_ready(out)
    assert out.shape == (2, 10), out.shape
    assert out.dtype == jnp.float32

    # bf16-tolerance self-check against the f32 reference of the PyTorch module.
    ref = reference_forward(params, x)
    err = float(jnp.max(jnp.abs(out - ref)))
    scale = float(jnp.max(jnp.abs(ref)))
    assert err <= 5e-2 * scale + 1e-5, (err, scale)
    print("KERNEL_OK")
</pallas_src>

<mosaic_0001>
module attributes {stable_mosaic.version = 11 : i64} {
  func.func @_lenet_kernel(%arg0: i32, %arg1: memref<96x128xbf16, #tpu.memory_space<vmem>>, %arg2: memref<128x640xbf16, #tpu.memory_space<vmem>>, %arg3: memref<5x168x96xbf16, #tpu.memory_space<vmem>>, %arg4: memref<168x1xf32, #tpu.memory_space<vmem>>, %arg5: memref<128x640xbf16, #tpu.memory_space<vmem>>, %arg6: memref<5x160x168xbf16, #tpu.memory_space<vmem>>, %arg7: memref<160x1xf32, #tpu.memory_space<vmem>>, %arg8: memref<128x640xbf16, #tpu.memory_space<vmem>>, %arg9: memref<5x120x160xbf16, #tpu.memory_space<vmem>>, %arg10: memref<120x1xf32, #tpu.memory_space<vmem>>, %arg11: memref<84x120xbf16, #tpu.memory_space<vmem>>, %arg12: memref<84x1xf32, #tpu.memory_space<vmem>>, %arg13: memref<16x84xbf16, #tpu.memory_space<vmem>>, %arg14: memref<16x1xf32, #tpu.memory_space<vmem>>, %arg15: memref<16x128xf32, #tpu.memory_space<vmem>>) attributes {dimension_semantics = [#tpu.dimension_semantics<parallel>], iteration_bounds = array<i64: 2>, scalar_prefetch = 0 : i64, scratch_operands = 0 : i64, tpu.core_type = #tpu.core_type<tc>, window_params = [{transform_indices = @transform_0, window_bounds = array<i64: 96, 128>}, {pipeline_mode = #tpu.pipeline_mode<synchronous>, transform_indices = @transform_1, window_bounds = array<i64: 128, 640>}, {pipeline_mode = #tpu.pipeline_mode<synchronous>, transform_indices = @transform_2, window_bounds = array<i64: 5, 168, 96>}, {pipeline_mode = #tpu.pipeline_mode<synchronous>, transform_indices = @transform_3, window_bounds = array<i64: 168, 1>}, {pipeline_mode = #tpu.pipeline_mode<synchronous>, transform_indices = @transform_4, window_bounds = array<i64: 128, 640>}, {pipeline_mode = #tpu.pipeline_mode<synchronous>, transform_indices = @transform_5, window_bounds = array<i64: 5, 160, 168>}, {pipeline_mode = #tpu.pipeline_mode<synchronous>, transform_indices = @transform_6, window_bounds = array<i64: 160, 1>}, {pipeline_mode = #tpu.pipeline_mode<synchronous>, transform_indices = @transform_7, window_bounds = array<i64: 128, 640>}, {pipeline_mode = #tpu.pipeline_mode<synchronous>, transform_indices = @transform_8, window_bounds = array<i64: 5, 120, 160>}, {pipeline_mode = #tpu.pipeline_mode<synchronous>, transform_indices = @transform_9, window_bounds = array<i64: 120, 1>}, {pipeline_mode = #tpu.pipeline_mode<synchronous>, transform_indices = @transform_10, window_bounds = array<i64: 84, 120>}, {pipeline_mode = #tpu.pipeline_mode<synchronous>, transform_indices = @transform_11, window_bounds = array<i64: 84, 1>}, {pipeline_mode = #tpu.pipeline_mode<synchronous>, transform_indices = @transform_12, window_bounds = array<i64: 16, 84>}, {pipeline_mode = #tpu.pipeline_mode<synchronous>, transform_indices = @transform_13, window_bounds = array<i64: 16, 1>}, {transform_indices = @transform_14, window_bounds = array<i64: 16, 128>}]} {
    %c0 = arith.constant 0 : index
    %c0_0 = arith.constant 0 : index
    %0 = vector.load %arg1[%c0, %c0_0] : memref<96x128xbf16, #tpu.memory_space<vmem>>, vector<96x128xbf16>
    %c0_1 = arith.constant 0 : index
    %c0_2 = arith.constant 0 : index
    %1 = vector.load %arg2[%c0_1, %c0_2] : memref<128x640xbf16, #tpu.memory_space<vmem>>, vector<128x640xbf16>
    %cst = arith.constant dense<0.000000e+00> : vector<96x640xf32>
    %2 = tpu.matmul %0, %1, %cst {dimension_numbers = #tpu.dot_dimension_numbers<[1], [0], [0], [1], [0, 0, 1, 1], [], []>} : vector<96x128xbf16>, vector<128x640xbf16>, vector<96x640xf32> -> vector<96x640xf32>
    %3 = arith.truncf %2 : vector<96x640xf32> to vector<96x640xbf16>
    %cst_3 = arith.constant 0.000000e+00 : f32
    %4 = vector.broadcast %cst_3 : f32 to vector<168x128xf32>
    %c0_4 = arith.constant 0 : index
    %c0_5 = arith.constant 0 : index
    %c0_6 = arith.constant 0 : index
    %5 = vector.load %arg3[%c0_4, %c0_5, %c0_6] : memref<5x168x96xbf16, #tpu.memory_space<vmem>>, vector<1x168x96xbf16>
    %6 = vector.shape_cast %5 : vector<1x168x96xbf16> to vector<168x96xbf16>
    %7 = vector.extract_strided_slice %3 {offsets = [0, 0], sizes = [96, 128], strides = [1, 1]} : vector<96x640xbf16> to vector<96x128xbf16>
    %cst_7 = arith.constant dense<0.000000e+00> : vector<168x128xf32>
    %8 = tpu.matmul %6, %7, %cst_7 {dimension_numbers = #tpu.dot_dimension_numbers<[1], [0], [0], [1], [0, 0, 1, 1], [], []>} : vector<168x96xbf16>, vector<96x128xbf16>, vector<168x128xf32> -> vector<168x128xf32>
    %9 = arith.addf %4, %8 : vector<168x128xf32>
    %c1 = arith.constant 1 : index
    %c0_8 = arith.constant 0 : index
    %c0_9 = arith.constant 0 : index
    %10 = vector.load %arg3[%c1, %c0_8, %c0_9] : memref<5x168x96xbf16, #tpu.memory_space<vmem>>, vector<1x168x96xbf16>
    %11 = vector.shape_cast %10 : vector<1x168x96xbf16> to vector<168x96xbf16>
    %12 = vector.extract_strided_slice %3 {offsets = [0, 128], sizes = [96, 128], strides = [1, 1]} : vector<96x640xbf16> to vector<96x128xbf16>
    %cst_10 = arith.constant dense<0.000000e+00> : vector<168x128xf32>
    %13 = tpu.matmul %11, %12, %cst_10 {dimension_numbers = #tpu.dot_dimension_numbers<[1], [0], [0], [1], [0, 0, 1, 1], [], []>} : vector<168x96xbf16>, vector<96x128xbf16>, vector<168x128xf32> -> vector<168x128xf32>
    %14 = arith.addf %9, %13 : vector<168x128xf32>
    %c2 = arith.constant 2 : index
    %c0_11 = arith.constant 0 : index
    %c0_12 = arith.constant 0 : index
    %15 = vector.load %arg3[%c2, %c0_11, %c0_12] : memref<5x168x96xbf16, #tpu.memory_space<vmem>>, vector<1x168x96xbf16>
    %16 = vector.shape_cast %15 : vector<1x168x96xbf16> to vector<168x96xbf16>
    %17 = vector.extract_strided_slice %3 {offsets = [0, 256], sizes = [96, 128], strides = [1, 1]} : vector<96x640xbf16> to vector<96x128xbf16>
    %cst_13 = arith.constant dense<0.000000e+00> : vector<168x128xf32>
    %18 = tpu.matmul %16, %17, %cst_13 {dimension_numbers = #tpu.dot_dimension_numbers<[1], [0], [0], [1], [0, 0, 1, 1], [], []>} : vector<168x96xbf16>, vector<96x128xbf16>, vector<168x128xf32> -> vector<168x128xf32>
    %19 = arith.addf %14, %18 : vector<168x128xf32>
    %c3 = arith.constant 3 : index
    %c0_14 = arith.constant 0 : index
    %c0_15 = arith.constant 0 : index
    %20 = vector.load %arg3[%c3, %c0_14, %c0_15] : memref<5x168x96xbf16, #tpu.memory_space<vmem>>, vector<1x168x96xbf16>
    %21 = vector.shape_cast %20 : vector<1x168x96xbf16> to vector<168x96xbf16>
    %22 = vector.extract_strided_slice %3 {offsets = [0, 384], sizes = [96, 128], strides = [1, 1]} : vector<96x640xbf16> to vector<96x128xbf16>
    %cst_16 = arith.constant dense<0.000000e+00> : vector<168x128xf32>
    %23 = tpu.matmul %21, %22, %cst_16 {dimension_numbers = #tpu.dot_dimension_numbers<[1], [0], [0], [1], [0, 0, 1, 1], [], []>} : vector<168x96xbf16>, vector<96x128xbf16>, vector<168x128xf32> -> vector<168x128xf32>
    %24 = arith.addf %19, %23 : vector<168x128xf32>
    %c4 = arith.constant 4 : index
    %c0_17 = arith.constant 0 : index
    %c0_18 = arith.constant 0 : index
    %25 = vector.load %arg3[%c4, %c0_17, %c0_18] : memref<5x168x96xbf16, #tpu.memory_space<vmem>>, vector<1x168x96xbf16>
    %26 = vector.shape_cast %25 : vector<1x168x96xbf16> to vector<168x96xbf16>
    %27 = vector.extract_strided_slice %3 {offsets = [0, 512], sizes = [96, 128], strides = [1, 1]} : vector<96x640xbf16> to vector<96x128xbf16>
    %cst_19 = arith.constant dense<0.000000e+00> : vector<168x128xf32>
    %28 = tpu.matmul %26, %27, %cst_19 {dimension_numbers = #tpu.dot_dimension_numbers<[1], [0], [0], [1], [0, 0, 1, 1], [], []>} : vector<168x96xbf16>, vector<96x128xbf16>, vector<168x128xf32> -> vector<168x128xf32>
    %29 = arith.addf %24, %28 : vector<168x128xf32>
    %c0_20 = arith.constant 0 : index
    %c0_21 = arith.constant 0 : index
    %30 = vector.load %arg4[%c0_20, %c0_21] : memref<168x1xf32, #tpu.memory_space<vmem>>, vector<168x1xf32>
    %31 = vector.broadcast %30 : vector<168x1xf32> to vector<168x128xf32>
    %32 = arith.addf %29, %31 : vector<168x128xf32>
    %cst_22 = arith.constant 0.000000e+00 : f32
    %33 = vector.broadcast %cst_22 : f32 to vector<168x128xf32>
    %34 = arith.maximumf %32, %33 : vector<168x128xf32>
    %35 = arith.truncf %34 : vector<168x128xf32> to vector<168x128xbf16>
    %c0_23 = arith.constant 0 : index
    %c0_24 = arith.constant 0 : index
    %36 = vector.load %arg5[%c0_23, %c0_24] : memref<128x640xbf16, #tpu.memory_space<vmem>>, vector<128x640xbf16>
    %cst_25 = arith.constant dense<0.000000e+00> : vector<168x640xf32>
    %37 = tpu.matmul %35, %36, %cst_25 {dimension_numbers = #tpu.dot_dimension_numbers<[1], [0], [0], [1], [0, 0, 1, 1], [], []>} : vector<168x128xbf16>, vector<128x640xbf16>, vector<168x640xf32> -> vector<168x640xf32>
    %38 = arith.truncf %37 : vector<168x640xf32> to vector<168x640xbf16>
    %cst_26 = arith.constant 0.000000e+00 : f32
    %39 = vector.broadcast %cst_26 : f32 to vector<160x128xf32>
    %c0_27 = arith.constant 0 : index
    %c0_28 = arith.constant 0 : index
    %c0_29 = arith.constant 0 : index
    %40 = vector.load %arg6[%c0_27, %c0_28, %c0_29] : memref<5x160x168xbf16, #tpu.memory_space<vmem>>, vector<1x160x168xbf16>
    %41 = vector.shape_cast %40 : vector<1x160x168xbf16> to vector<160x168xbf16>
    %42 = vector.extract_strided_slice %38 {offsets = [0, 0], sizes = [168, 128], strides = [1, 1]} : vector<168x640xbf16> to vector<168x128xbf16>
    %cst_30 = arith.constant dense<0.000000e+00> : vector<160x128xf32>
    %43 = tpu.matmul %41, %42, %cst_30 {dimension_numbers = #tpu.dot_dimension_numbers<[1], [0], [0], [1], [0, 0, 1, 1], [], []>} : vector<160x168xbf16>, vector<168x128xbf16>, vector<160x128xf32> -> vector<160x128xf32>
    %44 = arith.addf %39, %43 : vector<160x128xf32>
    %c1_31 = arith.constant 1 : index
    %c0_32 = arith.constant 0 : index
    %c0_33 = arith.constant 0 : index
    %45 = vector.load %arg6[%c1_31, %c0_32, %c0_33] : memref<5x160x168xbf16, #tpu.memory_space<vmem>>, vector<1x160x168xbf16>
    %46 = vector.shape_cast %45 : vector<1x160x168xbf16> to vector<160x168xbf16>
    %47 = vector.extract_strided_slice %38 {offsets = [0, 128], sizes = [168, 128], strides = [1, 1]} : vector<168x640xbf16> to vector<168x128xbf16>
    %cst_34 = arith.constant dense<0.000000e+00> : vector<160x128xf32>
    %48 = tpu.matmul %46, %47, %cst_34 {dimension_numbers = #tpu.dot_dimension_numbers<[1], [0], [0], [1], [0, 0, 1, 1], [], []>} : vector<160x168xbf16>, vector<168x128xbf16>, vector<160x128xf32> -> vector<160x128xf32>
    %49 = arith.addf %44, %48 : vector<160x128xf32>
    %c2_35 = arith.constant 2 : index
    %c0_36 = arith.constant 0 : index
    %c0_37 = arith.constant 0 : index
    %50 = vector.load %arg6[%c2_35, %c0_36, %c0_37] : memref<5x160x168xbf16, #tpu.memory_space<vmem>>, vector<1x160x168xbf16>
    %51 = vector.shape_cast %50 : vector<1x160x168xbf16> to vector<160x168xbf16>
    %52 = vector.extract_strided_slice %38 {offsets = [0, 256], sizes = [168, 128], strides = [1, 1]} : vector<168x640xbf16> to vector<168x128xbf16>
    %cst_38 = arith.constant dense<0.000000e+00> : vector<160x128xf32>
    %53 = tpu.matmul %51, %52, %cst_38 {dimension_numbers = #tpu.dot_dimension_numbers<[1], [0], [0], [1], [0, 0, 1, 1], [], []>} : vector<160x168xbf16>, vector<168x128xbf16>, vector<160x128xf32> -> vector<160x128xf32>
    %54 = arith.addf %49, %53 : vector<160x128xf32>
    %c3_39 = arith.constant 3 : index
    %c0_40 = arith.constant 0 : index
    %c0_41 = arith.constant 0 : index
    %55 = vector.load %arg6[%c3_39, %c0_40, %c0_41] : memref<5x160x168xbf16, #tpu.memory_space<vmem>>, vector<1x160x168xbf16>
    %56 = vector.shape_cast %55 : vector<1x160x168xbf16> to vector<160x168xbf16>
    %57 = vector.extract_strided_slice %38 {offsets = [0, 384], sizes = [168, 128], strides = [1, 1]} : vector<168x640xbf16> to vector<168x128xbf16>
    %cst_42 = arith.constant dense<0.000000e+00> : vector<160x128xf32>
    %58 = tpu.matmul %56, %57, %cst_42 {dimension_numbers = #tpu.dot_dimension_numbers<[1], [0], [0], [1], [0, 0, 1, 1], [], []>} : vector<160x168xbf16>, vector<168x128xbf16>, vector<160x128xf32> -> vector<160x128xf32>
    %59 = arith.addf %54, %58 : vector<160x128xf32>
    %c4_43 = arith.constant 4 : index
    %c0_44 = arith.constant 0 : index
    %c0_45 = arith.constant 0 : index
    %60 = vector.load %arg6[%c4_43, %c0_44, %c0_45] : memref<5x160x168xbf16, #tpu.memory_space<vmem>>, vector<1x160x168xbf16>
    %61 = vector.shape_cast %60 : vector<1x160x168xbf16> to vector<160x168xbf16>
    %62 = vector.extract_strided_slice %38 {offsets = [0, 512], sizes = [168, 128], strides = [1, 1]} : vector<168x640xbf16> to vector<168x128xbf16>
    %cst_46 = arith.constant dense<0.000000e+00> : vector<160x128xf32>
    %63 = tpu.matmul %61, %62, %cst_46 {dimension_numbers = #tpu.dot_dimension_numbers<[1], [0], [0], [1], [0, 0, 1, 1], [], []>} : vector<160x168xbf16>, vector<168x128xbf16>, vector<160x128xf32> -> vector<160x128xf32>
    %64 = arith.addf %59, %63 : vector<160x128xf32>
    %c0_47 = arith.constant 0 : index
    %c0_48 = arith.constant 0 : index
    %65 = vector.load %arg7[%c0_47, %c0_48] : memref<160x1xf32, #tpu.memory_space<vmem>>, vector<160x1xf32>
    %66 = vector.broadcast %65 : vector<160x1xf32> to vector<160x128xf32>
    %67 = arith.addf %64, %66 : vector<160x128xf32>
    %cst_49 = arith.constant 0.000000e+00 : f32
    %68 = vector.broadcast %cst_49 : f32 to vector<160x128xf32>
    %69 = arith.maximumf %67, %68 : vector<160x128xf32>
    %70 = arith.truncf %69 : vector<160x128xf32> to vector<160x128xbf16>
    %c0_50 = arith.constant 0 : index
    %c0_51 = arith.constant 0 : index
    %71 = vector.load %arg8[%c0_50, %c0_51] : memref<128x640xbf16, #tpu.memory_space<vmem>>, vector<128x640xbf16>
    %cst_52 = arith.constant dense<0.000000e+00> : vector<160x640xf32>
    %72 = tpu.matmul %70, %71, %cst_52 {dimension_numbers = #tpu.dot_dimension_numbers<[1], [0], [0], [1], [0, 0, 1, 1], [], []>} : vector<160x128xbf16>, vector<128x640xbf16>, vector<160x640xf32> -> vector<160x640xf32>
    %73 = arith.truncf %72 : vector<160x640xf32> to vector<160x640xbf16>
    %cst_53 = arith.constant 0.000000e+00 : f32
    %74 = vector.broadcast %cst_53 : f32 to vector<120x128xf32>
    %c0_54 = arith.constant 0 : index
    %c0_55 = arith.constant 0 : index
    %c0_56 = arith.constant 0 : index
    %75 = vector.load %arg9[%c0_54, %c0_55, %c0_56] : memref<5x120x160xbf16, #tpu.memory_space<vmem>>, vector<1x120x160xbf16>
    %76 = vector.shape_cast %75 : vector<1x120x160xbf16> to vector<120x160xbf16>
    %77 = vector.extract_strided_slice %73 {offsets = [0, 0], sizes = [160, 128], strides = [1, 1]} : vector<160x640xbf16> to vector<160x128xbf16>
    %cst_57 = arith.constant dense<0.000000e+00> : vector<120x128xf32>
    %78 = tpu.matmul %76, %77, %cst_57 {dimension_numbers = #tpu.dot_dimension_numbers<[1], [0], [0], [1], [0, 0, 1, 1], [], []>} : vector<120x160xbf16>, vector<160x128xbf16>, vector<120x128xf32> -> vector<120x128xf32>
    %79 = arith.addf %74, %78 : vector<120x128xf32>
    %c1_58 = arith.constant 1 : index
    %c0_59 = arith.constant 0 : index
    %c0_60 = arith.constant 0 : index
    %80 = vector.load %arg9[%c1_58, %c0_59, %c0_60] : memref<5x120x160xbf16, #tpu.memory_space<vmem>>, vector<1x120x160xbf16>
    %81 = vector.shape_cast %80 : vector<1x120x160xbf16> to vector<120x160xbf16>
    %82 = vector.extract_strided_slice %73 {offsets = [0, 128], sizes = [160, 128], strides = [1, 1]} : vector<160x640xbf16> to vector<160x128xbf16>
    %cst_61 = arith.constant dense<0.000000e+00> : vector<120x128xf32>
    %83 = tpu.matmul %81, %82, %cst_61 {dimension_numbers = #tpu.dot_dimension_numbers<[1], [0], [0], [1], [0, 0, 1, 1], [], []>} : vector<120x160xbf16>, vector<160x128xbf16>, vector<120x128xf32> -> vector<120x128xf32>
    %84 = arith.addf %79, %83 : vector<120x128xf32>
    %c2_62 = arith.constant 2 : index
    %c0_63 = arith.constant 0 : index
    %c0_64 = arith.constant 0 : index
    %85 = vector.load %arg9[%c2_62, %c0_63, %c0_64] : memref<5x120x160xbf16, #tpu.memory_space<vmem>>, vector<1x120x160xbf16>
    %86 = vector.shape_cast %85 : vector<1x120x160xbf16> to vector<120x160xbf16>
    %87 = vector.extract_strided_slice %73 {offsets = [0, 256], sizes = [160, 128], strides = [1, 1]} : vector<160x640xbf16> to vector<160x128xbf16>
    %cst_65 = arith.constant dense<0.000000e+00> : vector<120x128xf32>
    %88 = tpu.matmul %86, %87, %cst_65 {dimension_numbers = #tpu.dot_dimension_numbers<[1], [0], [0], [1], [0, 0, 1, 1], [], []>} : vector<120x160xbf16>, vector<160x128xbf16>, vector<120x128xf32> -> vector<120x128xf32>
    %89 = arith.addf %84, %88 : vector<120x128xf32>
    %c3_66 = arith.constant 3 : index
    %c0_67 = arith.constant 0 : index
    %c0_68 = arith.constant 0 : index
    %90 = vector.load %arg9[%c3_66, %c0_67, %c0_68] : memref<5x120x160xbf16, #tpu.memory_space<vmem>>, vector<1x120x160xbf16>
    %91 = vector.shape_cast %90 : vector<1x120x160xbf16> to vector<120x160xbf16>
    %92 = vector.extract_strided_slice %73 {offsets = [0, 384], sizes = [160, 128], strides = [1, 1]} : vector<160x640xbf16> to vector<160x128xbf16>
    %cst_69 = arith.constant dense<0.000000e+00> : vector<120x128xf32>
    %93 = tpu.matmul %91, %92, %cst_69 {dimension_numbers = #tpu.dot_dimension_numbers<[1], [0], [0], [1], [0, 0, 1, 1], [], []>} : vector<120x160xbf16>, vector<160x128xbf16>, vector<120x128xf32> -> vector<120x128xf32>
    %94 = arith.addf %89, %93 : vector<120x128xf32>
    %c4_70 = arith.constant 4 : index
    %c0_71 = arith.constant 0 : index
    %c0_72 = arith.constant 0 : index
    %95 = vector.load %arg9[%c4_70, %c0_71, %c0_72] : memref<5x120x160xbf16, #tpu.memory_space<vmem>>, vector<1x120x160xbf16>
    %96 = vector.shape_cast %95 : vector<1x120x160xbf16> to vector<120x160xbf16>
    %97 = vector.extract_strided_slice %73 {offsets = [0, 512], sizes = [160, 128], strides = [1, 1]} : vector<160x640xbf16> to vector<160x128xbf16>
    %cst_73 = arith.constant dense<0.000000e+00> : vector<120x128xf32>
    %98 = tpu.matmul %96, %97, %cst_73 {dimension_numbers = #tpu.dot_dimension_numbers<[1], [0], [0], [1], [0, 0, 1, 1], [], []>} : vector<120x160xbf16>, vector<160x128xbf16>, vector<120x128xf32> -> vector<120x128xf32>
    %99 = arith.addf %94, %98 : vector<120x128xf32>
    %c0_74 = arith.constant 0 : index
    %c0_75 = arith.constant 0 : index
    %100 = vector.load %arg10[%c0_74, %c0_75] : memref<120x1xf32, #tpu.memory_space<vmem>>, vector<120x1xf32>
    %101 = vector.broadcast %100 : vector<120x1xf32> to vector<120x128xf32>
    %102 = arith.addf %99, %101 : vector<120x128xf32>
    %cst_76 = arith.constant 0.000000e+00 : f32
    %103 = vector.broadcast %cst_76 : f32 to vector<120x128xf32>
    %104 = arith.maximumf %102, %103 : vector<120x128xf32>
    %c0_77 = arith.constant 0 : index
    %c0_78 = arith.constant 0 : index
    %105 = vector.load %arg11[%c0_77, %c0_78] : memref<84x120xbf16, #tpu.memory_space<vmem>>, vector<84x120xbf16>
    %106 = arith.truncf %104 : vector<120x128xf32> to vector<120x128xbf16>
    %cst_79 = arith.constant dense<0.000000e+00> : vector<84x128xf32>
    %107 = tpu.matmul %105, %106, %cst_79 {dimension_numbers = #tpu.dot_dimension_numbers<[1], [0], [0], [1], [0, 0, 1, 1], [], []>} : vector<84x120xbf16>, vector<120x128xbf16>, vector<84x128xf32> -> vector<84x128xf32>
    %c0_80 = arith.constant 0 : index
    %c0_81 = arith.constant 0 : index
    %108 = vector.load %arg12[%c0_80, %c0_81] : memref<84x1xf32, #tpu.memory_space<vmem>>, vector<84x1xf32>
    %109 = vector.broadcast %108 : vector<84x1xf32> to vector<84x128xf32>
    %110 = arith.addf %107, %109 : vector<84x128xf32>
    %cst_82 = arith.constant 0.000000e+00 : f32
    %111 = vector.broadcast %cst_82 : f32 to vector<84x128xf32>
    %112 = arith.maximumf %110, %111 : vector<84x128xf32>
    %c0_83 = arith.constant 0 : index
    %c0_84 = arith.constant 0 : index
    %113 = vector.load %arg13[%c0_83, %c0_84] : memref<16x84xbf16, #tpu.memory_space<vmem>>, vector<16x84xbf16>
    %114 = arith.truncf %112 : vector<84x128xf32> to vector<84x128xbf16>
    %cst_85 = arith.constant dense<0.000000e+00> : vector<16x128xf32>
    %115 = tpu.matmul %113, %114, %cst_85 {dimension_numbers = #tpu.dot_dimension_numbers<[1], [0], [0], [1], [0, 0, 1, 1], [], []>} : vector<16x84xbf16>, vector<84x128xbf16>, vector<16x128xf32> -> vector<16x128xf32>
    %c0_86 = arith.constant 0 : index
    %c0_87 = arith.constant 0 : index
    %116 = vector.load %arg14[%c0_86, %c0_87] : memref<16x1xf32, #tpu.memory_space<vmem>>, vector<16x1xf32>
    %117 = vector.broadcast %116 : vector<16x1xf32> to vector<16x128xf32>
    %118 = arith.addf %115, %117 : vector<16x128xf32>
    %c0_88 = arith.constant 0 : index
    %c0_89 = arith.constant 0 : index
    %119 = vector.load %arg15[%c0_88, %c0_89] : memref<16x128xf32, #tpu.memory_space<vmem>>, vector<16x128xf32>
    tpu.vector_store %arg15[%c0_88, %c0_89], %118 {strides = array<i32>} : memref<16x128xf32, #tpu.memory_space<vmem>>, vector<16x128xf32>,
    return
  }
  func.func @transform_0(%arg0: i32) -> (i32, i32) {
    %c0_i32 = arith.constant 0 : i32
    %c0_i32_0 = arith.constant 0 : i32
    return %c0_i32, %arg0 : i32, i32
  }
  func.func @transform_1(%arg0: i32) -> (i32, i32) {
    %c0_i32 = arith.constant 0 : i32
    %c0_i32_0 = arith.constant 0 : i32
    %c0_i32_1 = arith.constant 0 : i32
    return %c0_i32, %c0_i32_0 : i32, i32
  }
  func.func @transform_2(%arg0: i32) -> (i32, i32, i32) {
    %c0_i32 = arith.constant 0 : i32
    %c0_i32_0 = arith.constant 0 : i32
    %c0_i32_1 = arith.constant 0 : i32
    %c0_i32_2 = arith.constant 0 : i32
    return %c0_i32, %c0_i32_0, %c0_i32_1 : i32, i32, i32
  }
  func.func @transform_3(%arg0: i32) -> (i32, i32) {
    %c0_i32 = arith.constant 0 : i32
    %c0_i32_0 = arith.constant 0 : i32
    %c0_i32_1 = arith.constant 0 : i32
    return %c0_i32, %c0_i32_0 : i32, i32
  }
  func.func @transform_4(%arg0: i32) -> (i32, i32) {
    %c0_i32 = arith.constant 0 : i32
    %c0_i32_0 = arith.constant 0 : i32
    %c0_i32_1 = arith.constant 0 : i32
    return %c0_i32, %c0_i32_0 : i32, i32
  }
  func.func @transform_5(%arg0: i32) -> (i32, i32, i32) {
    %c0_i32 = arith.constant 0 : i32
    %c0_i32_0 = arith.constant 0 : i32
    %c0_i32_1 = arith.constant 0 : i32
    %c0_i32_2 = arith.constant 0 : i32
    return %c0_i32, %c0_i32_0, %c0_i32_1 : i32, i32, i32
  }
  func.func @transform_6(%arg0: i32) -> (i32, i32) {
    %c0_i32 = arith.constant 0 : i32
    %c0_i32_0 = arith.constant 0 : i32
    %c0_i32_1 = arith.constant 0 : i32
    return %c0_i32, %c0_i32_0 : i32, i32
  }
  func.func @transform_7(%arg0: i32) -> (i32, i32) {
    %c0_i32 = arith.constant 0 : i32
    %c0_i32_0 = arith.constant 0 : i32
    %c0_i32_1 = arith.constant 0 : i32
    return %c0_i32, %c0_i32_0 : i32, i32
  }
  func.func @transform_8(%arg0: i32) -> (i32, i32, i32) {
    %c0_i32 = arith.constant 0 : i32
    %c0_i32_0 = arith.constant 0 : i32
    %c0_i32_1 = arith.constant 0 : i32
    %c0_i32_2 = arith.constant 0 : i32
    return %c0_i32, %c0_i32_0, %c0_i32_1 : i32, i32, i32
  }
  func.func @transform_9(%arg0: i32) -> (i32, i32) {
    %c0_i32 = arith.constant 0 : i32
    %c0_i32_0 = arith.constant 0 : i32
    %c0_i32_1 = arith.constant 0 : i32
    return %c0_i32, %c0_i32_0 : i32, i32
  }
  func.func @transform_10(%arg0: i32) -> (i32, i32) {
    %c0_i32 = arith.constant 0 : i32
    %c0_i32_0 = arith.constant 0 : i32
    %c0_i32_1 = arith.constant 0 : i32
    return %c0_i32, %c0_i32_0 : i32, i32
  }
  func.func @transform_11(%arg0: i32) -> (i32, i32) {
    %c0_i32 = arith.constant 0 : i32
    %c0_i32_0 = arith.constant 0 : i32
    %c0_i32_1 = arith.constant 0 : i32
    return %c0_i32, %c0_i32_0 : i32, i32
  }
  func.func @transform_12(%arg0: i32) -> (i32, i32) {
    %c0_i32 = arith.constant 0 : i32
    %c0_i32_0 = arith.constant 0 : i32
    %c0_i32_1 = arith.constant 0 : i32
    return %c0_i32, %c0_i32_0 : i32, i32
  }
  func.func @transform_13(%arg0: i32) -> (i32, i32) {
    %c0_i32 = arith.constant 0 : i32
    %c0_i32_0 = arith.constant 0 : i32
    %c0_i32_1 = arith.constant 0 : i32
    return %c0_i32, %c0_i32_0 : i32, i32
  }
  func.func @transform_14(%arg0: i32) -> (i32, i32) {
    %c0_i32 = arith.constant 0 : i32
    %c0_i32_0 = arith.constant 0 : i32
    return %c0_i32, %arg0 : i32, i32
  }
}

</mosaic_0001>

<bundles_post_ra>
// kernel: lenet5_forward.1
= control target key start
LH: loop header
LB: loop body
LE: loop exit
PB: predicated region body
PF: predicated region fallthrough
CT: control target
= control target key end

     0   :  { %s13036_s0 = inlined_call_operand.vmem [shape: bf16[96,256], index: 0, kind: input, shape index: {}]   ;;  %s13037_s1 = inlined_call_operand.vmem [shape: bf16[128,640], index: 1, kind: input, shape index: {}]   ;;  %s13038_s2 = inlined_call_operand.vmem [shape: bf16[5,168,96], index: 2, kind: input, shape index: {}]   ;;  %s13039_s3 = inlined_call_operand.vmem [shape: f32[168,1], index: 3, kind: input, shape index: {}]   ;;  %s13040_s4 = inlined_call_operand.vmem [shape: bf16[128,640], index: 4, kind: input, shape index: {}]   ;;  %s13041_s5 = inlined_call_operand.vmem [shape: bf16[5,160,168], index: 5, kind: input, shape index: {}]   ;;  %s13042_s6 = inlined_call_operand.vmem [shape: f32[160,1], index: 6, kind: input, shape index: {}]   ;;  %s13043_s7 = inlined_call_operand.hbm [shape: bf16[128,640], index: 7, kind: input, shape index: {}]   ;;  %s13044_s8 = inlined_call_operand.vmem [shape: bf16[5,120,160], index: 8, kind: input, shape index: {}]   ;;  %s13045_s9 = inlined_call_operand.vmem [shape: f32[120,1], index: 9, kind: input, shape index: {}]   ;;  %s13046_s10 = inlined_call_operand.vmem [shape: bf16[84,120], index: 10, kind: input, shape index: {}]   ;;  %s13047_s11 = inlined_call_operand.vmem [shape: f32[84,1], index: 11, kind: input, shape index: {}]   ;;  %s13048_s12 = inlined_call_operand.vmem [shape: bf16[16,84], index: 12, kind: input, shape index: {}]   ;;  %s13049_s13 = inlined_call_operand.vmem [shape: f32[16,1], index: 13, kind: input, shape index: {}]   ;;  %s13050_s14 = inlined_call_operand.vmem [shape: f32[16,256], index: 14, kind: output, shape index: {}]  }
   0x1   :  { %13057 = sst [smem:[#allocation12_spill]] %s13043_s7 }
   0x2   :  { %13058 = sst [smem:[#allocation13_spill]] %s13050_s14 }
   0x3   :  { %19 = vsyncpa [#allocation4], 0  ;;  %s9548_s29 = smov 0   ;;  %s9550_s30 = smov 0  }
   0x4   :  { %s9552_s15 = smov 0  }
   0x5 LB: > { %s9564_s16 = sadd.s32 4294967295, %s9467_s15   ;;  %s9567_s17 = sadd.s32 1, %s9467_s15   ;;  %s9467_s15 = sphi %s9552_s15, %s13078_s15   ;;  %s9463_s30 = sphi %s9550_s30, %s13081_s30   ;;  %s9459_s29 = sphi %s9548_s29, %s13080_s29  }
   0x6   : > { %13059 = sst [smem:[#allocation7_spill]] %s9567_s17  ;;  %s29_s18 = ssub.s32 %s9467_s15, %s9567_s17 }
   0x7   : > { %s32_s19 = sadd.s32 1, %s9463_s30  ;;  %p30_p0 = scmp.eq.s32.totalorder %s29_s18, 0 }
   0x8   : > { %p39_p1 = scmp.ne.s32.totalorder %s9463_s30, %s9459_s29  ;;  %p40_p2 = scmp.eq.s32.totalorder %s9467_s15, 0 }
   0x9   : > { %p342_p3 = scmp.eq.s32.totalorder %s9564_s16, 1  ;;  %p7213_p6 = scmp.ge.s32.totalorder %s9467_s15, 1 }
   0xa   : > { %s9577_s20 = scalar_select %p30_p0, %s9463_s30, %s32_s19  }
   0xb   : > { %p9579_p4 = por %p40_p2, %p39_p1  ;;  %p9583_p5 = por %p342_p3, %p39_p1 }
   0xc   : > { %13060 = sst [smem:[#allocation8_spill]] %s9577_s20  ;;  %p355_p7 = scmp.lt.s32.totalorder %s9467_s15, 3 }
   0xd   : > { %p9378_p8 = scmp.eq.s32.totalorder %s9564_s16, 0  ;;  %s13064_s7 = sld [smem:[#allocation12_spill]] }
   0xe   : > { %p9590_p9 = pnand %p7213_p6, %p355_p7  ;;  %s9469_s27 = smov [#allocation3]  }
   0xf   : > { %s386_s28 = sshll.u32 %s9469_s27, 4  ;;  %s9470_s18 = smov 320   ;;  %s387_s28 = int_to_ptr.vmem [resolvable:$true] %s386_s28 }
  0x10   : > { %p9374_p10 = pneg %p9590_p9  ;;  %s9471_s19 = smov 20  }
  0x11   : > { %p7215_p12 = scmp.ge.s32.totalorder %s9467_s15, 2 }
  0x12   : > { %p9375_p11 = pnand %p9378_p8, %p9374_p10 }
  0x13   : > { %s384_s26 = sshll.u32 %s13064_s7, 4  ;;  %414 = sbr.rel (%p7215_p12) target bundleno = 41 (0x29), region = 68  ;;  %s385_s26 = int_to_ptr.hbm [resolvable:$true] %s384_s26 }
  0x14   : > { %9377 = dma.hbm_to_vmem [thread:$0]  (!%p9375_p11), %s385_s26, 5120, %s387_s28, [#allocation4], %s9470_s18, %s9470_s18, %s9471_s19  }
  0x18   : > { %417 = sbr.rel (!%p9579_p4) target bundleno = 41 (0x29), region = 72  ;;  %s419_s24 = sand.u32 (%p9579_p4), 1, %s9463_s30  }
  0x19   : > { %s7216_s25 = sshll.u32 (%p9579_p4), %s9467_s15, 2  ;;  %s9368_s7 = smul.u32 (%p9579_p4), 48, %s419_s24 }
  0x1a   : > { %s423_s27 = scalar_lea.vmem (%p9579_p4), %s13036_s0, %s7216_s25 }
  0x1b   : > { %v440_v0 = vld [vmem:[%s423_s27] sm:$0xf] (%p9579_p4)  ;;  %v442_v1 = vld [vmem:[%s423_s27 + $0x8] sm:$0xf] (%p9579_p4)  ;;  %v444_v2 = vld [vmem:[%s423_s27 + $0x10] sm:$0xf] (%p9579_p4) }
  0x1c   : > { %s421_s14 = scalar_lea.vmem (%p9579_p4), [#allocation2], %s9368_s7  ;;  %v446_v3 = vld [vmem:[%s423_s27 + $0x18] sm:$0xf] (%p9579_p4)  ;;  %v448_v4 = vld [vmem:[%s423_s27 + $0x20] sm:$0xf] (%p9579_p4) }
  0x1d   : > { %441 = vst [vmem:[%s421_s14] sm:$0xf] %v440_v0  ;;  %v450_v5 = vld [vmem:[%s423_s27 + $0x28] sm:$0xf]  ;;  %v452_v6 = vld [vmem:[%s423_s27 + $0x30] sm:$0xf] }
  0x1e   : > { %443 = vst [vmem:[%s421_s14 + $0x4] sm:$0xf] %v442_v1  ;;  %v454_v7 = vld [vmem:[%s423_s27 + $0x38] sm:$0xf]  ;;  %v456_v8 = vld [vmem:[%s423_s27 + $0x40] sm:$0xf] }
  0x1f   : > { %445 = vst [vmem:[%s421_s14 + $0x8] sm:$0xf] %v444_v2  ;;  %v458_v9 = vld [vmem:[%s423_s27 + $0x48] sm:$0xf]  ;;  %v460_v10 = vld [vmem:[%s423_s27 + $0x50] sm:$0xf] }
  0x20   : > { %447 = vst [vmem:[%s421_s14 + $0xc] sm:$0xf] %v446_v3  ;;  %v462_v11 = vld [vmem:[%s423_s27 + $0x58] sm:$0xf] }
  0x21   : > { %449 = vst [vmem:[%s421_s14 + $0x10] sm:$0xf] %v448_v4 }
  0x22   : > { %451 = vst [vmem:[%s421_s14 + $0x14] sm:$0xf] %v450_v5 }
  0x23   : > { %453 = vst [vmem:[%s421_s14 + $0x18] sm:$0xf] %v452_v6 }
  0x24   : > { %455 = vst [vmem:[%s421_s14 + $0x1c] sm:$0xf] %v454_v7 }
  0x25   : > { %457 = vst [vmem:[%s421_s14 + $0x20] sm:$0xf] %v456_v8 }
  0x26   : > { %459 = vst [vmem:[%s421_s14 + $0x24] sm:$0xf] %v458_v9 }
  0x27   : > { %461 = vst [vmem:[%s421_s14 + $0x28] sm:$0xf] %v460_v10 }
  0x28   : > { %463 = vst [vmem:[%s421_s14 + $0x2c] sm:$0xf] %v462_v11 }
  0x29 PF: > { %514 = sbr.rel (%p9590_p9) target bundleno = 2642 (0xa52), region = 113 }
  0x2e   : > { %s517_s7 = sand.u32 1, %s9459_s29  }
  0x2f   : > { %s9369_s15 = smul.u32 48, %s517_s7 }
  0x31   : > { %s9614_s17 = scalar_lea.vmem [#allocation2], %s9369_s15 }
  0x32   : > { %9454 = dma.done.wait (%p9378_p8), [#allocation4], 5120  }
  0x33   : > { %9456 = vsyncadd (%p9378_p8), [#allocation4], 4294962176  ;;  %v7386_v12 = vld [vmem:[%s13037_s1 + $0x118] sm:$0xf]  ;;  %v9051_v13 = vld [vmem:[%s13037_s1 + $0x128] sm:$0xf0] }
  0x34   : > { %v9049_v14 = vld [vmem:[%s13037_s1 + $0x11c] sm:$0xf]  ;;  %v7387_v15 = vor.u32 %v9051_v13, %v7386_v12  ;;  %v7388_v16 = vld [vmem:[%s13037_s1 + $0x12c] sm:$0xf0]  ;;  %v7394_v17 = vld [vmem:[%s13037_s1 + $0x120] sm:$0xf] }
  0x35   : > { %v9052_v18 = vld [vmem:[%s13037_s1 + $0x130] sm:$0xf0]  ;;  %v7391_v19 = vor.u32 %v9049_v14, %v7388_v16  ;;  %v9050_v21 = vld [vmem:[%s13037_s1 + $0x124] sm:$0xf]  ;;  %v7396_v22 = vld [vmem:[%s13037_s1 + $0x134] sm:$0xf0] }
  0x36   : > { %v7395_v20 = vor.u32 %v9052_v18, %v7394_v17  ;;  %v7366_v23 = vld [vmem:[%s13037_s1 + $0xf0] sm:$0xf]  ;;  %871 = vmatpush.bf16.msra.mxu0 %v7387_v15  ;;  %v7399_v24 = vor.u32 %v9050_v21, %v7396_v22  ;;  %v9046_v25 = vld [vmem:[%s13037_s1 + $0x100] sm:$0xf0]  ;;  %v9044_v26 = vld [vmem:[%s13037_s1 + $0xf4] sm:$0xf] }
  0x37   : > { %v7368_v27 = vld [vmem:[%s13037_s1 + $0x104] sm:$0xf0]  ;;  %910 = vmatpush.bf16.msra.mxu1 %v7391_v19  ;;  %v7367_v28 = vor.u32 %v9046_v25, %v7366_v23  ;;  %v7374_v30 = vld [vmem:[%s13037_s1 + $0xf8] sm:$0xf]  ;;  %v9047_v31 = vld [vmem:[%s13037_s1 + $0x108] sm:$0xf0] }
  0x38   : > { %949 = vmatpush.bf16.msra.mxu2 %v7395_v20  ;;  %v7371_v29 = vor.u32 %v9044_v26, %v7368_v27  ;;  %v9045_v32 = vld [vmem:[%s13037_s1 + $0xfc] sm:$0xf]  ;;  %988 = vmatpush.bf16.msra.mxu3 %v7399_v24  ;;  %v7375_v33 = vor.u32 %v9047_v31, %v7374_v30  ;;  %v7376_v34 = vld [vmem:[%s13037_s1 + $0x10c] sm:$0xf0]  ;;  %v7346_v35 = vld [vmem:[%s13037_s1 + $0xc8] sm:$0xf] }
  0x39   : > { %v9041_v36 = vld [vmem:[%s13037_s1 + $0xd8] sm:$0xf0]  ;;  %v7379_v37 = vor.u32 %v9045_v32, %v7376_v34  ;;  %v9039_v38 = vld [vmem:[%s13037_s1 + $0xcc] sm:$0xf]  ;;  %v7348_v39 = vld [vmem:[%s13037_s1 + $0xdc] sm:$0xf0] }
  0x3a   : > { %v7354_v40 = vld [vmem:[%s13037_s1 + $0xd0] sm:$0xf]  ;;  %872 = vmatpush.bf16.msra.mxu0 %v7367_v28  ;;  %v7347_v41 = vor.u32 %v9041_v36, %v7346_v35  ;;  %v9042_v42 = vld [vmem:[%s13037_s1 + $0xe0] sm:$0xf0]  ;;  %v9040_v43 = vld [vmem:[%s13037_s1 + $0xd4] sm:$0xf]  ;;  %v7351_v45 = vor.u32 %v9039_v38, %v7348_v39 }
  0x3b   : > { %v7356_v44 = vld [vmem:[%s13037_s1 + $0xe4] sm:$0xf0]  ;;  %911 = vmatpush.bf16.msra.mxu1 %v7371_v29  ;;  %v7355_v46 = vor.u32 %v9042_v42, %v7354_v40  ;;  %v7326_v47 = vld [vmem:[%s13037_s1 + $0xa0] sm:$0xf]  ;;  %v9036_v48 = vld [vmem:[%s13037_s1 + $0xb0] sm:$0xf0] }
  0x3c   : > { %950 = vmatpush.bf16.msra.mxu2 %v7375_v33  ;;  %v9034_v49 = vld [vmem:[%s13037_s1 + $0xa4] sm:$0xf]  ;;  %989 = vmatpush.bf16.msra.mxu3 %v7379_v37  ;;  %v7359_v50 = vor.u32 %v9040_v43, %v7356_v44  ;;  %v7328_v51 = vld [vmem:[%s13037_s1 + $0xb4] sm:$0xf0]  ;;  %v7334_v52 = vld [vmem:[%s13037_s1 + $0xa8] sm:$0xf]  ;;  %v7327_v56 = vor.u32 %v9036_v48, %v7326_v47 }
  0x3d   : > { %v9037_v53 = vld [vmem:[%s13037_s1 + $0xb8] sm:$0xf0]  ;;  %v9035_v54 = vld [vmem:[%s13037_s1 + $0xac] sm:$0xf]  ;;  %v7336_v55 = vld [vmem:[%s13037_s1 + $0xbc] sm:$0xf0]  ;;  %v7331_v57 = vor.u32 %v9034_v49, %v7328_v51 }
  0x3e   : > { %873 = vmatpush.bf16.msra.mxu0 %v7347_v41  ;;  %v7335_v58 = vor.u32 %v9037_v53, %v7334_v52  ;;  %v7306_v59 = vld [vmem:[%s13037_s1 + $0x78] sm:$0xf]  ;;  %v9031_v60 = vld [vmem:[%s13037_s1 + $0x88] sm:$0xf0]  ;;  %v9029_v61 = vld [vmem:[%s13037_s1 + $0x7c] sm:$0xf]  ;;  %v7339_v62 = vor.u32 %v9035_v54, %v7336_v55 }
  0x3f   : > { %912 = vmatpush.bf16.msra.mxu1 %v7351_v45  ;;  %v7308_v63 = vld [vmem:[%s13037_s1 + $0x8c] sm:$0xf0]  ;;  %v7314_v0 = vld [vmem:[%s13037_s1 + $0x80] sm:$0xf]  ;;  %v9032_v1 = vld [vmem:[%s13037_s1 + $0x90] sm:$0xf0]  ;;  %v7307_v4 = vor.u32 %v9031_v60, %v7306_v59 }
  0x40   : > { %951 = vmatpush.bf16.msra.mxu2 %v7355_v46  ;;  %990 = vmatpush.bf16.msra.mxu3 %v7359_v50  ;;  %v9030_v2 = vld [vmem:[%s13037_s1 + $0x84] sm:$0xf]  ;;  %v7316_v3 = vld [vmem:[%s13037_s1 + $0x94] sm:$0xf0]  ;;  %v7311_v5 = vor.u32 %v9029_v61, %v7308_v63  ;;  %v7315_v6 = vor.u32 %v9032_v1, %v7314_v0  ;;  %v7286_v7 = vld [vmem:[%s13037_s1 + $0x50] sm:$0xf] }
  0x41   : > { %v9026_v8 = vld [vmem:[%s13037_s1 + $0x60] sm:$0xf0]  ;;  %v9024_v9 = vld [vmem:[%s13037_s1 + $0x54] sm:$0xf]  ;;  %v7319_v10 = vor.u32 %v9030_v2, %v7316_v3  ;;  %v7288_v11 = vld [vmem:[%s13037_s1 + $0x64] sm:$0xf0] }
  0x42   : > { %874 = vmatpush.bf16.msra.mxu0 %v7327_v56  ;;  %v7294_v12 = vld [vmem:[%s13037_s1 + $0x58] sm:$0xf]  ;;  %v9027_v13 = vld [vmem:[%s13037_s1 + $0x68] sm:$0xf0]  ;;  %v9025_v14 = vld [vmem:[%s13037_s1 + $0x5c] sm:$0xf]  ;;  %v7287_v16 = vor.u32 %v9026_v8, %v7286_v7  ;;  %v7291_v17 = vor.u32 %v9024_v9, %v7288_v11 }
  0x43   : > { %913 = vmatpush.bf16.msra.mxu1 %v7331_v57  ;;  %v7296_v15 = vld [vmem:[%s13037_s1 + $0x6c] sm:$0xf0]  ;;  %v7295_v18 = vor.u32 %v9027_v13, %v7294_v12  ;;  %v7266_v19 = vld [vmem:[%s13037_s1 + $0x28] sm:$0xf]  ;;  %v9021_v20 = vld [vmem:[%s13037_s1 + $0x38] sm:$0xf0] }
  0x44   : > { %952 = vmatpush.bf16.msra.mxu2 %v7335_v58  ;;  %991 = vmatpush.bf16.msra.mxu3 %v7339_v62  ;;  %v9019_v21 = vld [vmem:[%s13037_s1 + $0x2c] sm:$0xf]  ;;  %v7299_v22 = vor.u32 %v9025_v14, %v7296_v15  ;;  %v7268_v23 = vld [vmem:[%s13037_s1 + $0x3c] sm:$0xf0]  ;;  %v7274_v24 = vld [vmem:[%s13037_s1 + $0x30] sm:$0xf]  ;;  %v7267_v28 = vor.u32 %v9021_v20, %v7266_v19 }
  0x45   : > { %v9022_v25 = vld [vmem:[%s13037_s1 + $0x40] sm:$0xf0]  ;;  %v9020_v26 = vld [vmem:[%s13037_s1 + $0x34] sm:$0xf]  ;;  %v7276_v27 = vld [vmem:[%s13037_s1 + $0x44] sm:$0xf0]  ;;  %v7271_v29 = vor.u32 %v9019_v21, %v7268_v23 }
  0x46   : > { %875 = vmatpush.bf16.msra.mxu0 %v7307_v4  ;;  %v7275_v30 = vor.u32 %v9022_v25, %v7274_v24  ;;  %v7246_v31 = vld [vmem:[%s13037_s1] sm:$0xf]  ;;  %v9016_v32 = vld [vmem:[%s13037_s1 + $0x10] sm:$0xf0]  ;;  %v9014_v33 = vld [vmem:[%s13037_s1 + $0x4] sm:$0xf]  ;;  %v7279_v34 = vor.u32 %v9020_v26, %v7276_v27 }
  0x47   : > { %914 = vmatpush.bf16.msra.mxu1 %v7311_v5  ;;  %v7248_v35 = vld [vmem:[%s13037_s1 + $0x14] sm:$0xf0]  ;;  %v7254_v36 = vld [vmem:[%s13037_s1 + $0x8] sm:$0xf]  ;;  %v9017_v37 = vld [vmem:[%s13037_s1 + $0x18] sm:$0xf0]  ;;  %v7247_v40 = vor.u32 %v9016_v32, %v7246_v31 }
  0x48   : > { %953 = vmatpush.bf16.msra.mxu2 %v7315_v6  ;;  %992 = vmatpush.bf16.msra.mxu3 %v7319_v10  ;;  %v9015_v38 = vld [vmem:[%s13037_s1 + $0xc] sm:$0xf]  ;;  %v7256_v39 = vld [vmem:[%s13037_s1 + $0x1c] sm:$0xf0]  ;;  %v7251_v41 = vor.u32 %v9014_v33, %v7248_v35  ;;  %v7255_v42 = vor.u32 %v9017_v37, %v7254_v36  ;;  %v7402_v47 = vld [vmem:[%s13037_s1 + $0x128] sm:$0xf] }
  0x49   : > { %v7259_v43 = vor.u32 %v9015_v38, %v7256_v39  ;;  %v9813_v44 = vld [vmem:[%s9614_s17] sm:$0xff]  ;;  %v9820_v45 = vld [vmem:[%s9614_s17 + $0x8] sm:$0xff]  ;;  %v9827_v46 = vld [vmem:[%s9614_s17 + $0x10] sm:$0xff]  ;;  %vm1234_vm0 = vcmask 785408   ;;  %vm3214_vm1 = vcmask 1043456   ;;  %vm3183_vm2 = vcmask 326656  }
  0x4a   : > { %876 = vmatpush.bf16.msra.mxu0 %v7287_v16  ;;  %v9053_v48 = vld [vmem:[%s13037_s1 + $0x138] sm:$0xf0]  ;;  %v7382_v51 = vld [vmem:[%s13037_s1 + $0x100] sm:$0xf]  ;;  %v9048_v52 = vld [vmem:[%s13037_s1 + $0x110] sm:$0xf0] }
  0x4b   : > { %915 = vmatpush.bf16.msra.mxu1 %v7291_v17  ;;  %v7403_v49 = vor.u32 %v9053_v48, %v7402_v47  ;;  %v9840_v50 = vld [vmem:[%s9614_s17 + $0x18] sm:$0xff]  ;;  %v7383_v53 = vor.u32 %v9048_v52, %v7382_v51  ;;  %v7342_v57 = vld [vmem:[%s13037_s1 + $0xb0] sm:$0xf]  ;;  %v9038_v58 = vld [vmem:[%s13037_s1 + $0xc0] sm:$0xf0]  ;;  %vm5574_vm3 = vcmask 261120  }
  0x4c   : > { %954 = vmatpush.bf16.msra.mxu2 %v7295_v18  ;;  %993 = vmatpush.bf16.msra.mxu3 %v7299_v22  ;;  %v7362_v54 = vld [vmem:[%s13037_s1 + $0xd8] sm:$0xf]  ;;  %v9043_v55 = vld [vmem:[%s13037_s1 + $0xe8] sm:$0xf0]  ;;  %v7343_v59 = vor.u32 %v9038_v58, %v7342_v57  ;;  %v7322_v60 = vld [vmem:[%s13037_s1 + $0x88] sm:$0xf] }
  0x4d   : > { %v7363_v56 = vor.u32 %v9043_v55, %v7362_v54  ;;  %v9033_v61 = vld [vmem:[%s13037_s1 + $0x98] sm:$0xf0]  ;;  %v9012_v63 = vld [vmem:[%s9614_s17 + $0x20] sm:$0xff]  ;;  %v7282_v3 = vld [vmem:[%s13037_s1 + $0x38] sm:$0xf]  ;;  %vm6977_vm4 = vcmask 982016  }
  0x4e   : > { %877 = vmatpush.bf16.msra.mxu0 %v7267_v28  ;;  %v7323_v62 = vor.u32 %v9033_v61, %v7322_v60  ;;  %v7302_v0 = vld [vmem:[%s13037_s1 + $0x60] sm:$0xf]  ;;  %v9028_v1 = vld [vmem:[%s13037_s1 + $0x70] sm:$0xf0]  ;;  %v9023_v4 = vld [vmem:[%s13037_s1 + $0x48] sm:$0xf0] }
  0x4f   : > { %916 = vmatpush.bf16.msra.mxu1 %v7271_v29  ;;  %v7303_v2 = vor.u32 %v9028_v1, %v7302_v0  ;;  %v7283_v5 = vor.u32 %v9023_v4, %v7282_v3  ;;  %v7262_v6 = vld [vmem:[%s13037_s1 + $0x10] sm:$0xf]  ;;  %v9018_v7 = vld [vmem:[%s13037_s1 + $0x20] sm:$0xf0]  ;;  %v9013_v9 = vld [vmem:[%s9614_s17 + $0x28] sm:$0xff]  ;;  %vm7077_vm5 = vcmask 1041408  }
  0x50   : > { %955 = vmatpush.bf16.msra.mxu2 %v7275_v30  ;;  %994 = vmatpush.bf16.msra.mxu3 %v7279_v34  ;;  %v7263_v8 = vor.u32 %v9018_v7, %v7262_v6  ;;  %vm7073_vm6 = vcmask 687104   ;;  %s7219_s27 = sshll.u32 %s517_s7, 4  ;;  %s9005_s20 = sshll.u32 (%p9583_p5), %s9564_s16, 3 }
  0x51   : > { %s565_s15 = scalar_lea.vmem [#allocation5], %s7219_s27  ;;  %s13077_s29 = sld [smem:[#allocation13_spill]] (%p9583_p5) }
  0x52   : > { %878 = vmatpush.bf16.msra.mxu0 %v7247_v40 }
  0x53   : > { %917 = vmatpush.bf16.msra.mxu1 %v7251_v41 }
  0x54   : > { %956 = vmatpush.bf16.msra.mxu2 %v7255_v42  ;;  %995 = vmatpush.bf16.msra.mxu3 %v7259_v43 }
  0x55   : > { %879 = vmatmul.bf16.vlgmr.msra.gmra.mxu0 %v9813_v44 }
  0x56   : > { %918 = vmatmul.bf16.vlgmr.msra.gmra.mxu1 %v9813_v44  ;;  %1027 = vmatpush.bf16.msrb.mxu0 %v7403_v49 }
  0x57   : > { %957 = vmatmul.bf16.vlgmr.msra.gmra.mxu2 %v9813_v44  ;;  %996 = vmatmul.bf16.vlgmr.msra.gmra.mxu3 %v9813_v44  ;;  %s7105_s7 = scalar_lea.vmem (%p9583_p5), %s13077_s29, %s9005_s20 }
  0x58   : > { %9360 = vmatpush.bf16.msrb.mxu2 %v7403_v49 }
  0x5a   : > { %1028 = vmatpush.bf16.msrb.mxu0 %v7383_v53 }
  0x5c   : > { %9361 = vmatpush.bf16.msrb.mxu2 %v7383_v53 }
  0x5e   : > { %1029 = vmatpush.bf16.msrb.mxu0 %v7363_v56 }
  0x60   : > { %9362 = vmatpush.bf16.msrb.mxu2 %v7363_v56 }
  0x62   : > { %1030 = vmatpush.bf16.msrb.mxu0 %v7343_v59 }
  0x64   : > { %9363 = vmatpush.bf16.msrb.mxu2 %v7343_v59 }
  0x65   : > { %884 = vmatmul.bf16.gmra.mxu0 %v9820_v45 }
  0x66   : > { %923 = vmatmul.bf16.gmra.mxu1 %v9820_v45  ;;  %1031 = vmatpush.bf16.msrb.mxu0 %v7323_v62 }
  0x67   : > { %962 = vmatmul.bf16.gmra.mxu2 %v9820_v45  ;;  %1001 = vmatmul.bf16.gmra.mxu3 %v9820_v45 }
  0x68   : > { %9364 = vmatpush.bf16.msrb.mxu2 %v7323_v62 }
  0x6a   : > { %1032 = vmatpush.bf16.msrb.mxu0 %v7303_v2 }
  0x6c   : > { %9365 = vmatpush.bf16.msrb.mxu2 %v7303_v2 }
  0x6e   : > { %1033 = vmatpush.bf16.msrb.mxu0 %v7283_v5 }
  0x70   : > { %9366 = vmatpush.bf16.msrb.mxu2 %v7283_v5 }
  0x72   : > { %1034 = vmatpush.bf16.msrb.mxu0 %v7263_v8 }
  0x74   : > { %9367 = vmatpush.bf16.msrb.mxu2 %v7263_v8 }
  0x75   : > { %889 = vmatmul.bf16.gmra.mxu0 %v9827_v46 }
  0x76   : > { %928 = vmatmul.bf16.gmra.mxu1 %v9827_v46 }
  0x77   : > { %967 = vmatmul.bf16.gmra.mxu2 %v9827_v46  ;;  %1006 = vmatmul.bf16.gmra.mxu3 %v9827_v46 }
  0x85   : > { %894 = vmatmul.bf16.gmra.mxu0 %v9840_v50 }
  0x86   : > { %933 = vmatmul.bf16.gmra.mxu1 %v9840_v50 }
  0x87   : > { %972 = vmatmul.bf16.gmra.mxu2 %v9840_v50  ;;  %1011 = vmatmul.bf16.gmra.mxu3 %v9840_v50 }
  0x95   : > { %899 = vmatmul.bf16.gmra.mxu0 %v9012_v63 }
  0x96   : > { %938 = vmatmul.bf16.gmra.mxu1 %v9012_v63 }
  0x97   : > { %977 = vmatmul.bf16.gmra.mxu2 %v9012_v63  ;;  %1016 = vmatmul.bf16.gmra.mxu3 %v9012_v63 }
  0xa5   : > { %904 = vmatmul.bf16.gmra.mxu0 %v9013_v9 }
  0xa6   : > { %943 = vmatmul.bf16.gmra.mxu1 %v9013_v9 }
  0xa7   : > { %982 = vmatmul.bf16.gmra.mxu2 %v9013_v9  ;;  %1021 = vmatmul.bf16.gmra.mxu3 %v9013_v9 }
  0xb5   : > { %1035 = vmatmul.bf16.vlgmr.msrb.gmra.mxu0 %v9813_v44 }
  0xb7   : > { %1060 = vmatmul.bf16.vlgmr.msrb.gmra.mxu2 %v9013_v9 }
  0xc5   : > { %1040 = vmatmul.bf16.gmra.mxu0 %v9820_v45 }
  0xd2   : > { %v880_v10 = vpop.f32.mrf.mxu0 }
  0xd3   : > { %v919_v11 = vpop.f32.mrf.mxu1 }
  0xd4   : > { %v9892_v12 = vpack.c.bf16 %v919_v11, %v880_v10 }
  0xd5   : > { %1045 = vmatmul.bf16.gmra.mxu0 %v9827_v46 }
  0xda   : > { %v958_v13 = vpop.f32.mrf.mxu2  ;;  %v997_v14 = vpop.f32.mrf.mxu3 }
  0xdb   : > { %v9895_v15 = vpop.f32.mrf.mxu0  ;;  %v9897_v16 = vpack.c.bf16 %v997_v14, %v958_v13  ;;  %v9899_v17 = vpop.f32.mrf.mxu1 }
  0xe2   : > { %v9901_v18 = vpop.f32.mrf.mxu2  ;;  %v9903_v19 = vpop.f32.mrf.mxu3 }
  0xe3   : > { %v885_v20 = vpop.f32.mrf.mxu0  ;;  %v924_v21 = vpop.f32.mrf.mxu1 }
  0xe4   : > { %v9905_v22 = vpack.c.bf16 %v924_v21, %v885_v20  ;;  %v2176_v20 = vld [vmem:[%s13039_s3] sm:$0xff] }
  0xe5   : > { %1050 = vmatmul.bf16.gmra.mxu0 %v9840_v50 }
  0xea   : > { %v963_v23 = vpop.f32.mrf.mxu2  ;;  %v1002_v24 = vpop.f32.mrf.mxu3 }
  0xeb   : > { %v9908_v25 = vpop.f32.mrf.mxu0  ;;  %v9910_v26 = vpack.c.bf16 %v1002_v24, %v963_v23  ;;  %v9912_v27 = vpop.f32.mrf.mxu1 }
  0xf2   : > { %v9914_v28 = vpop.f32.mrf.mxu2  ;;  %v9916_v29 = vpop.f32.mrf.mxu3 }
  0xf3   : > { %v890_v30 = vpop.f32.mrf.mxu0  ;;  %v929_v31 = vpop.f32.mrf.mxu1 }
  0xf4   : > { %v9918_v32 = vpack.c.bf16 %v929_v31, %v890_v30  ;;  %v9472_v31 = vmov 0  }
  0xf5   : > { %1055 = vmatmul.bf16.gmra.mxu0 %v9012_v63  ;;  %9408 = vset.pattern.permute.xlu0 %v9472_v31 }
  0xf6   : > { %9409 = vset.pattern.permute.xlu1 %v9472_v31  ;;  %2199 = vperm.xlu0 %9408, %v2176_v20  }
  0xf7   : > { %9410 = vset.pattern.permute.xlu2 %v9472_v31  ;;  %v2178_v31 = vld [vmem:[%s13039_s3 + $0x10] sm:$0xff] }
  0xf8   : > { %2209 = vperm.xlu1 %9409, %v2178_v31  }
  0xfa   : > { %v968_v33 = vpop.f32.mrf.mxu2  ;;  %v1007_v34 = vpop.f32.mrf.mxu3 }
  0xfb   : > { %v892_v35 = vpop.f32.mrf.mxu0  ;;  %v9920_v36 = vpack.c.bf16 %v1007_v34, %v968_v33  ;;  %v931_v37 = vpop.f32.mrf.mxu1 }
  0xfc   : > { %v9926_v7 = vpack.c.bf16 %v931_v37, %v892_v35 }
 0x102   : > { %v9922_v38 = vpop.f32.mrf.mxu2  ;;  %v9924_v39 = vpop.f32.mrf.mxu3 }
 0x103   : > { %v895_v40 = vpop.f32.mrf.mxu0  ;;  %v934_v41 = vpop.f32.mrf.mxu1 }
 0x104   : > { %v1084_v21 = vpack.c.bf16 %v934_v41, %v895_v40 }
 0x10a   : > { %v973_v42 = vpop.f32.mrf.mxu2  ;;  %v1012_v43 = vpop.f32.mrf.mxu3 }
 0x10b   : > { %v897_v44 = vpop.f32.mrf.mxu0  ;;  %v936_v45 = vpop.f32.mrf.mxu1  ;;  %v9931_v23 = vpack.c.bf16 %v1012_v43, %v973_v42 }
 0x10c   : > { %v1087_v1 = vpack.c.bf16 %v936_v45, %v897_v44 }
 0x10e   : > { %v1391_v33 = vunpack.c.l.b16 %v1087_v1  ;;  %v1217_v44 = vunpack.c.h.b16 %v1087_v1 }
 0x112   : > { %v975_v46 = vpop.f32.mrf.mxu2  ;;  %v1014_v47 = vpop.f32.mrf.mxu3 }
 0x113   : > { %v900_v48 = vpop.f32.mrf.mxu0  ;;  %v939_v49 = vpop.f32.mrf.mxu1 }
 0x114   : > { %v1090_v2 = vpack.c.bf16 %v939_v49, %v900_v48  ;;  %v1088_v48 = vpack.c.bf16 %v1014_v47, %v975_v46  ;;  %v1390_v46 = vunpack.c.l.b16 %v1084_v21  ;;  %v1082_v47 = vpack.c.bf16 %v9924_v39, %v9922_v38 }
 0x115   : > { %v1388_v38 = vunpack.c.l.b16 %v9918_v32 }
 0x116   : > { %v1218_v34 = vunpack.c.h.b16 %v1090_v2  ;;  %v1392_v35 = vunpack.c.l.b16 %v1090_v2  ;;  %v1399_v1 = vpack.c.b16 %v1391_v33, %v1390_v46  ;;  %v1598_v2 = vunpack.c.l.b16 %v1088_v48  ;;  %v2182_v33 = vld [vmem:[%s13039_s3 + $0x30] sm:$0xff]  ;;  %v9084_v46 = vld [vmem:[%s13038_s2 + $0xfc] sm:$0xff] }
 0x11a   : > { %v978_v50 = vpop.f32.mrf.mxu2  ;;  %v1017_v51 = vpop.f32.mrf.mxu3 }
 0x11b   : > { %v902_v52 = vpop.f32.mrf.mxu0  ;;  %v941_v53 = vpop.f32.mrf.mxu1  ;;  %v1091_v8 = vpack.c.bf16 %v1017_v51, %v978_v50 }
 0x11c   : > { %v1093_v62 = vpack.c.bf16 %v941_v53, %v902_v52 }
 0x11d   : > { %v1599_v41 = vunpack.c.l.b16 %v1091_v8  ;;  %v1815_v42 = vunpack.c.h.b16 %v1091_v8  ;;  %v1076_v8 = vpack.c.bf16 %v9916_v29, %v9914_v28  ;;  %v1070_v29 = vpack.c.bf16 %v9903_v19, %v9901_v18 }
 0x11e   : > { %v1393_v9 = vunpack.c.l.b16 %v1093_v62  ;;  %v1219_v14 = vunpack.c.h.b16 %v1093_v62  ;;  %v1597_v62 = vunpack.c.l.b16 %v9931_v23  ;;  %v1210_v18 = vunpack.c.h.b16 %v9892_v12 }
 0x11f   : > { %v1384_v19 = vunpack.c.l.b16 %v9892_v12  ;;  %v1592_v12 = vunpack.c.l.b16 %v1070_v29 }
 0x120   : > { %v1226_v43 = vpack.c.b16 %v1219_v14, %v1218_v34  ;;  %v1400_v51 = vpack.c.b16 %v1393_v9, %v1392_v35  ;;  %v1812_v14 = vunpack.c.h.b16 %v1082_v47  ;;  %v1606_v20 = vpack.c.b16 %v1598_v2, %v1597_v62  ;;  %v9055_v62 = vld [vmem:[%s13038_s2 + $0x8] sm:$0xff] }
 0x121   : > { %v1593_v34 = vunpack.c.l.b16 %v9910_v26  ;;  %v1594_v35 = vunpack.c.l.b16 %v1076_v8  ;;  %v9085_v2 = vld [vmem:[%s13038_s2 + $0x104] sm:$0xff] }
 0x122   : > { %v980_v54 = vpop.f32.mrf.mxu2  ;;  %v1019_v55 = vpop.f32.mrf.mxu3 }
 0x123   : > { %v905_v56 = vpop.f32.mrf.mxu0  ;;  %v944_v57 = vpop.f32.mrf.mxu1  ;;  %v1094_v24 = vpack.c.bf16 %v1019_v55, %v980_v54 }
 0x124   : > { %v1096_v59 = vpack.c.bf16 %v944_v57, %v905_v56  ;;  %v1075_v56 = vpack.c.bf16 %v9912_v27, %v9908_v25  ;;  %v1389_v57 = vunpack.c.l.b16 %v9926_v7  ;;  %v1814_v25 = vunpack.c.h.b16 %v1088_v48 }
 0x125   : > { %v1816_v52 = vunpack.c.h.b16 %v1094_v24  ;;  %v1600_v55 = vunpack.c.l.b16 %v1094_v24  ;;  %v1810_v48 = vunpack.c.h.b16 %v1076_v8 }
 0x126   : > { %v1220_v3 = vunpack.c.h.b16 %v1096_v59  ;;  %v1394_v4 = vunpack.c.l.b16 %v1096_v59  ;;  %v1213_v9 = vunpack.c.h.b16 %v1075_v56 }
 0x127   : > { %v1607_v27 = vpack.c.b16 %v1600_v55, %v1599_v41  ;;  %v1591_v41 = vunpack.c.l.b16 %v9897_v16 }
 0x12a   : > { %v983_v58 = vpop.f32.mrf.mxu2  ;;  %v1022_v60 = vpop.f32.mrf.mxu3 }
 0x12b   : > { %v907_v61 = vpop.f32.mrf.mxu0  ;;  %v946_v63 = vpop.f32.mrf.mxu1  ;;  %v1097_v10 = vpack.c.bf16 %v1022_v60, %v983_v58  ;;  %v1216_v58 = vunpack.c.h.b16 %v1084_v21  ;;  %v1596_v21 = vunpack.c.l.b16 %v1082_v47  ;;  %v2183_v47 = vld [vmem:[%s13039_s3 + $0x38] sm:$0xff] }
 0x12c   : > { %v1099_v0 = vpack.c.bf16 %v946_v63, %v907_v61  ;;  %v1215_v61 = vunpack.c.h.b16 %v9926_v7  ;;  %v1813_v63 = vunpack.c.h.b16 %v9931_v23  ;;  %v1387_v7 = vunpack.c.l.b16 %v1075_v56 }
 0x12d   : > { %v1601_v49 = vunpack.c.l.b16 %v1097_v10  ;;  %v1817_v50 = vunpack.c.h.b16 %v1097_v10  ;;  %v1595_v10 = vunpack.c.l.b16 %v9920_v36 }
 0x12e   : > { %v1395_v5 = vunpack.c.l.b16 %v1099_v0  ;;  %v1221_v6 = vunpack.c.h.b16 %v1099_v0  ;;  %v1225_v0 = vpack.c.b16 %v1217_v44, %v1216_v58  ;;  %v1822_v23 = vpack.c.b16 %v1814_v25, %v1813_v63  ;;  %v9074_v58 = vld [vmem:[%s13038_s2 + $0xa8] sm:$0xff]  ;;  %v2191_v25 = vld [vmem:[%s13039_s3 + $0x78] sm:$0xff] }
 0x12f   : > { %v1809_v44 = vunpack.c.h.b16 %v9910_v26  ;;  %v1807_v26 = vunpack.c.h.b16 %v9897_v16  ;;  %v2179_v16 = vld [vmem:[%s13039_s3 + $0x18] sm:$0xff] }
 0x130   : > { %v1401_v11 = vpack.c.b16 %v1395_v5, %v1394_v4  ;;  %v1227_v13 = vpack.c.b16 %v1221_v6, %v1220_v3  ;;  %v1823_v3 = vpack.c.b16 %v1816_v52, %v1815_v42  ;;  %v1214_v4 = vunpack.c.h.b16 %v9918_v32  ;;  %v2177_v5 = vld [vmem:[%s13039_s3 + $0x8] sm:$0xff]  ;;  %v9054_v52 = vld [vmem:[%s13038_s2] sm:$0xff]  ;;  %2214 = vperm.xlu1 %9409, %v2179_v16  }
 0x131   : > { %v1069_v6 = vpack.c.bf16 %v9899_v17, %v9895_v15  ;;  %2204 = vperm.xlu0 %9408, %v2177_v5   ;;  %v1811_v32 = vunpack.c.h.b16 %v9920_v36  ;;  %v1212_v15 = vunpack.c.h.b16 %v9905_v22  ;;  %v1386_v17 = vunpack.c.l.b16 %v9905_v22 }
 0x132   : > { %v985_v30 = vpop.f32.mrf.mxu2  ;;  %v1024_v37 = vpop.f32.mrf.mxu3  ;;  %1270 = vmatpush.bf16.msrb.mxu1 %v1227_v13  ;;  %1443 = vmatpush.bf16.msra.mxu2 %v1401_v11  ;;  %v1224_v11 = vpack.c.b16 %v1215_v61, %v1214_v4  ;;  %v1398_v13 = vpack.c.b16 %v1389_v57, %v1388_v38  ;;  %v1605_v22 = vpack.c.b16 %v1596_v21, %v1595_v10  ;;  %v2185_v57 = vld [vmem:[%s13039_s3 + $0x48] sm:$0xff]  ;;  %v9065_v61 = vld [vmem:[%s13038_s2 + $0x5c] sm:$0xff]  ;;  %v2194_v38 = vld [vmem:[%s13039_s3 + $0x90] sm:$0xff] }
 0x133   : > { %v9933_v45 = vpop.f32.mrf.mxu0  ;;  %v1100_v40 = vpack.c.bf16 %v1024_v37, %v985_v30  ;;  %v1385_v28 = vunpack.c.l.b16 %v1069_v6  ;;  %v1223_v24 = vpack.c.b16 %v1213_v9, %v1212_v15  ;;  %v1397_v36 = vpack.c.b16 %v1387_v7, %v1386_v17  ;;  %v2189_v4 = vld [vmem:[%s13039_s3 + $0x68] sm:$0xff]  ;;  %v4633_v21 = vld [vmem:[%s13042_s6] sm:$0xff] }
 0x134   : > { %v1211_v30 = vunpack.c.h.b16 %v1069_v6  ;;  %v1821_v37 = vpack.c.b16 %v1812_v14, %v1811_v32  ;;  %v1604_v42 = vpack.c.b16 %v1594_v35, %v1593_v34  ;;  %v9066_v9 = vld [vmem:[%s13038_s2 + $0x64] sm:$0xff]  ;;  %v9056_v32 = vld [vmem:[%s13038_s2 + $0x10] sm:$0xff] }
 0x135   : > { %v1818_v53 = vunpack.c.h.b16 %v1100_v40  ;;  %v1602_v54 = vunpack.c.l.b16 %v1100_v40  ;;  %v1396_v40 = vpack.c.b16 %v1385_v28, %v1384_v19  ;;  %v2180_v14 = vld [vmem:[%s13039_s3 + $0x20] sm:$0xff]  ;;  %v9086_v15 = vld [vmem:[%s13038_s2 + $0x10c] sm:$0xff]  ;;  %v2195_v28 = vld [vmem:[%s13039_s3 + $0x98] sm:$0xff] }
 0x136   : > { %1271 = vmatpush.bf16.msrb.mxu1 %v1226_v43  ;;  %1444 = vmatpush.bf16.msra.mxu2 %v1400_v51  ;;  %v9064_v43 = vld [vmem:[%s13038_s2 + $0x54] sm:$0xff]  ;;  %v1808_v51 = vunpack.c.h.b16 %v1070_v29  ;;  %v2181_v17 = vld [vmem:[%s13039_s3 + $0x28] sm:$0xff]  ;;  %v2184_v35 = vld [vmem:[%s13039_s3 + $0x40] sm:$0xff] }
 0x137   : > { %v1824_v59 = vpack.c.b16 %v1818_v53, %v1817_v50  ;;  %v1608_v60 = vpack.c.b16 %v1602_v54, %v1601_v49  ;;  %v1222_v50 = vpack.c.b16 %v1211_v30, %v1210_v18  ;;  %v1820_v53 = vpack.c.b16 %v1810_v48, %v1809_v44  ;;  %2219 = vperm.xlu2 %9410, %v2180_v14   ;;  %v4636_v29 = vld [vmem:[%s13042_s6 + $0x18] sm:$0xff]  ;;  %v4639_v18 = vld [vmem:[%s13042_s6 + $0x30] sm:$0xff]  ;;  %v9077_v48 = vld [vmem:[%s13038_s2 + $0xc0] sm:$0xff] }
 0x138   : > { %v1603_v54 = vpack.c.b16 %v1592_v12, %v1591_v41  ;;  %v1819_v55 = vpack.c.b16 %v1808_v51, %v1807_v26  ;;  %2234 = vperm.xlu1 %9409, %v2183_v47   ;;  %v9057_v30 = vld [vmem:[%s13038_s2 + $0x18] sm:$0xff]  ;;  %v6756_v14 = vld [vmem:[%s13045_s9 + $0x60] sm:$0xff] }
 0x139   : > { %1650 = vmatpush.bf16.msrb.mxu3 %v1608_v60  ;;  %1866 = vmatpush.bf16.msra.mxu0 %v1824_v59  ;;  %v2188_v59 = vld [vmem:[%s13039_s3 + $0x60] sm:$0xff]  ;;  %v2187_v51 = vld [vmem:[%s13039_s3 + $0x58] sm:$0xff] }
 0x13a   : > { %1272 = vmatpush.bf16.msrb.mxu1 %v1225_v0  ;;  %1445 = vmatpush.bf16.msra.mxu2 %v1399_v1  ;;  %v1061_v0 = vpop.f32.mrf.mxu2  ;;  %v2186_v1 = vld [vmem:[%s13039_s3 + $0x50] sm:$0xff] }
 0x13b   : > { %v9945_v39 = vpop.f32.mrf.mxu0  ;;  %2229 = vperm.xlu0 %9408, %v2182_v33   ;;  %v9068_v47 = vld [vmem:[%s13038_s2 + $0x74] sm:$0xff] }
 0x13d   : > { %1651 = vmatpush.bf16.msrb.mxu3 %v1607_v27  ;;  %1867 = vmatpush.bf16.msra.mxu0 %v1823_v3  ;;  %v9075_v27 = vld [vmem:[%s13038_s2 + $0xb0] sm:$0xff]  ;;  %v1098_v3 = vpack.c.bf16 %v1061_v0, %v1061_v0 }
 0x13e   : > { %1273 = vmatpush.bf16.msrb.mxu1 %v1224_v11  ;;  %1446 = vmatpush.bf16.msra.mxu2 %v1398_v13  ;;  %v2190_v0 = vld [vmem:[%s13039_s3 + $0x70] sm:$0xff] }
 0x13f   : > { %v2045_v7 = vunpack.c.l.b16 %v1098_v3  ;;  %2224 = vperm.xlu2 %9410, %v2181_v17   ;;  %v2193_v3 = vld [vmem:[%s13039_s3 + $0x88] sm:$0xff] }
 0x140   : > { %2249 = vperm.xlu1 %9409, %v2186_v1   ;;  %v4645_v1 = vld [vmem:[%s13042_s6 + $0x60] sm:$0xff]  ;;  %v4638_v17 = vld [vmem:[%s13042_s6 + $0x28] sm:$0xff] }
 0x141   : > { %1652 = vmatpush.bf16.msrb.mxu3 %v1606_v20  ;;  %1868 = vmatpush.bf16.msra.mxu0 %v1822_v23  ;;  %v2192_v20 = vld [vmem:[%s13039_s3 + $0x80] sm:$0xff]  ;;  %v9076_v23 = vld [vmem:[%s13038_s2 + $0xb8] sm:$0xff] }
 0x142   : > { %1274 = vmatpush.bf16.msrb.mxu1 %v1223_v24  ;;  %1447 = vmatpush.bf16.msra.mxu2 %v1397_v36  ;;  %v1063_v6 = vpop.f32.mrf.mxu2  ;;  %v9067_v36 = vld [vmem:[%s13038_s2 + $0x6c] sm:$0xff] }
 0x143   : > { %v9970_v49 = vpop.f32.mrf.mxu0  ;;  %2244 = vperm.xlu0 %9408, %v2185_v57   ;;  %v1101_v8 = vpack.c.bf16 %v1063_v6, %v1063_v6  ;;  %v9059_v6 = vld [vmem:[%s13038_s2 + $0x28] sm:$0xff] }
 0x145   : > { %1653 = vmatpush.bf16.msrb.mxu3 %v1605_v22  ;;  %1869 = vmatpush.bf16.msra.mxu0 %v1821_v37  ;;  %v2046_v10 = vunpack.c.l.b16 %v1101_v8  ;;  %v4634_v37 = vld [vmem:[%s13042_s6 + $0x8] sm:$0xff] }
 0x146   : > { %1275 = vmatpush.bf16.msrb.mxu1 %v1222_v50  ;;  %1448 = vmatpush.bf16.msra.mxu2 %v1396_v40  ;;  %v4646_v8 = vld [vmem:[%s13042_s6 + $0x68] sm:$0xff] }
 0x147   : > { %v2052_v11 = vpack.c.b16 %v2046_v10, %v2045_v7  ;;  %2239 = vperm.xlu2 %9410, %v2184_v35   ;;  %v2196_v7 = vld [vmem:[%s13039_s3 + $0xa0] sm:$0xff]  ;;  %v9079_v10 = vld [vmem:[%s13038_s2 + $0xd0] sm:$0xff]  ;;  %v4644_v35 = vld [vmem:[%s13042_s6 + $0x58] sm:$0xff] }
 0x148   : > { %2264 = vperm.xlu1 %9409, %v2189_v4   ;;  %v4643_v4 = vld [vmem:[%s13042_s6 + $0x50] sm:$0xff] }
 0x149   : > { %1654 = vmatpush.bf16.msrb.mxu3 %v1604_v42  ;;  %7465 = vmatmul.msk.bf16.vlgmr.msrb.gmra.mxu1 %vm1234_vm0, %v9064_v43  ;;  %v9087_v42 = vld [vmem:[%s13038_s2 + $0x114] sm:$0xff] }
 0x14a   : > { %7516 = vmatmul.msk.bf16.vlgmr.msra.gmra.mxu2 %vm1234_vm0, %v9054_v52  ;;  %1870 = vmatpush.bf16.msra.mxu0 %v1820_v53  ;;  %v4637_v52 = vld [vmem:[%s13042_s6 + $0x20] sm:$0xff] }
 0x14b   : > { %v9982_v56 = vpop.f32.mrf.mxu0  ;;  %2259 = vperm.xlu0 %9408, %v2188_v59   ;;  %2094 = vmatpush.bf16.msra.mxu1 %v2052_v11  ;;  %v1071_v59 = vpack.c.bf16 %v9945_v39, %v9945_v39  ;;  %v4640_v39 = vld [vmem:[%s13042_s6 + $0x38] sm:$0xff]  ;;  %v4635_v11 = vld [vmem:[%s13042_s6 + $0x10] sm:$0xff] }
 0x14c   : > { %v1077_v16 = vpack.c.bf16 %v9982_v56, %v9982_v56  ;;  %v9058_v56 = vld [vmem:[%s13038_s2 + $0x20] sm:$0xff] }
 0x14d   : > { %1655 = vmatpush.bf16.msrb.mxu3 %v1603_v54  ;;  %v4642_v54 = vld [vmem:[%s13042_s6 + $0x48] sm:$0xff] }
 0x14e   : > { %1871 = vmatpush.bf16.msra.mxu0 %v1819_v55  ;;  %v1074_v55 = vpack.c.bf16 %v9970_v49, %v9970_v49 }
 0x14f   : > { %2254 = vperm.xlu2 %9410, %v2187_v51  }
 0x150   : > { %7588 = vmatmul.msk.bf16.vlgmr.msrb.gmra.mxu3 %vm1234_vm0, %v9074_v58  ;;  %2279 = vperm.xlu1 %9409, %v2192_v20   ;;  %v2037_v49 = vunpack.c.l.b16 %v1074_v55  ;;  %v9070_v20 = vld [vmem:[%s13038_s2 + $0x84] sm:$0xff] }
 0x151   : > { %7660 = vmatmul.msk.bf16.vlgmr.msra.gmra.mxu0 %vm1234_vm0, %v9084_v46  ;;  %v1068_v46 = vpack.c.bf16 %v9933_v45, %v9933_v45  ;;  %v6891_v55 = vld [vmem:[%s13047_s11 + $0x40] sm:$0xff] }
 0x153   : > { %v10004_v60 = vpop.f32.mrf.mxu0  ;;  %2274 = vperm.xlu0 %9408, %v2191_v25   ;;  %v9078_v25 = vld [vmem:[%s13038_s2 + $0xc8] sm:$0xff] }
 0x154   : > { %v1080_v43 = vpack.c.bf16 %v10004_v60, %v10004_v60  ;;  %v2038_v60 = vunpack.c.l.b16 %v1077_v16 }
 0x156   : > { %v2039_v57 = vunpack.c.l.b16 %v1080_v43  ;;  %v2048_v45 = vpack.c.b16 %v2038_v60, %v2037_v49 }
 0x157   : > { %2269 = vperm.xlu2 %9410, %v2190_v0  }
 0x158   : > { %2294 = vperm.xlu1 %9409, %v2195_v28   ;;  %v4652_v28 = vld [vmem:[%s13042_s6 + $0x98] sm:$0xff] }
 0x159   : > { %7466 = vmatmul.msk.bf16.gmra.mxu1 %vm1234_vm0, %v9065_v61 }
 0x15a   : > { %7517 = vmatmul.msk.bf16.gmra.mxu2 %vm1234_vm0, %v9055_v62  ;;  %v2035_v62 = vunpack.c.l.b16 %v1068_v46  ;;  %v9073_v46 = vld [vmem:[%s13038_s2 + $0x9c] sm:$0xff] }
 0x15b   : > { %v10014_v63 = vpop.f32.mrf.mxu0  ;;  %2289 = vperm.xlu0 %9408, %v2194_v38   ;;  %v4648_v38 = vld [vmem:[%s13042_s6 + $0x78] sm:$0xff] }
 0x15c   : > { %v1083_v12 = vpack.c.bf16 %v10014_v63, %v10014_v63  ;;  %v2036_v63 = vunpack.c.l.b16 %v1071_v59 }
 0x15e   : > { %v2040_v58 = vunpack.c.l.b16 %v1083_v12  ;;  %v9092_v12 = vld [vmem:[%s13038_s2 + $0x13c] sm:$0xff] }
 0x15f   : > { %2284 = vperm.xlu2 %9410, %v2193_v3   ;;  %v6754_v3 = vld [vmem:[%s13045_s9 + $0x50] sm:$0xff] }
 0x160   : > { %7589 = vmatmul.msk.bf16.gmra.mxu3 %vm1234_vm0, %v9075_v27  ;;  %4660 = vperm.xlu1 %9409, %v4634_v37   ;;  %v2049_v61 = vpack.c.b16 %v2040_v58, %v2039_v57  ;;  %v9088_v27 = vld [vmem:[%s13038_s2 + $0x11c] sm:$0xff] }
 0x161   : > { %7661 = vmatmul.msk.bf16.gmra.mxu0 %vm1234_vm0, %v9085_v2  ;;  %v2047_v2 = vpack.c.b16 %v2036_v63, %v2035_v62  ;;  %v6752_v37 = vld [vmem:[%s13045_s9 + $0x40] sm:$0xff]  ;;  %v6890_v62 = vld [vmem:[%s13047_s11 + $0x38] sm:$0xff] }
 0x163   : > { %v1051_v5 = vpop.f32.mrf.mxu0  ;;  %4655 = vperm.xlu0 %9408, %v4633_v21   ;;  %v9060_v21 = vld [vmem:[%s13038_s2 + $0x30] sm:$0xff] }
 0x164   : > { %v1086_v33 = vpack.c.bf16 %v1051_v5, %v1051_v5  ;;  %v9069_v5 = vld [vmem:[%s13038_s2 + $0x7c] sm:$0xff] }
 0x166   : > { %v2041_v50 = vunpack.c.l.b16 %v1086_v33  ;;  %v6750_v33 = vld [vmem:[%s13045_s9 + $0x30] sm:$0xff] }
 0x167   : > { %2299 = vperm.xlu2 %9410, %v2196_v7  }
 0x168   : > { %4675 = vperm.xlu1 %9409, %v4637_v52  }
 0x169   : > { %7467 = vmatmul.msk.bf16.gmra.mxu1 %vm1234_vm0, %v9066_v9  ;;  %v4651_v9 = vld [vmem:[%s13042_s6 + $0x90] sm:$0xff] }
 0x16a   : > { %7518 = vmatmul.msk.bf16.gmra.mxu2 %vm1234_vm0, %v9056_v32  ;;  %v9089_v32 = vld [vmem:[%s13038_s2 + $0x124] sm:$0xff] }
 0x16b   : > { %v1053_v13 = vpop.f32.mrf.mxu0  ;;  %4670 = vperm.xlu0 %9408, %v4636_v29   ;;  %v6755_v29 = vld [vmem:[%s13045_s9 + $0x58] sm:$0xff] }
 0x16c   : > { %v1089_v34 = vpack.c.bf16 %v1053_v13, %v1053_v13  ;;  %v4649_v13 = vld [vmem:[%s13042_s6 + $0x80] sm:$0xff] }
 0x16e   : > { %v2042_v40 = vunpack.c.l.b16 %v1089_v34  ;;  %v9081_v34 = vld [vmem:[%s13038_s2 + $0xe0] sm:$0xff] }
 0x16f   : > { %4665 = vperm.xlu2 %9410, %v4635_v11   ;;  %v7547_v11 = vld [vmem:[%s13038_s2 + $0xf8] sm:$0xf] }
 0x170   : > { %7590 = vmatmul.msk.bf16.gmra.mxu3 %vm1234_vm0, %v9076_v23  ;;  %v2050_v53 = vpack.c.b16 %v2042_v40, %v2041_v50  ;;  %4690 = vperm.xlu1 %9409, %v4640_v39   ;;  %v9080_v23 = vld [vmem:[%s13038_s2 + $0xd8] sm:$0xff]  ;;  %v4647_v50 = vld [vmem:[%s13042_s6 + $0x70] sm:$0xff]  ;;  %v9093_v39 = vld [vmem:[%s13038_s2 + $0x144] sm:$0xff] }
 0x171   : > { %7662 = vmatmul.msk.bf16.gmra.mxu0 %vm1234_vm0, %v9086_v15  ;;  %v9090_v15 = vld [vmem:[%s13038_s2 + $0x12c] sm:$0xff]  ;;  %v6751_v40 = vld [vmem:[%s13045_s9 + $0x38] sm:$0xff] }
 0x173   : > { %v1056_v24 = vpop.f32.mrf.mxu0  ;;  %4685 = vperm.xlu0 %9408, %v4639_v18   ;;  %v6749_v18 = vld [vmem:[%s13045_s9 + $0x28] sm:$0xff] }
 0x174   : > { %v1092_v31 = vpack.c.bf16 %v1056_v24, %v1056_v24  ;;  %v9071_v24 = vld [vmem:[%s13038_s2 + $0x8c] sm:$0xff] }
 0x176   : > { %v2043_v19 = vunpack.c.l.b16 %v1092_v31  ;;  %v6757_v31 = vld [vmem:[%s13045_s9 + $0x68] sm:$0xff] }
 0x177   : > { %4680 = vperm.xlu2 %9410, %v4638_v17   ;;  %v6887_v17 = vld [vmem:[%s13047_s11 + $0x20] sm:$0xff] }
 0x178   : > { %4705 = vperm.xlu1 %9409, %v4643_v4   ;;  %v6892_v4 = vld [vmem:[%s13047_s11 + $0x48] sm:$0xff] }
 0x179   : > { %7468 = vmatmul.msk.bf16.gmra.mxu1 %vm1234_vm0, %v9067_v36  ;;  %v9061_v36 = vld [vmem:[%s13038_s2 + $0x38] sm:$0xff] }
 0x17a   : > { %7519 = vmatmul.msk.bf16.gmra.mxu2 %vm1234_vm0, %v9057_v30  ;;  %v4641_v30 = vld [vmem:[%s13042_s6 + $0x40] sm:$0xff] }
 0x17b   : > { %v1058_v22 = vpop.f32.mrf.mxu0  ;;  %4700 = vperm.xlu0 %9408, %v4642_v54   ;;  %v6746_v54 = vld [vmem:[%s13045_s9 + $0x10] sm:$0xff] }
 0x17c   : > { %v1095_v44 = vpack.c.bf16 %v1058_v22, %v1058_v22  ;;  %v9091_v22 = vld [vmem:[%s13038_s2 + $0x134] sm:$0xff] }
 0x17e   : > { %v2044_v41 = vunpack.c.l.b16 %v1095_v44  ;;  %v9062_v44 = vld [vmem:[%s13038_s2 + $0x40] sm:$0xff] }
 0x17f   : > { %4695 = vperm.xlu2 %9410, %v4641_v30  }
 0x180   : > { %v2051_v26 = vpack.c.b16 %v2044_v41, %v2043_v19  ;;  %7591 = vmatmul.msk.bf16.gmra.mxu3 %vm1234_vm0, %v9077_v48  ;;  %4720 = vperm.xlu1 %9409, %v4646_v8   ;;  %v9072_v19 = vld [vmem:[%s13038_s2 + $0x94] sm:$0xff]  ;;  %v6744_v41 = vld [vmem:[%s13045_s9] sm:$0xff] }
 0x181   : > { %7663 = vmatmul.msk.bf16.gmra.mxu0 %vm1234_vm0, %v9087_v42  ;;  %v9082_v42 = vld [vmem:[%s13038_s2 + $0xe8] sm:$0xff] }
 0x182   : > { %2095 = vmatpush.bf16.msra.mxu1 %v2051_v26 }
 0x183   : > { %4715 = vperm.xlu0 %9408, %v4645_v1   ;;  %v7424_v1 = vld [vmem:[%s13038_s2 + $0xa4] sm:$0xf] }
 0x186   : > { %2096 = vmatpush.bf16.msra.mxu1 %v2050_v53  ;;  %v4650_v53 = vld [vmem:[%s13042_s6 + $0x88] sm:$0xff] }
 0x187   : > { %4710 = vperm.xlu2 %9410, %v4644_v35  }
 0x188   : > { %4735 = vperm.xlu1 %9409, %v4649_v13   ;;  %v7619_v13 = vld [vmem:[%s13038_s2 + $0x14c] sm:$0xf] }
 0x189   : > { %7469 = vmatmul.msk.bf16.gmra.mxu1 %vm1234_vm0, %v9068_v47  ;;  %v9063_v47 = vld [vmem:[%s13038_s2 + $0x48] sm:$0xff] }
 0x18a   : > { %7520 = vmatmul.msk.bf16.gmra.mxu2 %vm1234_vm0, %v9058_v56  ;;  %2097 = vmatpush.bf16.msra.mxu1 %v2049_v61  ;;  %v6758_v56 = vld [vmem:[%s13045_s9 + $0x70] sm:$0xff]  ;;  %v6745_v61 = vld [vmem:[%s13045_s9 + $0x8] sm:$0xff] }
 0x18b   : > { %4730 = vperm.xlu0 %9408, %v4648_v38   ;;  %v6885_v38 = vld [vmem:[%s13047_s11 + $0x10] sm:$0xff] }
 0x18e   : > { %2098 = vmatpush.bf16.msra.mxu1 %v2048_v45  ;;  %v9083_v45 = vld [vmem:[%s13038_s2 + $0xf0] sm:$0xff] }
 0x18f   : > { %4725 = vperm.xlu2 %9410, %v4647_v50   ;;  %v9094_v50 = vld [vmem:[%s13038_s2 + $0x150] sm:$0xff] }
 0x190   : > { %7592 = vmatmul.msk.bf16.gmra.mxu3 %vm1234_vm0, %v9078_v25  ;;  %4750 = vperm.xlu1 %9409, %v4652_v28   ;;  %v6884_v28 = vld [vmem:[%s13047_s11 + $0x8] sm:$0xff] }
 0x191   : > { %7664 = vmatmul.msk.bf16.gmra.mxu0 %vm1234_vm0, %v9088_v27 }
 0x192   : > { %2099 = vmatpush.bf16.msra.mxu1 %v2047_v2 }
 0x193   : > { %4745 = vperm.xlu0 %9408, %v4651_v9  }
 0x197   : > { %4740 = vperm.xlu2 %9410, %v4650_v53  }
 0x198   : > { %6826 = vperm.xlu1 %9409, %v6757_v31  }
 0x199   : > { %7470 = vmatmul.msk.bf16.gmra.mxu1 %vm1234_vm0, %v9069_v5  ;;  %v1122_v5 = vld [vmem:[%s13038_s2 + $0x50] sm:$0xf] }
 0x19a   : > { %7521 = vmatmul.msk.bf16.gmra.mxu2 %vm1234_vm0, %v9059_v6  ;;  %v1186_v6 = vunpack.c.l.b16 %v7424_v1  ;;  %v1372_v7 = vunpack.c.l.b16 %v1122_v5 }
 0x19b   : > { %6821 = vperm.xlu0 %9408, %v6756_v14  }
 0x19f   : > { %6831 = vperm.xlu2 %9410, %v6758_v56  }
 0x1a0   : > { %7593 = vmatmul.msk.bf16.gmra.mxu3 %vm1234_vm0, %v9079_v10  ;;  %6801 = vperm.xlu1 %9409, %v6752_v37   ;;  %v6748_v37 = vld [vmem:[%s13045_s9 + $0x20] sm:$0xff] }
 0x1a1   : > { %7665 = vmatmul.msk.bf16.gmra.mxu0 %vm1234_vm0, %v9089_v32  ;;  %v1197_v32 = vpack.c.b16 %v1186_v6, %v1186_v6  ;;  %v9096_v6 = vld [vmem:[%s13038_s2 + $0x160] sm:$0xff] }
 0x1a3   : > { %6816 = vperm.xlu0 %9408, %v6755_v29   ;;  %v1567_v29 = vunpack.c.l.b16 %v7547_v11 }
 0x1a5   : > { %v1578_v30 = vpack.c.b16 %v1567_v29, %v1567_v29 }
 0x1a7   : > { %6811 = vperm.xlu2 %9410, %v6754_v3   ;;  %v6888_v3 = vld [vmem:[%s13047_s11 + $0x28] sm:$0xff] }
 0x1a8   : > { %6796 = vperm.xlu1 %9409, %v6751_v40  }
 0x1a9   : > { %7471 = vmatmul.msk.bf16.gmra.mxu1 %vm1234_vm0, %v9070_v20 }
 0x1aa   : > { %7522 = vmatmul.msk.bf16.gmra.mxu2 %vm1234_vm0, %v9060_v21  ;;  %v1383_v21 = vpack.c.b16 %v1372_v7, %v1372_v7 }
 0x1ab   : > { %6791 = vperm.xlu0 %9408, %v6750_v33  }
 0x1b0   : > { %7594 = vmatmul.msk.bf16.gmra.mxu3 %vm1234_vm0, %v9080_v23  ;;  %6771 = vperm.xlu1 %9409, %v6746_v54  }
 0x1b1   : > { %7666 = vmatmul.msk.bf16.gmra.mxu0 %vm1234_vm0, %v9090_v15  ;;  %v6753_v15 = vld [vmem:[%s13045_s9 + $0x48] sm:$0xff] }
 0x1b2   : > { %6806 = vperm.xlu2 %9410, %v6753_v15  }
 0x1b3   : > { %6786 = vperm.xlu0 %9408, %v6749_v18   ;;  %v6886_v18 = vld [vmem:[%s13047_s11 + $0x18] sm:$0xff] }
 0x1b8   : > { %6766 = vperm.xlu1 %9409, %v6745_v61  }
 0x1b9   : > { %7472 = vmatmul.msk.bf16.gmra.mxu1 %vm1234_vm0, %v9071_v24  ;;  %v1795_v24 = vunpack.c.l.b16 %v7619_v13 }
 0x1ba   : > { %7523 = vmatmul.msk.bf16.gmra.mxu2 %vm1234_vm0, %v9061_v36  ;;  %6781 = vperm.xlu2 %9410, %v6748_v37  }
 0x1bb   : > { %6761 = vperm.xlu0 %9408, %v6744_v41   ;;  %v1806_v33 = vpack.c.b16 %v1795_v24, %v1795_v24 }
 0x1c0   : > { %7595 = vmatmul.msk.bf16.gmra.mxu3 %vm1234_vm0, %v9081_v34  ;;  %6941 = vperm.xlu1 %9409, %v6892_v4  }
 0x1c1   : > { %7667 = vmatmul.msk.bf16.gmra.mxu0 %vm1234_vm0, %v9091_v22 }
 0x1c3   : > { %6936 = vperm.xlu0 %9408, %v6891_v55  }
 0x1c6   : > { %v1277_v48 = vpop.f32.mrf.mxu1 }
 0x1c8   : > { %6916 = vperm.xlu1 %9409, %v6887_v17   ;;  %v7057_v17 = vld [vmem:[%s13049_s13 + $0x8] sm:$0xff] }
 0x1c9   : > { %7473 = vmatmul.msk.bf16.gmra.mxu1 %vm1234_vm0, %v9072_v19 }
 0x1ca   : > { %7524 = vmatmul.msk.bf16.gmra.mxu2 %vm1234_vm0, %v9062_v44 }
 0x1cb   : > { %6931 = vperm.xlu0 %9408, %v6890_v62  }
 0x1cd   : > { %v1450_v43 = vpop.f32.mrf.mxu2 }
 0x1ce   : > { %v1451_v26 = vadd.f32 %v1450_v43, %v1277_v48  ;;  %v10266_v51 = vpop.f32.mrf.mxu1  ;;  %v1873_v52 = vpop.f32.mrf.mxu0  ;;  %v6747_v43 = vld [vmem:[%s13045_s9 + $0x18] sm:$0xff] }
 0x1cf   : > { %6776 = vperm.xlu2 %9410, %v6747_v43  }
 0x1d0   : > { %7596 = vmatmul.msk.bf16.gmra.mxu3 %vm1234_vm0, %v9082_v42  ;;  %6911 = vperm.xlu1 %9409, %v6886_v18  }
 0x1d1   : > { %7668 = vmatmul.msk.bf16.gmra.mxu0 %vm1234_vm0, %v9092_v12  ;;  %v7056_v12 = vld [vmem:[%s13049_s13] sm:$0xff] }
 0x1d3   : > { %v1657_v16 = vpop.f32.mrf.mxu3  ;;  %6906 = vperm.xlu0 %9408, %v6885_v38  }
 0x1d4   : > { %v1711_v57 = vadd.f32 %v1657_v16, %v1451_v26  ;;  %v6893_v16 = vld [vmem:[%s13047_s11 + $0x50] sm:$0xf] }
 0x1d5   : > { %v10279_v58 = vpop.f32.mrf.mxu2 }
 0x1d6   : > { %v10287_v59 = vadd.f32 %v1873_v52, %v1711_v57  ;;  %v1282_v49 = vpop.f32.mrf.mxu1  ;;  %v10289_v60 = vpop.f32.mrf.mxu0 }
 0x1d7   : > { %6946 = vperm.xlu2 %9410, %v6893_v16  }
 0x1d8   : > { %7060 = vperm.xlu1 %9409, %v7056_v12   ;;  %v9098_v12 = vld [vmem:[%s13038_s2 + $0x170] sm:$0xff] }
 0x1d9   : > { %7474 = vmatmul.msk.bf16.gmra.mxu1 %vm1234_vm0, %v9073_v46 }
 0x1da   : > { %7525 = vmatmul.msk.bf16.gmra.mxu2 %vm1234_vm0, %v9063_v47 }
 0x1db   : > { %v10302_v63 = vpop.f32.mrf.mxu3  ;;  %6901 = vperm.xlu0 %9408, %v6884_v28  }
 0x1dd   : > { %v1455_v0 = vpop.f32.mrf.mxu2 }
 0x1de   : > { %v1456_v25 = vadd.f32 %v1455_v0, %v1282_v49  ;;  %v10313_v27 = vpop.f32.mrf.mxu1  ;;  %v1878_v2 = vpop.f32.mrf.mxu0  ;;  %v9095_v49 = vld [vmem:[%s13038_s2 + $0x158] sm:$0xff] }
 0x1e0   : > { %7597 = vmatmul.msk.bf16.gmra.mxu3 %vm1234_vm0, %v9083_v45  ;;  %v6889_v45 = vld [vmem:[%s13047_s11 + $0x30] sm:$0xff] }
 0x1e1   : > { %7669 = vmatmul.msk.bf16.gmra.mxu0 %vm1234_vm0, %v9093_v39  ;;  %6926 = vperm.xlu2 %9410, %v6889_v45  }
 0x1e3   : > { %v1662_v8 = vpop.f32.mrf.mxu3 }
 0x1e4   : > { %v1713_v9 = vadd.f32 %v1662_v8, %v1456_v25 }
 0x1e5   : > { %v10329_v10 = vpop.f32.mrf.mxu2 }
 0x1e6   : > { %v10337_v14 = vadd.f32 %v1878_v2, %v1713_v9  ;;  %v1287_v20 = vpop.f32.mrf.mxu1  ;;  %v10339_v23 = vpop.f32.mrf.mxu0 }
 0x1e9   : > { %7475 = vmatmul.msk.bf16.gmra.mxu1 %vm1234_vm0, %v1197_v32  ;;  %6921 = vperm.xlu2 %9410, %v6888_v3   ;;  %v6883_v32 = vld [vmem:[%s13047_s11] sm:$0xff] }
 0x1ea   : > { %7526 = vmatmul.msk.bf16.gmra.mxu2 %vm1234_vm0, %v1383_v21 }
 0x1eb   : > { %v10352_v36 = vpop.f32.mrf.mxu3 }
 0x1ed   : > { %v1460_v31 = vpop.f32.mrf.mxu2 }
 0x1ee   : > { %v1461_v34 = vadd.f32 %v1460_v31, %v1287_v20  ;;  %v10354_v22 = vpop.f32.mrf.mxu1  ;;  %v1883_v35 = vpop.f32.mrf.mxu0 }
 0x1f0   : > { %7598 = vmatmul.msk.bf16.gmra.mxu3 %vm1234_vm0, %v1578_v30  ;;  %v9097_v30 = vld [vmem:[%s13038_s2 + $0x168] sm:$0xff] }
 0x1f1   : > { %7670 = vmatmul.msk.bf16.gmra.mxu0 %vm1234_vm0, %v1806_v33  ;;  %6896 = vperm.xlu2 %9410, %v6883_v32   ;;  %v9139_v32 = vld [vmem:[%s13040_s4 + $0x11c] sm:$0xf] }
 0x1f3   : > { %v1667_v19 = vpop.f32.mrf.mxu3 }
 0x1f4   : > { %v1715_v44 = vadd.f32 %v1667_v19, %v1461_v34 }
 0x1f5   : > { %v10364_v48 = vpop.f32.mrf.mxu2 }
 0x1f6   : > { %v10369_v40 = vadd.f32 %v1883_v35, %v1715_v44  ;;  %v1292_v41 = vpop.f32.mrf.mxu1  ;;  %v10371_v42 = vpop.f32.mrf.mxu0 }
 0x1f9   : > { %7732 = vmatmul.msk.bf16.vlgmr.msra.gmra.mxu1 %vm1234_vm0, %v9094_v50  ;;  %7065 = vperm.xlu2 %9410, %v7057_v17   ;;  %v9142_v17 = vld [vmem:[%s13040_s4 + $0x130] sm:$0xf0] }
 0x1fb   : > { %v10380_v26 = vpop.f32.mrf.mxu3 }
 0x1fd   : > { %v1465_v52 = vpop.f32.mrf.mxu2 }
 0x1fe   : > { %v1466_v53 = vadd.f32 %v1465_v52, %v1292_v41  ;;  %v10382_v54 = vpop.f32.mrf.mxu1  ;;  %v1888_v55 = vpop.f32.mrf.mxu0 }
 0x203   : > { %v1672_v57 = vpop.f32.mrf.mxu3 }
 0x204   : > { %v1717_v46 = vadd.f32 %v1672_v57, %v1466_v53 }
 0x205   : > { %v10387_v47 = vpop.f32.mrf.mxu2 }
 0x206   : > { %v10392_v56 = vadd.f32 %v1888_v55, %v1717_v46  ;;  %v1297_v61 = vpop.f32.mrf.mxu1  ;;  %v10394_v62 = vpop.f32.mrf.mxu0 }
 0x209   : > { %7733 = vmatmul.msk.bf16.gmra.mxu1 %vm1234_vm0, %v9095_v49 }
 0x20b   : > { %v10400_v0 = vpop.f32.mrf.mxu3 }
 0x20d   : > { %v1470_v39 = vpop.f32.mrf.mxu2 }
 0x20e   : > { %v1471_v1 = vadd.f32 %v1470_v39, %v1297_v61  ;;  %v10402_v25 = vpop.f32.mrf.mxu1  ;;  %v1893_v2 = vpop.f32.mrf.mxu0 }
 0x213   : > { %v1677_v4 = vpop.f32.mrf.mxu3 }
 0x214   : > { %v1719_v38 = vadd.f32 %v1677_v4, %v1471_v1 }
 0x215   : > { %v10407_v5 = vpop.f32.mrf.mxu2 }
 0x216   : > { %v10412_v7 = vadd.f32 %v1893_v2, %v1719_v38  ;;  %v1302_v8 = vpop.f32.mrf.mxu1  ;;  %v10414_v9 = vpop.f32.mrf.mxu0  ;;  %v9099_v2 = vld [vmem:[%s13038_s2 + $0x178] sm:$0xff] }
 0x219   : > { %7734 = vmatmul.msk.bf16.gmra.mxu1 %vm1234_vm0, %v9096_v6  ;;  %v7885_v6 = vld [vmem:[%s13040_s4 + $0x118] sm:$0xf] }
 0x21b   : > { %v10420_v11 = vpop.f32.mrf.mxu3 }
 0x21d   : > { %v1475_v13 = vpop.f32.mrf.mxu2 }
 0x21e   : > { %v1476_v20 = vadd.f32 %v1475_v13, %v1302_v8  ;;  %v10422_v21 = vpop.f32.mrf.mxu1  ;;  %v1898_v15 = vpop.f32.mrf.mxu0  ;;  %v9141_v8 = vld [vmem:[%s13040_s4 + $0x128] sm:$0xf0] }
 0x21f   : > { %v7886_v13 = vor.u32 %v9141_v8, %v7885_v6  ;;  %v9131_v6 = vld [vmem:[%s13040_s4 + $0xd8] sm:$0xf0]  ;;  %v9129_v8 = vld [vmem:[%s13040_s4 + $0xcc] sm:$0xf] }
 0x221   : > { %2611 = vmatpush.bf16.msrb.mxu2 %v7886_v13  ;;  %v7853_v13 = vld [vmem:[%s13040_s4 + $0xd0] sm:$0xf] }
 0x223   : > { %v1682_v28 = vpop.f32.mrf.mxu3 }
 0x224   : > { %v1721_v29 = vadd.f32 %v1682_v28, %v1476_v20  ;;  %v7887_v20 = vld [vmem:[%s13040_s4 + $0x12c] sm:$0xf0] }
 0x225   : > { %v10427_v24 = vpop.f32.mrf.mxu2  ;;  %v7890_v28 = vor.u32 %v9139_v32, %v7887_v20  ;;  %v9132_v20 = vld [vmem:[%s13040_s4 + $0xe0] sm:$0xf0] }
 0x226   : > { %v10432_v31 = vadd.f32 %v1898_v15, %v1721_v29  ;;  %v1307_v33 = vpop.f32.mrf.mxu1  ;;  %v10434_v34 = vpop.f32.mrf.mxu0  ;;  %v7893_v15 = vld [vmem:[%s13040_s4 + $0x120] sm:$0xf] }
 0x227   : > { %v7894_v29 = vor.u32 %v9142_v17, %v7893_v15  ;;  %2674 = vmatpush.bf16.msra.mxu3 %v7890_v28  ;;  %v7854_v17 = vor.u32 %v9132_v20, %v7853_v13  ;;  %v7825_v28 = vld [vmem:[%s13040_s4 + $0xa0] sm:$0xf]  ;;  %v9119_v13 = vld [vmem:[%s13040_s4 + $0x7c] sm:$0xf] }
 0x229   : > { %7735 = vmatmul.msk.bf16.gmra.mxu1 %vm1234_vm0, %v9097_v30  ;;  %2737 = vmatpush.bf16.msrb.mxu0 %v7894_v29  ;;  %v7865_v30 = vld [vmem:[%s13040_s4 + $0xf0] sm:$0xf]  ;;  %v9126_v29 = vld [vmem:[%s13040_s4 + $0xb0] sm:$0xf0] }
 0x22b   : > { %v10437_v35 = vpop.f32.mrf.mxu3 }
 0x22d   : > { %v1480_v37 = vpop.f32.mrf.mxu2 }
 0x22e   : > { %v1481_v18 = vadd.f32 %v1480_v37, %v1307_v33  ;;  %v10439_v19 = vpop.f32.mrf.mxu1  ;;  %v1903_v44 = vpop.f32.mrf.mxu0  ;;  %v9136_v33 = vld [vmem:[%s13040_s4 + $0x100] sm:$0xf0]  ;;  %v9134_v37 = vld [vmem:[%s13040_s4 + $0xf4] sm:$0xf] }
 0x233   : > { %v1687_v50 = vpop.f32.mrf.mxu3 }
 0x234   : > { %v1723_v41 = vadd.f32 %v1687_v50, %v1481_v18  ;;  %v7867_v50 = vld [vmem:[%s13040_s4 + $0x104] sm:$0xf0] }
 0x235   : > { %v10441_v43 = vpop.f32.mrf.mxu2 }
 0x236   : > { %v10446_v52 = vadd.f32 %v1903_v44, %v1723_v41  ;;  %v1312_v53 = vpop.f32.mrf.mxu1  ;;  %v10448_v55 = vpop.f32.mrf.mxu0  ;;  %v7866_v44 = vor.u32 %v9136_v33, %v7865_v30  ;;  %v7873_v41 = vld [vmem:[%s13040_s4 + $0xf8] sm:$0xf]  ;;  %v9124_v30 = vld [vmem:[%s13040_s4 + $0xa4] sm:$0xf] }
 0x238   : > { %2612 = vmatpush.bf16.msrb.mxu2 %v7866_v44  ;;  %v7827_v44 = vld [vmem:[%s13040_s4 + $0xb4] sm:$0xf0] }
 0x239   : > { %7736 = vmatmul.msk.bf16.gmra.mxu1 %vm1234_vm0, %v9098_v12  ;;  %v9137_v12 = vld [vmem:[%s13040_s4 + $0x108] sm:$0xf0] }
 0x23b   : > { %v10451_v16 = vpop.f32.mrf.mxu3 }
 0x23d   : > { %v1485_v57 = vpop.f32.mrf.mxu2 }
 0x23e   : > { %v1486_v46 = vadd.f32 %v1485_v57, %v1312_v53  ;;  %v10453_v49 = vpop.f32.mrf.mxu1  ;;  %v1908_v61 = vpop.f32.mrf.mxu0  ;;  %v7870_v53 = vor.u32 %v9134_v37, %v7867_v50  ;;  %v7874_v57 = vor.u32 %v9137_v12, %v7873_v41  ;;  %v7826_v37 = vor.u32 %v9126_v29, %v7825_v28  ;;  %v7833_v50 = vld [vmem:[%s13040_s4 + $0xa8] sm:$0xf]  ;;  %v9127_v41 = vld [vmem:[%s13040_s4 + $0xb8] sm:$0xf0] }
 0x240   : > { %2675 = vmatpush.bf16.msra.mxu3 %v7870_v53  ;;  %2738 = vmatpush.bf16.msrb.mxu0 %v7874_v57  ;;  %v7830_v53 = vor.u32 %v9124_v30, %v7827_v44  ;;  %v7834_v57 = vor.u32 %v9127_v41, %v7833_v50  ;;  %v7785_v30 = vld [vmem:[%s13040_s4 + $0x50] sm:$0xf]  ;;  %v7787_v41 = vld [vmem:[%s13040_s4 + $0x64] sm:$0xf0] }
 0x243   : > { %v1692_v45 = vpop.f32.mrf.mxu3 }
 0x244   : > { %v1725_v39 = vadd.f32 %v1692_v45, %v1486_v46  ;;  %2739 = vmatpush.bf16.msrb.mxu0 %v7854_v17  ;;  %v9122_v17 = vld [vmem:[%s13040_s4 + $0x90] sm:$0xf0] }
 0x245   : > { %v10455_v1 = vpop.f32.mrf.mxu2 }
 0x246   : > { %v10460_v3 = vadd.f32 %v1908_v61, %v1725_v39  ;;  %v1317_v4 = vpop.f32.mrf.mxu1  ;;  %v10462_v38 = vpop.f32.mrf.mxu0 }
 0x248   : > { %2740 = vmatpush.bf16.msrb.mxu0 %v7834_v57 }
 0x249   : > { %7737 = vmatmul.msk.bf16.gmra.mxu1 %vm1234_vm0, %v9099_v2  ;;  %v7845_v2 = vld [vmem:[%s13040_s4 + $0xc8] sm:$0xf] }
 0x24a   : > { %v7846_v32 = vor.u32 %v9131_v6, %v7845_v2  ;;  %v9100_v2 = vld [vmem:[%s13038_s2 + $0x180] sm:$0xff] }
 0x24b   : > { %v10492_v18 = vpop.f32.mrf.mxu3 }
 0x24c   : > { %2613 = vmatpush.bf16.msrb.mxu2 %v7846_v32 }
 0x24d   : > { %v1490_v46 = vpop.f32.mrf.mxu2 }
 0x24e   : > { %v1491_v61 = vadd.f32 %v1490_v46, %v1317_v4  ;;  %v10503_v45 = vpop.f32.mrf.mxu1  ;;  %v1913_v39 = vpop.f32.mrf.mxu0  ;;  %v7847_v4 = vld [vmem:[%s13040_s4 + $0xdc] sm:$0xf0] }
 0x24f   : > { %v7850_v15 = vor.u32 %v9129_v8, %v7847_v4  ;;  %v9121_v4 = vld [vmem:[%s13040_s4 + $0x88] sm:$0xf0] }
 0x250   : > { %2614 = vmatpush.bf16.msrb.mxu2 %v7826_v37  ;;  %v9114_v37 = vld [vmem:[%s13040_s4 + $0x54] sm:$0xf] }
 0x251   : > { %2676 = vmatpush.bf16.msra.mxu3 %v7850_v15  ;;  %v7813_v15 = vld [vmem:[%s13040_s4 + $0x80] sm:$0xf]  ;;  %v7790_v57 = vor.u32 %v9114_v37, %v7787_v41  ;;  %v9106_v41 = vld [vmem:[%s13040_s4 + $0x10] sm:$0xf0] }
 0x252   : > { %v7814_v29 = vor.u32 %v9122_v17, %v7813_v15  ;;  %v9111_v15 = vld [vmem:[%s13040_s4 + $0x38] sm:$0xf0]  ;;  %v9109_v17 = vld [vmem:[%s13040_s4 + $0x2c] sm:$0xf] }
 0x253   : > { %v1697_v33 = vpop.f32.mrf.mxu3 }
 0x254   : > { %v1727_v12 = vadd.f32 %v1697_v33, %v1491_v61  ;;  %v7805_v61 = vld [vmem:[%s13040_s4 + $0x78] sm:$0xf]  ;;  %2741 = vmatpush.bf16.msrb.mxu0 %v7814_v29  ;;  %v9116_v33 = vld [vmem:[%s13040_s4 + $0x60] sm:$0xf0]  ;;  %v7773_v29 = vld [vmem:[%s13040_s4 + $0x30] sm:$0xf] }
 0x255   : > { %v10541_v46 = vpop.f32.mrf.mxu2  ;;  %2677 = vmatpush.bf16.msra.mxu3 %v7830_v53  ;;  %v7806_v20 = vor.u32 %v9121_v4, %v7805_v61  ;;  %v7786_v50 = vor.u32 %v9116_v33, %v7785_v30  ;;  %v9117_v53 = vld [vmem:[%s13040_s4 + $0x68] sm:$0xf0]  ;;  %v9112_v30 = vld [vmem:[%s13040_s4 + $0x40] sm:$0xf0] }
 0x256   : > { %v10546_v6 = vadd.f32 %v1913_v39, %v1727_v12  ;;  %v1322_v8 = vpop.f32.mrf.mxu1  ;;  %v10548_v32 = vpop.f32.mrf.mxu0  ;;  %v7807_v39 = vld [vmem:[%s13040_s4 + $0x8c] sm:$0xf0]  ;;  %v7793_v12 = vld [vmem:[%s13040_s4 + $0x58] sm:$0xf]  ;;  %v7774_v37 = vor.u32 %v9112_v30, %v7773_v29  ;;  %v9101_v29 = vld [vmem:[%s13038_s2 + $0x188] sm:$0xff] }
 0x257   : > { %v7810_v28 = vor.u32 %v9119_v13, %v7807_v39  ;;  %2615 = vmatpush.bf16.msrb.mxu2 %v7806_v20  ;;  %v7765_v39 = vld [vmem:[%s13040_s4 + $0x28] sm:$0xf] }
 0x259   : > { %7738 = vmatmul.msk.bf16.gmra.mxu1 %vm1234_vm0, %v9100_v2  ;;  %2678 = vmatpush.bf16.msra.mxu3 %v7810_v28  ;;  %v7794_v2 = vor.u32 %v9117_v53, %v7793_v12  ;;  %v7766_v28 = vor.u32 %v9111_v15, %v7765_v39  ;;  %v9104_v12 = vld [vmem:[%s13040_s4 + $0x4] sm:$0xf]  ;;  %v9107_v39 = vld [vmem:[%s13040_s4 + $0x18] sm:$0xf0] }
 0x25b   : > { %v10578_v44 = vpop.f32.mrf.mxu3  ;;  %2616 = vmatpush.bf16.msrb.mxu2 %v7786_v50  ;;  %2742 = vmatpush.bf16.msrb.mxu0 %v7794_v2  ;;  %v7745_v50 = vld [vmem:[%s13040_s4] sm:$0xf]  ;;  %v7747_v2 = vld [vmem:[%s13040_s4 + $0x14] sm:$0xf0] }
 0x25d   : > { %v1495_v61 = vpop.f32.mrf.mxu2  ;;  %2679 = vmatpush.bf16.msra.mxu3 %v7790_v57  ;;  %v7746_v57 = vor.u32 %v9106_v41, %v7745_v50  ;;  %v7895_v50 = vld [vmem:[%s13040_s4 + $0x134] sm:$0xf0] }
 0x25e   : > { %v1496_v4 = vadd.f32 %v1495_v61, %v1322_v8  ;;  %v10589_v13 = vpop.f32.mrf.mxu1  ;;  %v1918_v20 = vpop.f32.mrf.mxu0  ;;  %v7767_v8 = vld [vmem:[%s13040_s4 + $0x3c] sm:$0xf0]  ;;  %v7753_v61 = vld [vmem:[%s13040_s4 + $0x8] sm:$0xf] }
 0x25f   : > { %v7770_v33 = vor.u32 %v9109_v17, %v7767_v8  ;;  %2617 = vmatpush.bf16.msrb.mxu2 %v7766_v28  ;;  %2743 = vmatpush.bf16.msrb.mxu0 %v7774_v37  ;;  %v7750_v17 = vor.u32 %v9104_v12, %v7747_v2  ;;  %v7754_v28 = vor.u32 %v9107_v39, %v7753_v61 }
 0x261   : > { %2680 = vmatpush.bf16.msra.mxu3 %v7770_v33 }
 0x263   : > { %v1702_v53 = vpop.f32.mrf.mxu3  ;;  %2618 = vmatpush.bf16.msrb.mxu2 %v7746_v57  ;;  %2744 = vmatpush.bf16.msrb.mxu0 %v7754_v28  ;;  %v7855_v28 = vld [vmem:[%s13040_s4 + $0xe4] sm:$0xf0] }
 0x264   : > { %v1729_v15 = vadd.f32 %v1702_v53, %v1496_v4  ;;  %v9140_v4 = vld [vmem:[%s13040_s4 + $0x124] sm:$0xf]  ;;  %v7875_v53 = vld [vmem:[%s13040_s4 + $0x10c] sm:$0xf0] }
 0x265   : > { %v10627_v8 = vpop.f32.mrf.mxu2  ;;  %2681 = vmatpush.bf16.msra.mxu3 %v7750_v17  ;;  %v7898_v41 = vor.u32 %v9140_v4, %v7895_v50  ;;  %v9130_v17 = vld [vmem:[%s13040_s4 + $0xd4] sm:$0xf] }
 0x266   : > { %v10632_v30 = vadd.f32 %v1918_v20, %v1729_v15  ;;  %v1327_v33 = vpop.f32.mrf.mxu1  ;;  %v10634_v37 = vpop.f32.mrf.mxu0  ;;  %v9135_v20 = vld [vmem:[%s13040_s4 + $0xfc] sm:$0xf] }
 0x267   : > { %13065 = vst [vmem:[#allocation9_spill] sm:$0xff] %v10634_v37  ;;  %2800 = vmatpush.bf16.msrb.mxu1 %v7898_v41  ;;  %v7878_v2 = vor.u32 %v9135_v20, %v7875_v53  ;;  %v9125_v41 = vld [vmem:[%s13040_s4 + $0xac] sm:$0xf]  ;;  %v2200_v20 = vpop.permute.xlu0 %2199  ;;  %v9102_v53 = vld [vmem:[%s13038_s2 + $0x190] sm:$0xff] }
 0x269   : > { %7739 = vmatmul.msk.bf16.gmra.mxu1 %vm1234_vm0, %v9101_v29  ;;  %v7858_v29 = vor.u32 %v9130_v17, %v7855_v28 }
 0x26b   : > { %v10643_v12 = vpop.f32.mrf.mxu3  ;;  %2801 = vmatpush.bf16.msrb.mxu1 %v7878_v2 }
 0x26d   : > { %v1500_v57 = vpop.f32.mrf.mxu2 }
 0x26e   : > { %v1501_v61 = vadd.f32 %v1500_v57, %v1327_v33  ;;  %v1329_v39 = vpop.f32.mrf.mxu1  ;;  %v1923_v15 = vpop.f32.mrf.mxu0  ;;  %v7835_v33 = vld [vmem:[%s13040_s4 + $0xbc] sm:$0xf0] }
 0x26f   : > { %2802 = vmatpush.bf16.msrb.mxu1 %v7858_v29  ;;  %v7838_v57 = vor.u32 %v9125_v41, %v7835_v33  ;;  %v9120_v29 = vld [vmem:[%s13040_s4 + $0x84] sm:$0xf] }
 0x273   : > { %v1707_v4 = vpop.f32.mrf.mxu3  ;;  %2803 = vmatpush.bf16.msrb.mxu1 %v7838_v57 }
 0x274   : > { %v1731_v50 = vadd.f32 %v1707_v4, %v1501_v61  ;;  %v1453_v61 = vadd.f32 %v10279_v58, %v10266_v51  ;;  %v7815_v4 = vld [vmem:[%s13040_s4 + $0x94] sm:$0xf0]  ;;  %v9115_v51 = vld [vmem:[%s13040_s4 + $0x5c] sm:$0xf]  ;;  %v7795_v58 = vld [vmem:[%s13040_s4 + $0x6c] sm:$0xf0] }
 0x275   : > { %v1502_v2 = vpop.f32.mrf.mxu2  ;;  %v7798_v57 = vor.u32 %v9115_v51, %v7795_v58  ;;  %v2210_v51 = vpop.permute.xlu1 %2209 }
 0x276   : > { %v10666_v39 = vadd.f32 %v1923_v15, %v1731_v50  ;;  %v2101_v17 = vpop.f32.mrf.mxu1  ;;  %v1925_v28 = vpop.f32.mrf.mxu0  ;;  %v1712_v37 = vadd.f32 %v10302_v63, %v1453_v61  ;;  %v7818_v15 = vor.u32 %v9120_v29, %v7815_v4 }
 0x277   : > { %v2155_v50 = vadd.f32 %v2101_v17, %v10287_v59  ;;  %v9110_v59 = vld [vmem:[%s13040_s4 + $0x34] sm:$0xf]  ;;  %v7775_v17 = vld [vmem:[%s13040_s4 + $0x44] sm:$0xf0] }
 0x278   : > { %2804 = vmatpush.bf16.msrb.mxu1 %v7818_v15  ;;  %v1928_v33 = vadd.f32 %v10289_v60, %v1712_v37  ;;  %v7778_v29 = vor.u32 %v9110_v59, %v7775_v17  ;;  %v9105_v60 = vld [vmem:[%s13040_s4 + $0xc] sm:$0xf]  ;;  %v7755_v37 = vld [vmem:[%s13040_s4 + $0x1c] sm:$0xf0] }
 0x279   : > { %7740 = vmatmul.msk.bf16.gmra.mxu1 %vm1234_vm0, %v9102_v53  ;;  %v2302_v63 = vadd.f32 %v2200_v20, %v2155_v50  ;;  %v2205_v53 = vpop.permute.xlu0 %2204  ;;  %v9103_v50 = vld [vmem:[%s13038_s2 + $0x198] sm:$0xff] }
 0x27b   : > { %v1709_v41 = vpop.f32.mrf.mxu3  ;;  %v2323_v4 = vmax.f32 %v2302_v63, 0.0 }
 0x27c   : > { %2805 = vmatpush.bf16.msrb.mxu1 %v7798_v57  ;;  %v7758_v41 = vor.u32 %v9105_v60, %v7755_v37  ;;  %v2220_v60 = vpop.permute.xlu2 %2219 }
 0x27d   : > { %v2215_v59 = vpop.permute.xlu1 %2214 }
 0x27e   : > { %v2103_v2 = vpop.f32.mrf.mxu1 }
 0x27f   : > { %v2156_v28 = vadd.f32 %v2103_v2, %v1928_v33  ;;  %v1458_v33 = vadd.f32 %v10329_v10, %v10313_v27  ;;  %v7691_v27 = vld [vmem:[%s13038_s2 + $0x1a0] sm:$0xf] }
 0x280   : > { %2806 = vmatpush.bf16.msrb.mxu1 %v7778_v29 }
 0x281   : > { %v2303_v61 = vadd.f32 %v2205_v53, %v2156_v28  ;;  %v1714_v57 = vadd.f32 %v10352_v36, %v1458_v33 }
 0x283   : > { %v2324_v15 = vmax.f32 %v2303_v61, 0.0  ;;  %v1930_v63 = vadd.f32 %v10339_v23, %v1714_v57  ;;  %v2011_v61 = vunpack.c.l.b16 %v7691_v27  ;;  %v1468_v27 = vadd.f32 %v10387_v47, %v10382_v54 }
 0x284   : > { %2807 = vmatpush.bf16.msrb.mxu1 %v7758_v41  ;;  %v2225_v57 = vpop.permute.xlu2 %2224 }
 0x285   : > { %v10698_v20 = vpack.c.bf16 %v2324_v15, %v2323_v4  ;;  %v2022_v36 = vpack.c.b16 %v2011_v61, %v2011_v61  ;;  %v2235_v61 = vpop.permute.xlu1 %2234 }
 0x286   : > { %v2106_v58 = vpop.f32.mrf.mxu1 }
 0x287   : > { %2619 = vmatmul.bf16.vlgmr.msrb.gmra.mxu2 %v10698_v20  ;;  %2682 = vmatmul.bf16.vlgmr.msra.gmra.mxu3 %v10698_v20  ;;  %v2157_v2 = vadd.f32 %v2106_v58, %v10337_v14  ;;  %v1463_v14 = vadd.f32 %v10364_v48, %v10354_v22 }
 0x288   : > { %2745 = vmatmul.bf16.vlgmr.msrb.gmra.mxu0 %v10698_v20 }
 0x289   : > { %7741 = vmatmul.msk.bf16.gmra.mxu1 %vm1234_vm0, %v9103_v50  ;;  %v2304_v10 = vadd.f32 %v2210_v51, %v2157_v2  ;;  %v1716_v23 = vadd.f32 %v10380_v26, %v1463_v14 }
 0x28b   : > { %v2325_v29 = vmax.f32 %v2304_v10, 0.0  ;;  %v1932_v41 = vadd.f32 %v10371_v42, %v1716_v23  ;;  %v2230_v10 = vpop.permute.xlu0 %2229 }
 0x28e   : > { %v2108_v28 = vpop.f32.mrf.mxu1 }
 0x28f   : > { %v2158_v53 = vadd.f32 %v2108_v28, %v1930_v63 }
 0x291   : > { %v2305_v17 = vadd.f32 %v2215_v59, %v2158_v53 }
 0x293   : > { %v2326_v4 = vmax.f32 %v2305_v17, 0.0 }
 0x295   : > { %v10715_v15 = vpack.c.bf16 %v2326_v4, %v2325_v29 }
 0x296   : > { %v2111_v37 = vpop.f32.mrf.mxu1 }
 0x297   : > { %2624 = vmatmul.bf16.gmra.mxu2 %v10715_v15  ;;  %2687 = vmatmul.bf16.gmra.mxu3 %v10715_v15  ;;  %v2159_v50 = vadd.f32 %v2111_v37, %v10369_v40  ;;  %v1718_v40 = vadd.f32 %v10400_v0, %v1468_v27  ;;  %v1473_v0 = vadd.f32 %v10407_v5, %v10402_v25  ;;  %v2240_v37 = vpop.permute.xlu2 %2239 }
 0x298   : > { %2750 = vmatmul.bf16.gmra.mxu0 %v10715_v15 }
 0x299   : > { %7742 = vmatmul.msk.bf16.gmra.mxu1 %vm1234_vm0, %v2022_v36  ;;  %v2306_v58 = vadd.f32 %v2220_v60, %v2159_v50  ;;  %v1934_v26 = vadd.f32 %v10394_v62, %v1718_v40 }
 0x29b   : > { %v2327_v22 = vmax.f32 %v2306_v58, 0.0 }
 0x29e   : > { %v2113_v51 = vpop.f32.mrf.mxu1 }
 0x29f   : > { %v2160_v33 = vadd.f32 %v2113_v51, %v1932_v41  ;;  %v2245_v41 = vpop.permute.xlu0 %2244  ;;  %v2255_v27 = vpop.permute.xlu2 %2254 }
 0x2a1   : > { %v2307_v2 = vadd.f32 %v2225_v57, %v2160_v33 }
 0x2a3   : > { %v2328_v48 = vmax.f32 %v2307_v2, 0.0  ;;  %v2250_v2 = vpop.permute.xlu1 %2249 }
 0x2a5   : > { %v10726_v63 = vpack.c.bf16 %v2328_v48, %v2327_v22 }
 0x2a6   : > { %v2116_v28 = vpop.f32.mrf.mxu1 }
 0x2a7   : > { %2629 = vmatmul.bf16.gmra.mxu2 %v10726_v63  ;;  %2692 = vmatmul.bf16.gmra.mxu3 %v10726_v63  ;;  %v2161_v42 = vadd.f32 %v2116_v28, %v10392_v56  ;;  %v1720_v56 = vadd.f32 %v10420_v11, %v1473_v0  ;;  %v1478_v11 = vadd.f32 %v10427_v24, %v10422_v21 }
 0x2a8   : > { %2755 = vmatmul.bf16.gmra.mxu0 %v10726_v63 }
 0x2a9   : > { %2808 = vmatmul.bf16.vlgmr.msrb.gmra.mxu1 %v10698_v20  ;;  %v2308_v59 = vadd.f32 %v2230_v10, %v2161_v42  ;;  %v1936_v60 = vadd.f32 %v10414_v9, %v1720_v56  ;;  %v2270_v56 = vpop.permute.xlu2 %2269 }
 0x2ab   : > { %v2329_v47 = vmax.f32 %v2308_v59, 0.0 }
 0x2ae   : > { %v2118_v53 = vpop.f32.mrf.mxu1 }
 0x2af   : > { %v2162_v17 = vadd.f32 %v2118_v53, %v1934_v26  ;;  %v2260_v53 = vpop.permute.xlu0 %2259 }
 0x2b1   : > { %v2309_v54 = vadd.f32 %v2235_v61, %v2162_v17 }
 0x2b3   : > { %v2330_v29 = vmax.f32 %v2309_v54, 0.0  ;;  %v2265_v54 = vpop.permute.xlu1 %2264 }
 0x2b5   : > { %v10737_v4 = vpack.c.bf16 %v2330_v29, %v2329_v47 }
 0x2b6   : > { %v2121_v36 = vpop.f32.mrf.mxu1 }
 0x2b7   : > { %2634 = vmatmul.bf16.gmra.mxu2 %v10737_v4  ;;  %2697 = vmatmul.bf16.gmra.mxu3 %v10737_v4  ;;  %v2163_v62 = vadd.f32 %v2121_v36, %v10412_v7  ;;  %v1722_v7 = vadd.f32 %v10437_v35, %v1478_v11  ;;  %v1483_v35 = vadd.f32 %v10441_v43, %v10439_v19 }
 0x2b8   : > { %2760 = vmatmul.bf16.gmra.mxu0 %v10737_v4 }
 0x2b9   : > { %2813 = vmatmul.bf16.gmra.mxu1 %v10715_v15  ;;  %v2310_v23 = vadd.f32 %v2240_v37, %v2163_v62  ;;  %v1938_v57 = vadd.f32 %v10434_v34, %v1722_v7 }
 0x2bb   : > { %v2331_v5 = vmax.f32 %v2310_v23, 0.0  ;;  %v2280_v7 = vpop.permute.xlu1 %2279 }
 0x2be   : > { %v2123_v14 = vpop.f32.mrf.mxu1 }
 0x2bf   : > { %v2164_v50 = vadd.f32 %v2123_v14, %v1936_v60  ;;  %v2275_v14 = vpop.permute.xlu0 %2274 }
 0x2c1   : > { %v2311_v25 = vadd.f32 %v2245_v41, %v2164_v50 }
 0x2c3   : > { %v2332_v51 = vmax.f32 %v2311_v25, 0.0 }
 0x2c5   : > { %v10748_v58 = vpack.c.bf16 %v2332_v51, %v2331_v5  ;;  %v7881_v51 = vld [vmem:[%s13040_s4 + $0x100] sm:$0xf] }
 0x2c6   : > { %v2126_v33 = vpop.f32.mrf.mxu1 }
 0x2c7   : > { %2639 = vmatmul.bf16.gmra.mxu2 %v10748_v58  ;;  %2702 = vmatmul.bf16.gmra.mxu3 %v10748_v58  ;;  %v2165_v9 = vadd.f32 %v2126_v33, %v10432_v31  ;;  %v1724_v31 = vadd.f32 %v10451_v16, %v1483_v35  ;;  %v1488_v16 = vadd.f32 %v10455_v1, %v10453_v49 }
 0x2c8   : > { %2765 = vmatmul.bf16.gmra.mxu0 %v10748_v58 }
 0x2c9   : > { %2818 = vmatmul.bf16.gmra.mxu1 %v10726_v63  ;;  %v2312_v48 = vadd.f32 %v2250_v2, %v2165_v9  ;;  %v1940_v10 = vadd.f32 %v10448_v55, %v1724_v31 }
 0x2cb   : > { %v2333_v24 = vmax.f32 %v2312_v48, 0.0 }
 0x2ce   : > { %v2128_v22 = vpop.f32.mrf.mxu1 }
 0x2cf   : > { %v2166_v28 = vadd.f32 %v2128_v22, %v1938_v57  ;;  %v9133_v57 = vld [vmem:[%s13040_s4 + $0xe8] sm:$0xf0] }
 0x2d1   : > { %v2313_v21 = vadd.f32 %v2255_v27, %v2166_v28  ;;  %v2285_v28 = vpop.permute.xlu2 %2284 }
 0x2d3   : > { %v2334_v40 = vmax.f32 %v2313_v21, 0.0 }
 0x2d5   : > { %v10759_v42 = vpack.c.bf16 %v2334_v40, %v2333_v24 }
 0x2d6   : > { %v2131_v26 = vpop.f32.mrf.mxu1 }
 0x2d7   : > { %2644 = vmatmul.bf16.gmra.mxu2 %v10759_v42  ;;  %2707 = vmatmul.bf16.gmra.mxu3 %v10759_v42  ;;  %v2167_v34 = vadd.f32 %v2131_v26, %v10446_v52  ;;  %v1726_v52 = vadd.f32 %v10492_v18, %v1488_v16  ;;  %v7901_v18 = vld [vmem:[%s13040_s4 + $0x128] sm:$0xf] }
 0x2d8   : > { %2770 = vmatmul.bf16.gmra.mxu0 %v10759_v42 }
 0x2d9   : > { %2823 = vmatmul.bf16.gmra.mxu1 %v10737_v4  ;;  %v2314_v17 = vadd.f32 %v2260_v53, %v2167_v34  ;;  %v1942_v0 = vadd.f32 %v10462_v38, %v1726_v52  ;;  %v1493_v38 = vadd.f32 %v10541_v46, %v10503_v45  ;;  %v9138_v45 = vld [vmem:[%s13040_s4 + $0x110] sm:$0xf0]  ;;  %v7821_v34 = vld [vmem:[%s13040_s4 + $0x88] sm:$0xf]  ;;  %v1498_v53 = vadd.f32 %v10627_v8, %v10589_v13  ;;  %v2290_v52 = vpop.permute.xlu0 %2289 }
 0x2da   : > { %v7882_v33 = vor.u32 %v9138_v45, %v7881_v51  ;;  %v9118_v13 = vld [vmem:[%s13040_s4 + $0x70] sm:$0xf0] }
 0x2db   : > { %v2335_v43 = vmax.f32 %v2314_v17, 0.0  ;;  %v1728_v5 = vadd.f32 %v10578_v44, %v1493_v38  ;;  %v7861_v44 = vld [vmem:[%s13040_s4 + $0xd8] sm:$0xf]  ;;  %v1730_v17 = vadd.f32 %v10643_v12, %v1498_v53 }
 0x2dc   : > { %v7862_v48 = vor.u32 %v9133_v57, %v7861_v44 }
 0x2dd   : > { %v1944_v11 = vadd.f32 %v10548_v32, %v1728_v5  ;;  %v9128_v32 = vld [vmem:[%s13040_s4 + $0xc0] sm:$0xf0] }
 0x2de   : > { %v2133_v59 = vpop.f32.mrf.mxu1 }
 0x2df   : > { %v2168_v61 = vadd.f32 %v2133_v59, %v1940_v10  ;;  %v9123_v10 = vld [vmem:[%s13040_s4 + $0x98] sm:$0xf0] }
 0x2e0   : > { %v7822_v59 = vor.u32 %v9123_v10, %v7821_v34 }
 0x2e1   : > { %v2315_v19 = vadd.f32 %v2265_v54, %v2168_v61 }
 0x2e3   : > { %v2336_v47 = vmax.f32 %v2315_v19, 0.0  ;;  %v7801_v19 = vld [vmem:[%s13040_s4 + $0x60] sm:$0xf] }
 0x2e5   : > { %v10770_v29 = vpack.c.bf16 %v2336_v47, %v2335_v43  ;;  %v7802_v47 = vor.u32 %v9118_v13, %v7801_v19 }
 0x2e6   : > { %v2136_v36 = vpop.f32.mrf.mxu1 }
 0x2e7   : > { %2649 = vmatmul.bf16.gmra.mxu2 %v10770_v29  ;;  %2712 = vmatmul.bf16.gmra.mxu3 %v10770_v29  ;;  %v2169_v55 = vadd.f32 %v2136_v36, %v10460_v3  ;;  %v9143_v3 = vld [vmem:[%s13040_s4 + $0x138] sm:$0xf0]  ;;  %v13066_v36 = vld [vmem:[#allocation9_spill] sm:$0xff] }
 0x2e8   : > { %2775 = vmatmul.bf16.gmra.mxu0 %v10770_v29  ;;  %v7902_v25 = vor.u32 %v9143_v3, %v7901_v18  ;;  %v1946_v16 = vadd.f32 %v13066_v36, %v1730_v17 }
 0x2e9   : > { %2828 = vmatmul.bf16.gmra.mxu1 %v10748_v58  ;;  %v2316_v60 = vadd.f32 %v2270_v56, %v2169_v55  ;;  %v9113_v56 = vld [vmem:[%s13040_s4 + $0x48] sm:$0xf0] }
 0x2ea   : > { %2863 = vmatpush.bf16.msra.mxu2 %v7902_v25 }
 0x2eb   : > { %v2337_v1 = vmax.f32 %v2316_v60, 0.0 }
 0x2ee   : > { %v2138_v62 = vpop.f32.mrf.mxu1  ;;  %2864 = vmatpush.bf16.msra.mxu2 %v7882_v33 }
 0x2ef   : > { %v2170_v37 = vadd.f32 %v2138_v62, %v1942_v0  ;;  %v7781_v0 = vld [vmem:[%s13040_s4 + $0x38] sm:$0xf] }
 0x2f1   : > { %v2317_v49 = vadd.f32 %v2275_v14, %v2170_v37  ;;  %v2295_v37 = vpop.permute.xlu1 %2294 }
 0x2f2   : > { %2865 = vmatpush.bf16.msra.mxu2 %v7862_v48  ;;  %v2300_v48 = vpop.permute.xlu2 %2299 }
 0x2f3   : > { %v2338_v23 = vmax.f32 %v2317_v49, 0.0 }
 0x2f5   : > { %v10781_v50 = vpack.c.bf16 %v2338_v23, %v2337_v1  ;;  %v7761_v23 = vld [vmem:[%s13040_s4 + $0x10] sm:$0xf] }
 0x2f6   : > { %v2141_v41 = vpop.f32.mrf.mxu1 }
 0x2f7   : > { %2654 = vmatmul.bf16.gmra.mxu2 %v10781_v50  ;;  %2717 = vmatmul.bf16.gmra.mxu3 %v10781_v50  ;;  %v2171_v46 = vadd.f32 %v2141_v41, %v10546_v6  ;;  %v7841_v6 = vld [vmem:[%s13040_s4 + $0xb0] sm:$0xf]  ;;  %v9108_v41 = vld [vmem:[%s13040_s4 + $0x20] sm:$0xf0] }
 0x2f8   : > { %2780 = vmatmul.bf16.gmra.mxu0 %v10781_v50  ;;  %v7842_v40 = vor.u32 %v9128_v32, %v7841_v6  ;;  %v7762_v25 = vor.u32 %v9108_v41, %v7761_v23 }
 0x2f9   : > { %2833 = vmatmul.bf16.gmra.mxu1 %v10759_v42  ;;  %v2318_v2 = vadd.f32 %v2280_v7, %v2171_v46 }
 0x2fa   : > { %2866 = vmatpush.bf16.msra.mxu2 %v7842_v40 }
 0x2fb   : > { %v2339_v21 = vmax.f32 %v2318_v2, 0.0 }
 0x2fe   : > { %v2143_v9 = vpop.f32.mrf.mxu1  ;;  %2867 = vmatpush.bf16.msra.mxu2 %v7822_v59 }
 0x2ff   : > { %v2172_v22 = vadd.f32 %v2143_v9, %v1944_v11 }
 0x301   : > { %v2319_v27 = vadd.f32 %v2285_v28, %v2172_v22 }
 0x302   : > { %2868 = vmatpush.bf16.msra.mxu2 %v7802_v47 }
 0x303   : > { %v2340_v24 = vmax.f32 %v2319_v27, 0.0 }
 0x305   : > { %v10816_v26 = vpack.c.bf16 %v2340_v24, %v2339_v21  ;;  %v10818_v35 = vpop.f32.mrf.mxu0 }
 0x306   : > { %v2146_v31 = vpop.f32.mrf.mxu1 }
 0x307   : > { %2659 = vmatmul.bf16.gmra.mxu2 %v10816_v26  ;;  %2722 = vmatmul.bf16.gmra.mxu3 %v10816_v26  ;;  %v2173_v8 = vadd.f32 %v2146_v31, %v10632_v30  ;;  %v7782_v30 = vor.u32 %v9113_v56, %v7781_v0 }
 0x308   : > { %2785 = vmatmul.bf16.gmra.mxu0 %v10816_v26 }
 0x309   : > { %2838 = vmatmul.bf16.gmra.mxu1 %v10770_v29  ;;  %v2320_v62 = vadd.f32 %v2290_v52, %v2173_v8  ;;  %2869 = vmatpush.bf16.msra.mxu2 %v7782_v30 }
 0x30a   : > { %v2620_v61 = vpop.f32.mrf.mxu2  ;;  %v2683_v54 = vpop.f32.mrf.mxu3 }
 0x30b   : > { %v2926_v43 = vpack.c.bf16 %v2683_v54, %v2620_v61  ;;  %v2341_v18 = vmax.f32 %v2320_v62, 0.0 }
 0x30d   : > { %v10841_v12 = vpop.f32.mrf.mxu0  ;;  %v3141_v5 = vunpack.c.h.b16 %v2926_v43  ;;  %v3426_v51 = vunpack.c.l.b16 %v2926_v43  ;;  %2870 = vmatpush.bf16.msra.mxu2 %v7762_v25 }
 0x30e   : > { %v2148_v55 = vpop.f32.mrf.mxu1 }
 0x30f   : > { %v2174_v60 = vadd.f32 %v2148_v55, %v1946_v16 }
 0x311   : > { %v2321_v14 = vadd.f32 %v2295_v37, %v2174_v60 }
 0x312   : > { %v2622_v49 = vpop.f32.mrf.mxu2  ;;  %v2685_v1 = vpop.f32.mrf.mxu3 }
 0x313   : > { %v2342_v3 = vmax.f32 %v2321_v14, 0.0  ;;  %v2929_v38 = vpack.c.bf16 %v2685_v1, %v2622_v49 }
 0x315   : > { %v10855_v45 = vpack.c.bf16 %v2342_v3, %v2341_v18  ;;  %v3142_v46 = vunpack.c.h.b16 %v2929_v38  ;;  %v3427_v33 = vunpack.c.l.b16 %v2929_v38  ;;  %v2751_v11 = vpop.f32.mrf.mxu0 }
 0x316   : > { %v2151_v7 = vpop.f32.mrf.mxu1 }
 0x317   : > { %2664 = vmatmul.bf16.gmra.mxu2 %v10855_v45  ;;  %2727 = vmatmul.bf16.gmra.mxu3 %v10855_v45  ;;  %v10859_v9 = vpack.c.b16 %v3142_v46, %v3141_v5  ;;  %v10861_v44 = vpack.c.b16 %v3427_v33, %v3426_v51  ;;  %v2175_v57 = vadd.f32 %v2151_v7, %v10666_v39 }
 0x318   : > { %2790 = vmatmul.bf16.gmra.mxu0 %v10855_v45 }
 0x319   : > { %2843 = vmatmul.bf16.gmra.mxu1 %v10781_v50  ;;  %v2322_v27 = vadd.f32 %v2300_v48, %v2175_v57 }
 0x31a   : > { %v2625_v2 = vpop.f32.mrf.mxu2  ;;  %v2688_v22 = vpop.f32.mrf.mxu3 }
 0x31b   : > { %v2932_v28 = vpack.c.bf16 %v2688_v22, %v2625_v2  ;;  %v2343_v21 = vmax.f32 %v2322_v27, 0.0 }
 0x31d   : > { %v10866_v6 = vpop.f32.mrf.mxu0  ;;  %v10868_v34 = vpack.c.bf16 %v2343_v21, %v2343_v21  ;;  %v3143_v10 = vunpack.c.h.b16 %v2932_v28  ;;  %v3428_v39 = vunpack.c.l.b16 %v2932_v28 }
 0x31e   : > { %v2153_v32 = vpop.f32.mrf.mxu1 }
 0x31f   : > { %13067 = vst [vmem:[#allocation9_spill] sm:$0xff] %v10868_v34 }
 0x322   : > { %v2627_v24 = vpop.f32.mrf.mxu2  ;;  %v2690_v40 = vpop.f32.mrf.mxu3 }
 0x323   : > { %v2935_v31 = vpack.c.bf16 %v2690_v40, %v2627_v24 }
 0x325   : > { %v3144_v53 = vunpack.c.h.b16 %v2935_v31  ;;  %v3429_v59 = vunpack.c.l.b16 %v2935_v31  ;;  %v2756_v17 = vpop.f32.mrf.mxu0 }
 0x326   : > { %v2809_v61 = vpop.f32.mrf.mxu1 }
 0x327   : > { %v10871_v54 = vpack.c.bf16 %v2809_v61, %v10818_v35  ;;  %2669 = vmatmul.bf16.gmra.mxu2 %v10868_v34  ;;  %2732 = vmatmul.bf16.gmra.mxu3 %v10868_v34  ;;  %v10875_v19 = vpack.c.b16 %v3144_v53, %v3143_v10  ;;  %v10877_v13 = vpack.c.b16 %v3429_v59, %v3428_v39 }
 0x328   : > { %2795 = vmatmul.bf16.gmra.mxu0 %v10868_v34 }
 0x329   : > { %2848 = vmatmul.bf16.gmra.mxu1 %v10816_v26 }
 0x32a   : > { %v2630_v8 = vpop.f32.mrf.mxu2  ;;  %v2693_v43 = vpop.f32.mrf.mxu3 }
 0x32b   : > { %v2938_v47 = vpack.c.bf16 %v2693_v43, %v2630_v8 }
 0x32d   : > { %v10881_v36 = vpop.f32.mrf.mxu0  ;;  %v3145_v0 = vunpack.c.h.b16 %v2938_v47  ;;  %v3430_v56 = vunpack.c.l.b16 %v2938_v47 }
 0x32e   : > { %v10883_v16 = vpop.f32.mrf.mxu1 }
 0x332   : > { %v2632_v35 = vpop.f32.mrf.mxu2  ;;  %v2695_v52 = vpop.f32.mrf.mxu3 }
 0x333   : > { %v2941_v55 = vpack.c.bf16 %v2695_v52, %v2632_v35 }
 0x335   : > { %v3146_v62 = vunpack.c.h.b16 %v2941_v55  ;;  %v3431_v60 = vunpack.c.l.b16 %v2941_v55  ;;  %v2761_v30 = vpop.f32.mrf.mxu0 }
 0x336   : > { %v2814_v37 = vpop.f32.mrf.mxu1 }
 0x337   : > { %v10885_v14 = vpack.c.bf16 %v2814_v37, %v2751_v11  ;;  %2871 = vmatmul.bf16.vlgmr.msra.gmra.mxu2 %v10698_v20  ;;  %v10888_v49 = vpack.c.b16 %v3146_v62, %v3145_v0  ;;  %v10890_v1 = vpack.c.b16 %v3431_v60, %v3430_v56 }
 0x339   : > { %2853 = vmatmul.bf16.gmra.mxu1 %v10855_v45 }
 0x33a   : > { %v2635_v23 = vpop.f32.mrf.mxu2  ;;  %v2698_v41 = vpop.f32.mrf.mxu3 }
 0x33b   : > { %v2944_v18 = vpack.c.bf16 %v2698_v41, %v2635_v23 }
 0x33d   : > { %v10893_v3 = vpop.f32.mrf.mxu0  ;;  %v3147_v46 = vunpack.c.h.b16 %v2944_v18  ;;  %v3432_v33 = vunpack.c.l.b16 %v2944_v18 }
 0x33e   : > { %v10895_v38 = vpop.f32.mrf.mxu1 }
 0x342   : > { %v2637_v25 = vpop.f32.mrf.mxu2  ;;  %v2700_v5 = vpop.f32.mrf.mxu3 }
 0x343   : > { %v2947_v51 = vpack.c.bf16 %v2700_v5, %v2637_v25 }
 0x345   : > { %v3148_v11 = vunpack.c.h.b16 %v2947_v51  ;;  %v3433_v20 = vunpack.c.l.b16 %v2947_v51  ;;  %v2766_v7 = vpop.f32.mrf.mxu0 }
 0x346   : > { %v2819_v57 = vpop.f32.mrf.mxu1 }
 0x347   : > { %v10897_v2 = vpack.c.bf16 %v2819_v57, %v2756_v17  ;;  %2876 = vmatmul.bf16.gmra.mxu2 %v10715_v15  ;;  %v10900_v22 = vpack.c.b16 %v3148_v11, %v3147_v46  ;;  %v10902_v48 = vpack.c.b16 %v3433_v20, %v3432_v33 }
 0x349   : > { %2858 = vmatmul.bf16.gmra.mxu1 %v10868_v34 }
 0x34a   : > { %v2640_v28 = vpop.f32.mrf.mxu2  ;;  %v2703_v27 = vpop.f32.mrf.mxu3 }
 0x34b   : > { %v10905_v32 = vpack.c.bf16 %v2703_v27, %v2640_v28 }
 0x34d   : > { %v10907_v21 = vpop.f32.mrf.mxu0 }
 0x34e   : > { %v10909_v24 = vpop.f32.mrf.mxu1 }
 0x352   : > { %v2642_v40 = vpop.f32.mrf.mxu2  ;;  %v2705_v31 = vpop.f32.mrf.mxu3 }
 0x355   : > { %v10911_v10 = vpop.f32.mrf.mxu0 }
 0x356   : > { %v2824_v39 = vpop.f32.mrf.mxu1 }
 0x357   : > { %v10913_v15 = vpack.c.bf16 %v2824_v39, %v2761_v30  ;;  %2881 = vmatmul.bf16.gmra.mxu2 %v10726_v63 }
 0x35a   : > { %v2645_v53 = vpop.f32.mrf.mxu2  ;;  %v2708_v59 = vpop.f32.mrf.mxu3 }
 0x35d   : > { %v10916_v17 = vpop.f32.mrf.mxu0 }
 0x35e   : > { %v10918_v61 = vpop.f32.mrf.mxu1 }
 0x362   : > { %v2647_v8 = vpop.f32.mrf.mxu2  ;;  %v2710_v43 = vpop.f32.mrf.mxu3 }
 0x363   : > { %v10936_v27 = vpack.c.bf16 %v2710_v43, %v2647_v8 }
 0x365   : > { %v10920_v47 = vpop.f32.mrf.mxu0 }
 0x366   : > { %v2829_v35 = vpop.f32.mrf.mxu1 }
 0x367   : > { %v10922_v52 = vpack.c.bf16 %v2829_v35, %v2766_v7  ;;  %2886 = vmatmul.bf16.gmra.mxu2 %v10737_v4  ;;  %v10940_v35 = vpack.c.bf16 %v2708_v59, %v2645_v53 }
 0x369   : > { %v3151_v43 = vunpack.c.h.b16 %v10940_v35 }
 0x36a   : > { %v2650_v55 = vpop.f32.mrf.mxu2  ;;  %v2713_v0 = vpop.f32.mrf.mxu3 }
 0x36b   : > { %v10932_v11 = vpack.c.bf16 %v2713_v0, %v2650_v55  ;;  %v10947_v0 = vpack.c.bf16 %v2705_v31, %v2642_v40 }
 0x36d   : > { %v2778_v56 = vpop.f32.mrf.mxu0  ;;  %v3150_v53 = vunpack.c.h.b16 %v10947_v0 }
 0x36e   : > { %v10925_v62 = vpop.f32.mrf.mxu1 }
 0x372   : > { %v2652_v63 = vpop.f32.mrf.mxu2  ;;  %v2715_v60 = vpop.f32.mrf.mxu3 }
 0x373   : > { %v10930_v4 = vpack.c.bf16 %v2715_v60, %v2652_v63  ;;  %v3153_v63 = vunpack.c.h.b16 %v10932_v11 }
 0x375   : > { %v2781_v30 = vpop.f32.mrf.mxu0 }
 0x376   : > { %v10927_v37 = vpop.f32.mrf.mxu1 }
 0x377   : > { %2891 = vmatmul.bf16.gmra.mxu2 %v10748_v58  ;;  %v3154_v58 = vunpack.c.h.b16 %v10930_v4 }
 0x379   : > { %v3168_v8 = vpack.c.b16 %v3154_v58, %v3153_v63 }
 0x37a   : > { %v2655_v23 = vpop.f32.mrf.mxu2  ;;  %v2718_v41 = vpop.f32.mrf.mxu3 }
 0x37b   : > { %v2968_v5 = vpack.c.bf16 %v2718_v41, %v2655_v23  ;;  %v3152_v23 = vunpack.c.h.b16 %v10936_v27 }
 0x37d   : > { %v2783_v18 = vpop.f32.mrf.mxu0  ;;  %v3155_v20 = vunpack.c.h.b16 %v2968_v5  ;;  %v3167_v59 = vpack.c.b16 %v3152_v23, %v3151_v43 }
 0x37e   : > { %v2836_v25 = vpop.f32.mrf.mxu1 }
 0x382   : > { %v2657_v51 = vpop.f32.mrf.mxu2  ;;  %v2720_v46 = vpop.f32.mrf.mxu3 }
 0x383   : > { %v2971_v33 = vpack.c.bf16 %v2720_v46, %v2657_v51  ;;  %v3149_v51 = vunpack.c.h.b16 %v10905_v32 }
 0x385   : > { %v3156_v7 = vunpack.c.h.b16 %v2971_v33  ;;  %v10934_v57 = vpop.f32.mrf.mxu0  ;;  %v3166_v40 = vpack.c.b16 %v3150_v53, %v3149_v51 }
 0x386   : > { %13068 = vst [vmem:[#allocation10_spill] sm:$0xff] %v10934_v57  ;;  %v2839_v28 = vpop.f32.mrf.mxu1 }
 0x387   : > { %v3169_v39 = vpack.c.b16 %v3156_v7, %v3155_v20  ;;  %2896 = vmatmul.bf16.gmra.mxu2 %v10759_v42  ;;  %v10973_v51 = vpack.c.bf16 %v2839_v28, %v10920_v47  ;;  %v10985_v47 = vpack.c.bf16 %v2836_v25, %v10916_v17  ;;  %v3438_v17 = vunpack.c.l.b16 %v10932_v11 }
 0x388   : > { %v3436_v11 = vunpack.c.l.b16 %v10940_v35 }
 0x389   : > { %3218 = vmatpush.bf16.msrb.mxu3 %v3169_v39  ;;  %v3763_v34 = vunpack.c.l.b16 %v10973_v51 }
 0x38a   : > { %v10943_v60 = vpop.f32.mrf.mxu2  ;;  %v10945_v55 = vpop.f32.mrf.mxu3 }
 0x38d   : > { %v10951_v41 = vpop.f32.mrf.mxu0  ;;  %3219 = vmatpush.bf16.msrb.mxu3 %v3168_v8 }
 0x38e   : > { %v2841_v42 = vpop.f32.mrf.mxu1 }
 0x38f   : > { %v10968_v43 = vpack.c.bf16 %v2841_v42, %v2778_v56  ;;  %v3440_v56 = vunpack.c.l.b16 %v2968_v5  ;;  %v11002_v5 = vpack.c.bf16 %v10925_v62, %v10907_v21  ;;  %v11011_v21 = vpack.c.bf16 %v10918_v61, %v10893_v3 }
 0x390   : > { %v11019_v3 = vpack.c.bf16 %v10909_v24, %v10881_v36 }
 0x391   : > { %3220 = vmatpush.bf16.msrb.mxu3 %v3167_v59  ;;  %v3441_v59 = vunpack.c.l.b16 %v2971_v33  ;;  %v3764_v28 = vunpack.c.l.b16 %v10968_v43  ;;  %v3760_v62 = vunpack.c.l.b16 %v11002_v5 }
 0x392   : > { %v10955_v46 = vpop.f32.mrf.mxu2  ;;  %v10957_v20 = vpop.f32.mrf.mxu3 }
 0x395   : > { %v10959_v31 = vpop.f32.mrf.mxu0  ;;  %3221 = vmatpush.bf16.msrb.mxu3 %v3166_v40  ;;  %v3439_v40 = vunpack.c.l.b16 %v10930_v4  ;;  %v3762_v4 = vunpack.c.l.b16 %v10985_v47 }
 0x396   : > { %v2844_v7 = vpop.f32.mrf.mxu1 }
 0x397   : > { %2901 = vmatmul.bf16.gmra.mxu2 %v10770_v29  ;;  %v10963_v63 = vpack.c.bf16 %v2844_v7, %v2781_v30  ;;  %v7925_v30 = vld [vmem:[%s13041_s5 + $0xa0] sm:$0xf] }
 0x399   : > { %3222 = vmatpush.bf16.msrb.mxu3 %v10900_v22  ;;  %v3765_v29 = vunpack.c.l.b16 %v10963_v63 }
 0x39a   : > { %v2665_v58 = vpop.f32.mrf.mxu2  ;;  %v2728_v39 = vpop.f32.mrf.mxu3 }
 0x39b   : > { %v2980_v61 = vpack.c.bf16 %v2728_v39, %v2665_v58  ;;  %v7933_v58 = vld [vmem:[%s13041_s5 + $0xb0] sm:$0xf]  ;;  %v9167_v39 = vld [vmem:[%s13041_s5 + $0xb4] sm:$0xf0] }
 0x39d   : > { %v10965_v23 = vpop.f32.mrf.mxu0  ;;  %3223 = vmatpush.bf16.msrb.mxu3 %v10888_v49  ;;  %v9165_v49 = vld [vmem:[%s13041_s5 + $0xa4] sm:$0xf0] }
 0x39e   : > { %v2846_v8 = vpop.f32.mrf.mxu1  ;;  %v7926_v7 = vor.u32 %v9165_v49, %v7925_v30 }
 0x39f   : > { %v10970_v53 = vpack.c.bf16 %v2846_v8, %v2783_v18  ;;  %v10991_v8 = vpack.c.bf16 %v10927_v37, %v10911_v10  ;;  %v3778_v10 = vpack.c.b16 %v3764_v28, %v3763_v34  ;;  %v3437_v37 = vunpack.c.l.b16 %v10936_v27 }
 0x3a0   : > { %v3435_v27 = vunpack.c.l.b16 %v10947_v0  ;;  %v3758_v0 = vunpack.c.l.b16 %v11011_v21 }
 0x3a1   : > { %v3766_v22 = vunpack.c.l.b16 %v10970_v53  ;;  %3224 = vmatpush.bf16.msrb.mxu3 %v10875_v19  ;;  %v3454_v19 = vpack.c.b16 %v3441_v59, %v3440_v56  ;;  %v3453_v59 = vpack.c.b16 %v3439_v40, %v3438_v17  ;;  %v3452_v49 = vpack.c.b16 %v3437_v37, %v3436_v11 }
 0x3a2   : > { %v2667_v18 = vpop.f32.mrf.mxu2  ;;  %v2730_v33 = vpop.f32.mrf.mxu3  ;;  %v3759_v56 = vunpack.c.l.b16 %v10922_v52  ;;  %v3434_v40 = vunpack.c.l.b16 %v10905_v32  ;;  %v2977_v17 = vpack.c.bf16 %v10957_v20, %v10955_v46  ;;  %v3757_v32 = vunpack.c.l.b16 %v10913_v15 }
 0x3a3   : > { %v3779_v42 = vpack.c.b16 %v3766_v22, %v3765_v29  ;;  %v2983_v30 = vpack.c.bf16 %v2730_v33, %v2667_v18  ;;  %v2974_v46 = vpack.c.bf16 %v10945_v55, %v10943_v60  ;;  %v3159_v20 = vunpack.c.h.b16 %v2980_v61 }
 0x3a4   : > { %v11039_v11 = vpack.c.bf16 %v10895_v38, %v10866_v6  ;;  %v3443_v60 = vunpack.c.l.b16 %v2977_v17  ;;  %v9164_v6 = vld [vmem:[%s13041_s5 + $0xa4] sm:$0xf]  ;;  %v7927_v38 = vld [vmem:[%s13041_s5 + $0xa8] sm:$0xf0] }
 0x3a5   : > { %v10994_v57 = vpop.f32.mrf.mxu0  ;;  %3225 = vmatpush.bf16.msrb.mxu3 %v10859_v9  ;;  %3826 = vmatpush.bf16.msrb.mxu2 %v3779_v42  ;;  %v3761_v9 = vunpack.c.l.b16 %v10991_v8  ;;  %v3445_v37 = vunpack.c.l.b16 %v2983_v30 }
 0x3a6   : > { %v10998_v25 = vpop.f32.mrf.mxu1 }
 0x3a7   : > { %2906 = vmatmul.bf16.gmra.mxu2 %v10781_v50  ;;  %v3777_v34 = vpack.c.b16 %v3762_v4, %v3761_v9  ;;  %v3160_v4 = vunpack.c.h.b16 %v2983_v30  ;;  %v3755_v30 = vunpack.c.l.b16 %v10897_v2 }
 0x3a8   : > { %3226 = vmatmul.bf16.vlgmr.msrb.gmra.mxu3 %v7926_v7  ;;  %v3776_v7 = vpack.c.b16 %v3760_v62, %v3759_v56  ;;  %v3775_v62 = vpack.c.b16 %v3758_v0, %v3757_v32 }
 0x3a9   : > { %3501 = vmatpush.bf16.msra.mxu3 %v3454_v19  ;;  %3827 = vmatpush.bf16.msrb.mxu2 %v3778_v10  ;;  %v3451_v10 = vpack.c.b16 %v3435_v27, %v3434_v40  ;;  %v7934_v27 = vor.u32 %v9167_v39, %v7933_v58  ;;  %v9166_v39 = vld [vmem:[%s13041_s5 + $0xb4] sm:$0xf] }
 0x3aa   : > { %v2670_v29 = vpop.f32.mrf.mxu2  ;;  %v2733_v22 = vpop.f32.mrf.mxu3 }
 0x3ab   : > { %v2986_v50 = vpack.c.bf16 %v2733_v22, %v2670_v29  ;;  %v3756_v29 = vunpack.c.l.b16 %v11019_v3  ;;  %v3444_v22 = vunpack.c.l.b16 %v2980_v61  ;;  %v3753_v61 = vunpack.c.l.b16 %v10885_v14 }
 0x3ad   : > { %3502 = vmatpush.bf16.msra.mxu3 %v3453_v59  ;;  %v3161_v28 = vunpack.c.h.b16 %v2986_v50  ;;  %v3446_v42 = vunpack.c.l.b16 %v2986_v50  ;;  %v2798_v35 = vpop.f32.mrf.mxu0  ;;  %3828 = vmatpush.bf16.msrb.mxu2 %v3777_v34  ;;  %v3158_v50 = vunpack.c.h.b16 %v2977_v17  ;;  %v3171_v34 = vpack.c.b16 %v3160_v4, %v3159_v20 }
 0x3ae   : > { %v11021_v19 = vpop.f32.mrf.mxu1  ;;  %v3456_v55 = vpack.c.b16 %v3445_v37, %v3444_v22  ;;  %v3442_v35 = vunpack.c.l.b16 %v2974_v46  ;;  %v3774_v40 = vpack.c.b16 %v3756_v29, %v3755_v30  ;;  %v4089_v4 = vunpack.c.h.b16 %v10963_v63  ;;  %v7941_v37 = vld [vmem:[%s13041_s5 + $0xc0] sm:$0xf] }
 0x3af   : > { %v3172_v18 = vpack.c.b16 %v3161_v28, %v3161_v28  ;;  %v3457_v33 = vpack.c.b16 %v3446_v42, %v3446_v42  ;;  %v11052_v28 = vpack.c.bf16 %v10883_v16, %v10841_v12  ;;  %v3754_v42 = vunpack.c.l.b16 %v11039_v11 }
 0x3b0   : > { %v3455_v0 = vpack.c.b16 %v3443_v60, %v3442_v35  ;;  %v4085_v20 = vunpack.c.h.b16 %v10991_v8  ;;  %v4083_v8 = vunpack.c.h.b16 %v10922_v52  ;;  %v4080_v35 = vunpack.c.h.b16 %v11019_v3 }
 0x3b1   : > { %3503 = vmatpush.bf16.msra.mxu3 %v3452_v49  ;;  %3829 = vmatpush.bf16.msrb.mxu2 %v3776_v7  ;;  %v3216_v36 = vsel %vm3214_vm1, %v3172_v18, 0  ;;  %v3499_v24 = vsel %vm3214_vm1, %v3457_v33, 0  ;;  %v3157_v49 = vunpack.c.h.b16 %v2974_v46  ;;  %v7930_v18 = vor.u32 %v9164_v6, %v7927_v38  ;;  %v7935_v46 = vld [vmem:[%s13041_s5 + $0xb8] sm:$0xf0] }
 0x3b2   : > { %v2672_v59 = vpop.f32.mrf.mxu2  ;;  %v2735_v9 = vpop.f32.mrf.mxu3  ;;  %3282 = vmatpush.bf16.msra.mxu0 %v3216_v36  ;;  %3565 = vmatpush.bf16.msra.mxu1 %v3499_v24  ;;  %v3752_v12 = vunpack.c.l.b16 %v11052_v28  ;;  %v3773_v16 = vpack.c.b16 %v3754_v42, %v3753_v61  ;;  %v4090_v7 = vunpack.c.h.b16 %v10970_v53  ;;  %v9169_v53 = vld [vmem:[%s13041_s5 + $0xc4] sm:$0xf0]  ;;  %v7938_v22 = vor.u32 %v9166_v39, %v7935_v46  ;;  %v7965_v46 = vld [vmem:[%s13041_s5 + $0xf0] sm:$0xf] }
 0x3b3   : > { %v7942_v63 = vor.u32 %v9169_v53, %v7941_v37  ;;  %v4075_v53 = vunpack.c.h.b16 %v10871_v54 }
 0x3b4   : > { %v4103_v32 = vpack.c.b16 %v4090_v7, %v4089_v4  ;;  %v7943_v4 = vld [vmem:[%s13041_s5 + $0xc8] sm:$0xf0] }
 0x3b5   : > { %3504 = vmatpush.bf16.msra.mxu3 %v3451_v10  ;;  %3830 = vmatpush.bf16.msrb.mxu2 %v3775_v62 }
 0x3b6   : > { %v2854_v56 = vpop.f32.mrf.mxu1  ;;  %3283 = vmatpush.bf16.msra.mxu0 %v3171_v34  ;;  %3566 = vmatpush.bf16.msra.mxu1 %v3456_v55  ;;  %v13069_v55 = vld [vmem:[#allocation10_spill] sm:$0xff] }
 0x3b7   : > { %2911 = vmatmul.bf16.gmra.mxu2 %v10816_v26  ;;  %v3751_v26 = vunpack.c.l.b16 %v10871_v54  ;;  %v2981_v62 = vpack.c.bf16 %v2854_v56, %v10959_v31  ;;  %v2975_v52 = vpack.c.bf16 %v10998_v25, %v13069_v55  ;;  %v9171_v25 = vld [vmem:[%s13041_s5 + $0xd4] sm:$0xf0]  ;;  %v9170_v54 = vld [vmem:[%s13041_s5 + $0xd4] sm:$0xf]  ;;  %v9176_v55 = vld [vmem:[%s13041_s5 + $0x104] sm:$0xf] }
 0x3b8   : > { %3231 = vmatmul.bf16.gmra.mxu3 %v7934_v27 }
 0x3b9   : > { %3505 = vmatpush.bf16.msra.mxu3 %v10902_v48  ;;  %v3170_v48 = vpack.c.b16 %v3158_v50, %v3157_v49  ;;  %3831 = vmatpush.bf16.msrb.mxu2 %v3774_v40  ;;  %v3772_v10 = vpack.c.b16 %v3752_v12, %v3751_v26  ;;  %v3769_v49 = vunpack.c.l.b16 %v2981_v62  ;;  %v4093_v56 = vunpack.c.h.b16 %v2981_v62  ;;  %v9177_v62 = vld [vmem:[%s13041_s5 + $0x104] sm:$0xf0] }
 0x3ba   : > { %v11057_v33 = vpop.f32.mrf.mxu2  ;;  %3567 = vmatpush.bf16.msra.mxu1 %v3455_v0  ;;  %v3767_v61 = vunpack.c.l.b16 %v2975_v52  ;;  %v4091_v0 = vunpack.c.h.b16 %v2975_v52  ;;  %v4078_v26 = vunpack.c.h.b16 %v11039_v11  ;;  %v7975_v52 = vld [vmem:[%s13041_s5 + $0x108] sm:$0xf0] }
 0x3bb   : > { %3284 = vmatpush.bf16.msra.mxu0 %v3170_v48  ;;  %v7949_v48 = vld [vmem:[%s13041_s5 + $0xd0] sm:$0xf] }
 0x3bd   : > { %3506 = vmatpush.bf16.msra.mxu3 %v10890_v1  ;;  %3832 = vmatpush.bf16.msrb.mxu2 %v3773_v16  ;;  %v4088_v1 = vunpack.c.h.b16 %v10968_v43  ;;  %v4086_v43 = vunpack.c.h.b16 %v10985_v47  ;;  %v7950_v16 = vor.u32 %v9171_v25, %v7949_v48  ;;  %v8017_v48 = vld [vmem:[%s13041_s5 + $0x8] sm:$0xf0] }
 0x3be   : > { %8003 = vmatmul.msk.bf16.vlgmr.msra.gmra.mxu0 %vm3183_vm2, %v7930_v18  ;;  %v2856_v17 = vpop.f32.mrf.mxu1 }
 0x3bf   : > { %v2984_v47 = vpack.c.bf16 %v2856_v17, %v10965_v23  ;;  %v4101_v29 = vpack.c.b16 %v4086_v43, %v4085_v20  ;;  %v4082_v23 = vunpack.c.h.b16 %v11011_v21  ;;  %v9168_v17 = vld [vmem:[%s13041_s5 + $0xc4] sm:$0xf]  ;;  %v9175_v20 = vld [vmem:[%s13041_s5 + $0xf4] sm:$0xf0] }
 0x3c1   : > { %3507 = vmatpush.bf16.msra.mxu3 %v10877_v13  ;;  %3833 = vmatpush.bf16.msrb.mxu2 %v3772_v10  ;;  %v4087_v13 = vunpack.c.h.b16 %v10973_v51  ;;  %v4084_v51 = vunpack.c.h.b16 %v11002_v5  ;;  %v3770_v5 = vunpack.c.l.b16 %v2984_v47  ;;  %v4094_v27 = vunpack.c.h.b16 %v2984_v47  ;;  %v9172_v47 = vld [vmem:[%s13041_s5 + $0xe4] sm:$0xf] }
 0x3c2   : > { %v11073_v36 = vpop.f32.mrf.mxu2  ;;  %v4077_v10 = vunpack.c.h.b16 %v10885_v14  ;;  %v7957_v14 = vld [vmem:[%s13041_s5 + $0xe0] sm:$0xf] }
 0x3c3   : > { %v4102_v24 = vpack.c.b16 %v4088_v1, %v4087_v13  ;;  %v4100_v60 = vpack.c.b16 %v4084_v51, %v4083_v8  ;;  %v3781_v38 = vpack.c.b16 %v3770_v5, %v3769_v49  ;;  %v4105_v42 = vpack.c.b16 %v4094_v27, %v4093_v56 }
 0x3c4   : > { %v4076_v1 = vunpack.c.h.b16 %v11052_v28  ;;  %v4097_v11 = vpack.c.b16 %v4078_v26, %v4077_v10  ;;  %v7966_v51 = vor.u32 %v9175_v20, %v7965_v46  ;;  %v7978_v49 = vor.u32 %v9176_v55, %v7975_v52  ;;  %v7997_v26 = vld [vmem:[%s13041_s5 + $0x130] sm:$0xf]  ;;  %v9146_v20 = vld [vmem:[%s13041_s5 + $0x14] sm:$0xf] }
 0x3c5   : > { %3508 = vmatpush.bf16.msra.mxu3 %v10861_v44 }
 0x3c6   : > { %v2859_v58 = vpop.f32.mrf.mxu1  ;;  %v4096_v13 = vpack.c.b16 %v4076_v1, %v4075_v53 }
 0x3c7   : > { %v2987_v44 = vpack.c.bf16 %v2859_v58, %v10994_v57  ;;  %2916 = vmatmul.bf16.gmra.mxu2 %v10855_v45  ;;  %v2978_v45 = vpack.c.bf16 %v11021_v19, %v10951_v41  ;;  %v4081_v41 = vunpack.c.h.b16 %v10913_v15  ;;  %v4079_v15 = vunpack.c.h.b16 %v10897_v2  ;;  %v13070_v2 = vld [vmem:[#allocation9_spill] sm:$0xff] }
 0x3c8   : > { %3236 = vmatmul.bf16.gmra.mxu3 %v7942_v63  ;;  %v9173_v63 = vld [vmem:[%s13041_s5 + $0xe4] sm:$0xf0] }
 0x3c9   : > { %4150 = vmatpush.bf16.msrb.mxu3 %v4103_v32  ;;  %v3771_v59 = vunpack.c.l.b16 %v2987_v44  ;;  %v4095_v9 = vunpack.c.h.b16 %v2987_v44  ;;  %v3768_v19 = vunpack.c.l.b16 %v2978_v45  ;;  %v4092_v21 = vunpack.c.h.b16 %v2978_v45  ;;  %v7967_v45 = vld [vmem:[%s13041_s5 + $0xf8] sm:$0xf0] }
 0x3ca   : > { %v11090_v50 = vpop.f32.mrf.mxu2  ;;  %v4099_v40 = vpack.c.b16 %v4082_v23, %v4081_v41  ;;  %v4098_v7 = vpack.c.b16 %v4080_v35, %v4079_v15  ;;  %v7946_v32 = vor.u32 %v9168_v17, %v7943_v4  ;;  %v7958_v43 = vor.u32 %v9173_v63, %v7957_v14  ;;  %v7981_v23 = vld [vmem:[%s13041_s5 + $0x110] sm:$0xf]  ;;  %v9181_v41 = vld [vmem:[%s13041_s5 + $0x124] sm:$0xf0]  ;;  %v8125_v15 = vld [vmem:[%s13041_s5 + $0x140] sm:$0xf] }
 0x3cb   : > { %v3782_v34 = vpack.c.b16 %v3771_v59, %v3771_v59  ;;  %v4106_v57 = vpack.c.b16 %v4095_v9, %v4095_v9  ;;  %v3780_v12 = vpack.c.b16 %v3768_v19, %v3767_v61  ;;  %v4104_v3 = vpack.c.b16 %v4092_v21, %v4091_v0  ;;  %v7959_v59 = vld [vmem:[%s13041_s5 + $0xe8] sm:$0xf0] }
 0x3cc   : > { %v7962_v9 = vor.u32 %v9172_v47, %v7959_v59  ;;  %v7991_v14 = vld [vmem:[%s13041_s5 + $0x128] sm:$0xf0] }
 0x3cd   : > { %4151 = vmatpush.bf16.msrb.mxu3 %v4102_v24  ;;  %v3824_v30 = vsel %vm3214_vm1, %v3782_v34, 0  ;;  %v4148_v31 = vsel %vm3214_vm1, %v4106_v57, 0  ;;  %v7951_v24 = vld [vmem:[%s13041_s5 + $0xd8] sm:$0xf0]  ;;  %v9174_v57 = vld [vmem:[%s13041_s5 + $0xf4] sm:$0xf] }
 0x3ce   : > { %8004 = vmatmul.msk.bf16.gmra.mxu0 %vm3183_vm2, %v7938_v22  ;;  %v2861_v6 = vpop.f32.mrf.mxu1  ;;  %4214 = vmatpush.bf16.msrb.mxu1 %v4148_v31  ;;  %v7954_v58 = vor.u32 %v9170_v54, %v7951_v24  ;;  %v7973_v22 = vld [vmem:[%s13041_s5 + $0x100] sm:$0xf]  ;;  %v7970_v5 = vor.u32 %v9174_v57, %v7967_v45 }
 0x3cf   : > { %3890 = vmatpush.bf16.msrb.mxu0 %v3824_v30  ;;  %v7974_v34 = vor.u32 %v9177_v62, %v7973_v22  ;;  %v9179_v30 = vld [vmem:[%s13041_s5 + $0x114] sm:$0xf0]  ;;  %v7989_v6 = vld [vmem:[%s13041_s5 + $0x120] sm:$0xf] }
 0x3d0   : > { %v7990_v21 = vor.u32 %v9181_v41, %v7989_v6 }
 0x3d1   : > { %4152 = vmatpush.bf16.msrb.mxu3 %v4101_v29 }
 0x3d2   : > { %v11109_v18 = vpop.f32.mrf.mxu2  ;;  %4215 = vmatpush.bf16.msrb.mxu1 %v4105_v42  ;;  %v7983_v42 = vld [vmem:[%s13041_s5 + $0x118] sm:$0xf0] }
 0x3d3   : > { %3891 = vmatpush.bf16.msrb.mxu0 %v3781_v38  ;;  %v9178_v38 = vld [vmem:[%s13041_s5 + $0x114] sm:$0xf] }
 0x3d4   : > { %v7986_v35 = vor.u32 %v9178_v38, %v7983_v42 }
 0x3d5   : > { %4153 = vmatpush.bf16.msrb.mxu3 %v4100_v60  ;;  %v7982_v60 = vor.u32 %v9179_v30, %v7981_v23 }
 0x3d6   : > { %4216 = vmatpush.bf16.msrb.mxu1 %v4104_v3 }
 0x3d7   : > { %3892 = vmatpush.bf16.msrb.mxu0 %v3780_v12  ;;  %2921 = vmatmul.bf16.gmra.mxu2 %v13070_v2  ;;  %v9185_v12 = vld [vmem:[%s13041_s5 + $0x144] sm:$0xf0] }
 0x3d8   : > { %3241 = vmatmul.bf16.gmra.mxu3 %v7950_v16  ;;  %v8126_v3 = vor.u32 %v9185_v12, %v8125_v15  ;;  %v2934_v15 = vpack.c.bf16 %v11090_v50, %v11090_v50 }
 0x3d9   : > { %4154 = vmatpush.bf16.msrb.mxu3 %v4099_v40  ;;  %v9144_v40 = vld [vmem:[%s13041_s5 + $0x4] sm:$0xf] }
 0x3da   : > { %v11122_v37 = vpop.f32.mrf.mxu2  ;;  %v8020_v61 = vor.u32 %v9144_v40, %v8017_v48  ;;  %v9182_v48 = vld [vmem:[%s13041_s5 + $0x134] sm:$0xf] }
 0x3dc   : > { %8093 = vmatmul.msk.bf16.vlgmr.msra.gmra.mxu1 %vm3183_vm2, %v8020_v61 }
 0x3dd   : > { %4155 = vmatpush.bf16.msrb.mxu3 %v4098_v7  ;;  %v9183_v7 = vld [vmem:[%s13041_s5 + $0x134] sm:$0xf0] }
 0x3de   : > { %8005 = vmatmul.msk.bf16.gmra.mxu0 %vm3183_vm2, %v7946_v32  ;;  %v7998_v1 = vor.u32 %v9183_v7, %v7997_v26 }
 0x3e1   : > { %4156 = vmatpush.bf16.msrb.mxu3 %v4097_v11 }
 0x3e2   : > { %v11132_v28 = vpop.f32.mrf.mxu2 }
 0x3e5   : > { %4157 = vmatpush.bf16.msrb.mxu3 %v4096_v13  ;;  %v9180_v13 = vld [vmem:[%s13041_s5 + $0x124] sm:$0xf] }
 0x3e6   : > { %v7994_v46 = vor.u32 %v9180_v13, %v7991_v14 }
 0x3e7   : > { %3834 = vmatmul.bf16.vlgmr.msrb.gmra.mxu2 %v8126_v3  ;;  %v9148_v3 = vld [vmem:[%s13041_s5 + $0x24] sm:$0xf] }
 0x3e8   : > { %3246 = vmatmul.bf16.gmra.mxu3 %v7958_v43 }
 0x3ea   : > { %v11140_v39 = vpop.f32.mrf.mxu2 }
 0x3eb   : > { %v2946_v52 = vpack.c.bf16 %v11140_v39, %v11140_v39 }
 0x3ed   : > { %v4426_v40 = vunpack.c.l.b16 %v2946_v52 }
 0x3ee   : > { %8006 = vmatmul.msk.bf16.gmra.mxu0 %vm3183_vm2, %v7954_v58 }
 0x3f2   : > { %v11149_v44 = vpop.f32.mrf.mxu2 }
 0x3f8   : > { %3251 = vmatmul.bf16.gmra.mxu3 %v7966_v51  ;;  %v8025_v51 = vld [vmem:[%s13041_s5 + $0x18] sm:$0xf0] }
 0x3fa   : > { %v11157_v29 = vpop.f32.mrf.mxu2 }
 0x3fb   : > { %v2952_v30 = vpack.c.bf16 %v11157_v29, %v11157_v29  ;;  %v9145_v29 = vld [vmem:[%s13041_s5 + $0x4] sm:$0xf0] }
 0x3fe   : > { %8007 = vmatmul.msk.bf16.gmra.mxu0 %vm3183_vm2, %v7962_v9  ;;  %v8028_v9 = vor.u32 %v9146_v20, %v8025_v51 }
 0x400   : > { %8094 = vmatmul.msk.bf16.gmra.mxu1 %vm3183_vm2, %v8028_v9  ;;  %v8127_v9 = vld [vmem:[%s13041_s5 + $0x148] sm:$0xf0] }
 0x402   : > { %v11166_v8 = vpop.f32.mrf.mxu2 }
 0x403   : > { %v2955_v22 = vpack.c.bf16 %v11166_v8, %v11166_v8 }
 0x408   : > { %3256 = vmatmul.bf16.gmra.mxu3 %v7974_v34 }
 0x40a   : > { %v11174_v27 = vpop.f32.mrf.mxu2 }
 0x40b   : > { %v2958_v24 = vpack.c.bf16 %v11174_v27, %v11174_v27  ;;  %v9187_v27 = vld [vmem:[%s13041_s5 + $0x154] sm:$0xf0] }
 0x40d   : > { %v4430_v8 = vunpack.c.l.b16 %v2958_v24 }
 0x40e   : > { %8008 = vmatmul.msk.bf16.gmra.mxu0 %vm3183_vm2, %v7970_v5  ;;  %v8133_v5 = vld [vmem:[%s13041_s5 + $0x150] sm:$0xf] }
 0x40f   : > { %v8134_v23 = vor.u32 %v9187_v27, %v8133_v5 }
 0x411   : > { %3839 = vmatmul.bf16.gmra.mxu2 %v8134_v23 }
 0x412   : > { %v2899_v31 = vpop.f32.mrf.mxu2 }
 0x413   : > { %v2961_v63 = vpack.c.bf16 %v2899_v31, %v2899_v31  ;;  %v2949_v31 = vpack.c.bf16 %v11149_v44, %v11149_v44  ;;  %v2943_v44 = vpack.c.bf16 %v11132_v28, %v11132_v28  ;;  %v2937_v28 = vpack.c.bf16 %v11109_v18, %v11109_v18 }
 0x415   : > { %v4431_v62 = vunpack.c.l.b16 %v2961_v63  ;;  %v4425_v61 = vunpack.c.l.b16 %v2943_v44 }
 0x417   : > { %v4446_v55 = vpack.c.b16 %v4431_v62, %v4430_v8  ;;  %v9150_v62 = vld [vmem:[%s13041_s5 + $0x34] sm:$0xf] }
 0x418   : > { %3261 = vmatmul.bf16.gmra.mxu3 %v7982_v60  ;;  %v4429_v60 = vunpack.c.l.b16 %v2955_v22 }
 0x41a   : > { %v2902_v56 = vpop.f32.mrf.mxu2 }
 0x41b   : > { %v2964_v11 = vpack.c.bf16 %v2902_v56, %v2902_v56  ;;  %v8015_v56 = vld [vmem:[%s13041_s5] sm:$0xf] }
 0x41c   : > { %v8016_v42 = vor.u32 %v9145_v29, %v8015_v56 }
 0x41d   : > { %v4432_v58 = vunpack.c.l.b16 %v2964_v11  ;;  %v9189_v11 = vld [vmem:[%s13041_s5 + $0x164] sm:$0xf0] }
 0x41e   : > { %8009 = vmatmul.msk.bf16.gmra.mxu0 %vm3183_vm2, %v7978_v49  ;;  %v4428_v49 = vunpack.c.l.b16 %v2952_v30 }
 0x420   : > { %v4445_v38 = vpack.c.b16 %v4429_v60, %v4428_v49  ;;  %v9191_v60 = vld [vmem:[%s13041_s5 + $0x174] sm:$0xf0] }
 0x422   : > { %v2904_v19 = vpop.f32.mrf.mxu2 }
 0x423   : > { %v2967_v4 = vpack.c.bf16 %v2904_v19, %v2904_v19  ;;  %v4427_v19 = vunpack.c.l.b16 %v2949_v31  ;;  %v8149_v31 = vld [vmem:[%s13041_s5 + $0x170] sm:$0xf] }
 0x424   : > { %v8150_v52 = vor.u32 %v9191_v60, %v8149_v31  ;;  %v9190_v31 = vld [vmem:[%s13041_s5 + $0x174] sm:$0xf]  ;;  %v8151_v60 = vld [vmem:[%s13041_s5 + $0x178] sm:$0xf0] }
 0x425   : > { %v4433_v43 = vunpack.c.l.b16 %v2967_v4  ;;  %v4423_v4 = vunpack.c.l.b16 %v2937_v28 }
 0x427   : > { %v4447_v45 = vpack.c.b16 %v4433_v43, %v4432_v58  ;;  %v8023_v43 = vld [vmem:[%s13041_s5 + $0x10] sm:$0xf] }
 0x428   : > { %3266 = vmatmul.bf16.gmra.mxu3 %v7990_v21 }
 0x42a   : > { %v2907_v25 = vpop.f32.mrf.mxu2 }
 0x42b   : > { %v3227_v0 = vpop.f32.mrf.mxu3  ;;  %v2970_v16 = vpack.c.bf16 %v2907_v25, %v2907_v25  ;;  %v7999_v25 = vld [vmem:[%s13041_s5 + $0x138] sm:$0xf0] }
 0x42c   : > { %v8002_v12 = vor.u32 %v9182_v48, %v7999_v25 }
 0x42d   : > { %v4434_v32 = vunpack.c.l.b16 %v2970_v16  ;;  %v8033_v16 = vld [vmem:[%s13041_s5 + $0x28] sm:$0xf0] }
 0x42e   : > { %8010 = vmatmul.msk.bf16.gmra.mxu0 %vm3183_vm2, %v7986_v35  ;;  %v2940_v35 = vpack.c.bf16 %v11122_v37, %v11122_v37  ;;  %v8036_v18 = vor.u32 %v9148_v3, %v8033_v16  ;;  %v9152_v16 = vld [vmem:[%s13041_s5 + $0x44] sm:$0xf] }
 0x430   : > { %v4424_v37 = vunpack.c.l.b16 %v2940_v35  ;;  %8095 = vmatmul.msk.bf16.gmra.mxu1 %vm3183_vm2, %v8036_v18 }
 0x432   : > { %v2909_v17 = vpop.f32.mrf.mxu2 }
 0x433   : > { %v2973_v10 = vpack.c.bf16 %v2909_v17, %v2909_v17  ;;  %v3229_v2 = vpop.f32.mrf.mxu3  ;;  %v2931_v17 = vpack.c.bf16 %v11073_v36, %v11073_v36  ;;  %v4422_v36 = vunpack.c.l.b16 %v2934_v15 }
 0x435   : > { %v4435_v53 = vunpack.c.l.b16 %v2973_v10  ;;  %v4421_v13 = vunpack.c.l.b16 %v2931_v17  ;;  %v4442_v14 = vpack.c.b16 %v4423_v4, %v4422_v36 }
 0x437   : > { %v4448_v54 = vpack.c.b16 %v4435_v53, %v4434_v32  ;;  %v2928_v53 = vpack.c.bf16 %v11057_v33, %v11057_v33 }
 0x438   : > { %3271 = vmatmul.bf16.gmra.mxu3 %v7998_v1  ;;  %v8141_v1 = vld [vmem:[%s13041_s5 + $0x160] sm:$0xf] }
 0x439   : > { %4495 = vmatpush.bf16.msra.mxu2 %v4448_v54  ;;  %v8142_v32 = vor.u32 %v9189_v11, %v8141_v1  ;;  %v4420_v63 = vunpack.c.l.b16 %v2928_v53  ;;  %v9147_v54 = vld [vmem:[%s13041_s5 + $0x14] sm:$0xf0]  ;;  %v8039_v11 = vld [vmem:[%s13041_s5 + $0x30] sm:$0xf] }
 0x43a   : > { %v11236_v47 = vpop.f32.mrf.mxu2  ;;  %v8024_v51 = vor.u32 %v9147_v54, %v8023_v43  ;;  %v8143_v43 = vld [vmem:[%s13041_s5 + $0x168] sm:$0xf0] }
 0x43b   : > { %v3286_v59 = vpop.f32.mrf.mxu0  ;;  %v3232_v57 = vpop.f32.mrf.mxu3  ;;  %3844 = vmatmul.bf16.gmra.mxu2 %v8142_v32  ;;  %v4441_v20 = vpack.c.b16 %v4421_v13, %v4420_v63  ;;  %v9151_v32 = vld [vmem:[%s13041_s5 + $0x34] sm:$0xf0]  ;;  %v9188_v63 = vld [vmem:[%s13041_s5 + $0x164] sm:$0xf] }
 0x43c   : > { %v11240_v34 = vadd.f32 %v3286_v59, %v3227_v0  ;;  %v4444_v0 = vpack.c.b16 %v4427_v19, %v4426_v40  ;;  %v9184_v59 = vld [vmem:[%s13041_s5 + $0x144] sm:$0xf]  ;;  %v8146_v54 = vor.u32 %v9188_v63, %v8143_v43 }
 0x43d   : > { %4496 = vmatpush.bf16.msra.mxu2 %v4447_v45  ;;  %v8130_v22 = vor.u32 %v9184_v59, %v8127_v9  ;;  %v8165_v9 = vld [vmem:[%s13041_s5 + $0x190] sm:$0xf] }
 0x43e   : > { %8011 = vmatmul.msk.bf16.gmra.mxu0 %vm3183_vm2, %v7994_v46 }
 0x441   : > { %4497 = vmatpush.bf16.msra.mxu2 %v4446_v55 }
 0x442   : > { %v11262_v6 = vpop.f32.mrf.mxu2 }
 0x443   : > { %v3288_v41 = vpop.f32.mrf.mxu0  ;;  %v3234_v39 = vpop.f32.mrf.mxu3 }
 0x444   : > { %v11266_v21 = vadd.f32 %v3288_v41, %v3229_v2  ;;  %v4443_v2 = vpack.c.b16 %v4425_v61, %v4424_v37  ;;  %v2979_v41 = vpack.c.bf16 %v11262_v6, %v11262_v6  ;;  %v9186_v37 = vld [vmem:[%s13041_s5 + $0x154] sm:$0xf] }
 0x445   : > { %4498 = vmatpush.bf16.msra.mxu2 %v4445_v38  ;;  %v9149_v38 = vld [vmem:[%s13041_s5 + $0x24] sm:$0xf0] }
 0x446   : > { %v4437_v28 = vunpack.c.l.b16 %v2979_v41 }
 0x448   : > { %3509 = vmatmul.bf16.vlgmr.msra.gmra.mxu3 %v8016_v42  ;;  %v2976_v42 = vpack.c.bf16 %v11236_v47, %v11236_v47  ;;  %v8135_v47 = vld [vmem:[%s13041_s5 + $0x158] sm:$0xf0] }
 0x449   : > { %4499 = vmatpush.bf16.msra.mxu2 %v4444_v0  ;;  %v8138_v3 = vor.u32 %v9186_v37, %v8135_v47  ;;  %v9158_v37 = vld [vmem:[%s13041_s5 + $0x74] sm:$0xf]  ;;  %v8073_v47 = vld [vmem:[%s13041_s5 + $0x78] sm:$0xf0] }
 0x44a   : > { %v2917_v26 = vpop.f32.mrf.mxu2  ;;  %v4436_v15 = vunpack.c.l.b16 %v2976_v42  ;;  %v8055_v42 = vld [vmem:[%s13041_s5 + $0x50] sm:$0xf] }
 0x44b   : > { %v3291_v7 = vpop.f32.mrf.mxu0  ;;  %v3237_v50 = vpop.f32.mrf.mxu3  ;;  %v2982_v56 = vpack.c.bf16 %v2917_v26, %v2917_v26  ;;  %3849 = vmatmul.bf16.gmra.mxu2 %v8150_v52  ;;  %v8049_v26 = vld [vmem:[%s13041_s5 + $0x48] sm:$0xf0]  ;;  %v9156_v52 = vld [vmem:[%s13041_s5 + $0x64] sm:$0xf] }
 0x44c   : > { %v11288_v10 = vadd.f32 %v3291_v7, %v3232_v57  ;;  %v8041_v57 = vld [vmem:[%s13041_s5 + $0x38] sm:$0xf0]  ;;  %v8052_v18 = vor.u32 %v9152_v16, %v8049_v26 }
 0x44d   : > { %4500 = vmatpush.bf16.msra.mxu2 %v4443_v2  ;;  %v8044_v27 = vor.u32 %v9150_v62, %v8041_v57  ;;  %v4438_v35 = vunpack.c.l.b16 %v2982_v56  ;;  %v9193_v2 = vld [vmem:[%s13041_s5 + $0x184] sm:$0xf0]  ;;  %v8047_v57 = vld [vmem:[%s13041_s5 + $0x40] sm:$0xf] }
 0x44e   : > { %8012 = vmatmul.msk.bf16.gmra.mxu0 %vm3183_vm2, %v8002_v12  ;;  %v4449_v12 = vpack.c.b16 %v4437_v28, %v4436_v15 }
 0x44f   : > { %8096 = vmatmul.msk.bf16.gmra.mxu1 %vm3183_vm2, %v8044_v27 }
 0x451   : > { %4501 = vmatpush.bf16.msra.mxu2 %v4442_v14  ;;  %v8040_v14 = vor.u32 %v9151_v32, %v8039_v11 }
 0x452   : > { %v2919_v24 = vpop.f32.mrf.mxu2 }
 0x453   : > { %v3293_v58 = vpop.f32.mrf.mxu0  ;;  %v3239_v46 = vpop.f32.mrf.mxu3  ;;  %v2985_v55 = vpack.c.bf16 %v2919_v24, %v2919_v24  ;;  %v9154_v24 = vld [vmem:[%s13041_s5 + $0x54] sm:$0xf] }
 0x454   : > { %v11306_v33 = vadd.f32 %v3293_v58, %v3234_v39  ;;  %v8031_v39 = vld [vmem:[%s13041_s5 + $0x20] sm:$0xf]  ;;  %v8057_v58 = vld [vmem:[%s13041_s5 + $0x58] sm:$0xf0] }
 0x455   : > { %4502 = vmatpush.bf16.msra.mxu2 %v4441_v20  ;;  %v4439_v44 = vunpack.c.l.b16 %v2985_v55  ;;  %v8032_v0 = vor.u32 %v9149_v38, %v8031_v39  ;;  %v8060_v20 = vor.u32 %v9154_v24, %v8057_v58  ;;  %v8154_v55 = vor.u32 %v9190_v31, %v8151_v60  ;;  %v9197_v39 = vld [vmem:[%s13041_s5 + $0x1a4] sm:$0xf0]  ;;  %v8081_v24 = vld [vmem:[%s13041_s5 + $0x88] sm:$0xf0] }
 0x457   : > { %v4450_v61 = vpack.c.b16 %v4439_v44, %v4438_v35  ;;  %v9155_v35 = vld [vmem:[%s13041_s5 + $0x54] sm:$0xf0] }
 0x458   : > { %3514 = vmatmul.bf16.gmra.mxu3 %v8024_v51  ;;  %v8056_v28 = vor.u32 %v9155_v35, %v8055_v42 }
 0x459   : > { %v11469_v43 = vpop.f32.mrf.mxu1 }
 0x45a   : > { %v2922_v45 = vpop.f32.mrf.mxu2 }
 0x45b   : > { %v3296_v5 = vpop.f32.mrf.mxu0  ;;  %v2988_v23 = vpack.c.bf16 %v2922_v45, %v2922_v45  ;;  %v3242_v8 = vpop.f32.mrf.mxu3  ;;  %v9153_v45 = vld [vmem:[%s13041_s5 + $0x44] sm:$0xf0] }
 0x45c   : > { %v11320_v30 = vadd.f32 %v3296_v5, %v3237_v50  ;;  %v8157_v50 = vld [vmem:[%s13041_s5 + $0x180] sm:$0xf] }
 0x45d   : > { %v4440_v49 = vunpack.c.l.b16 %v2988_v23  ;;  %v8158_v1 = vor.u32 %v9193_v2, %v8157_v50  ;;  %v8063_v50 = vld [vmem:[%s13041_s5 + $0x60] sm:$0xf]  ;;  %v9157_v2 = vld [vmem:[%s13041_s5 + $0x64] sm:$0xf0] }
 0x45e   : > { %8203 = vmatmul.msk.bf16.vlgmr.msrb.gmra.mxu0 %vm3183_vm2, %v8130_v22  ;;  %v9195_v22 = vld [vmem:[%s13041_s5 + $0x194] sm:$0xf0] }
 0x45f   : > { %v4451_v29 = vpack.c.b16 %v4440_v49, %v4440_v49  ;;  %8097 = vmatmul.msk.bf16.gmra.mxu1 %vm3183_vm2, %v8052_v18  ;;  %3854 = vmatmul.bf16.gmra.mxu2 %v8158_v1  ;;  %v8166_v62 = vor.u32 %v9195_v22, %v8165_v9  ;;  %v8065_v49 = vld [vmem:[%s13041_s5 + $0x68] sm:$0xf0]  ;;  %v9199_v18 = vld [vmem:[%s13041_s5 + $0x1b4] sm:$0xf0]  ;;  %v8189_v9 = vld [vmem:[%s13041_s5 + $0x1c0] sm:$0xf] }
 0x460   : > { %v9201_v22 = vld [vmem:[%s13041_s5 + $0x1c4] sm:$0xf0] }
 0x461   : > { %v4493_v19 = vsel %vm3214_vm1, %v4451_v29, 0  ;;  %v8068_v29 = vor.u32 %v9156_v52, %v8065_v49  ;;  %v9196_v52 = vld [vmem:[%s13041_s5 + $0x1a4] sm:$0xf]  ;;  %v8175_v49 = vld [vmem:[%s13041_s5 + $0x1a8] sm:$0xf0] }
 0x462   : > { %v2924_v40 = vpop.f32.mrf.mxu2  ;;  %4559 = vmatpush.bf16.msra.mxu0 %v4493_v19  ;;  %v8173_v19 = vld [vmem:[%s13041_s5 + $0x1a0] sm:$0xf] }
 0x463   : > { %v3298_v48 = vpop.f32.mrf.mxu0  ;;  %v3244_v6 = vpop.f32.mrf.mxu3  ;;  %v8174_v38 = vor.u32 %v9197_v39, %v8173_v19  ;;  %v8089_v19 = vld [vmem:[%s13041_s5 + $0x98] sm:$0xf0] }
 0x464   : > { %v11341_v25 = vadd.f32 %v3298_v48, %v3239_v46 }
 0x466   : > { %4560 = vmatpush.bf16.msra.mxu0 %v4450_v61  ;;  %v9192_v61 = vld [vmem:[%s13041_s5 + $0x184] sm:$0xf] }
 0x468   : > { %3519 = vmatmul.bf16.gmra.mxu3 %v8032_v0  ;;  %v8159_v0 = vld [vmem:[%s13041_s5 + $0x188] sm:$0xf0] }
 0x469   : > { %v8162_v15 = vor.u32 %v9192_v61, %v8159_v0  ;;  %v8079_v0 = vld [vmem:[%s13041_s5 + $0x80] sm:$0xf] }
 0x46a   : > { %4561 = vmatpush.bf16.msra.mxu0 %v4449_v12 }
 0x46b   : > { %v3301_v7 = vpop.f32.mrf.mxu0  ;;  %v3247_v4 = vpop.f32.mrf.mxu3 }
 0x46c   : > { %v11355_v17 = vadd.f32 %v3301_v7, %v3242_v8  ;;  %v8048_v8 = vor.u32 %v9153_v45, %v8047_v57  ;;  %v8181_v7 = vld [vmem:[%s13041_s5 + $0x1b0] sm:$0xf]  ;;  %v9159_v45 = vld [vmem:[%s13041_s5 + $0x74] sm:$0xf0] }
 0x46d   : > { %v8071_v57 = vld [vmem:[%s13041_s5 + $0x70] sm:$0xf] }
 0x46e   : > { %8204 = vmatmul.msk.bf16.gmra.mxu0 %vm3183_vm2, %v8138_v3  ;;  %v8076_v3 = vor.u32 %v9158_v37, %v8073_v47 }
 0x46f   : > { %8098 = vmatmul.msk.bf16.gmra.mxu1 %vm3183_vm2, %v8060_v20  ;;  %3859 = vmatmul.bf16.gmra.mxu2 %v8166_v62  ;;  %v8190_v62 = vor.u32 %v9201_v22, %v8189_v9  ;;  %v8087_v22 = vld [vmem:[%s13041_s5 + $0x90] sm:$0xf] }
 0x473   : > { %v3303_v53 = vpop.f32.mrf.mxu0  ;;  %v3249_v13 = vpop.f32.mrf.mxu3 }
 0x474   : > { %v11371_v36 = vadd.f32 %v3303_v53, %v3244_v6  ;;  %v8064_v53 = vor.u32 %v9157_v2, %v8063_v50 }
 0x478   : > { %3524 = vmatmul.bf16.gmra.mxu3 %v8040_v14  ;;  %v8167_v14 = vld [vmem:[%s13041_s5 + $0x198] sm:$0xf0] }
 0x47b   : > { %v3306_v46 = vpop.f32.mrf.mxu0  ;;  %v3252_v59 = vpop.f32.mrf.mxu3 }
 0x47c   : > { %v11385_v51 = vadd.f32 %v3306_v46, %v3247_v4  ;;  %v8182_v4 = vor.u32 %v9199_v18, %v8181_v7  ;;  %v9198_v18 = vld [vmem:[%s13041_s5 + $0x1b4] sm:$0xf] }
 0x47e   : > { %8205 = vmatmul.msk.bf16.gmra.mxu0 %vm3183_vm2, %v8146_v54  ;;  %v9160_v54 = vld [vmem:[%s13041_s5 + $0x84] sm:$0xf] }
 0x47f   : > { %8099 = vmatmul.msk.bf16.gmra.mxu1 %vm3183_vm2, %v8068_v29  ;;  %3864 = vmatmul.bf16.gmra.mxu2 %v8174_v38  ;;  %v8084_v46 = vor.u32 %v9160_v54, %v8081_v24  ;;  %v8345_v24 = vld [vmem:[%s13041_s5 + $0x280] sm:$0xf] }
 0x483   : > { %v3308_v5 = vpop.f32.mrf.mxu0  ;;  %v3254_v23 = vpop.f32.mrf.mxu3 }
 0x484   : > { %v11401_v27 = vadd.f32 %v3308_v5, %v3249_v13  ;;  %v9194_v13 = vld [vmem:[%s13041_s5 + $0x194] sm:$0xf]  ;;  %v3571_v5 = vpop.f32.mrf.mxu1 }
 0x485   : > { %v8170_v63 = vor.u32 %v9194_v13, %v8167_v14 }
 0x488   : > { %3529 = vmatmul.bf16.gmra.mxu3 %v8048_v8  ;;  %v11493_v8 = vpop.f32.mrf.mxu2 }
 0x48b   : > { %v3311_v56 = vpop.f32.mrf.mxu0  ;;  %v3257_v44 = vpop.f32.mrf.mxu3 }
 0x48c   : > { %v11415_v41 = vadd.f32 %v3311_v56, %v3252_v59  ;;  %v8178_v56 = vor.u32 %v9196_v52, %v8175_v49  ;;  %v11503_v29 = vpop.f32.mrf.mxu1  ;;  %v9200_v49 = vld [vmem:[%s13041_s5 + $0x1c4] sm:$0xf] }
 0x48e   : > { %8206 = vmatmul.msk.bf16.gmra.mxu0 %vm3183_vm2, %v8154_v55  ;;  %v8072_v55 = vor.u32 %v9159_v45, %v8071_v57 }
 0x48f   : > { %8100 = vmatmul.msk.bf16.gmra.mxu1 %vm3183_vm2, %v8076_v3  ;;  %3869 = vmatmul.bf16.gmra.mxu2 %v8182_v4  ;;  %v8183_v4 = vld [vmem:[%s13041_s5 + $0x1b8] sm:$0xf0] }
 0x490   : > { %v11511_v38 = vpop.f32.mrf.mxu2  ;;  %v8186_v50 = vor.u32 %v9198_v18, %v8183_v4  ;;  %v9205_v18 = vld [vmem:[%s13041_s5 + $0x1e4] sm:$0xf0] }
 0x493   : > { %v3313_v40 = vpop.f32.mrf.mxu0  ;;  %v3259_v6 = vpop.f32.mrf.mxu3 }
 0x494   : > { %v11431_v48 = vadd.f32 %v3313_v40, %v3254_v23  ;;  %v11529_v37 = vpop.f32.mrf.mxu1 }
 0x498   : > { %3534 = vmatmul.bf16.gmra.mxu3 %v8056_v28  ;;  %v9203_v28 = vld [vmem:[%s13041_s5 + $0x1d4] sm:$0xf0] }
 0x49b   : > { %v3316_v12 = vpop.f32.mrf.mxu0  ;;  %v3262_v26 = vpop.f32.mrf.mxu3 }
 0x49c   : > { %v11445_v16 = vadd.f32 %v3316_v12, %v3257_v44  ;;  %v9162_v44 = vld [vmem:[%s13041_s5 + $0x94] sm:$0xf]  ;;  %v11531_v12 = vpop.f32.mrf.mxu2 }
 0x49d   : > { %v8092_v42 = vor.u32 %v9162_v44, %v8089_v19 }
 0x49e   : > { %8207 = vmatmul.msk.bf16.gmra.mxu0 %vm3183_vm2, %v8162_v15  ;;  %v9161_v15 = vld [vmem:[%s13041_s5 + $0x84] sm:$0xf0] }
 0x49f   : > { %8101 = vmatmul.msk.bf16.gmra.mxu1 %vm3183_vm2, %v8084_v46  ;;  %3874 = vmatmul.bf16.gmra.mxu2 %v8190_v62  ;;  %v8080_v7 = vor.u32 %v9161_v15, %v8079_v0  ;;  %v9225_v46 = vld [vmem:[%s13041_s5 + $0x284] sm:$0xf0]  ;;  %v9227_v0 = vld [vmem:[%s13041_s5 + $0x294] sm:$0xf0] }
 0x4a3   : > { %v3318_v1 = vpop.f32.mrf.mxu0  ;;  %v3264_v32 = vpop.f32.mrf.mxu3 }
 0x4a4   : > { %v11461_v11 = vadd.f32 %v3318_v1, %v3259_v6  ;;  %v8197_v6 = vld [vmem:[%s13041_s5 + $0x1d0] sm:$0xf]  ;;  %v9204_v1 = vld [vmem:[%s13041_s5 + $0x1e4] sm:$0xf]  ;;  %v11549_v13 = vpop.f32.mrf.mxu2 }
 0x4a5   : > { %v8198_v61 = vor.u32 %v9203_v28, %v8197_v6 }
 0x4a8   : > { %3539 = vmatmul.bf16.gmra.mxu3 %v8064_v53 }
 0x4ab   : > { %v3321_v58 = vpop.f32.mrf.mxu0  ;;  %v3267_v59 = vpop.f32.mrf.mxu3 }
 0x4ac   : > { %v11477_v20 = vadd.f32 %v3321_v58, %v3262_v26 }
 0x4ad   : > { %v11541_v2 = vpop.f32.mrf.mxu1 }
 0x4ae   : > { %8208 = vmatmul.msk.bf16.gmra.mxu0 %vm3183_vm2, %v8170_v63 }
 0x4af   : > { %8102 = vmatmul.msk.bf16.gmra.mxu1 %vm3183_vm2, %v8092_v42  ;;  %3879 = vmatmul.bf16.gmra.mxu2 %v8198_v61  ;;  %v8353_v61 = vld [vmem:[%s13041_s5 + $0x290] sm:$0xf] }
 0x4b3   : > { %v3323_v23 = vpop.f32.mrf.mxu0  ;;  %v3269_v60 = vpop.f32.mrf.mxu3 }
 0x4b4   : > { %v11495_v31 = vadd.f32 %v3323_v23, %v3264_v32  ;;  %v8237_v32 = vld [vmem:[%s13041_s5 + $0x1e8] sm:$0xf0] }
 0x4b5   : > { %v8240_v14 = vor.u32 %v9204_v1, %v8237_v32  ;;  %v11569_v62 = vpop.f32.mrf.mxu1 }
 0x4b8   : > { %3544 = vmatmul.bf16.gmra.mxu3 %v8072_v55 }
 0x4bb   : > { %v3326_v39 = vpop.f32.mrf.mxu0  ;;  %v3272_v40 = vpop.f32.mrf.mxu3 }
 0x4bc   : > { %v11513_v35 = vadd.f32 %v3326_v39, %v3267_v59  ;;  %v8346_v59 = vor.u32 %v9225_v46, %v8345_v24  ;;  %v9206_v39 = vld [vmem:[%s13041_s5 + $0x1f4] sm:$0xf] }
 0x4bd   : > { %v9202_v24 = vld [vmem:[%s13041_s5 + $0x1d4] sm:$0xf] }
 0x4be   : > { %8209 = vmatmul.msk.bf16.gmra.mxu0 %vm3183_vm2, %v8178_v56  ;;  %v11571_v45 = vpop.f32.mrf.mxu2  ;;  %v8191_v56 = vld [vmem:[%s13041_s5 + $0x1c8] sm:$0xf0] }
 0x4bf   : > { %8313 = vmatmul.msk.bf16.vlgmr.msrb.gmra.mxu1 %vm3183_vm2, %v8240_v14  ;;  %4503 = vmatmul.bf16.vlgmr.msra.gmra.mxu2 %v8346_v59  ;;  %v8194_v44 = vor.u32 %v9200_v49, %v8191_v56  ;;  %v8243_v56 = vld [vmem:[%s13041_s5 + $0x1f0] sm:$0xf] }
 0x4c3   : > { %v3328_v47 = vpop.f32.mrf.mxu0  ;;  %v3274_v26 = vpop.f32.mrf.mxu3 }
 0x4c4   : > { %v11533_v3 = vadd.f32 %v3328_v47, %v3269_v60  ;;  %v8354_v47 = vor.u32 %v9227_v0, %v8353_v61  ;;  %v9224_v0 = vld [vmem:[%s13041_s5 + $0x284] sm:$0xf] }
 0x4c6   : > { %v11590_v42 = vpop.f32.mrf.mxu2 }
 0x4c8   : > { %3549 = vmatmul.bf16.gmra.mxu3 %v8080_v7  ;;  %v8235_v7 = vld [vmem:[%s13041_s5 + $0x1e0] sm:$0xf] }
 0x4cb   : > { %v3331_v53 = vpop.f32.mrf.mxu0  ;;  %v3510_v54 = vpop.f32.mrf.mxu3 }
 0x4cc   : > { %v11551_v63 = vadd.f32 %v3331_v53, %v3272_v40  ;;  %v3511_v58 = vadd.f32 %v3510_v54, %v11240_v34  ;;  %v9163_v34 = vld [vmem:[%s13041_s5 + $0x94] sm:$0xf0]  ;;  %v11582_v19 = vpop.f32.mrf.mxu1 }
 0x4ce   : > { %8210 = vmatmul.msk.bf16.gmra.mxu0 %vm3183_vm2, %v8186_v50  ;;  %v3570_v9 = vadd.f32 %v11469_v43, %v3511_v58  ;;  %v8088_v43 = vor.u32 %v9163_v34, %v8087_v22  ;;  %v11613_v50 = vpop.f32.mrf.mxu2  ;;  %v8199_v58 = vld [vmem:[%s13041_s5 + $0x1d8] sm:$0xf0] }
 0x4cf   : > { %4508 = vmatmul.bf16.gmra.mxu2 %v8354_v47  ;;  %v8202_v46 = vor.u32 %v9202_v24, %v8199_v58  ;;  %v8251_v58 = vld [vmem:[%s13041_s5 + $0x200] sm:$0xf] }
 0x4d3   : > { %v3333_v57 = vpop.f32.mrf.mxu0  ;;  %v3512_v60 = vpop.f32.mrf.mxu3 }
 0x4d4   : > { %v11573_v23 = vadd.f32 %v3333_v57, %v3274_v26  ;;  %v3513_v55 = vadd.f32 %v3512_v60, %v11266_v21  ;;  %v8245_v21 = vld [vmem:[%s13041_s5 + $0x1f8] sm:$0xf0]  ;;  %v11611_v4 = vpop.f32.mrf.mxu1  ;;  %v8361_v60 = vld [vmem:[%s13041_s5 + $0x2a0] sm:$0xf] }
 0x4d5   : > { %v8248_v40 = vor.u32 %v9206_v39, %v8245_v21 }
 0x4d6   : > { %v3572_v52 = vadd.f32 %v3571_v5, %v3513_v55  ;;  %v9229_v55 = vld [vmem:[%s13041_s5 + $0x2a4] sm:$0xf0] }
 0x4d7   : > { %8314 = vmatmul.msk.bf16.gmra.mxu1 %vm3183_vm2, %v8248_v40 }
 0x4d8   : > { %3554 = vmatmul.bf16.gmra.mxu3 %v8088_v43 }
 0x4db   : > { %v3894_v5 = vpop.f32.mrf.mxu0  ;;  %v3515_v28 = vpop.f32.mrf.mxu3 }
 0x4dc   : > { %v3895_v6 = vadd.f32 %v3894_v5, %v11493_v8  ;;  %v3516_v15 = vadd.f32 %v3515_v28, %v11288_v10  ;;  %v11626_v59 = vpop.f32.mrf.mxu1 }
 0x4de   : > { %v11601_v26 = vadd.f32 %v3895_v6, %v3570_v9  ;;  %8211 = vmatmul.msk.bf16.gmra.mxu0 %vm3183_vm2, %v8194_v44  ;;  %v3575_v8 = vadd.f32 %v11503_v29, %v3516_v15  ;;  %v8236_v29 = vor.u32 %v9205_v18, %v8235_v7  ;;  %v11634_v9 = vpop.f32.mrf.mxu2  ;;  %v9207_v44 = vld [vmem:[%s13041_s5 + $0x1f4] sm:$0xf0]  ;;  %v8347_v15 = vld [vmem:[%s13041_s5 + $0x288] sm:$0xf0] }
 0x4df   : > { %v8350_v47 = vor.u32 %v9224_v0, %v8347_v15  ;;  %v8259_v15 = vld [vmem:[%s13041_s5 + $0x210] sm:$0xf] }
 0x4e3   : > { %v3896_v10 = vpop.f32.mrf.mxu0  ;;  %v3517_v32 = vpop.f32.mrf.mxu3 }
 0x4e4   : > { %v3897_v1 = vadd.f32 %v3896_v10, %v11511_v38  ;;  %v3518_v53 = vadd.f32 %v3517_v32, %v11306_v33  ;;  %v9208_v33 = vld [vmem:[%s13041_s5 + $0x204] sm:$0xf]  ;;  %v8253_v38 = vld [vmem:[%s13041_s5 + $0x208] sm:$0xf0]  ;;  %v11655_v39 = vpop.f32.mrf.mxu1  ;;  %v8369_v32 = vld [vmem:[%s13041_s5 + $0x2b0] sm:$0xf] }
 0x4e5   : > { %v8256_v22 = vor.u32 %v9208_v33, %v8253_v38 }
 0x4e6   : > { %v11617_v14 = vadd.f32 %v3897_v1, %v3572_v52  ;;  %v3577_v54 = vadd.f32 %v11529_v37, %v3518_v53  ;;  %v8362_v52 = vor.u32 %v9229_v55, %v8361_v60  ;;  %v11657_v21 = vpop.f32.mrf.mxu2  ;;  %v9231_v53 = vld [vmem:[%s13041_s5 + $0x2b4] sm:$0xf0]  ;;  %v9226_v55 = vld [vmem:[%s13041_s5 + $0x294] sm:$0xf] }
 0x4e7   : > { %8315 = vmatmul.msk.bf16.gmra.mxu1 %vm3183_vm2, %v8256_v22 }
 0x4e8   : > { %4158 = vmatmul.bf16.vlgmr.msrb.gmra.mxu3 %v8236_v29  ;;  %4513 = vmatmul.bf16.gmra.mxu2 %v8362_v52 }
 0x4eb   : > { %v3899_v37 = vpop.f32.mrf.mxu0  ;;  %v3520_v57 = vpop.f32.mrf.mxu3 }
 0x4ec   : > { %v3900_v34 = vadd.f32 %v3899_v37, %v11531_v12  ;;  %v3521_v43 = vadd.f32 %v3520_v57, %v11320_v30 }
 0x4ee   : > { %v11645_v49 = vadd.f32 %v3900_v34, %v3575_v8  ;;  %8212 = vmatmul.msk.bf16.gmra.mxu0 %vm3183_vm2, %v8202_v46  ;;  %v3580_v12 = vadd.f32 %v11541_v2, %v3521_v43  ;;  %v8244_v2 = vor.u32 %v9207_v44, %v8243_v56  ;;  %v11670_v8 = vpop.f32.mrf.mxu1  ;;  %v11678_v7 = vpop.f32.mrf.mxu2  ;;  %v9209_v46 = vld [vmem:[%s13041_s5 + $0x204] sm:$0xf0]  ;;  %v8355_v43 = vld [vmem:[%s13041_s5 + $0x298] sm:$0xf0] }
 0x4ef   : > { %v8358_v52 = vor.u32 %v9226_v55, %v8355_v43  ;;  %v8267_v43 = vld [vmem:[%s13041_s5 + $0x220] sm:$0xf] }
 0x4f3   : > { %v3901_v30 = vpop.f32.mrf.mxu0  ;;  %v3522_v40 = vpop.f32.mrf.mxu3 }
 0x4f4   : > { %v3902_v5 = vadd.f32 %v3901_v30, %v11549_v13  ;;  %v3523_v6 = vadd.f32 %v3522_v40, %v11341_v25  ;;  %v9210_v25 = vld [vmem:[%s13041_s5 + $0x214] sm:$0xf]  ;;  %v8261_v13 = vld [vmem:[%s13041_s5 + $0x218] sm:$0xf0]  ;;  %v8377_v40 = vld [vmem:[%s13041_s5 + $0x2c0] sm:$0xf] }
 0x4f5   : > { %v8264_v18 = vor.u32 %v9210_v25, %v8261_v13 }
 0x4f6   : > { %v11661_v28 = vadd.f32 %v3902_v5, %v3577_v54  ;;  %v3582_v61 = vadd.f32 %v11569_v62, %v3523_v6  ;;  %v8370_v54 = vor.u32 %v9231_v53, %v8369_v32  ;;  %v11699_v33 = vpop.f32.mrf.mxu1  ;;  %v11701_v38 = vpop.f32.mrf.mxu2  ;;  %v9233_v6 = vld [vmem:[%s13041_s5 + $0x2c4] sm:$0xf0]  ;;  %v9228_v53 = vld [vmem:[%s13041_s5 + $0x2a4] sm:$0xf] }
 0x4f7   : > { %8316 = vmatmul.msk.bf16.gmra.mxu1 %vm3183_vm2, %v8264_v18 }
 0x4f8   : > { %4163 = vmatmul.bf16.gmra.mxu3 %v8244_v2  ;;  %4518 = vmatmul.bf16.gmra.mxu2 %v8370_v54 }
 0x4fb   : > { %v3904_v62 = vpop.f32.mrf.mxu0  ;;  %v3525_v1 = vpop.f32.mrf.mxu3 }
 0x4fc   : > { %v3905_v10 = vadd.f32 %v3904_v62, %v11571_v45  ;;  %v3526_v29 = vadd.f32 %v3525_v1, %v11355_v17 }
 0x4fe   : > { %v11689_v24 = vadd.f32 %v3905_v10, %v3580_v12  ;;  %8423 = vmatmul.msk.bf16.vlgmr.msra.gmra.mxu0 %vm3183_vm2, %v8350_v47  ;;  %v3585_v45 = vadd.f32 %v11582_v19, %v3526_v29  ;;  %v8252_v19 = vor.u32 %v9209_v46, %v8251_v58  ;;  %v11714_v12 = vpop.f32.mrf.mxu1  ;;  %v11722_v56 = vpop.f32.mrf.mxu2  ;;  %v9211_v47 = vld [vmem:[%s13041_s5 + $0x214] sm:$0xf0]  ;;  %v8363_v29 = vld [vmem:[%s13041_s5 + $0x2a8] sm:$0xf0] }
 0x4ff   : > { %v8366_v54 = vor.u32 %v9228_v53, %v8363_v29  ;;  %v8275_v29 = vld [vmem:[%s13041_s5 + $0x230] sm:$0xf] }
 0x503   : > { %v3906_v17 = vpop.f32.mrf.mxu0  ;;  %v3527_v22 = vpop.f32.mrf.mxu3 }
 0x504   : > { %v3907_v37 = vadd.f32 %v3906_v17, %v11590_v42  ;;  %v3528_v34 = vadd.f32 %v3527_v22, %v11371_v36  ;;  %v9212_v36 = vld [vmem:[%s13041_s5 + $0x224] sm:$0xf]  ;;  %v8269_v42 = vld [vmem:[%s13041_s5 + $0x228] sm:$0xf0]  ;;  %v8385_v22 = vld [vmem:[%s13041_s5 + $0x2d0] sm:$0xf] }
 0x505   : > { %v8272_v44 = vor.u32 %v9212_v36, %v8269_v42 }
 0x506   : > { %v11705_v57 = vadd.f32 %v3907_v37, %v3582_v61  ;;  %v3587_v60 = vadd.f32 %v11611_v4, %v3528_v34  ;;  %v8378_v61 = vor.u32 %v9233_v6, %v8377_v40  ;;  %v11743_v25 = vpop.f32.mrf.mxu1  ;;  %v11745_v13 = vpop.f32.mrf.mxu2  ;;  %v9235_v34 = vld [vmem:[%s13041_s5 + $0x2d4] sm:$0xf0]  ;;  %v9230_v6 = vld [vmem:[%s13041_s5 + $0x2b4] sm:$0xf] }
 0x507   : > { %8317 = vmatmul.msk.bf16.gmra.mxu1 %vm3183_vm2, %v8272_v44 }
 0x508   : > { %4168 = vmatmul.bf16.gmra.mxu3 %v8252_v19  ;;  %4523 = vmatmul.bf16.gmra.mxu2 %v8378_v61 }
 0x50b   : > { %v3909_v4 = vpop.f32.mrf.mxu0  ;;  %v3530_v5 = vpop.f32.mrf.mxu3 }
 0x50c   : > { %v3910_v30 = vadd.f32 %v3909_v4, %v11613_v50  ;;  %v3531_v2 = vadd.f32 %v3530_v5, %v11385_v51 }
 0x50e   : > { %v11733_v0 = vadd.f32 %v3910_v30, %v3585_v45  ;;  %8424 = vmatmul.msk.bf16.gmra.mxu0 %vm3183_vm2, %v8358_v52  ;;  %v3590_v50 = vadd.f32 %v11626_v59, %v3531_v2  ;;  %v8260_v59 = vor.u32 %v9211_v47, %v8259_v15  ;;  %v11758_v45 = vpop.f32.mrf.mxu1  ;;  %v11766_v58 = vpop.f32.mrf.mxu2  ;;  %v9213_v52 = vld [vmem:[%s13041_s5 + $0x224] sm:$0xf0]  ;;  %v8371_v2 = vld [vmem:[%s13041_s5 + $0x2b8] sm:$0xf0] }
 0x50f   : > { %v8374_v61 = vor.u32 %v9230_v6, %v8371_v2  ;;  %v8283_v2 = vld [vmem:[%s13041_s5 + $0x240] sm:$0xf] }
 0x513   : > { %v3911_v51 = vpop.f32.mrf.mxu0  ;;  %v3532_v18 = vpop.f32.mrf.mxu3 }
 0x514   : > { %v3912_v62 = vadd.f32 %v3911_v51, %v11634_v9  ;;  %v3533_v10 = vadd.f32 %v3532_v18, %v11401_v27  ;;  %v9214_v27 = vld [vmem:[%s13041_s5 + $0x234] sm:$0xf]  ;;  %v8277_v9 = vld [vmem:[%s13041_s5 + $0x238] sm:$0xf0]  ;;  %v8393_v18 = vld [vmem:[%s13041_s5 + $0x2e0] sm:$0xf] }
 0x515   : > { %v8280_v46 = vor.u32 %v9214_v27, %v8277_v9 }
 0x516   : > { %v11749_v1 = vadd.f32 %v3912_v62, %v3587_v60  ;;  %v3592_v32 = vadd.f32 %v11655_v39, %v3533_v10  ;;  %v8386_v60 = vor.u32 %v9235_v34, %v8385_v22  ;;  %v11787_v36 = vpop.f32.mrf.mxu1  ;;  %v11789_v42 = vpop.f32.mrf.mxu2  ;;  %v9237_v10 = vld [vmem:[%s13041_s5 + $0x2e4] sm:$0xf0]  ;;  %v9232_v34 = vld [vmem:[%s13041_s5 + $0x2c4] sm:$0xf] }
 0x517   : > { %8318 = vmatmul.msk.bf16.gmra.mxu1 %vm3183_vm2, %v8280_v46 }
 0x518   : > { %4173 = vmatmul.bf16.gmra.mxu3 %v8260_v59  ;;  %4528 = vmatmul.bf16.gmra.mxu2 %v8386_v60 }
 0x51b   : > { %v3914_v39 = vpop.f32.mrf.mxu0  ;;  %v3535_v37 = vpop.f32.mrf.mxu3 }
 0x51c   : > { %v3915_v17 = vadd.f32 %v3914_v39, %v11657_v21  ;;  %v3536_v19 = vadd.f32 %v3535_v37, %v11415_v41 }
 0x51e   : > { %v11777_v55 = vadd.f32 %v3915_v17, %v3590_v50  ;;  %8425 = vmatmul.msk.bf16.gmra.mxu0 %vm3183_vm2, %v8366_v54  ;;  %v3595_v21 = vadd.f32 %v11670_v8, %v3536_v19  ;;  %v8268_v8 = vor.u32 %v9213_v52, %v8267_v43  ;;  %v11802_v50 = vpop.f32.mrf.mxu1  ;;  %v11810_v15 = vpop.f32.mrf.mxu2  ;;  %v9215_v54 = vld [vmem:[%s13041_s5 + $0x234] sm:$0xf0]  ;;  %v8379_v19 = vld [vmem:[%s13041_s5 + $0x2c8] sm:$0xf0] }
 0x51f   : > { %v8382_v60 = vor.u32 %v9232_v34, %v8379_v19  ;;  %v8575_v34 = vld [vmem:[#allocation3 + $0x118] sm:$0xf]  ;;  %v9281_v19 = vld [vmem:[#allocation3 + $0x128] sm:$0xf0] }
 0x523   : > { %v3916_v41 = vpop.f32.mrf.mxu0  ;;  %v3537_v44 = vpop.f32.mrf.mxu3 }
 0x524   : > { %v3917_v4 = vadd.f32 %v3916_v41, %v11678_v7  ;;  %v3538_v30 = vadd.f32 %v3537_v44, %v11431_v48  ;;  %v9216_v48 = vld [vmem:[%s13041_s5 + $0x244] sm:$0xf]  ;;  %v8285_v7 = vld [vmem:[%s13041_s5 + $0x248] sm:$0xf0]  ;;  %v8401_v44 = vld [vmem:[%s13041_s5 + $0x2f0] sm:$0xf] }
 0x525   : > { %v8288_v47 = vor.u32 %v9216_v48, %v8285_v7 }
 0x526   : > { %v11793_v5 = vadd.f32 %v3917_v4, %v3592_v32  ;;  %v3597_v40 = vadd.f32 %v11699_v33, %v3538_v30  ;;  %v8394_v32 = vor.u32 %v9237_v10, %v8393_v18  ;;  %v11831_v27 = vpop.f32.mrf.mxu1  ;;  %v11833_v9 = vpop.f32.mrf.mxu2  ;;  %v9239_v30 = vld [vmem:[%s13041_s5 + $0x2f4] sm:$0xf0]  ;;  %v9234_v10 = vld [vmem:[%s13041_s5 + $0x2d4] sm:$0xf] }
 0x527   : > { %8319 = vmatmul.msk.bf16.gmra.mxu1 %vm3183_vm2, %v8288_v47 }
 0x528   : > { %4178 = vmatmul.bf16.gmra.mxu3 %v8268_v8  ;;  %4533 = vmatmul.bf16.gmra.mxu2 %v8394_v32 }
 0x52b   : > { %v3919_v33 = vpop.f32.mrf.mxu0  ;;  %v3540_v62 = vpop.f32.mrf.mxu3 }
 0x52c   : > { %v3920_v51 = vadd.f32 %v3919_v33, %v11701_v38  ;;  %v3541_v59 = vadd.f32 %v3540_v62, %v11445_v16 }
 0x52e   : > { %v11821_v53 = vadd.f32 %v3920_v51, %v3595_v21  ;;  %8426 = vmatmul.msk.bf16.gmra.mxu0 %vm3183_vm2, %v8374_v61  ;;  %v3600_v38 = vadd.f32 %v11714_v12, %v3541_v59  ;;  %v8276_v12 = vor.u32 %v9215_v54, %v8275_v29  ;;  %v11846_v21 = vpop.f32.mrf.mxu1  ;;  %v11854_v43 = vpop.f32.mrf.mxu2  ;;  %v9217_v61 = vld [vmem:[%s13041_s5 + $0x244] sm:$0xf0]  ;;  %v8387_v59 = vld [vmem:[%s13041_s5 + $0x2d8] sm:$0xf0] }
 0x52f   : > { %v8390_v32 = vor.u32 %v9234_v10, %v8387_v59 }
 0x533   : > { %v3921_v16 = vpop.f32.mrf.mxu0  ;;  %v3542_v46 = vpop.f32.mrf.mxu3 }
 0x534   : > { %v3922_v39 = vadd.f32 %v3921_v16, %v11722_v56  ;;  %v3543_v17 = vadd.f32 %v3542_v46, %v11461_v11  ;;  %v9218_v11 = vld [vmem:[%s13041_s5 + $0x254] sm:$0xf]  ;;  %v8293_v56 = vld [vmem:[%s13041_s5 + $0x258] sm:$0xf0]  ;;  %v8409_v46 = vld [vmem:[%s13041_s5 + $0x300] sm:$0xf] }
 0x535   : > { %v8296_v52 = vor.u32 %v9218_v11, %v8293_v56  ;;  %v9279_v11 = vld [vmem:[#allocation3 + $0x11c] sm:$0xf]  ;;  %v8577_v56 = vld [vmem:[#allocation3 + $0x12c] sm:$0xf0] }
 0x536   : > { %v11837_v37 = vadd.f32 %v3922_v39, %v3597_v40  ;;  %v3602_v22 = vadd.f32 %v11743_v25, %v3543_v17  ;;  %v8402_v40 = vor.u32 %v9239_v30, %v8401_v44  ;;  %v11875_v48 = vpop.f32.mrf.mxu1  ;;  %v11877_v7 = vpop.f32.mrf.mxu2  ;;  %v9241_v17 = vld [vmem:[%s13041_s5 + $0x304] sm:$0xf0]  ;;  %v9219_v44 = vld [vmem:[%s13041_s5 + $0x254] sm:$0xf0] }
 0x537   : > { %8320 = vmatmul.msk.bf16.gmra.mxu1 %vm3183_vm2, %v8296_v52 }
 0x538   : > { %4183 = vmatmul.bf16.gmra.mxu3 %v8276_v12  ;;  %4538 = vmatmul.bf16.gmra.mxu2 %v8402_v40  ;;  %v9276_v40 = vld [vmem:[#allocation3 + $0x100] sm:$0xf0] }
 0x53b   : > { %v3924_v25 = vpop.f32.mrf.mxu0  ;;  %v3545_v4 = vpop.f32.mrf.mxu3 }
 0x53c   : > { %v3925_v41 = vadd.f32 %v3924_v25, %v11745_v13  ;;  %v3546_v8 = vadd.f32 %v3545_v4, %v11477_v20  ;;  %v8583_v25 = vld [vmem:[#allocation3 + $0x120] sm:$0xf]  ;;  %v9282_v4 = vld [vmem:[#allocation3 + $0x130] sm:$0xf0] }
 0x53d   : > { %v8584_v30 = vor.u32 %v9282_v4, %v8583_v25  ;;  %v8517_v4 = vld [vmem:[#allocation3 + $0xb4] sm:$0xf0] }
 0x53e   : > { %v11865_v6 = vadd.f32 %v3925_v41, %v3600_v38  ;;  %8427 = vmatmul.msk.bf16.gmra.mxu0 %vm3183_vm2, %v8382_v60  ;;  %v3605_v13 = vadd.f32 %v11758_v45, %v3546_v8  ;;  %v8284_v45 = vor.u32 %v9217_v61, %v8283_v2  ;;  %v11890_v38 = vpop.f32.mrf.mxu1  ;;  %v11898_v29 = vpop.f32.mrf.mxu2  ;;  %v8580_v41 = vor.u32 %v9279_v11, %v8577_v56  ;;  %v8555_v8 = vld [vmem:[#allocation3 + $0xf0] sm:$0xf]  ;;  %v8557_v61 = vld [vmem:[#allocation3 + $0x104] sm:$0xf0]  ;;  %v9264_v11 = vld [vmem:[#allocation3 + $0xa4] sm:$0xf] }
 0x53f   : > { %5177 = vmatpush.bf16.msrb.mxu2 %v8584_v30  ;;  %v8556_v2 = vor.u32 %v9276_v40, %v8555_v8  ;;  %v8520_v40 = vor.u32 %v9264_v11, %v8517_v4  ;;  %v9254_v11 = vld [vmem:[#allocation3 + $0x54] sm:$0xf]  ;;  %v8483_v4 = vld [vmem:[#allocation3 + $0x58] sm:$0xf] }
 0x540   : > { %5118 = vmatpush.bf16.msra.mxu1 %v8580_v41 }
 0x543   : > { %v3926_v20 = vpop.f32.mrf.mxu0  ;;  %v3547_v47 = vpop.f32.mrf.mxu3 }
 0x544   : > { %v3927_v33 = vadd.f32 %v3926_v20, %v11766_v58  ;;  %v3548_v51 = vadd.f32 %v3547_v47, %v11495_v31  ;;  %v9220_v31 = vld [vmem:[%s13041_s5 + $0x264] sm:$0xf]  ;;  %v8301_v58 = vld [vmem:[%s13041_s5 + $0x268] sm:$0xf0]  ;;  %v8563_v20 = vld [vmem:[#allocation3 + $0xf8] sm:$0xf] }
 0x545   : > { %v8304_v54 = vor.u32 %v9220_v31, %v8301_v58 }
 0x546   : > { %v11881_v62 = vadd.f32 %v3927_v33, %v3602_v22  ;;  %v3607_v18 = vadd.f32 %v11787_v36, %v3548_v51  ;;  %v8410_v22 = vor.u32 %v9241_v17, %v8409_v46  ;;  %v9277_v33 = vld [vmem:[#allocation3 + $0x108] sm:$0xf0]  ;;  %v11923_v51 = vpop.f32.mrf.mxu2  ;;  %v8537_v17 = vld [vmem:[#allocation3 + $0xdc] sm:$0xf0] }
 0x547   : > { %8321 = vmatmul.msk.bf16.gmra.mxu1 %vm3183_vm2, %v8304_v54  ;;  %v8564_v10 = vor.u32 %v9277_v33, %v8563_v20  ;;  %v9271_v54 = vld [vmem:[#allocation3 + $0xd8] sm:$0xf0] }
 0x548   : > { %4188 = vmatmul.bf16.gmra.mxu3 %v8284_v45  ;;  %4543 = vmatmul.bf16.gmra.mxu2 %v8410_v22  ;;  %v9272_v22 = vld [vmem:[#allocation3 + $0xe0] sm:$0xf0] }
 0x549   : > { %5178 = vmatpush.bf16.msrb.mxu2 %v8564_v10  ;;  %v9243_v10 = vld [vmem:[%s13041_s5 + $0x314] sm:$0xf0] }
 0x54b   : > { %v3929_v36 = vpop.f32.mrf.mxu0  ;;  %v3550_v39 = vpop.f32.mrf.mxu3 }
 0x54c   : > { %v3930_v16 = vadd.f32 %v3929_v36, %v11789_v42  ;;  %v3551_v12 = vadd.f32 %v3550_v39, %v11513_v35  ;;  %v8576_v42 = vor.u32 %v9281_v19, %v8575_v34  ;;  %v8291_v35 = vld [vmem:[%s13041_s5 + $0x250] sm:$0xf]  ;;  %v8535_v36 = vld [vmem:[#allocation3 + $0xc8] sm:$0xf] }
 0x54d   : > { %v8292_v58 = vor.u32 %v9219_v44, %v8291_v35  ;;  %v8536_v46 = vor.u32 %v9271_v54, %v8535_v36  ;;  %v8523_v35 = vld [vmem:[#allocation3 + $0xa8] sm:$0xf]  ;;  %v9267_v44 = vld [vmem:[#allocation3 + $0xb8] sm:$0xf0]  ;;  %v9261_v36 = vld [vmem:[#allocation3 + $0x88] sm:$0xf0] }
 0x54e   : > { %v11909_v60 = vadd.f32 %v3930_v16, %v3605_v13  ;;  %8428 = vmatmul.msk.bf16.gmra.mxu0 %vm3183_vm2, %v8390_v32  ;;  %v11913_v52 = vadd.f32 %v11802_v50, %v3551_v12  ;;  %5059 = vmatpush.bf16.msra.mxu3 %v8576_v42  ;;  %v9274_v13 = vld [vmem:[#allocation3 + $0xf4] sm:$0xf]  ;;  %v11921_v50 = vpop.f32.mrf.mxu1  ;;  %v9269_v16 = vld [vmem:[#allocation3 + $0xcc] sm:$0xf]  ;;  %v8543_v12 = vld [vmem:[#allocation3 + $0xd0] sm:$0xf]  ;;  %v11939_v8 = vpop.f32.mrf.mxu2 }
 0x54f   : > { %v8560_v45 = vor.u32 %v9274_v13, %v8557_v61  ;;  %v8540_v34 = vor.u32 %v9269_v16, %v8537_v17  ;;  %v8544_v19 = vor.u32 %v9272_v22, %v8543_v12  ;;  %v9266_v42 = vld [vmem:[#allocation3 + $0xb0] sm:$0xf0]  ;;  %v8524_v13 = vor.u32 %v9267_v44, %v8523_v35  ;;  %v8309_v61 = vld [vmem:[%s13041_s5 + $0x278] sm:$0xf0]  ;;  %v8503_v17 = vld [vmem:[#allocation3 + $0x80] sm:$0xf] }
 0x550   : > { %v9259_v16 = vld [vmem:[#allocation3 + $0x7c] sm:$0xf]  ;;  %v9262_v22 = vld [vmem:[#allocation3 + $0x90] sm:$0xf0]  ;;  %v9257_v35 = vld [vmem:[#allocation3 + $0x68] sm:$0xf0] }
 0x551   : > { %5119 = vmatpush.bf16.msra.mxu1 %v8560_v45  ;;  %5179 = vmatpush.bf16.msrb.mxu2 %v8544_v19  ;;  %v8417_v45 = vld [vmem:[%s13041_s5 + $0x310] sm:$0xf]  ;;  %v8504_v19 = vor.u32 %v9262_v22, %v8503_v17  ;;  %v9252_v17 = vld [vmem:[#allocation3 + $0x40] sm:$0xf0] }
 0x552   : > { %5060 = vmatpush.bf16.msra.mxu3 %v8556_v2  ;;  %v9222_v2 = vld [vmem:[%s13041_s5 + $0x274] sm:$0xf] }
 0x553   : > { %v3931_v47 = vpop.f32.mrf.mxu0  ;;  %v3552_v32 = vpop.f32.mrf.mxu3 }
 0x554   : > { %v3932_v59 = vadd.f32 %v3931_v47, %v11810_v15  ;;  %v11927_v31 = vadd.f32 %v3552_v32, %v11533_v3  ;;  %v9236_v15 = vld [vmem:[%s13041_s5 + $0x2e4] sm:$0xf]  ;;  %v8395_v3 = vld [vmem:[%s13041_s5 + $0x2e8] sm:$0xf0]  ;;  %v8312_v47 = vor.u32 %v9222_v2, %v8309_v61  ;;  %v8418_v32 = vor.u32 %v9243_v10, %v8417_v45  ;;  %v9275_v2 = vld [vmem:[#allocation3 + $0xfc] sm:$0xf] }
 0x555   : > { %5120 = vmatpush.bf16.msra.mxu1 %v8540_v34  ;;  %v8398_v56 = vor.u32 %v9236_v15, %v8395_v3  ;;  %5180 = vmatpush.bf16.msrb.mxu2 %v8524_v13  ;;  %v9280_v15 = vld [vmem:[#allocation3 + $0x124] sm:$0xf]  ;;  %v8585_v3 = vld [vmem:[#allocation3 + $0x134] sm:$0xf0]  ;;  %v9221_v34 = vld [vmem:[%s13041_s5 + $0x264] sm:$0xf0]  ;;  %v8484_v13 = vor.u32 %v9257_v35, %v8483_v4 }
 0x556   : > { %v11929_v39 = vadd.f32 %v3932_v59, %v3607_v18  ;;  %5061 = vmatpush.bf16.msra.mxu3 %v8536_v46  ;;  %v8515_v18 = vld [vmem:[#allocation3 + $0xa0] sm:$0xf]  ;;  %v11937_v25 = vpop.f32.mrf.mxu1  ;;  %v8497_v46 = vld [vmem:[#allocation3 + $0x8c] sm:$0xf0] }
 0x557   : > { %v8516_v41 = vor.u32 %v9266_v42, %v8515_v18  ;;  %8322 = vmatmul.msk.bf16.gmra.mxu1 %vm3183_vm2, %v8312_v47  ;;  %v8588_v18 = vor.u32 %v9280_v15, %v8585_v3  ;;  %v9256_v42 = vld [vmem:[#allocation3 + $0x60] sm:$0xf0]  ;;  %v8565_v61 = vld [vmem:[#allocation3 + $0x10c] sm:$0xf0]  ;;  %v9270_v15 = vld [vmem:[#allocation3 + $0xd4] sm:$0xf] }
 0x558   : > { %4193 = vmatmul.bf16.gmra.mxu3 %v8292_v58  ;;  %v8495_v58 = vld [vmem:[#allocation3 + $0x78] sm:$0xf]  ;;  %4548 = vmatmul.bf16.gmra.mxu2 %v8418_v32  ;;  %v8568_v10 = vor.u32 %v9275_v2, %v8565_v61  ;;  %v8545_v3 = vld [vmem:[#allocation3 + $0xe4] sm:$0xf0]  ;;  %v8525_v2 = vld [vmem:[#allocation3 + $0xbc] sm:$0xf0] }
 0x559   : > { %5121 = vmatpush.bf16.msra.mxu1 %v8520_v40  ;;  %5181 = vmatpush.bf16.msrb.mxu2 %v8504_v19  ;;  %v9246_v19 = vld [vmem:[#allocation3 + $0x10] sm:$0xf0] }
 0x55a   : > { %5062 = vmatpush.bf16.msra.mxu3 %v8516_v41  ;;  %5236 = vmatpush.bf16.msrb.mxu0 %v8588_v18  ;;  %v8477_v41 = vld [vmem:[#allocation3 + $0x64] sm:$0xf0]  ;;  %v9244_v18 = vld [vmem:[#allocation3 + $0x4] sm:$0xf] }
 0x55b   : > { %v3934_v30 = vpop.f32.mrf.mxu0  ;;  %v3555_v33 = vpop.f32.mrf.mxu3  ;;  %v8480_v40 = vor.u32 %v9254_v11, %v8477_v41  ;;  %v8437_v11 = vld [vmem:[#allocation3 + $0x14] sm:$0xf0]  ;;  %v9247_v41 = vld [vmem:[#allocation3 + $0x18] sm:$0xf0] }
 0x55c   : > { %v3935_v20 = vadd.f32 %v3934_v30, %v11833_v9  ;;  %v3556_v59 = vadd.f32 %v3555_v33, %v11551_v63  ;;  %v8496_v9 = vor.u32 %v9261_v36, %v8495_v58  ;;  %v8500_v63 = vor.u32 %v9259_v16, %v8497_v46  ;;  %v11969_v30 = vpop.f32.mrf.mxu2  ;;  %v9238_v58 = vld [vmem:[%s13041_s5 + $0x2f4] sm:$0xf]  ;;  %v8455_v36 = vld [vmem:[#allocation3 + $0x28] sm:$0xf]  ;;  %v9249_v16 = vld [vmem:[#allocation3 + $0x2c] sm:$0xf] }
 0x55d   : > { %5182 = vmatpush.bf16.msrb.mxu2 %v8484_v13  ;;  %v9265_v13 = vld [vmem:[#allocation3 + $0xac] sm:$0xf] }
 0x55e   : > { %v11956_v54 = vadd.f32 %v3935_v20, %v11913_v52  ;;  %8429 = vmatmul.msk.bf16.gmra.mxu0 %vm3183_vm2, %v8398_v56  ;;  %v11960_v12 = vadd.f32 %v11846_v21, %v3556_v59  ;;  %v8299_v52 = vld [vmem:[%s13041_s5 + $0x260] sm:$0xf]  ;;  %5063 = vmatpush.bf16.msra.mxu3 %v8496_v9  ;;  %v8475_v21 = vld [vmem:[#allocation3 + $0x50] sm:$0xf]  ;;  %v3612_v20 = vadd.f32 %v11831_v27, %v11927_v31  ;;  %v11974_v45 = vpop.f32.mrf.mxu1  ;;  %v9251_v9 = vld [vmem:[#allocation3 + $0x38] sm:$0xf0] }
 0x55f   : > { %5122 = vmatpush.bf16.msra.mxu1 %v8500_v63  ;;  %v8476_v56 = vor.u32 %v9256_v42, %v8475_v21  ;;  %v8300_v32 = vor.u32 %v9221_v34, %v8299_v52  ;;  %5237 = vmatpush.bf16.msrb.mxu0 %v8568_v10  ;;  %v8456_v27 = vor.u32 %v9251_v9, %v8455_v36  ;;  %v8463_v31 = vld [vmem:[#allocation3 + $0x30] sm:$0xf]  ;;  %v8435_v34 = vld [vmem:[#allocation3] sm:$0xf]  ;;  %v8505_v10 = vld [vmem:[#allocation3 + $0x94] sm:$0xf0] }
 0x560   : > { %v8464_v22 = vor.u32 %v9252_v17, %v8463_v31  ;;  %v8548_v52 = vor.u32 %v9270_v15, %v8545_v3  ;;  %v8436_v42 = vor.u32 %v9246_v19, %v8435_v34  ;;  %v9255_v9 = vld [vmem:[#allocation3 + $0x5c] sm:$0xf]  ;;  %v9250_v15 = vld [vmem:[#allocation3 + $0x34] sm:$0xf]  ;;  %v8465_v3 = vld [vmem:[#allocation3 + $0x44] sm:$0xf0] }
 0x561   : > { %v9240_v34 = vld [vmem:[%s13041_s5 + $0x304] sm:$0xf]  ;;  %v8411_v19 = vld [vmem:[%s13041_s5 + $0x308] sm:$0xf0] }
 0x562   : > { %5064 = vmatpush.bf16.msra.mxu3 %v8476_v56  ;;  %5183 = vmatpush.bf16.msrb.mxu2 %v8464_v22  ;;  %v8443_v56 = vld [vmem:[#allocation3 + $0x8] sm:$0xf] }
 0x563   : > { %v3936_v44 = vpop.f32.mrf.mxu0  ;;  %v3557_v47 = vpop.f32.mrf.mxu3  ;;  %5123 = vmatpush.bf16.msra.mxu1 %v8480_v40  ;;  %5238 = vmatpush.bf16.msrb.mxu0 %v8548_v52  ;;  %v8444_v40 = vor.u32 %v9247_v41, %v8443_v56 }
 0x564   : > { %v3937_v33 = vadd.f32 %v3936_v44, %v11854_v43  ;;  %v3558_v59 = vadd.f32 %v3557_v47, %v11573_v23  ;;  %v8457_v43 = vld [vmem:[#allocation3 + $0x3c] sm:$0xf0]  ;;  %v8403_v23 = vld [vmem:[%s13041_s5 + $0x2f8] sm:$0xf0]  ;;  %v11985_v35 = vpop.f32.mrf.mxu2  ;;  %v8440_v44 = vor.u32 %v9244_v18, %v8437_v11  ;;  %v9260_v47 = vld [vmem:[#allocation3 + $0x84] sm:$0xf]  ;;  %v8468_v18 = vor.u32 %v9250_v15, %v8465_v3 }
 0x565   : > { %v8460_v63 = vor.u32 %v9249_v16, %v8457_v43  ;;  %v8406_v21 = vor.u32 %v9238_v58, %v8403_v23  ;;  %v8508_v36 = vor.u32 %v9260_v47, %v8505_v10  ;;  %v8485_v16 = vld [vmem:[#allocation3 + $0x6c] sm:$0xf0]  ;;  %v4656_v10 = vpop.permute.xlu0 %4655 }
 0x566   : > { %v11980_v46 = vadd.f32 %v3937_v33, %v3612_v20  ;;  %5065 = vmatpush.bf16.msra.mxu3 %v8456_v27  ;;  %v8528_v33 = vor.u32 %v9265_v13, %v8525_v2  ;;  %v11992_v58 = vpop.f32.mrf.mxu1  ;;  %5184 = vmatpush.bf16.msrb.mxu2 %v8444_v40  ;;  %v9223_v27 = vld [vmem:[%s13041_s5 + $0x274] sm:$0xf0]  ;;  %v8488_v31 = vor.u32 %v9255_v9, %v8485_v16  ;;  %v4661_v16 = vpop.permute.xlu1 %4660 }
 0x567   : > { %5124 = vmatpush.bf16.msra.mxu1 %v8460_v63  ;;  %v3617_v17 = vadd.f32 %v11875_v48, %v3558_v59  ;;  %v9245_v48 = vld [vmem:[#allocation3 + $0xc] sm:$0xf]  ;;  %v8414_v59 = vor.u32 %v9240_v34, %v8411_v19 }
 0x568   : > { %4198 = vmatmul.bf16.gmra.mxu3 %v8300_v32  ;;  %5239 = vmatpush.bf16.msrb.mxu0 %v8528_v33 }
 0x56a   : > { %5066 = vmatpush.bf16.msra.mxu3 %v8436_v42 }
 0x56b   : > { %v3939_v4 = vpop.f32.mrf.mxu0  ;;  %v4159_v20 = vpop.f32.mrf.mxu3  ;;  %5125 = vmatpush.bf16.msra.mxu1 %v8440_v44 }
 0x56c   : > { %v3940_v61 = vadd.f32 %v3939_v4, %v11877_v7  ;;  %v8307_v7 = vld [vmem:[%s13041_s5 + $0x270] sm:$0xf]  ;;  %5240 = vmatpush.bf16.msrb.mxu0 %v8508_v36  ;;  %v4219_v56 = vadd.f32 %v11890_v38, %v4159_v20 }
 0x56d   : > { %v8308_v22 = vor.u32 %v9223_v27, %v8307_v7 }
 0x56e   : > { %v11989_v32 = vadd.f32 %v3940_v61, %v11960_v12  ;;  %8430 = vmatmul.msk.bf16.gmra.mxu0 %vm3183_vm2, %v8406_v21  ;;  %v12000_v12 = vpop.f32.mrf.mxu2  ;;  %v12012_v21 = vpop.f32.mrf.mxu1  ;;  %v4268_v40 = vadd.f32 %v4219_v56, %v11601_v26  ;;  %v9242_v26 = vld [vmem:[%s13041_s5 + $0x314] sm:$0xf] }
 0x56f   : > { %v4671_v56 = vpop.permute.xlu0 %4670 }
 0x570   : > { %5241 = vmatpush.bf16.msrb.mxu0 %v8488_v31 }
 0x573   : > { %v3941_v43 = vpop.f32.mrf.mxu0  ;;  %v4161_v63 = vpop.f32.mrf.mxu3 }
 0x574   : > { %v3942_v23 = vadd.f32 %v3941_v43, %v11898_v29  ;;  %v8445_v29 = vld [vmem:[#allocation3 + $0x1c] sm:$0xf0]  ;;  %5242 = vmatpush.bf16.msrb.mxu0 %v8468_v18  ;;  %v4221_v13 = vadd.f32 %v11921_v50, %v4161_v63  ;;  %v8419_v50 = vld [vmem:[%s13041_s5 + $0x318] sm:$0xf0] }
 0x575   : > { %v8448_v11 = vor.u32 %v9245_v48, %v8445_v29  ;;  %v8422_v43 = vor.u32 %v9242_v26, %v8419_v50  ;;  %v4666_v29 = vpop.permute.xlu2 %4665 }
 0x576   : > { %v12004_v52 = vadd.f32 %v3942_v23, %v3617_v17  ;;  %v12015_v4 = vpop.f32.mrf.mxu2  ;;  %v12021_v61 = vpop.f32.mrf.mxu1  ;;  %v4269_v47 = vadd.f32 %v4221_v13, %v11617_v14 }
 0x578   : > { %4203 = vmatmul.bf16.gmra.mxu3 %v8308_v22  ;;  %5243 = vmatpush.bf16.msrb.mxu0 %v8448_v11 }
 0x57b   : > { %v4563_v42 = vpop.f32.mrf.mxu0  ;;  %v4164_v41 = vpop.f32.mrf.mxu3 }
 0x57c   : > { %v4564_v44 = vadd.f32 %v4563_v42, %v11923_v51  ;;  %v4224_v31 = vadd.f32 %v11937_v25, %v4164_v41 }
 0x57e   : > { %8431 = vmatmul.msk.bf16.gmra.mxu0 %vm3183_vm2, %v8414_v59  ;;  %v4613_v2 = vadd.f32 %v4564_v44, %v4268_v40  ;;  %v12025_v51 = vpop.f32.mrf.mxu2  ;;  %v4235_v63 = vpop.f32.mrf.mxu1  ;;  %v4270_v15 = vadd.f32 %v4224_v31, %v11645_v49 }
 0x580   : > { %v4753_v36 = vadd.f32 %v4656_v10, %v4613_v2 }
 0x582   : > { %v4773_v27 = vmax.f32 %v4753_v36, 0.0 }
 0x583   : > { %v4565_v33 = vpop.f32.mrf.mxu0  ;;  %v4166_v20 = vpop.f32.mrf.mxu3 }
 0x584   : > { %v4566_v38 = vadd.f32 %v4565_v33, %v11939_v8  ;;  %v4226_v3 = vadd.f32 %v11974_v45, %v4166_v20 }
 0x586   : > { %v4614_v9 = vadd.f32 %v4566_v38, %v4269_v47  ;;  %v4521_v34 = vpop.f32.mrf.mxu2  ;;  %v4271_v18 = vadd.f32 %v4226_v3, %v11661_v28  ;;  %v4238_v11 = vpop.f32.mrf.mxu1 }
 0x588   : > { %v4754_v7 = vadd.f32 %v4661_v16, %v4614_v9  ;;  %v4676_v16 = vpop.permute.xlu1 %4675 }
 0x58a   : > { %v4774_v14 = vmax.f32 %v4754_v7, 0.0  ;;  %v4681_v7 = vpop.permute.xlu2 %4680 }
 0x58b   : > { %v4568_v8 = vpop.f32.mrf.mxu0  ;;  %v4169_v23 = vpop.f32.mrf.mxu3 }
 0x58c   : > { %v12034_v17 = vpack.c.bf16 %v4774_v14, %v4773_v27  ;;  %v4569_v22 = vadd.f32 %v4568_v8, %v11969_v30  ;;  %v4229_v45 = vadd.f32 %v11992_v58, %v4169_v23 }
 0x58e   : > { %8432 = vmatmul.msk.bf16.gmra.mxu0 %vm3183_vm2, %v8422_v43  ;;  %5067 = vmatmul.bf16.vlgmr.msra.gmra.mxu3 %v12034_v17  ;;  %v4615_v25 = vadd.f32 %v4569_v22, %v4270_v15  ;;  %v4524_v13 = vpop.f32.mrf.mxu2  ;;  %v4240_v38 = vpop.f32.mrf.mxu1 }
 0x58f   : > { %5126 = vmatmul.bf16.vlgmr.msra.gmra.mxu1 %v12034_v17  ;;  %5185 = vmatmul.bf16.vlgmr.msrb.gmra.mxu2 %v12034_v17 }
 0x590   : > { %v4755_v59 = vadd.f32 %v4666_v29, %v4615_v25 }
 0x592   : > { %v4775_v44 = vmax.f32 %v4755_v59, 0.0  ;;  %v4691_v59 = vpop.permute.xlu1 %4690 }
 0x593   : > { %v4570_v19 = vpop.f32.mrf.mxu0  ;;  %v4171_v30 = vpop.f32.mrf.mxu3 }
 0x594   : > { %v4571_v48 = vadd.f32 %v4570_v19, %v11985_v35  ;;  %v4272_v35 = vadd.f32 %v4229_v45, %v11689_v24  ;;  %v4231_v47 = vadd.f32 %v12012_v21, %v4171_v30 }
 0x596   : > { %v4616_v42 = vadd.f32 %v4571_v48, %v4271_v18  ;;  %v4273_v10 = vadd.f32 %v4231_v47, %v11705_v57  ;;  %v4526_v9 = vpop.f32.mrf.mxu2  ;;  %v4243_v8 = vpop.f32.mrf.mxu1 }
 0x598   : > { %v4756_v41 = vadd.f32 %v4671_v56, %v4616_v42 }
 0x59a   : > { %v4776_v40 = vmax.f32 %v4756_v41, 0.0 }
 0x59b   : > { %v4573_v49 = vpop.f32.mrf.mxu0  ;;  %v4174_v33 = vpop.f32.mrf.mxu3 }
 0x59c   : > { %v12046_v2 = vpack.c.bf16 %v4776_v40, %v4775_v44  ;;  %v4574_v28 = vadd.f32 %v4573_v49, %v12000_v12  ;;  %v4234_v21 = vadd.f32 %v12021_v61, %v4174_v33 }
 0x59e   : > { %5072 = vmatmul.bf16.gmra.mxu3 %v12046_v2  ;;  %5244 = vmatmul.bf16.vlgmr.msrb.gmra.mxu0 %v12034_v17  ;;  %v4617_v20 = vadd.f32 %v4574_v28, %v4272_v35  ;;  %v4274_v22 = vadd.f32 %v4234_v21, %v11733_v0  ;;  %v4245_v48 = vpop.f32.mrf.mxu1 }
 0x59f   : > { %5131 = vmatmul.bf16.gmra.mxu1 %v12046_v2  ;;  %5190 = vmatmul.bf16.gmra.mxu2 %v12046_v2 }
 0x5a0   : > { %v4757_v26 = vadd.f32 %v4676_v16, %v4617_v20 }
 0x5a2   : > { %v4777_v14 = vmax.f32 %v4757_v26, 0.0 }
 0x5a3   : > { %v4575_v58 = vpop.f32.mrf.mxu0  ;;  %v4176_v12 = vpop.f32.mrf.mxu3 }
 0x5a4   : > { %v4576_v36 = vadd.f32 %v4575_v58, %v12015_v4  ;;  %v4529_v4 = vpop.f32.mrf.mxu2  ;;  %v4236_v15 = vadd.f32 %v4235_v63, %v4176_v12 }
 0x5a6   : > { %v4618_v50 = vadd.f32 %v4576_v36, %v4273_v10  ;;  %v4275_v61 = vadd.f32 %v4236_v15, %v11749_v1  ;;  %v4248_v1 = vpop.f32.mrf.mxu1 }
 0x5a8   : > { %v4758_v27 = vadd.f32 %v4681_v7, %v4618_v50 }
 0x5aa   : > { %v4778_v43 = vmax.f32 %v4758_v27, 0.0 }
 0x5ab   : > { %v4578_v24 = vpop.f32.mrf.mxu0  ;;  %v4179_v23 = vpop.f32.mrf.mxu3 }
 0x5ac   : > { %v12058_v31 = vpack.c.bf16 %v4778_v43, %v4777_v14  ;;  %v4579_v57 = vadd.f32 %v4578_v24, %v12025_v51  ;;  %v4686_v51 = vpop.permute.xlu0 %4685  ;;  %v4531_v56 = vpop.f32.mrf.mxu2  ;;  %v4239_v49 = vadd.f32 %v4238_v11, %v4179_v23 }
 0x5ae   : > { %5077 = vmatmul.bf16.gmra.mxu3 %v12058_v31  ;;  %5249 = vmatmul.bf16.gmra.mxu0 %v12046_v2  ;;  %v4619_v3 = vadd.f32 %v4579_v57, %v4274_v22  ;;  %v4250_v26 = vpop.f32.mrf.mxu1 }
 0x5af   : > { %5136 = vmatmul.bf16.gmra.mxu1 %v12058_v31  ;;  %5195 = vmatmul.bf16.gmra.mxu2 %v12058_v31 }
 0x5b0   : > { %v4759_v30 = vadd.f32 %v4686_v51, %v4619_v3  ;;  %v4706_v3 = vpop.permute.xlu1 %4705 }
 0x5b2   : > { %v4779_v41 = vmax.f32 %v4759_v30, 0.0 }
 0x5b3   : > { %v4580_v25 = vpop.f32.mrf.mxu0  ;;  %v4181_v18 = vpop.f32.mrf.mxu3 }
 0x5b4   : > { %v4581_v19 = vadd.f32 %v4580_v25, %v4521_v34  ;;  %v4276_v34 = vadd.f32 %v4239_v49, %v11777_v55  ;;  %v4241_v33 = vadd.f32 %v4240_v38, %v4181_v18  ;;  %v4534_v35 = vpop.f32.mrf.mxu2  ;;  %v4701_v12 = vpop.permute.xlu0 %4700 }
 0x5b6   : > { %v4620_v29 = vadd.f32 %v4581_v19, %v4275_v61  ;;  %v4277_v11 = vadd.f32 %v4241_v33, %v11793_v5  ;;  %v4253_v23 = vpop.f32.mrf.mxu1 }
 0x5b8   : > { %v4760_v42 = vadd.f32 %v4691_v59, %v4620_v29 }
 0x5ba   : > { %v4780_v44 = vmax.f32 %v4760_v42, 0.0 }
 0x5bb   : > { %v4583_v40 = vpop.f32.mrf.mxu0  ;;  %v4184_v0 = vpop.f32.mrf.mxu3 }
 0x5bc   : > { %v12067_v45 = vpack.c.bf16 %v4780_v44, %v4779_v41  ;;  %v4584_v63 = vadd.f32 %v4583_v40, %v4524_v13  ;;  %v4696_v13 = vpop.permute.xlu2 %4695  ;;  %v4244_v14 = vadd.f32 %v4243_v8, %v4184_v0  ;;  %v4536_v38 = vpop.f32.mrf.mxu2 }
 0x5be   : > { %5082 = vmatmul.bf16.gmra.mxu3 %v12067_v45  ;;  %5254 = vmatmul.bf16.gmra.mxu0 %v12058_v31  ;;  %v4621_v28 = vadd.f32 %v4584_v63, %v4276_v34  ;;  %v4278_v5 = vadd.f32 %v4244_v14, %v11821_v53  ;;  %v4716_v34 = vpop.permute.xlu0 %4715 }
 0x5bf   : > { %5141 = vmatmul.bf16.gmra.mxu1 %v12067_v45  ;;  %5200 = vmatmul.bf16.gmra.mxu2 %v12067_v45 }
 0x5c0   : > { %v4761_v10 = vadd.f32 %v4696_v13, %v4621_v28 }
 0x5c2   : > { %v4781_v50 = vmax.f32 %v4761_v10, 0.0 }
 0x5c3   : > { %v4585_v47 = vpop.f32.mrf.mxu0  ;;  %v4186_v58 = vpop.f32.mrf.mxu3 }
 0x5c4   : > { %v4586_v20 = vadd.f32 %v4585_v47, %v4526_v9  ;;  %v4246_v9 = vadd.f32 %v4245_v48, %v4186_v58  ;;  %v4539_v61 = vpop.f32.mrf.mxu2  ;;  %v4711_v19 = vpop.permute.xlu2 %4710 }
 0x5c5   : > { %v4255_v48 = vpop.f32.mrf.mxu1  ;;  %v4721_v47 = vpop.permute.xlu1 %4720 }
 0x5c6   : > { %v4622_v36 = vadd.f32 %v4586_v20, %v4277_v11  ;;  %v4279_v8 = vadd.f32 %v4246_v9, %v11837_v37 }
 0x5c8   : > { %v4762_v16 = vadd.f32 %v4701_v12, %v4622_v36 }
 0x5ca   : > { %v4782_v7 = vmax.f32 %v4762_v16, 0.0  ;;  %v8591_v16 = vld [vmem:[#allocation3 + $0x128] sm:$0xf] }
 0x5cb   : > { %v4588_v27 = vpop.f32.mrf.mxu0  ;;  %v4189_v55 = vpop.f32.mrf.mxu3 }
 0x5cc   : > { %v12075_v43 = vpack.c.bf16 %v4782_v7, %v4781_v50  ;;  %v4589_v24 = vadd.f32 %v4588_v27, %v4529_v4  ;;  %v4249_v59 = vadd.f32 %v4248_v1, %v4189_v55  ;;  %v4541_v44 = vpop.f32.mrf.mxu2  ;;  %v8571_v55 = vld [vmem:[#allocation3 + $0x100] sm:$0xf] }
 0x5ce   : > { %5087 = vmatmul.bf16.gmra.mxu3 %v12075_v43  ;;  %5259 = vmatmul.bf16.gmra.mxu0 %v12067_v45  ;;  %v4623_v21 = vadd.f32 %v4589_v24, %v4278_v5  ;;  %v4280_v37 = vadd.f32 %v4249_v59, %v11865_v6 }
 0x5cf   : > { %5146 = vmatmul.bf16.gmra.mxu1 %v12075_v43  ;;  %5205 = vmatmul.bf16.gmra.mxu2 %v12075_v43 }
 0x5d0   : > { %v4763_v4 = vadd.f32 %v4706_v3, %v4623_v21  ;;  %v9273_v3 = vld [vmem:[#allocation3 + $0xe8] sm:$0xf0] }
 0x5d2   : > { %v4783_v51 = vmax.f32 %v4763_v4, 0.0 }
 0x5d3   : > { %v4590_v57 = vpop.f32.mrf.mxu0  ;;  %v4191_v15 = vpop.f32.mrf.mxu3 }
 0x5d4   : > { %v4591_v22 = vadd.f32 %v4590_v57, %v4531_v56  ;;  %v4251_v56 = vadd.f32 %v4250_v26, %v4191_v15  ;;  %v4544_v13 = vpop.f32.mrf.mxu2  ;;  %v9283_v26 = vld [vmem:[#allocation3 + $0x138] sm:$0xf0]  ;;  %v8551_v15 = vld [vmem:[#allocation3 + $0xd8] sm:$0xf] }
 0x5d6   : > { %v4624_v25 = vadd.f32 %v4591_v22, %v4279_v8  ;;  %v4281_v0 = vadd.f32 %v4251_v56, %v11881_v62  ;;  %v8592_v62 = vor.u32 %v9283_v26, %v8591_v16  ;;  %v4726_v8 = vpop.permute.xlu2 %4725  ;;  %v9263_v56 = vld [vmem:[#allocation3 + $0x98] sm:$0xf0] }
 0x5d8   : > { %v4764_v18 = vadd.f32 %v4711_v19, %v4624_v25  ;;  %5295 = vmatpush.bf16.msrb.mxu3 %v8592_v62 }
 0x5da   : > { %v4784_v30 = vmax.f32 %v4764_v18, 0.0  ;;  %v8531_v18 = vld [vmem:[#allocation3 + $0xb0] sm:$0xf] }
 0x5db   : > { %v4593_v29 = vpop.f32.mrf.mxu0  ;;  %v4194_v53 = vpop.f32.mrf.mxu3 }
 0x5dc   : > { %v12083_v42 = vpack.c.bf16 %v4784_v30, %v4783_v51  ;;  %v4594_v41 = vadd.f32 %v4593_v29, %v4534_v35  ;;  %v4258_v35 = vpop.f32.mrf.mxu1  ;;  %v4254_v36 = vadd.f32 %v4253_v23, %v4194_v53  ;;  %v4546_v57 = vpop.f32.mrf.mxu2  ;;  %v9268_v51 = vld [vmem:[#allocation3 + $0xc0] sm:$0xf0] }
 0x5dd   : > { %v8532_v53 = vor.u32 %v9268_v51, %v8531_v18 }
 0x5de   : > { %5092 = vmatmul.bf16.gmra.mxu3 %v12083_v42  ;;  %5264 = vmatmul.bf16.gmra.mxu0 %v12075_v43  ;;  %v4625_v40 = vadd.f32 %v4594_v41, %v4280_v37  ;;  %v4282_v7 = vadd.f32 %v4254_v36, %v11909_v60  ;;  %v8552_v60 = vor.u32 %v9273_v3, %v8551_v15  ;;  %v8511_v37 = vld [vmem:[#allocation3 + $0x88] sm:$0xf]  ;;  %v9253_v36 = vld [vmem:[#allocation3 + $0x48] sm:$0xf0] }
 0x5df   : > { %5151 = vmatmul.bf16.gmra.mxu1 %v12083_v42  ;;  %5210 = vmatmul.bf16.gmra.mxu2 %v12083_v42 }
 0x5e0   : > { %v4765_v33 = vadd.f32 %v4716_v34, %v4625_v40  ;;  %v8491_v34 = vld [vmem:[#allocation3 + $0x60] sm:$0xf] }
 0x5e2   : > { %v4785_v20 = vmax.f32 %v4765_v33, 0.0  ;;  %v9258_v33 = vld [vmem:[#allocation3 + $0x70] sm:$0xf0] }
 0x5e3   : > { %v4595_v49 = vpop.f32.mrf.mxu0  ;;  %v4196_v1 = vpop.f32.mrf.mxu3 }
 0x5e4   : > { %v4596_v63 = vadd.f32 %v4595_v49, %v4536_v38  ;;  %v4256_v27 = vadd.f32 %v4255_v48, %v4196_v1  ;;  %v4260_v14 = vpop.f32.mrf.mxu1  ;;  %v9278_v38 = vld [vmem:[#allocation3 + $0x110] sm:$0xf0]  ;;  %v4549_v40 = vpop.f32.mrf.mxu2  ;;  %v8512_v49 = vor.u32 %v9263_v56, %v8511_v37 }
 0x5e5   : > { %v8572_v5 = vor.u32 %v9278_v38, %v8571_v55 }
 0x5e6   : > { %v4626_v28 = vadd.f32 %v4596_v63, %v4281_v0  ;;  %v4283_v21 = vadd.f32 %v4256_v27, %v11929_v39  ;;  %v8451_v27 = vld [vmem:[#allocation3 + $0x10] sm:$0xf] }
 0x5e7   : > { %5296 = vmatpush.bf16.msrb.mxu3 %v8572_v5 }
 0x5e8   : > { %v4766_v11 = vadd.f32 %v4721_v47, %v4626_v28 }
 0x5ea   : > { %v4786_v58 = vmax.f32 %v4766_v11, 0.0 }
 0x5eb   : > { %v4598_v10 = vpop.f32.mrf.mxu0  ;;  %v4199_v12 = vpop.f32.mrf.mxu3  ;;  %5297 = vmatpush.bf16.msrb.mxu3 %v8552_v60 }
 0x5ec   : > { %v12091_v6 = vpack.c.bf16 %v4786_v58, %v4785_v20  ;;  %v4599_v50 = vadd.f32 %v4598_v10, %v4539_v61  ;;  %v4731_v61 = vpop.permute.xlu0 %4730  ;;  %v4263_v59 = vpop.f32.mrf.mxu1  ;;  %v4259_v48 = vadd.f32 %v4258_v35, %v4199_v12  ;;  %v8492_v35 = vor.u32 %v9258_v33, %v8491_v34  ;;  %v8471_v10 = vld [vmem:[#allocation3 + $0x38] sm:$0xf] }
 0x5ed   : > { %v8472_v26 = vor.u32 %v9253_v36, %v8471_v10  ;;  %v4551_v62 = vpop.f32.mrf.mxu2 }
 0x5ee   : > { %5097 = vmatmul.bf16.gmra.mxu3 %v12091_v6  ;;  %5269 = vmatmul.bf16.gmra.mxu0 %v12083_v42  ;;  %v4627_v24 = vadd.f32 %v4599_v50, %v4282_v7  ;;  %v4284_v63 = vadd.f32 %v4259_v48, %v11956_v54  ;;  %v4741_v50 = vpop.permute.xlu2 %4740 }
 0x5ef   : > { %5156 = vmatmul.bf16.gmra.mxu1 %v12091_v6  ;;  %5215 = vmatmul.bf16.gmra.mxu2 %v12091_v6 }
 0x5f0   : > { %v4767_v4 = vadd.f32 %v4726_v8, %v4627_v24  ;;  %5298 = vmatpush.bf16.msrb.mxu3 %v8532_v53 }
 0x5f2   : > { %v4787_v30 = vmax.f32 %v4767_v4, 0.0 }
 0x5f3   : > { %v4600_v9 = vpop.f32.mrf.mxu0  ;;  %v4201_v22 = vpop.f32.mrf.mxu3 }
 0x5f4   : > { %v4601_v23 = vadd.f32 %v4600_v9, %v4541_v44  ;;  %v4261_v1 = vadd.f32 %v4260_v14, %v4201_v22  ;;  %5299 = vmatpush.bf16.msrb.mxu3 %v8512_v49  ;;  %v4265_v20 = vpop.f32.mrf.mxu1  ;;  %v9248_v14 = vld [vmem:[#allocation3 + $0x20] sm:$0xf0]  ;;  %v4746_v18 = vpop.permute.xlu0 %4745 }
 0x5f5   : > { %v8452_v24 = vor.u32 %v9248_v14, %v8451_v27 }
 0x5f6   : > { %v4628_v25 = vadd.f32 %v4601_v23, %v4283_v21  ;;  %v4285_v11 = vadd.f32 %v4261_v1, %v11980_v46 }
 0x5f8   : > { %v4768_v19 = vadd.f32 %v4731_v61, %v4628_v25  ;;  %5300 = vmatpush.bf16.msrb.mxu3 %v8492_v35 }
 0x5fa   : > { %v4788_v29 = vmax.f32 %v4768_v19, 0.0 }
 0x5fb   : > { %v4603_v39 = vpop.f32.mrf.mxu0  ;;  %v4204_v0 = vpop.f32.mrf.mxu3 }
 0x5fc   : > { %v12099_v41 = vpack.c.bf16 %v4788_v29, %v4787_v30  ;;  %v4604_v44 = vadd.f32 %v4603_v39, %v4544_v13  ;;  %v4736_v13 = vpop.permute.xlu1 %4735  ;;  %5301 = vmatpush.bf16.msrb.mxu3 %v8472_v26  ;;  %v4264_v5 = vadd.f32 %v4263_v59, %v4204_v0 }
 0x5fe   : > { %5102 = vmatmul.bf16.gmra.mxu3 %v12099_v41  ;;  %5274 = vmatmul.bf16.gmra.mxu0 %v12091_v6  ;;  %v4629_v28 = vadd.f32 %v4604_v44, %v4284_v63 }
 0x5ff   : > { %5161 = vmatmul.bf16.gmra.mxu1 %v12099_v41  ;;  %5220 = vmatmul.bf16.gmra.mxu2 %v12099_v41 }
 0x600   : > { %v4769_v12 = vadd.f32 %v4736_v13, %v4629_v28  ;;  %5302 = vmatpush.bf16.msrb.mxu3 %v8452_v24 }
 0x602   : > { %v4789_v55 = vmax.f32 %v4769_v12, 0.0 }
 0x603   : > { %v4605_v47 = vpop.f32.mrf.mxu0  ;;  %v4206_v7 = vpop.f32.mrf.mxu3 }
 0x604   : > { %v4606_v58 = vadd.f32 %v4605_v47, %v4546_v57  ;;  %v4286_v57 = vadd.f32 %v4264_v5, %v11989_v32  ;;  %v4266_v8 = vadd.f32 %v4265_v20, %v4206_v7  ;;  %v4751_v29 = vpop.permute.xlu1 %4750 }
 0x606   : > { %v4630_v16 = vadd.f32 %v4606_v58, %v4285_v11  ;;  %v4287_v60 = vadd.f32 %v4266_v8, %v12004_v52 }
 0x608   : > { %v4770_v54 = vadd.f32 %v4741_v50, %v4630_v16 }
 0x60a   : > { %v4790_v38 = vmax.f32 %v4770_v54, 0.0 }
 0x60b   : > { %v4608_v46 = vpop.f32.mrf.mxu0 }
 0x60c   : > { %v12107_v9 = vpack.c.bf16 %v4790_v38, %v4789_v55  ;;  %v5127_v21 = vpop.f32.mrf.mxu1  ;;  %v4609_v23 = vadd.f32 %v4608_v46, %v4549_v40 }
 0x60e   : > { %5107 = vmatmul.bf16.gmra.mxu3 %v12107_v9  ;;  %5279 = vmatmul.bf16.gmra.mxu0 %v12099_v41  ;;  %v4631_v15 = vadd.f32 %v4609_v23, %v4286_v57 }
 0x60f   : > { %5166 = vmatmul.bf16.gmra.mxu1 %v12107_v9  ;;  %5225 = vmatmul.bf16.gmra.mxu2 %v12107_v9 }
 0x610   : > { %v4771_v51 = vadd.f32 %v4746_v18, %v4631_v15 }
 0x611   : > { %v5068_v22 = vpop.f32.mrf.mxu3 }
 0x612   : > { %v5354_v3 = vpack.c.bf16 %v5127_v21, %v5068_v22  ;;  %v5186_v4 = vpop.f32.mrf.mxu2  ;;  %v4791_v39 = vmax.f32 %v4771_v51, 0.0 }
 0x613   : > { %v4610_v25 = vpop.f32.mrf.mxu0 }
 0x614   : > { %v4611_v61 = vadd.f32 %v4610_v25, %v4551_v62  ;;  %v5129_v19 = vpop.f32.mrf.mxu1  ;;  %v5534_v56 = vunpack.c.h.b16 %v5354_v3  ;;  %v5764_v44 = vunpack.c.l.b16 %v5354_v3 }
 0x616   : > { %v4632_v30 = vadd.f32 %v4611_v61, %v4287_v60 }
 0x618   : > { %v4772_v59 = vadd.f32 %v4751_v29, %v4632_v30 }
 0x619   : > { %v5070_v53 = vpop.f32.mrf.mxu3 }
 0x61a   : > { %v4792_v48 = vmax.f32 %v4772_v59, 0.0  ;;  %v5357_v37 = vpack.c.bf16 %v5129_v19, %v5070_v53  ;;  %v12115_v32 = vpop.f32.mrf.mxu2 }
 0x61b   : > { %v5245_v40 = vpop.f32.mrf.mxu0 }
 0x61c   : > { %v12117_v49 = vpack.c.bf16 %v4792_v48, %v4791_v39  ;;  %v5535_v0 = vunpack.c.h.b16 %v5357_v37  ;;  %v5765_v52 = vunpack.c.l.b16 %v5357_v37  ;;  %v5132_v63 = vpop.f32.mrf.mxu1  ;;  %v12119_v1 = vpack.c.bf16 %v5245_v40, %v5186_v4 }
 0x61e   : > { %13071 = vst [vmem:[#allocation10_spill] sm:$0xff] %v12117_v49  ;;  %5112 = vmatmul.bf16.gmra.mxu3 %v12117_v49  ;;  %5284 = vmatmul.bf16.gmra.mxu0 %v12107_v9  ;;  %v12123_v34 = vpack.c.b16 %v5535_v0, %v5534_v56  ;;  %v12125_v33 = vpack.c.b16 %v5765_v52, %v5764_v44 }
 0x61f   : > { %13072 = vst [vmem:[#allocation9_spill] sm:$0xff] %v12119_v1  ;;  %5171 = vmatmul.bf16.gmra.mxu1 %v12117_v49  ;;  %5230 = vmatmul.bf16.gmra.mxu2 %v12117_v49 }
 0x621   : > { %v5073_v28 = vpop.f32.mrf.mxu3 }
 0x622   : > { %v5360_v35 = vpack.c.bf16 %v5132_v63, %v5073_v28  ;;  %v5191_v47 = vpop.f32.mrf.mxu2 }
 0x623   : > { %v12129_v11 = vpop.f32.mrf.mxu0 }
 0x624   : > { %v5134_v20 = vpop.f32.mrf.mxu1  ;;  %v5536_v36 = vunpack.c.h.b16 %v5360_v35  ;;  %v5766_v16 = vunpack.c.l.b16 %v5360_v35 }
 0x629   : > { %v5075_v58 = vpop.f32.mrf.mxu3 }
 0x62a   : > { %v5363_v13 = vpack.c.bf16 %v5134_v20, %v5075_v58  ;;  %v12131_v10 = vpop.f32.mrf.mxu2 }
 0x62b   : > { %v5250_v12 = vpop.f32.mrf.mxu0 }
 0x62c   : > { %v5537_v26 = vunpack.c.h.b16 %v5363_v13  ;;  %v5767_v50 = vunpack.c.l.b16 %v5363_v13  ;;  %v5137_v54 = vpop.f32.mrf.mxu1  ;;  %v12133_v62 = vpack.c.bf16 %v5250_v12, %v5191_v47 }
 0x62e   : > { %13073 = vst [vmem:[#allocation11_spill] sm:$0xff] %v12133_v62  ;;  %5289 = vmatmul.bf16.gmra.mxu0 %v12117_v49  ;;  %5303 = vmatmul.bf16.vlgmr.msrb.gmra.mxu3 %v12034_v17  ;;  %v12137_v7 = vpack.c.b16 %v5537_v26, %v5536_v36  ;;  %v12139_v27 = vpack.c.b16 %v5767_v50, %v5766_v16 }
 0x631   : > { %v5078_v14 = vpop.f32.mrf.mxu3 }
 0x632   : > { %v5366_v55 = vpack.c.bf16 %v5137_v54, %v5078_v14  ;;  %v5196_v38 = vpop.f32.mrf.mxu2 }
 0x633   : > { %v12141_v24 = vpop.f32.mrf.mxu0 }
 0x634   : > { %v5139_v46 = vpop.f32.mrf.mxu1  ;;  %v5538_v57 = vunpack.c.h.b16 %v5366_v55  ;;  %v5768_v22 = vunpack.c.l.b16 %v5366_v55 }
 0x639   : > { %v5080_v5 = vpop.f32.mrf.mxu3 }
 0x63a   : > { %v5369_v21 = vpack.c.bf16 %v5139_v46, %v5080_v5  ;;  %v12143_v23 = vpop.f32.mrf.mxu2 }
 0x63b   : > { %v5255_v8 = vpop.f32.mrf.mxu0 }
 0x63c   : > { %v5539_v15 = vunpack.c.h.b16 %v5369_v21  ;;  %v5769_v3 = vunpack.c.l.b16 %v5369_v21  ;;  %v5142_v17 = vpop.f32.mrf.mxu1  ;;  %v12145_v4 = vpack.c.bf16 %v5255_v8, %v5196_v38 }
 0x63e   : > { %5308 = vmatmul.bf16.gmra.mxu3 %v12046_v2  ;;  %v12148_v25 = vpack.c.b16 %v5539_v15, %v5538_v57  ;;  %v12150_v60 = vpack.c.b16 %v5769_v3, %v5768_v22 }
 0x641   : > { %v5083_v61 = vpop.f32.mrf.mxu3 }
 0x642   : > { %v5372_v19 = vpack.c.bf16 %v5142_v17, %v5083_v61  ;;  %v5201_v18 = vpop.f32.mrf.mxu2 }
 0x643   : > { %v12152_v51 = vpop.f32.mrf.mxu0 }
 0x644   : > { %v5144_v30 = vpop.f32.mrf.mxu1  ;;  %v5540_v39 = vunpack.c.h.b16 %v5372_v19  ;;  %v5770_v37 = vunpack.c.l.b16 %v5372_v19 }
 0x649   : > { %v5085_v29 = vpop.f32.mrf.mxu3 }
 0x64a   : > { %v5375_v59 = vpack.c.bf16 %v5144_v30, %v5085_v29  ;;  %v12154_v53 = vpop.f32.mrf.mxu2 }
 0x64b   : > { %v5260_v48 = vpop.f32.mrf.mxu0 }
 0x64c   : > { %v5541_v56 = vunpack.c.h.b16 %v5375_v59  ;;  %v5771_v44 = vunpack.c.l.b16 %v5375_v59  ;;  %v5147_v2 = vpop.f32.mrf.mxu1  ;;  %v12156_v40 = vpack.c.bf16 %v5260_v48, %v5201_v18 }
 0x64e   : > { %5313 = vmatmul.bf16.gmra.mxu3 %v12058_v31  ;;  %v12159_v0 = vpack.c.b16 %v5541_v56, %v5540_v39  ;;  %v12161_v52 = vpack.c.b16 %v5771_v44, %v5770_v37 }
 0x651   : > { %v5088_v63 = vpop.f32.mrf.mxu3 }
 0x652   : > { %v12163_v28 = vpack.c.bf16 %v5147_v2, %v5088_v63  ;;  %v5206_v35 = vpop.f32.mrf.mxu2 }
 0x653   : > { %v12165_v47 = vpop.f32.mrf.mxu0 }
 0x654   : > { %v5149_v20 = vpop.f32.mrf.mxu1 }
 0x659   : > { %v5090_v58 = vpop.f32.mrf.mxu3 }
 0x65a   : > { %v12167_v13 = vpop.f32.mrf.mxu2 }
 0x65b   : > { %v5265_v36 = vpop.f32.mrf.mxu0 }
 0x65c   : > { %v5152_v12 = vpop.f32.mrf.mxu1  ;;  %v12169_v16 = vpack.c.bf16 %v5265_v36, %v5206_v35 }
 0x65e   : > { %5318 = vmatmul.bf16.gmra.mxu3 %v12067_v45 }
 0x661   : > { %v5093_v31 = vpop.f32.mrf.mxu3 }
 0x662   : > { %v5211_v26 = vpop.f32.mrf.mxu2 }
 0x663   : > { %v12172_v50 = vpop.f32.mrf.mxu0 }
 0x664   : > { %v5154_v54 = vpop.f32.mrf.mxu1 }
 0x669   : > { %v5095_v14 = vpop.f32.mrf.mxu3 }
 0x66a   : > { %v12174_v55 = vpop.f32.mrf.mxu2 }
 0x66b   : > { %v5270_v38 = vpop.f32.mrf.mxu0 }
 0x66c   : > { %v5157_v46 = vpop.f32.mrf.mxu1  ;;  %v12176_v5 = vpack.c.bf16 %v5270_v38, %v5211_v26 }
 0x66e   : > { %5323 = vmatmul.bf16.gmra.mxu3 %v12075_v43 }
 0x671   : > { %v5098_v21 = vpop.f32.mrf.mxu3 }
 0x672   : > { %v12179_v57 = vpop.f32.mrf.mxu2  ;;  %v5390_v37 = vpack.c.bf16 %v5157_v46, %v5098_v21  ;;  %v5381_v46 = vpack.c.bf16 %v5149_v20, %v5090_v58 }
 0x673   : > { %v12181_v8 = vpop.f32.mrf.mxu0 }
 0x674   : > { %v5159_v45 = vpop.f32.mrf.mxu1 }
 0x679   : > { %v5100_v22 = vpop.f32.mrf.mxu3 }
 0x67a   : > { %v12183_v15 = vpop.f32.mrf.mxu2  ;;  %v5393_v59 = vpack.c.bf16 %v5159_v45, %v5100_v22  ;;  %v5776_v45 = vunpack.c.l.b16 %v5390_v37 }
 0x67b   : > { %v12185_v3 = vpop.f32.mrf.mxu0 }
 0x67c   : > { %v5162_v17 = vpop.f32.mrf.mxu1  ;;  %v5547_v26 = vunpack.c.h.b16 %v5393_v59  ;;  %v5777_v38 = vunpack.c.l.b16 %v5393_v59 }
 0x67e   : > { %5328 = vmatmul.bf16.gmra.mxu3 %v12083_v42  ;;  %v5387_v42 = vpack.c.bf16 %v5154_v54, %v5095_v14 }
 0x680   : > { %v5545_v22 = vunpack.c.h.b16 %v5387_v42 }
 0x681   : > { %v5103_v61 = vpop.f32.mrf.mxu3 }
 0x682   : > { %v12188_v19 = vpop.f32.mrf.mxu2  ;;  %v5396_v30 = vpack.c.bf16 %v5162_v17, %v5103_v61  ;;  %v5384_v17 = vpack.c.bf16 %v5152_v12, %v5093_v31  ;;  %v5546_v61 = vunpack.c.h.b16 %v5390_v37  ;;  %v5773_v12 = vunpack.c.l.b16 %v5381_v46 }
 0x683   : > { %v12190_v18 = vpop.f32.mrf.mxu0 }
 0x684   : > { %v5164_v43 = vpop.f32.mrf.mxu1  ;;  %v5548_v44 = vunpack.c.h.b16 %v5396_v30  ;;  %v5778_v2 = vunpack.c.l.b16 %v5396_v30  ;;  %v5560_v30 = vpack.c.b16 %v5547_v26, %v5546_v61  ;;  %v5544_v49 = vunpack.c.h.b16 %v5384_v17 }
 0x685   : > { %v5774_v54 = vunpack.c.l.b16 %v5384_v17 }
 0x686   : > { %v5559_v31 = vpack.c.b16 %v5545_v22, %v5544_v49 }
 0x689   : > { %v5105_v29 = vpop.f32.mrf.mxu3 }
 0x68a   : > { %v5399_v39 = vpack.c.bf16 %v5164_v43, %v5105_v29  ;;  %v5223_v48 = vpop.f32.mrf.mxu2  ;;  %v5775_v43 = vunpack.c.l.b16 %v5387_v42  ;;  %v5790_v29 = vpack.c.b16 %v5777_v38, %v5776_v45  ;;  %v12215_v38 = vpack.c.bf16 %v12190_v18, %v12183_v15  ;;  %v9285_v15 = vld [vmem:[%s13044_s8 + $0x4] sm:$0xf0] }
 0x68b   : > { %v5280_v56 = vpop.f32.mrf.mxu0 }
 0x68c   : > { %v5549_v63 = vunpack.c.h.b16 %v5399_v39  ;;  %v5779_v35 = vunpack.c.l.b16 %v5399_v39  ;;  %v12192_v36 = vpop.f32.mrf.mxu1  ;;  %v5789_v37 = vpack.c.b16 %v5775_v43, %v5774_v54  ;;  %v5397_v26 = vpack.c.bf16 %v5280_v56, %v12188_v19 }
 0x68d   : > { %v12234_v19 = vpack.c.bf16 %v12185_v3, %v12179_v57  ;;  %v6302_v17 = vunpack.c.h.b16 %v12215_v38 }
 0x68e   : > { %v5561_v1 = vpack.c.b16 %v5549_v63, %v5548_v44  ;;  %v5791_v62 = vpack.c.b16 %v5779_v35, %v5778_v2  ;;  %5333 = vmatmul.bf16.gmra.mxu3 %v12091_v6  ;;  %v5543_v6 = vunpack.c.h.b16 %v5381_v46  ;;  %v6303_v18 = vunpack.c.h.b16 %v5397_v26 }
 0x690   : > { %5599 = vmatpush.bf16.msrb.mxu1 %v5561_v1  ;;  %5828 = vmatpush.bf16.msra.mxu0 %v5791_v62  ;;  %v5542_v1 = vunpack.c.h.b16 %v12163_v28  ;;  %v5772_v62 = vunpack.c.l.b16 %v12163_v28 }
 0x691   : > { %v5108_v21 = vpop.f32.mrf.mxu3 }
 0x692   : > { %v12195_v14 = vpop.f32.mrf.mxu2  ;;  %v5558_v58 = vpack.c.b16 %v5543_v6, %v5542_v1  ;;  %v5788_v44 = vpack.c.b16 %v5773_v12, %v5772_v62  ;;  %v5402_v46 = vpack.c.bf16 %v12192_v36, %v5108_v21  ;;  %v6299_v1 = vunpack.c.h.b16 %v12176_v5 }
 0x693   : > { %v5282_v39 = vpop.f32.mrf.mxu0  ;;  %v6043_v62 = vunpack.c.l.b16 %v5397_v26 }
 0x694   : > { %5600 = vmatpush.bf16.msrb.mxu1 %v5560_v30  ;;  %5829 = vmatpush.bf16.msra.mxu0 %v5790_v29  ;;  %v5169_v59 = vpop.f32.mrf.mxu1  ;;  %v12206_v28 = vpack.c.bf16 %v5282_v39, %v5223_v48 }
 0x698   : > { %5601 = vmatpush.bf16.msrb.mxu1 %v5559_v31  ;;  %5830 = vmatpush.bf16.msra.mxu0 %v5789_v37  ;;  %v6044_v31 = vunpack.c.l.b16 %v12206_v28  ;;  %v5780_v37 = vunpack.c.l.b16 %v5402_v46 }
 0x699   : > { %v5110_v20 = vpop.f32.mrf.mxu3 }
 0x69a   : > { %v12201_v63 = vpop.f32.mrf.mxu2  ;;  %v5405_v61 = vpack.c.bf16 %v5169_v59, %v5110_v20 }
 0x69b   : > { %v12199_v2 = vpop.f32.mrf.mxu0 }
 0x69c   : > { %5602 = vmatpush.bf16.msrb.mxu1 %v5558_v58  ;;  %5831 = vmatpush.bf16.msra.mxu0 %v5788_v44  ;;  %v5172_v35 = vpop.f32.mrf.mxu1  ;;  %v5551_v36 = vunpack.c.h.b16 %v5405_v61  ;;  %v5781_v21 = vunpack.c.l.b16 %v5405_v61  ;;  %v6295_v61 = vunpack.c.h.b16 %v12156_v40 }
 0x69e   : > { %5338 = vmatmul.bf16.gmra.mxu3 %v12099_v41  ;;  %v6304_v41 = vunpack.c.h.b16 %v12206_v28  ;;  %v6042_v28 = vunpack.c.l.b16 %v12215_v38  ;;  %v6297_v38 = vunpack.c.h.b16 %v12169_v16 }
 0x6a0   : > { %5603 = vmatpush.bf16.msrb.mxu1 %v12159_v0  ;;  %5832 = vmatpush.bf16.msra.mxu0 %v12161_v52  ;;  %v8610_v0 = vld [vmem:[%s13044_s8 + $0x78] sm:$0xf]  ;;  %v6316_v22 = vpack.c.b16 %v6304_v41, %v6303_v18  ;;  %v6056_v41 = vpack.c.b16 %v6044_v31, %v6043_v62  ;;  %v5403_v18 = vpack.c.bf16 %v12199_v2, %v12195_v14  ;;  %v8618_v14 = vld [vmem:[%s13044_s8 + $0x88] sm:$0xf]  ;;  %v9301_v2 = vld [vmem:[%s13044_s8 + $0x8c] sm:$0xf0]  ;;  %v6037_v31 = vunpack.c.l.b16 %v12169_v16 }
 0x6a1   : > { %v5113_v49 = vpop.f32.mrf.mxu3  ;;  %v9300_v16 = vld [vmem:[%s13044_s8 + $0x8c] sm:$0xf] }
 0x6a2   : > { %v5408_v52 = vpack.c.bf16 %v5172_v35, %v5113_v49  ;;  %v5231_v48 = vpop.f32.mrf.mxu2  ;;  %v5792_v49 = vpack.c.b16 %v5781_v21, %v5780_v37  ;;  %v8619_v21 = vor.u32 %v9301_v2, %v8618_v14  ;;  %v9291_v14 = vld [vmem:[%s13044_s8 + $0x34] sm:$0xf0] }
 0x6a3   : > { %v12208_v42 = vpop.f32.mrf.mxu0 }
 0x6a4   : > { %5604 = vmatpush.bf16.msrb.mxu1 %v12148_v25  ;;  %5833 = vmatpush.bf16.msra.mxu0 %v12150_v60  ;;  %v9299_v25 = vld [vmem:[%s13044_s8 + $0x7c] sm:$0xf0]  ;;  %v5552_v39 = vunpack.c.h.b16 %v5408_v52  ;;  %v5782_v57 = vunpack.c.l.b16 %v5408_v52 }
 0x6a5   : > { %v8674_v60 = vld [vmem:[%s13044_s8] sm:$0xf]  ;;  %v8611_v30 = vor.u32 %v9299_v25, %v8610_v0 }
 0x6a6   : > { %v8675_v29 = vor.u32 %v9285_v15, %v8674_v60  ;;  %v6041_v15 = vunpack.c.l.b16 %v12234_v19 }
 0x6a8   : > { %5605 = vmatpush.bf16.msrb.mxu1 %v12137_v7  ;;  %5834 = vmatpush.bf16.msra.mxu0 %v12139_v27  ;;  %v5174_v7 = vpop.f32.mrf.mxu1  ;;  %v12238_v27 = vpack.c.bf16 %v12181_v8, %v12174_v55  ;;  %v12246_v55 = vpack.c.bf16 %v12172_v50, %v12167_v13  ;;  %v6301_v8 = vunpack.c.h.b16 %v12234_v19  ;;  %v9298_v13 = vld [vmem:[%s13044_s8 + $0x7c] sm:$0xf]  ;;  %v8612_v50 = vld [vmem:[%s13044_s8 + $0x80] sm:$0xf0] }
 0x6a9   : > { %v5115_v56 = vpop.f32.mrf.mxu3  ;;  %v8615_v60 = vor.u32 %v9298_v13, %v8612_v50  ;;  %v8620_v50 = vld [vmem:[%s13044_s8 + $0x90] sm:$0xf0] }
 0x6aa   : > { %v5411_v45 = vpack.c.bf16 %v5174_v7, %v5115_v56  ;;  %v6300_v12 = vunpack.c.h.b16 %v12238_v27  ;;  %v6298_v58 = vunpack.c.h.b16 %v12246_v55  ;;  %v5233_v0 = vpop.f32.mrf.mxu2 }
 0x6ab   : > { %v5290_v43 = vpop.f32.mrf.mxu0 }
 0x6ac   : > { %v5553_v3 = vunpack.c.h.b16 %v5411_v45  ;;  %v5783_v54 = vunpack.c.l.b16 %v5411_v45  ;;  %5606 = vmatpush.bf16.msrb.mxu1 %v12123_v34  ;;  %5835 = vmatpush.bf16.msra.mxu0 %v12125_v33  ;;  %v6315_v34 = vpack.c.b16 %v6302_v17, %v6301_v8  ;;  %v5550_v33 = vunpack.c.h.b16 %v5402_v46 }
 0x6ad   : > { %v5409_v44 = vpack.c.bf16 %v5290_v43, %v5231_v48  ;;  %v6314_v25 = vpack.c.b16 %v6300_v12, %v6299_v1  ;;  %v6313_v17 = vpack.c.b16 %v6298_v58, %v6297_v38  ;;  %v6045_v8 = vunpack.c.l.b16 %v5403_v18 }
 0x6ae   : > { %v5563_v59 = vpack.c.b16 %v5553_v3, %v5552_v39  ;;  %v5793_v6 = vpack.c.b16 %v5783_v54, %v5782_v57  ;;  %5343 = vmatmul.bf16.gmra.mxu3 %v12107_v9  ;;  %v12260_v9 = vpack.c.bf16 %v12165_v47, %v12154_v53  ;;  %v5562_v35 = vpack.c.b16 %v5551_v36, %v5550_v33 }
 0x6af   : > { %5607 = vmatmul.bf16.vlgmr.msrb.gmra.mxu1 %v8611_v30  ;;  %5836 = vmatmul.bf16.vlgmr.msra.gmra.mxu0 %v8675_v29  ;;  %v12269_v53 = vpack.c.bf16 %v12152_v51, %v12143_v23  ;;  %v5406_v47 = vpack.c.bf16 %v12208_v42, %v12201_v63  ;;  %v6047_v23 = vunpack.c.l.b16 %v5409_v44  ;;  %v6307_v51 = vunpack.c.h.b16 %v5409_v44  ;;  %v8682_v30 = vld [vmem:[%s13044_s8 + $0x10] sm:$0xf]  ;;  %v9287_v29 = vld [vmem:[%s13044_s8 + $0x14] sm:$0xf0] }
 0x6b0   : > { %6353 = vmatpush.bf16.msrb.mxu0 %v6316_v22  ;;  %5653 = vmatpush.bf16.msra.mxu2 %v5563_v59  ;;  %v6296_v48 = vunpack.c.h.b16 %v12260_v9  ;;  %v6040_v63 = vunpack.c.l.b16 %v12238_v27  ;;  %v6055_v42 = vpack.c.b16 %v6042_v28, %v6041_v15  ;;  %v6039_v22 = vunpack.c.l.b16 %v12176_v5  ;;  %v13076_v28 = vld [vmem:[#allocation9_spill] sm:$0xff] }
 0x6b1   : > { %5882 = vmatpush.bf16.msra.mxu1 %v5793_v6  ;;  %v12263_v20 = vpop.f32.mrf.mxu3  ;;  %v6306_v45 = vunpack.c.h.b16 %v5406_v47  ;;  %v6046_v27 = vunpack.c.l.b16 %v5406_v47  ;;  %v5364_v39 = vpack.c.bf16 %v12141_v24, %v12131_v10  ;;  %v6294_v57 = vunpack.c.h.b16 %v12269_v53 }
 0x6b2   : > { %v6305_v3 = vunpack.c.h.b16 %v5403_v18  ;;  %v6312_v5 = vpack.c.b16 %v6296_v48, %v6295_v61  ;;  %v6038_v54 = vunpack.c.l.b16 %v12246_v55  ;;  %v6054_v36 = vpack.c.b16 %v6040_v63, %v6039_v22  ;;  %v9289_v48 = vld [vmem:[%s13044_s8 + $0x24] sm:$0xf0]  ;;  %v8628_v63 = vld [vmem:[%s13044_s8 + $0xa0] sm:$0xf0] }
 0x6b3   : > { %v5292_v52 = vpop.f32.mrf.mxu0  ;;  %v8683_v6 = vor.u32 %v9287_v29, %v8682_v30  ;;  %v6293_v12 = vunpack.c.h.b16 %v12145_v4  ;;  %v6057_v10 = vpack.c.b16 %v6046_v27, %v6045_v8  ;;  %v5358_v24 = vpack.c.bf16 %v12129_v11, %v12115_v32  ;;  %v13075_v32 = vld [vmem:[#allocation11_spill] sm:$0xff]  ;;  %v8634_v61 = vld [vmem:[%s13044_s8 + $0xa8] sm:$0xf]  ;;  %v9304_v27 = vld [vmem:[%s13044_s8 + $0xac] sm:$0xf] }
 0x6b4   : > { %6354 = vmatpush.bf16.msrb.mxu0 %v6315_v34  ;;  %v5412_v26 = vpack.c.bf16 %v5292_v52, %v5233_v0  ;;  %5654 = vmatpush.bf16.msra.mxu2 %v5562_v35  ;;  %v6317_v59 = vpack.c.b16 %v6306_v45, %v6305_v3  ;;  %v13074_v34 = vld [vmem:[#allocation10_spill] sm:$0xff]  ;;  %v6292_v33 = vunpack.c.h.b16 %v5364_v39  ;;  %v6036_v55 = vunpack.c.l.b16 %v12260_v9  ;;  %v9305_v45 = vld [vmem:[%s13044_s8 + $0xac] sm:$0xf0]  ;;  %v8636_v30 = vld [vmem:[%s13044_s8 + $0xb0] sm:$0xf0] }
 0x6b5   : > { %5883 = vmatpush.bf16.msra.mxu1 %v5792_v49  ;;  %v6053_v37 = vpack.c.b16 %v6038_v54, %v6037_v31  ;;  %v6311_v13 = vpack.c.b16 %v6294_v57, %v6293_v12  ;;  %v6291_v11 = vunpack.c.h.b16 %v13075_v32  ;;  %v6035_v1 = vunpack.c.l.b16 %v12156_v40  ;;  %v8642_v57 = vld [vmem:[%s13044_s8 + $0xb8] sm:$0xf]  ;;  %v9307_v3 = vld [vmem:[%s13044_s8 + $0xbc] sm:$0xf0]  ;;  %v9293_v8 = vld [vmem:[%s13044_s8 + $0x44] sm:$0xf0] }
 0x6b6   : > { %v6048_v7 = vunpack.c.l.b16 %v5412_v26  ;;  %v6308_v56 = vunpack.c.h.b16 %v5412_v26  ;;  %v6290_v9 = vunpack.c.h.b16 %v5358_v24  ;;  %v6034_v58 = vunpack.c.l.b16 %v12269_v53  ;;  %v9303_v53 = vld [vmem:[%s13044_s8 + $0x9c] sm:$0xf0] }
 0x6b7   : > { %8664 = vmatmul.msk.bf16.vlgmr.msra.gmra.mxu2 %vm5574_vm3, %v8615_v60  ;;  %v6052_v44 = vpack.c.b16 %v6036_v55, %v6035_v1  ;;  %v6310_v35 = vpack.c.b16 %v6292_v33, %v6291_v11  ;;  %v8623_v49 = vor.u32 %v9300_v16, %v8620_v50  ;;  %v6033_v0 = vunpack.c.l.b16 %v12145_v4  ;;  %v8626_v60 = vld [vmem:[%s13044_s8 + $0x98] sm:$0xf]  ;;  %v8690_v4 = vld [vmem:[%s13044_s8 + $0x20] sm:$0xf]  ;;  %v8714_v33 = vld [vmem:[%s13044_s8 + $0x50] sm:$0xf] }
 0x6b8   : > { %6093 = vmatpush.bf16.msrb.mxu2 %v6056_v41  ;;  %6355 = vmatpush.bf16.msrb.mxu0 %v6314_v25  ;;  %v6058_v46 = vpack.c.b16 %v6048_v7, %v6047_v23  ;;  %v6318_v19 = vpack.c.b16 %v6308_v56, %v6307_v51  ;;  %v6289_v41 = vunpack.c.h.b16 %v13076_v28  ;;  %v6032_v52 = vunpack.c.l.b16 %v5364_v39  ;;  %v9302_v56 = vld [vmem:[%s13044_s8 + $0x9c] sm:$0xf]  ;;  %v8706_v54 = vld [vmem:[%s13044_s8 + $0x40] sm:$0xf]  ;;  %v9295_v55 = vld [vmem:[%s13044_s8 + $0x54] sm:$0xf0] }
 0x6b9   : > { %v12288_v43 = vpop.f32.mrf.mxu3  ;;  %v6051_v40 = vpack.c.b16 %v6034_v58, %v6033_v0  ;;  %v6031_v47 = vunpack.c.l.b16 %v13075_v32  ;;  %v6030_v38 = vunpack.c.l.b16 %v5358_v24  ;;  %v8627_v18 = vor.u32 %v9303_v53, %v8626_v60  ;;  %v9309_v24 = vld [vmem:[%s13044_s8 + $0xcc] sm:$0xf0]  ;;  %v9308_v16 = vld [vmem:[%s13044_s8 + $0xcc] sm:$0xf]  ;;  %v8652_v50 = vld [vmem:[%s13044_s8 + $0xd0] sm:$0xf0] }
 0x6ba   : > { %6147 = vmatpush.bf16.msra.mxu3 %v6058_v46  ;;  %6407 = vmatpush.bf16.msrb.mxu1 %v6318_v19  ;;  %v6309_v25 = vpack.c.b16 %v6290_v9, %v6289_v41  ;;  %v8691_v23 = vor.u32 %v9289_v48, %v8690_v4  ;;  %v6029_v51 = vunpack.c.l.b16 %v13076_v28  ;;  %v8698_v19 = vld [vmem:[%s13044_s8 + $0x30] sm:$0xf]  ;;  %v8635_v2 = vor.u32 %v9305_v45, %v8634_v61  ;;  %v8658_v1 = vld [vmem:[%s13044_s8 + $0xd8] sm:$0xf]  ;;  %v9311_v9 = vld [vmem:[%s13044_s8 + $0xdc] sm:$0xf0] }
 0x6bb   : > { %v6050_v15 = vpack.c.b16 %v6032_v52, %v6031_v47  ;;  %v8699_v22 = vor.u32 %v9291_v14, %v8698_v19  ;;  %v8639_v39 = vor.u32 %v9304_v27, %v8636_v30  ;;  %v8655_v11 = vor.u32 %v9308_v16, %v8652_v50  ;;  %v9312_v41 = vld [vmem:[%s13044_s8 + $0xf4] sm:$0xf]  ;;  %v8755_v0 = vld [vmem:[%s13044_s8 + $0xf8] sm:$0xf0]  ;;  %v8607_v47 = vld [vmem:[%s13044_s8 + $0xe8] sm:$0xff] }
 0x6bc   : > { %6094 = vmatpush.bf16.msrb.mxu2 %v6055_v42  ;;  %6356 = vmatpush.bf16.msrb.mxu0 %v6313_v17  ;;  %v6049_v7 = vpack.c.b16 %v6030_v38, %v6029_v51  ;;  %v8631_v17 = vor.u32 %v9302_v56, %v8628_v63  ;;  %v8758_v52 = vor.u32 %v9312_v41, %v8755_v0  ;;  %v12445_v4 = vld [vmem:[%s13044_s8 + $0x70] sm:$0xff]  ;;  %v5488_v48 = vunpack.c.l.b16 %v8607_v47  ;;  %v9314_v51 = vld [vmem:[%s13044_s8 + $0x104] sm:$0xf]  ;;  %v8676_v14 = vld [vmem:[%s13044_s8 + $0x8] sm:$0xf0] }
 0x6bd   : > { %v5738_v38 = vunpack.c.l.b16 %v12445_v4  ;;  %v5489_v63 = vunpack.c.h.b16 %v8607_v47  ;;  %v9284_v19 = vld [vmem:[%s13044_s8 + $0x4] sm:$0xf]  ;;  %v8684_v0 = vld [vmem:[%s13044_s8 + $0x18] sm:$0xf0] }
 0x6be   : > { %5348 = vmatmul.bf16.gmra.mxu3 %v13074_v34  ;;  %6408 = vmatpush.bf16.msrb.mxu1 %v6317_v59  ;;  %v9306_v59 = vld [vmem:[%s13044_s8 + $0xbc] sm:$0xf]  ;;  %v8679_v30 = vor.u32 %v9284_v19, %v8676_v14 }
 0x6bf   : > { %6148 = vmatpush.bf16.msra.mxu3 %v6057_v10  ;;  %5612 = vmatmul.bf16.gmra.mxu1 %v8619_v21  ;;  %v8707_v21 = vor.u32 %v9293_v8, %v8706_v54  ;;  %v8650_v10 = vld [vmem:[%s13044_s8 + $0xc8] sm:$0xf]  ;;  %v5505_v61 = vpack.c.b16 %v5489_v63, %v5489_v63 }
 0x6c0   : > { %6095 = vmatpush.bf16.msrb.mxu2 %v6054_v36  ;;  %6357 = vmatpush.bf16.msrb.mxu0 %v6312_v5  ;;  %v8643_v36 = vor.u32 %v9307_v3, %v8642_v57 }
 0x6c1   : > { %5841 = vmatmul.bf16.gmra.mxu0 %v8683_v6  ;;  %v12314_v62 = vpop.f32.mrf.mxu3  ;;  %v8644_v6 = vld [vmem:[%s13044_s8 + $0xc0] sm:$0xf0] }
 0x6c2   : > { %v8647_v31 = vor.u32 %v9306_v59, %v8644_v6  ;;  %v5362_v63 = vpack.c.bf16 %v12314_v62, %v12314_v62 }
 0x6c4   : > { %6096 = vmatpush.bf16.msrb.mxu2 %v6053_v37  ;;  %6358 = vmatpush.bf16.msrb.mxu0 %v6311_v13  ;;  %v8651_v37 = vor.u32 %v9309_v24, %v8650_v10  ;;  %v8715_v13 = vor.u32 %v9295_v55, %v8714_v33  ;;  %v8753_v55 = vld [vmem:[%s13044_s8 + $0xf0] sm:$0xf] }
 0x6c7   : > { %8665 = vmatmul.msk.bf16.gmra.mxu2 %vm5574_vm3, %v8623_v49  ;;  %v8659_v49 = vor.u32 %v9311_v9, %v8658_v1 }
 0x6c8   : > { %6097 = vmatpush.bf16.msrb.mxu2 %v6052_v44  ;;  %6359 = vmatpush.bf16.msrb.mxu0 %v6310_v35  ;;  %v8722_v44 = vld [vmem:[%s13044_s8 + $0x60] sm:$0xf]  ;;  %v9297_v35 = vld [vmem:[%s13044_s8 + $0x64] sm:$0xf0] }
 0x6c9   : > { %v12327_v26 = vpop.f32.mrf.mxu3  ;;  %v8723_v28 = vor.u32 %v9297_v35, %v8722_v44 }
 0x6cc   : > { %6098 = vmatpush.bf16.msrb.mxu2 %v6051_v40  ;;  %6360 = vmatpush.bf16.msrb.mxu0 %v6309_v25  ;;  %v9310_v40 = vld [vmem:[%s13044_s8 + $0xdc] sm:$0xf]  ;;  %v8660_v25 = vld [vmem:[%s13044_s8 + $0xe0] sm:$0xf0] }
 0x6cd   : > { %v8663_v53 = vor.u32 %v9310_v40, %v8660_v25 }
 0x6ce   : > { %8807 = vmatmul.msk.bf16.vlgmr.msra.gmra.mxu3 %vm5574_vm3, %v8758_v52 }
 0x6cf   : > { %5617 = vmatmul.bf16.gmra.mxu1 %v8627_v18  ;;  %v5504_v18 = vpack.c.b16 %v5488_v48, %v5488_v48 }
 0x6d0   : > { %6099 = vmatpush.bf16.msrb.mxu2 %v6050_v15 }
 0x6d1   : > { %5846 = vmatmul.bf16.gmra.mxu0 %v8691_v23  ;;  %v12342_v42 = vpop.f32.mrf.mxu3  ;;  %v5754_v23 = vpack.c.b16 %v5738_v38, %v5738_v38 }
 0x6d4   : > { %6100 = vmatpush.bf16.msrb.mxu2 %v6049_v7  ;;  %v8763_v7 = vld [vmem:[%s13044_s8 + $0x108] sm:$0xf0] }
 0x6d5   : > { %v8766_v56 = vor.u32 %v9314_v51, %v8763_v7  ;;  %v5365_v51 = vpack.c.bf16 %v12327_v26, %v12327_v26  ;;  %v5359_v26 = vpack.c.bf16 %v12288_v43, %v12288_v43  ;;  %v9288_v43 = vld [vmem:[%s13044_s8 + $0x24] sm:$0xf] }
 0x6d7   : > { %8666 = vmatmul.msk.bf16.gmra.mxu2 %vm5574_vm3, %v8631_v17  ;;  %v6572_v14 = vunpack.c.l.b16 %v5365_v51 }
 0x6d9   : > { %v12351_v46 = vpop.f32.mrf.mxu3 }
 0x6de   : > { %8808 = vmatmul.msk.bf16.gmra.mxu3 %vm5574_vm3, %v8766_v56 }
 0x6df   : > { %5622 = vmatmul.bf16.gmra.mxu1 %v8635_v2 }
 0x6e1   : > { %5851 = vmatmul.bf16.gmra.mxu0 %v8699_v22  ;;  %v12365_v29 = vpop.f32.mrf.mxu3 }
 0x6e7   : > { %8667 = vmatmul.msk.bf16.gmra.mxu2 %vm5574_vm3, %v8639_v39 }
 0x6e9   : > { %v12374_v5 = vpop.f32.mrf.mxu3 }
 0x6ea   : > { %v5377_v35 = vpack.c.bf16 %v12374_v5, %v12374_v5  ;;  %v5371_v5 = vpack.c.bf16 %v12351_v46, %v12351_v46 }
 0x6ec   : > { %v6576_v40 = vunpack.c.l.b16 %v5377_v35  ;;  %v6574_v7 = vunpack.c.l.b16 %v5371_v5 }
 0x6ef   : > { %5627 = vmatmul.bf16.gmra.mxu1 %v8643_v36  ;;  %v9316_v36 = vld [vmem:[%s13044_s8 + $0x114] sm:$0xf] }
 0x6f1   : > { %5856 = vmatmul.bf16.gmra.mxu0 %v8707_v21  ;;  %v12388_v12 = vpop.f32.mrf.mxu3 }
 0x6f2   : > { %v5380_v1 = vpack.c.bf16 %v12388_v12, %v12388_v12  ;;  %v9286_v12 = vld [vmem:[%s13044_s8 + $0x14] sm:$0xf] }
 0x6f3   : > { %v8687_v47 = vor.u32 %v9286_v12, %v8684_v0 }
 0x6f4   : > { %v6577_v41 = vunpack.c.l.b16 %v5380_v1  ;;  %v8787_v1 = vld [vmem:[%s13044_s8 + $0x138] sm:$0xf0] }
 0x6f7   : > { %8668 = vmatmul.msk.bf16.gmra.mxu2 %vm5574_vm3, %v8647_v31  ;;  %v8771_v31 = vld [vmem:[%s13044_s8 + $0x118] sm:$0xf0] }
 0x6f8   : > { %v8774_v10 = vor.u32 %v9316_v36, %v8771_v31 }
 0x6f9   : > { %v12397_v34 = vpop.f32.mrf.mxu3 }
 0x6fa   : > { %8809 = vmatmul.msk.bf16.gmra.mxu3 %vm5574_vm3, %v8774_v10  ;;  %v5383_v16 = vpack.c.bf16 %v12397_v34, %v12397_v34  ;;  %v5374_v34 = vpack.c.bf16 %v12365_v29, %v12365_v29  ;;  %v5368_v29 = vpack.c.bf16 %v12342_v42, %v12342_v42 }
 0x6fc   : > { %v6575_v48 = vunpack.c.l.b16 %v5374_v34  ;;  %v8769_v34 = vld [vmem:[%s13044_s8 + $0x110] sm:$0xf] }
 0x6fe   : > { %v6592_v56 = vpack.c.b16 %v6576_v40, %v6575_v48 }
 0x6ff   : > { %5632 = vmatmul.bf16.gmra.mxu1 %v8651_v37  ;;  %v9313_v37 = vld [vmem:[%s13044_s8 + $0xf4] sm:$0xf0] }
 0x701   : > { %5861 = vmatmul.bf16.gmra.mxu0 %v8715_v13  ;;  %v12411_v32 = vpop.f32.mrf.mxu3 }
 0x702   : > { %v5386_v24 = vpack.c.bf16 %v12411_v32, %v12411_v32  ;;  %v8754_v32 = vor.u32 %v9313_v37, %v8753_v55 }
 0x704   : > { %v6579_v9 = vunpack.c.l.b16 %v5386_v24 }
 0x707   : > { %8669 = vmatmul.msk.bf16.gmra.mxu2 %vm5574_vm3, %v8655_v11 }
 0x709   : > { %v5331_v58 = vpop.f32.mrf.mxu3 }
 0x70a   : > { %v5389_v21 = vpack.c.bf16 %v5331_v58, %v5331_v58 }
 0x70c   : > { %v6580_v50 = vunpack.c.l.b16 %v5389_v21 }
 0x70f   : > { %5637 = vmatmul.bf16.gmra.mxu1 %v8659_v49  ;;  %v6578_v49 = vunpack.c.l.b16 %v5383_v16 }
 0x711   : > { %5866 = vmatmul.bf16.gmra.mxu0 %v8723_v28  ;;  %v5334_v60 = vpop.f32.mrf.mxu3  ;;  %v6594_v28 = vpack.c.b16 %v6580_v50, %v6579_v9 }
 0x712   : > { %v5392_v39 = vpack.c.bf16 %v5334_v60, %v5334_v60  ;;  %v6593_v60 = vpack.c.b16 %v6578_v49, %v6577_v41  ;;  %v9317_v41 = vld [vmem:[%s13044_s8 + $0x114] sm:$0xf0] }
 0x713   : > { %v8770_v5 = vor.u32 %v9317_v41, %v8769_v34 }
 0x714   : > { %v6581_v33 = vunpack.c.l.b16 %v5392_v39  ;;  %v6571_v39 = vunpack.c.l.b16 %v5362_v63 }
 0x717   : > { %8670 = vmatmul.msk.bf16.gmra.mxu2 %vm5574_vm3, %v8663_v53 }
 0x719   : > { %v5336_v15 = vpop.f32.mrf.mxu3 }
 0x71a   : > { %v5395_v22 = vpack.c.bf16 %v5336_v15, %v5336_v15  ;;  %v9318_v15 = vld [vmem:[%s13044_s8 + $0x124] sm:$0xf] }
 0x71c   : > { %v6582_v59 = vunpack.c.l.b16 %v5395_v22 }
 0x71e   : > { %v6595_v11 = vpack.c.b16 %v6582_v59, %v6581_v33  ;;  %v8692_v59 = vld [vmem:[%s13044_s8 + $0x28] sm:$0xf0] }
 0x71f   : > { %5642 = vmatmul.bf16.gmra.mxu1 %v5504_v18  ;;  %v8779_v18 = vld [vmem:[%s13044_s8 + $0x128] sm:$0xf0]  ;;  %v8695_v55 = vor.u32 %v9288_v43, %v8692_v59  ;;  %v9321_v43 = vld [vmem:[%s13044_s8 + $0x134] sm:$0xf0] }
 0x720   : > { %v8782_v42 = vor.u32 %v9318_v15, %v8779_v18  ;;  %v9322_v15 = vld [vmem:[%s13044_s8 + $0x144] sm:$0xf]  ;;  %v8795_v18 = vld [vmem:[%s13044_s8 + $0x148] sm:$0xf0] }
 0x721   : > { %5871 = vmatmul.bf16.gmra.mxu0 %v5754_v23  ;;  %v5339_v17 = vpop.f32.mrf.mxu3 }
 0x722   : > { %v5398_v45 = vpack.c.bf16 %v5339_v17, %v5339_v17  ;;  %v6573_v17 = vunpack.c.l.b16 %v5368_v29  ;;  %8810 = vmatmul.msk.bf16.gmra.mxu3 %vm5574_vm3, %v8782_v42  ;;  %v9319_v42 = vld [vmem:[%s13044_s8 + $0x124] sm:$0xf0] }
 0x724   : > { %v6583_v57 = vunpack.c.l.b16 %v5398_v45  ;;  %v9315_v45 = vld [vmem:[%s13044_s8 + $0x104] sm:$0xf0]  ;;  %v6591_v22 = vpack.c.b16 %v6574_v7, %v6573_v17  ;;  %v8798_v7 = vor.u32 %v9322_v15, %v8795_v18 }
 0x727   : > { %8671 = vmatmul.msk.bf16.gmra.mxu2 %vm5574_vm3, %v5505_v61  ;;  %v8761_v61 = vld [vmem:[%s13044_s8 + $0x100] sm:$0xf] }
 0x729   : > { %v5341_v2 = vpop.f32.mrf.mxu3 }
 0x72a   : > { %v5401_v27 = vpack.c.bf16 %v5341_v2, %v5341_v2 }
 0x72c   : > { %v6584_v3 = vunpack.c.l.b16 %v5401_v27  ;;  %v5608_v54 = vpop.f32.mrf.mxu1  ;;  %v5837_v8 = vpop.f32.mrf.mxu0  ;;  %v8762_v27 = vor.u32 %v9315_v45, %v8761_v61 }
 0x72e   : > { %v6596_v6 = vpack.c.b16 %v6584_v3, %v6583_v57 }
 0x72f   : > { %8728 = vmatmul.msk.bf16.vlgmr.msra.gmra.mxu1 %vm5574_vm3, %v8679_v30  ;;  %v5356_v30 = vpack.c.bf16 %v12263_v20, %v12263_v20 }
 0x730   : > { %6633 = vmatpush.bf16.msra.mxu2 %v6596_v6 }
 0x731   : > { %v12478_v13 = vpop.f32.mrf.mxu3  ;;  %v6569_v36 = vunpack.c.l.b16 %v5356_v30 }
 0x732   : > { %v5404_v37 = vpack.c.bf16 %v12478_v13, %v12478_v13 }
 0x734   : > { %v5610_v58 = vpop.f32.mrf.mxu1  ;;  %6634 = vmatpush.bf16.msra.mxu2 %v6595_v11  ;;  %v12485_v44 = vpop.f32.mrf.mxu0  ;;  %v6585_v13 = vunpack.c.l.b16 %v5404_v37 }
 0x737   : > { %6101 = vmatmul.bf16.vlgmr.msrb.gmra.mxu2 %v8754_v32  ;;  %v9320_v32 = vld [vmem:[%s13044_s8 + $0x134] sm:$0xf] }
 0x738   : > { %6635 = vmatpush.bf16.msra.mxu2 %v6594_v28  ;;  %v8790_v28 = vor.u32 %v9320_v32, %v8787_v1 }
 0x739   : > { %v5346_v52 = vpop.f32.mrf.mxu3 }
 0x73a   : > { %v5656_v25 = vpop.f32.mrf.mxu2  ;;  %v5407_v6 = vpack.c.bf16 %v5346_v52, %v5346_v52  ;;  %8811 = vmatmul.msk.bf16.gmra.mxu3 %vm5574_vm3, %v8790_v28  ;;  %v9323_v28 = vld [vmem:[%s13044_s8 + $0x144] sm:$0xf0] }
 0x73b   : > { %v5657_v53 = vadd.f32 %v5656_v25, %v5608_v54  ;;  %v6570_v54 = vunpack.c.l.b16 %v5359_v26  ;;  %v9292_v26 = vld [vmem:[%s13044_s8 + $0x44] sm:$0xf] }
 0x73c   : > { %v5613_v38 = vpop.f32.mrf.mxu1  ;;  %6636 = vmatpush.bf16.msra.mxu2 %v6593_v60  ;;  %v6586_v35 = vunpack.c.l.b16 %v5407_v6  ;;  %v9290_v60 = vld [vmem:[%s13044_s8 + $0x34] sm:$0xf] }
 0x73d   : > { %v12507_v46 = vadd.f32 %v5837_v8, %v5657_v53  ;;  %v6590_v8 = vpack.c.b16 %v6572_v14, %v6571_v39  ;;  %v6589_v24 = vpack.c.b16 %v6570_v54, %v6569_v36  ;;  %v8700_v53 = vld [vmem:[%s13044_s8 + $0x38] sm:$0xf0]  ;;  %v8708_v14 = vld [vmem:[%s13044_s8 + $0x48] sm:$0xf0]  ;;  %v9324_v39 = vld [vmem:[%s13044_s8 + $0x154] sm:$0xf] }
 0x73e   : > { %v5842_v23 = vpop.f32.mrf.mxu0  ;;  %v6597_v0 = vpack.c.b16 %v6586_v35, %v6585_v13  ;;  %v8703_v48 = vor.u32 %v9290_v60, %v8700_v53 }
 0x73f   : > { %8729 = vmatmul.msk.bf16.gmra.mxu1 %vm5574_vm3, %v8687_v47 }
 0x740   : > { %6637 = vmatpush.bf16.msra.mxu2 %v6592_v56  ;;  %v8777_v56 = vld [vmem:[%s13044_s8 + $0x120] sm:$0xf] }
 0x741   : > { %v5349_v19 = vpop.f32.mrf.mxu3  ;;  %v8778_v61 = vor.u32 %v9319_v42, %v8777_v56  ;;  %v8913_v56 = vld [vmem:[%s13044_s8 + $0x1e8] sm:$0xf0] }
 0x742   : > { %v5658_v2 = vpop.f32.mrf.mxu2  ;;  %v5410_v21 = vpack.c.bf16 %v5349_v19, %v5349_v19 }
 0x743   : > { %v12523_v62 = vadd.f32 %v5658_v2, %v5610_v58 }
 0x744   : > { %v5615_v57 = vpop.f32.mrf.mxu1  ;;  %6638 = vmatpush.bf16.msra.mxu2 %v6591_v22  ;;  %v6587_v16 = vunpack.c.l.b16 %v5410_v21  ;;  %v8785_v21 = vld [vmem:[%s13044_s8 + $0x130] sm:$0xf] }
 0x745   : > { %v8786_v6 = vor.u32 %v9321_v43, %v8785_v21  ;;  %v8840_v43 = vld [vmem:[%s13044_s8 + $0x178] sm:$0xf] }
 0x746   : > { %v12527_v3 = vpop.f32.mrf.mxu0 }
 0x747   : > { %6106 = vmatmul.bf16.gmra.mxu2 %v8762_v27  ;;  %v8711_v27 = vor.u32 %v9292_v26, %v8708_v14 }
 0x748   : > { %6639 = vmatpush.bf16.msra.mxu2 %v6590_v8 }
 0x749   : > { %v5351_v20 = vpop.f32.mrf.mxu3 }
 0x74a   : > { %v5413_v31 = vpack.c.bf16 %v5351_v20, %v5351_v20  ;;  %v5661_v10 = vpop.f32.mrf.mxu2  ;;  %8812 = vmatmul.msk.bf16.gmra.mxu3 %vm5574_vm3, %v8798_v7  ;;  %v9340_v7 = vld [vmem:[%s13044_s8 + $0x1e4] sm:$0xf] }
 0x74b   : > { %v5662_v33 = vadd.f32 %v5661_v10, %v5613_v38  ;;  %v8916_v42 = vor.u32 %v9340_v7, %v8913_v56  ;;  %v9341_v7 = vld [vmem:[%s13044_s8 + $0x1e4] sm:$0xf0] }
 0x74c   : > { %v6588_v50 = vunpack.c.l.b16 %v5413_v31  ;;  %v5618_v11 = vpop.f32.mrf.mxu1  ;;  %6640 = vmatpush.bf16.msra.mxu2 %v6589_v24  ;;  %v9294_v24 = vld [vmem:[%s13044_s8 + $0x54] sm:$0xf] }
 0x74d   : > { %v12543_v9 = vadd.f32 %v5842_v23, %v5662_v33  ;;  %v8716_v33 = vld [vmem:[%s13044_s8 + $0x58] sm:$0xf0] }
 0x74e   : > { %v5847_v58 = vpop.f32.mrf.mxu0  ;;  %v6598_v49 = vpack.c.b16 %v6588_v50, %v6587_v16  ;;  %v8719_v16 = vor.u32 %v9294_v24, %v8716_v33  ;;  %v12618_v50 = vld [vmem:[%s13044_s8 + $0x160] sm:$0xff]  ;;  %v8921_v33 = vld [vmem:[%s13044_s8 + $0x1f8] sm:$0xf0] }
 0x74f   : > { %8730 = vmatmul.msk.bf16.gmra.mxu1 %vm5574_vm3, %v8695_v55  ;;  %v5984_v32 = vunpack.c.h.b16 %v12618_v50 }
 0x750   : > { %6687 = vmatpush.bf16.msrb.mxu3 %v6598_v49  ;;  %v8793_v49 = vld [vmem:[%s13044_s8 + $0x140] sm:$0xf] }
 0x751   : > { %v6000_v35 = vpack.c.b16 %v5984_v32, %v5984_v32  ;;  %v8794_v41 = vor.u32 %v9323_v28, %v8793_v49  ;;  %v9326_v28 = vld [vmem:[%s13044_s8 + $0x16c] sm:$0xf] }
 0x752   : > { %v5663_v12 = vpop.f32.mrf.mxu2 }
 0x753   : > { %v12553_v52 = vadd.f32 %v5663_v12, %v5615_v57  ;;  %v8803_v57 = vld [vmem:[%s13044_s8 + $0x158] sm:$0xf0] }
 0x754   : > { %v5620_v40 = vpop.f32.mrf.mxu1  ;;  %6688 = vmatpush.bf16.msrb.mxu3 %v6597_v0  ;;  %v8806_v36 = vor.u32 %v9324_v39, %v8803_v57 }
 0x756   : > { %v12555_v25 = vpop.f32.mrf.mxu0 }
 0x757   : > { %6111 = vmatmul.bf16.gmra.mxu2 %v8770_v5  ;;  %v9296_v5 = vld [vmem:[%s13044_s8 + $0x64] sm:$0xf] }
 0x75a   : > { %v5666_v47 = vpop.f32.mrf.mxu2  ;;  %8813 = vmatmul.msk.bf16.gmra.mxu3 %vm5574_vm3, %v8806_v36 }
 0x75b   : > { %v5667_v29 = vadd.f32 %v5666_v47, %v5618_v11 }
 0x75c   : > { %v5623_v38 = vpop.f32.mrf.mxu1 }
 0x75d   : > { %v12569_v23 = vadd.f32 %v5847_v58, %v5667_v29 }
 0x75e   : > { %v5852_v51 = vpop.f32.mrf.mxu0 }
 0x75f   : > { %8731 = vmatmul.msk.bf16.gmra.mxu1 %vm5574_vm3, %v8703_v48  ;;  %v8832_v48 = vld [vmem:[%s13044_s8 + $0x168] sm:$0xf] }
 0x762   : > { %v5668_v63 = vpop.f32.mrf.mxu2 }
 0x763   : > { %v12579_v17 = vadd.f32 %v5668_v63, %v5620_v40  ;;  %v8724_v40 = vld [vmem:[%s13044_s8 + $0x68] sm:$0xf0]  ;;  %v8801_v63 = vld [vmem:[%s13044_s8 + $0x150] sm:$0xf] }
 0x764   : > { %v5625_v45 = vpop.f32.mrf.mxu1  ;;  %v8727_v47 = vor.u32 %v9296_v5, %v8724_v40 }
 0x766   : > { %v12581_v19 = vpop.f32.mrf.mxu0 }
 0x767   : > { %6116 = vmatmul.bf16.gmra.mxu2 %v8778_v61  ;;  %v9325_v61 = vld [vmem:[%s13044_s8 + $0x154] sm:$0xf0] }
 0x768   : > { %v8802_v14 = vor.u32 %v9325_v61, %v8801_v63 }
 0x76a   : > { %v5671_v2 = vpop.f32.mrf.mxu2  ;;  %8814 = vmatmul.msk.bf16.gmra.mxu3 %vm5574_vm3, %v6000_v35 }
 0x76b   : > { %v5672_v22 = vadd.f32 %v5671_v2, %v5623_v38  ;;  %v9327_v38 = vld [vmem:[%s13044_s8 + $0x16c] sm:$0xf0] }
 0x76c   : > { %v5628_v30 = vpop.f32.mrf.mxu1 }
 0x76d   : > { %v12595_v54 = vadd.f32 %v5852_v51, %v5672_v22  ;;  %v8833_v51 = vor.u32 %v9327_v38, %v8832_v48  ;;  %v6150_v22 = vpop.f32.mrf.mxu3  ;;  %v9344_v38 = vld [vmem:[%s13044_s8 + $0x204] sm:$0xf] }
 0x76e   : > { %v5857_v8 = vpop.f32.mrf.mxu0 }
 0x76f   : > { %8732 = vmatmul.msk.bf16.gmra.mxu1 %vm5574_vm3, %v8711_v27  ;;  %6361 = vmatmul.bf16.vlgmr.msrb.gmra.mxu0 %v8833_v51  ;;  %v8911_v51 = vld [vmem:[%s13044_s8 + $0x1e0] sm:$0xf] }
 0x770   : > { %v8912_v63 = vor.u32 %v9341_v7, %v8911_v51  ;;  %v8927_v51 = vld [vmem:[%s13044_s8 + $0x200] sm:$0xf]  ;;  %v9345_v7 = vld [vmem:[%s13044_s8 + $0x204] sm:$0xf0] }
 0x772   : > { %v5673_v59 = vpop.f32.mrf.mxu2 }
 0x773   : > { %v12605_v20 = vadd.f32 %v5673_v59, %v5625_v45  ;;  %v9329_v59 = vld [vmem:[%s13044_s8 + $0x17c] sm:$0xf0] }
 0x774   : > { %v5630_v31 = vpop.f32.mrf.mxu1  ;;  %v8841_v24 = vor.u32 %v9329_v59, %v8840_v43  ;;  %v8856_v59 = vld [vmem:[%s13044_s8 + $0x198] sm:$0xf] }
 0x775   : > { %v12668_v21 = vpop.f32.mrf.mxu3 }
 0x776   : > { %v12607_v10 = vpop.f32.mrf.mxu0 }
 0x777   : > { %6121 = vmatmul.bf16.gmra.mxu2 %v8786_v6 }
 0x77a   : > { %v5676_v55 = vpop.f32.mrf.mxu2  ;;  %8965 = vmatmul.msk.bf16.vlgmr.msrb.gmra.mxu3 %vm5574_vm3, %v8916_v42  ;;  %v5840_v42 = vadd.f32 %v12485_v44, %v12523_v62 }
 0x77b   : > { %v5677_v37 = vadd.f32 %v5676_v55, %v5628_v30  ;;  %v5739_v30 = vunpack.c.h.b16 %v12445_v4  ;;  %v9342_v4 = vld [vmem:[%s13044_s8 + $0x1f4] sm:$0xf]  ;;  %v5983_v55 = vunpack.c.l.b16 %v12618_v50 }
 0x77c   : > { %v5633_v11 = vpop.f32.mrf.mxu1  ;;  %v8834_v50 = vld [vmem:[%s13044_s8 + $0x170] sm:$0xf0] }
 0x77d   : > { %v12621_v1 = vadd.f32 %v5857_v8, %v5677_v37  ;;  %v5755_v57 = vpack.c.b16 %v5739_v30, %v5739_v30  ;;  %v8924_v37 = vor.u32 %v9342_v4, %v8921_v33  ;;  %v5999_v32 = vpack.c.b16 %v5983_v55, %v5983_v55  ;;  %v6155_v35 = vpop.f32.mrf.mxu3  ;;  %v8842_v30 = vld [vmem:[%s13044_s8 + $0x180] sm:$0xf0]  ;;  %v8937_v4 = vld [vmem:[%s13044_s8 + $0x218] sm:$0xf0]  ;;  %v8919_v33 = vld [vmem:[%s13044_s8 + $0x1f0] sm:$0xf] }
 0x77e   : > { %v5862_v58 = vpop.f32.mrf.mxu0  ;;  %v9343_v55 = vld [vmem:[%s13044_s8 + $0x1f4] sm:$0xf0] }
 0x77f   : > { %8733 = vmatmul.msk.bf16.gmra.mxu1 %vm5574_vm3, %v8719_v16  ;;  %6366 = vmatmul.bf16.gmra.mxu0 %v8841_v24 }
 0x782   : > { %v5678_v13 = vpop.f32.mrf.mxu2 }
 0x783   : > { %v12631_v34 = vadd.f32 %v5678_v13, %v5630_v31 }
 0x784   : > { %v5635_v12 = vpop.f32.mrf.mxu1 }
 0x785   : > { %v12695_v40 = vpop.f32.mrf.mxu3 }
 0x786   : > { %v12633_v0 = vpop.f32.mrf.mxu0 }
 0x787   : > { %6126 = vmatmul.bf16.gmra.mxu2 %v8794_v41 }
 0x78a   : > { %v5681_v60 = vpop.f32.mrf.mxu2  ;;  %8966 = vmatmul.msk.bf16.gmra.mxu3 %vm5574_vm3, %v8924_v37 }
 0x78b   : > { %v5682_v53 = vadd.f32 %v5681_v60, %v5633_v11 }
 0x78c   : > { %v5638_v29 = vpop.f32.mrf.mxu1 }
 0x78d   : > { %v12647_v15 = vadd.f32 %v5862_v58, %v5682_v53  ;;  %v8848_v53 = vld [vmem:[%s13044_s8 + $0x188] sm:$0xf] }
 0x78e   : > { %v5867_v18 = vpop.f32.mrf.mxu0 }
 0x78f   : > { %8734 = vmatmul.msk.bf16.gmra.mxu1 %vm5574_vm3, %v8727_v47  ;;  %v9331_v47 = vld [vmem:[%s13044_s8 + $0x18c] sm:$0xf0] }
 0x790   : > { %v8849_v48 = vor.u32 %v9331_v47, %v8848_v53 }
 0x792   : > { %v5683_v45 = vpop.f32.mrf.mxu2  ;;  %6371 = vmatmul.bf16.gmra.mxu0 %v8849_v48  ;;  %v8864_v48 = vld [vmem:[%s13044_s8 + $0x1a8] sm:$0xf] }
 0x793   : > { %v12663_v26 = vadd.f32 %v5683_v45, %v5635_v12  ;;  %v8837_v12 = vor.u32 %v9326_v28, %v8834_v50  ;;  %v12722_v45 = vpop.f32.mrf.mxu3 }
 0x794   : > { %v5640_v2 = vpop.f32.mrf.mxu1 }
 0x796   : > { %v12665_v27 = vpop.f32.mrf.mxu0 }
 0x797   : > { %6131 = vmatmul.bf16.gmra.mxu2 %v8802_v14 }
 0x79a   : > { %v5686_v39 = vpop.f32.mrf.mxu2 }
 0x79b   : > { %v5687_v8 = vadd.f32 %v5686_v39, %v5638_v29  ;;  %v12730_v43 = vpop.f32.mrf.mxu3 }
 0x79c   : > { %v5643_v36 = vpop.f32.mrf.mxu1 }
 0x79d   : > { %v12676_v6 = vadd.f32 %v5867_v18, %v5687_v8  ;;  %v8929_v18 = vld [vmem:[%s13044_s8 + $0x208] sm:$0xf0] }
 0x79e   : > { %v5872_v31 = vpop.f32.mrf.mxu0 }
 0x79f   : > { %8735 = vmatmul.msk.bf16.gmra.mxu1 %vm5574_vm3, %v5755_v57 }
 0x7a2   : > { %v5688_v16 = vpop.f32.mrf.mxu2 }
 0x7a3   : > { %v12687_v11 = vadd.f32 %v5688_v16, %v5640_v2  ;;  %v9328_v2 = vld [vmem:[%s13044_s8 + $0x17c] sm:$0xf]  ;;  %v5845_v16 = vadd.f32 %v12527_v3, %v12553_v52 }
 0x7a4   : > { %v5645_v58 = vpop.f32.mrf.mxu1  ;;  %v8845_v8 = vor.u32 %v9328_v2, %v8842_v30 }
 0x7a5   : > { %v8920_v58 = vor.u32 %v9343_v55, %v8919_v33  ;;  %v12758_v28 = vpop.f32.mrf.mxu3  ;;  %v8935_v33 = vld [vmem:[%s13044_s8 + $0x210] sm:$0xf]  ;;  %v9347_v55 = vld [vmem:[%s13044_s8 + $0x214] sm:$0xf0] }
 0x7a6   : > { %v5874_v49 = vpop.f32.mrf.mxu0 }
 0x7a7   : > { %6136 = vmatmul.bf16.gmra.mxu2 %v5999_v32 }
 0x7aa   : > { %v5691_v13 = vpop.f32.mrf.mxu2 }
 0x7ab   : > { %v5692_v41 = vadd.f32 %v5691_v13, %v5643_v36 }
 0x7ac   : > { %v5885_v5 = vpop.f32.mrf.mxu1 }
 0x7ad   : > { %v5886_v60 = vadd.f32 %v5885_v5, %v12507_v46  ;;  %v12704_v29 = vadd.f32 %v5872_v31, %v5692_v41  ;;  %v8932_v46 = vor.u32 %v9344_v38, %v8929_v18  ;;  %v9333_v31 = vld [vmem:[%s13044_s8 + $0x19c] sm:$0xf0]  ;;  %v9330_v41 = vld [vmem:[%s13044_s8 + $0x18c] sm:$0xf]  ;;  %v9335_v38 = vld [vmem:[%s13044_s8 + $0x1ac] sm:$0xf0] }
 0x7ae   : > { %v8857_v24 = vor.u32 %v9333_v31, %v8856_v59  ;;  %v8865_v18 = vor.u32 %v9335_v38, %v8864_v48  ;;  %v8880_v38 = vld [vmem:[%s13044_s8 + $0x1c8] sm:$0xf] }
 0x7af   : > { %8886 = vmatmul.msk.bf16.vlgmr.msrb.gmra.mxu1 %vm5574_vm3, %v8837_v12  ;;  %8967 = vmatmul.msk.bf16.gmra.mxu3 %vm5574_vm3, %v8932_v46  ;;  %v8850_v12 = vld [vmem:[%s13044_s8 + $0x190] sm:$0xf0]  ;;  %v8945_v46 = vld [vmem:[%s13044_s8 + $0x228] sm:$0xf0] }
 0x7b0   : > { %6376 = vmatmul.bf16.gmra.mxu0 %v8857_v24  ;;  %v8853_v52 = vor.u32 %v9330_v41, %v8850_v12  ;;  %v8872_v24 = vld [vmem:[%s13044_s8 + $0x1b8] sm:$0xf] }
 0x7b2   : > { %v5693_v56 = vpop.f32.mrf.mxu2 }
 0x7b4   : > { %v5887_v61 = vpop.f32.mrf.mxu1 }
 0x7b5   : > { %v5888_v14 = vadd.f32 %v5887_v61, %v5840_v42  ;;  %v5850_v42 = vadd.f32 %v12555_v25, %v12579_v17  ;;  %v8928_v61 = vor.u32 %v9345_v7, %v8927_v51  ;;  %v9349_v51 = vld [vmem:[%s13044_s8 + $0x224] sm:$0xf0] }
 0x7b7   : > { %6641 = vmatmul.bf16.vlgmr.msra.gmra.mxu2 %v8912_v63 }
 0x7ba   : > { %v6102_v39 = vpop.f32.mrf.mxu2 }
 0x7bb   : > { %v6151_v57 = vadd.f32 %v6150_v22, %v6102_v39  ;;  %v9346_v22 = vld [vmem:[%s13044_s8 + $0x214] sm:$0xf] }
 0x7bc   : > { %v5890_v36 = vpop.f32.mrf.mxu1 }
 0x7bd   : > { %v12732_v44 = vadd.f32 %v6151_v57, %v5886_v60  ;;  %v5891_v62 = vadd.f32 %v5890_v36, %v12543_v9  ;;  %v8940_v9 = vor.u32 %v9346_v22, %v8937_v4  ;;  %v12768_v60 = vpop.f32.mrf.mxu3  ;;  %v9332_v57 = vld [vmem:[%s13044_s8 + $0x19c] sm:$0xf]  ;;  %v9337_v22 = vld [vmem:[%s13044_s8 + $0x1bc] sm:$0xf0] }
 0x7be   : > { %v8873_v4 = vor.u32 %v9337_v22, %v8872_v24 }
 0x7bf   : > { %8887 = vmatmul.msk.bf16.gmra.mxu1 %vm5574_vm3, %v8845_v8  ;;  %8968 = vmatmul.msk.bf16.gmra.mxu3 %vm5574_vm3, %v8940_v9  ;;  %v8858_v8 = vld [vmem:[%s13044_s8 + $0x1a0] sm:$0xf0]  ;;  %v8953_v9 = vld [vmem:[%s13044_s8 + $0x238] sm:$0xf0] }
 0x7c0   : > { %6381 = vmatmul.bf16.gmra.mxu0 %v8865_v18  ;;  %v8861_v17 = vor.u32 %v9332_v57, %v8858_v8  ;;  %v9339_v18 = vld [vmem:[%s13044_s8 + $0x1cc] sm:$0xf0]  ;;  %v8874_v57 = vld [vmem:[%s13044_s8 + $0x1c0] sm:$0xf0] }
 0x7c2   : > { %v6104_v37 = vpop.f32.mrf.mxu2 }
 0x7c3   : > { %v6153_v32 = vadd.f32 %v12668_v21, %v6104_v37 }
 0x7c4   : > { %v5892_v49 = vpop.f32.mrf.mxu1 }
 0x7c5   : > { %v12760_v50 = vadd.f32 %v6153_v32, %v5888_v14  ;;  %v5893_v13 = vadd.f32 %v5892_v49, %v5845_v16  ;;  %v12796_v2 = vpop.f32.mrf.mxu3  ;;  %v5855_v16 = vadd.f32 %v12581_v19, %v12605_v20 }
 0x7c7   : > { %6646 = vmatmul.bf16.gmra.mxu2 %v8920_v58  ;;  %v8936_v58 = vor.u32 %v9347_v55, %v8935_v33  ;;  %v9351_v33 = vld [vmem:[%s13044_s8 + $0x234] sm:$0xf0]  ;;  %v5860_v55 = vadd.f32 %v12607_v10, %v12631_v34  ;;  %v9338_v10 = vld [vmem:[%s13044_s8 + $0x1cc] sm:$0xf]  ;;  %v8882_v34 = vld [vmem:[%s13044_s8 + $0x1d0] sm:$0xf0] }
 0x7ca   : > { %v6107_v5 = vpop.f32.mrf.mxu2 }
 0x7cb   : > { %v6156_v3 = vadd.f32 %v6155_v35, %v6107_v5  ;;  %v9348_v35 = vld [vmem:[%s13044_s8 + $0x224] sm:$0xf]  ;;  %v9334_v5 = vld [vmem:[%s13044_s8 + $0x1ac] sm:$0xf] }
 0x7cc   : > { %v5895_v21 = vpop.f32.mrf.mxu1 }
 0x7cd   : > { %v12770_v53 = vadd.f32 %v6156_v3, %v5891_v62  ;;  %v5896_v47 = vadd.f32 %v5895_v21, %v12569_v23  ;;  %v8948_v23 = vor.u32 %v9348_v35, %v8945_v46  ;;  %v12807_v62 = vpop.f32.mrf.mxu3  ;;  %v8866_v3 = vld [vmem:[%s13044_s8 + $0x1b0] sm:$0xf0]  ;;  %v8881_v35 = vor.u32 %v9339_v18, %v8880_v38  ;;  %v8961_v46 = vld [vmem:[%s13044_s8 + $0x248] sm:$0xf0]  ;;  %v8959_v38 = vld [vmem:[%s13044_s8 + $0x240] sm:$0xf] }
 0x7ce   : > { %v8869_v20 = vor.u32 %v9334_v5, %v8866_v3  ;;  %v9353_v18 = vld [vmem:[%s13044_s8 + $0x244] sm:$0xf0] }
 0x7cf   : > { %8888 = vmatmul.msk.bf16.gmra.mxu1 %vm5574_vm3, %v8853_v52  ;;  %8969 = vmatmul.msk.bf16.gmra.mxu3 %vm5574_vm3, %v8948_v23  ;;  %v8943_v23 = vld [vmem:[%s13044_s8 + $0x220] sm:$0xf] }
 0x7d0   : > { %6386 = vmatmul.bf16.gmra.mxu0 %v8873_v4 }
 0x7d2   : > { %v6109_v56 = vpop.f32.mrf.mxu2 }
 0x7d3   : > { %v6158_v63 = vadd.f32 %v12695_v40, %v6109_v56 }
 0x7d4   : > { %v5897_v14 = vpop.f32.mrf.mxu1 }
 0x7d5   : > { %v12798_v30 = vadd.f32 %v6158_v63, %v5893_v13  ;;  %v5898_v39 = vadd.f32 %v5897_v14, %v5850_v42  ;;  %v12835_v13 = vpop.f32.mrf.mxu3  ;;  %v8944_v42 = vor.u32 %v9349_v51, %v8943_v23 }
 0x7d7   : > { %6651 = vmatmul.bf16.gmra.mxu2 %v8928_v61 }
 0x7da   : > { %v6112_v36 = vpop.f32.mrf.mxu2 }
 0x7db   : > { %v6161_v25 = vadd.f32 %v12722_v45, %v6112_v36  ;;  %v9350_v45 = vld [vmem:[%s13044_s8 + $0x234] sm:$0xf] }
 0x7dc   : > { %v5900_v40 = vpop.f32.mrf.mxu1 }
 0x7dd   : > { %v12809_v59 = vadd.f32 %v6161_v25, %v5896_v47  ;;  %v5901_v31 = vadd.f32 %v5900_v40, %v12595_v54  ;;  %v8956_v54 = vor.u32 %v9350_v45, %v8953_v9  ;;  %v12846_v21 = vpop.f32.mrf.mxu3 }
 0x7df   : > { %8889 = vmatmul.msk.bf16.gmra.mxu1 %vm5574_vm3, %v8861_v17  ;;  %8970 = vmatmul.msk.bf16.gmra.mxu3 %vm5574_vm3, %v8956_v54  ;;  %v12887_v17 = vld [vmem:[%s13044_s8 + $0x250] sm:$0xff] }
 0x7e0   : > { %6391 = vmatmul.bf16.gmra.mxu0 %v8881_v35  ;;  %v6524_v22 = vunpack.c.h.b16 %v12887_v17  ;;  %v8951_v54 = vld [vmem:[%s13044_s8 + $0x230] sm:$0xf] }
 0x7e2   : > { %v6114_v37 = vpop.f32.mrf.mxu2  ;;  %v6540_v9 = vpack.c.b16 %v6524_v22, %v6524_v22 }
 0x7e3   : > { %v6163_v32 = vadd.f32 %v12730_v43, %v6114_v37 }
 0x7e4   : > { %v5902_v49 = vpop.f32.mrf.mxu1 }
 0x7e5   : > { %v12837_v41 = vadd.f32 %v6163_v32, %v5898_v39  ;;  %v5903_v12 = vadd.f32 %v5902_v49, %v5855_v16  ;;  %v6180_v61 = vpop.f32.mrf.mxu3  ;;  %v9336_v39 = vld [vmem:[%s13044_s8 + $0x1bc] sm:$0xf] }
 0x7e6   : > { %v8877_v25 = vor.u32 %v9336_v39, %v8874_v57 }
 0x7e7   : > { %6656 = vmatmul.bf16.gmra.mxu2 %v8936_v58  ;;  %v8952_v58 = vor.u32 %v9351_v33, %v8951_v54 }
 0x7ea   : > { %v6117_v52 = vpop.f32.mrf.mxu2 }
 0x7eb   : > { %v6166_v19 = vadd.f32 %v12758_v28, %v6117_v52  ;;  %v9352_v28 = vld [vmem:[%s13044_s8 + $0x244] sm:$0xf] }
 0x7ec   : > { %v5905_v43 = vpop.f32.mrf.mxu1 }
 0x7ed   : > { %v12848_v47 = vadd.f32 %v6166_v19, %v5901_v31  ;;  %v5906_v48 = vadd.f32 %v5905_v43, %v12621_v1  ;;  %v8964_v1 = vor.u32 %v9352_v28, %v8961_v46  ;;  %v6182_v24 = vpop.f32.mrf.mxu3  ;;  %v8960_v46 = vor.u32 %v9353_v18, %v8959_v38 }
 0x7ef   : > { %8890 = vmatmul.msk.bf16.gmra.mxu1 %vm5574_vm3, %v8869_v20  ;;  %8971 = vmatmul.msk.bf16.gmra.mxu3 %vm5574_vm3, %v8964_v1 }
 0x7f2   : > { %v6119_v7 = vpop.f32.mrf.mxu2 }
 0x7f3   : > { %v6168_v56 = vadd.f32 %v12768_v60, %v6119_v7  ;;  %v8829_v60 = vld [vmem:[%s13044_s8 + $0x1d8] sm:$0xff] }
 0x7f4   : > { %v5907_v63 = vpop.f32.mrf.mxu1  ;;  %v6263_v31 = vunpack.c.l.b16 %v8829_v60 }
 0x7f5   : > { %v12872_v14 = vadd.f32 %v6168_v56, %v5903_v12  ;;  %v5908_v16 = vadd.f32 %v5907_v63, %v5860_v55  ;;  %v6185_v12 = vpop.f32.mrf.mxu3  ;;  %v6264_v56 = vunpack.c.h.b16 %v8829_v60  ;;  %v12930_v63 = vpop.permute.xlu0 %6821 }
 0x7f7   : > { %6661 = vmatmul.bf16.gmra.mxu2 %v8944_v42  ;;  %v6280_v57 = vpack.c.b16 %v6264_v56, %v6264_v56 }
 0x7fa   : > { %v6122_v8 = vpop.f32.mrf.mxu2 }
 0x7fb   : > { %v6171_v36 = vadd.f32 %v12796_v2, %v6122_v8  ;;  %v6279_v2 = vpack.c.b16 %v6263_v31, %v6263_v31 }
 0x7fc   : > { %v5910_v40 = vpop.f32.mrf.mxu1 }
 0x7fd   : > { %v12890_v4 = vadd.f32 %v6171_v36, %v5906_v48  ;;  %v5911_v45 = vadd.f32 %v5910_v40, %v12647_v15  ;;  %6396 = vmatmul.bf16.gmra.mxu0 %v6279_v2  ;;  %v5865_v15 = vadd.f32 %v12633_v0, %v12663_v26  ;;  %v8885_v26 = vor.u32 %v9338_v10, %v8882_v34  ;;  %v6187_v19 = vpop.f32.mrf.mxu3  ;;  %v6362_v48 = vpop.f32.mrf.mxu0 }
 0x7fe   : > { %v6523_v40 = vunpack.c.l.b16 %v12887_v17 }
 0x7ff   : > { %8891 = vmatmul.msk.bf16.gmra.mxu1 %vm5574_vm3, %v8877_v25  ;;  %8972 = vmatmul.msk.bf16.gmra.mxu3 %vm5574_vm3, %v6540_v9  ;;  %v12932_v25 = vpop.permute.xlu1 %6826 }
 0x800   : > { %v6539_v22 = vpack.c.b16 %v6523_v40, %v6523_v40 }
 0x802   : > { %v6124_v37 = vpop.f32.mrf.mxu2 }
 0x803   : > { %v6173_v32 = vadd.f32 %v12807_v62, %v6124_v37 }
 0x804   : > { %v5912_v49 = vpop.f32.mrf.mxu1 }
 0x805   : > { %v12906_v5 = vadd.f32 %v6173_v32, %v5908_v16  ;;  %v5913_v3 = vadd.f32 %v5912_v49, %v5865_v15  ;;  %v6364_v7 = vpop.f32.mrf.mxu0  ;;  %v12945_v16 = vpop.permute.xlu2 %6831 }
 0x807   : > { %6666 = vmatmul.bf16.gmra.mxu2 %v8952_v58  ;;  %v12943_v33 = vpop.permute.xlu1 %6801 }
 0x80a   : > { %v6127_v52 = vpop.f32.mrf.mxu2 }
 0x80b   : > { %v6176_v0 = vadd.f32 %v12835_v13, %v6127_v52  ;;  %v5870_v13 = vadd.f32 %v12665_v27, %v12687_v11 }
 0x80c   : > { %v5915_v62 = vpop.f32.mrf.mxu1 }
 0x80d   : > { %v12915_v20 = vadd.f32 %v6176_v0, %v5911_v45  ;;  %v5916_v43 = vadd.f32 %v5915_v62, %v12676_v6  ;;  %v6690_v6 = vpop.f32.mrf.mxu3 }
 0x80f   : > { %8892 = vmatmul.msk.bf16.gmra.mxu1 %vm5574_vm3, %v8885_v26 }
 0x812   : > { %v6129_v35 = vpop.f32.mrf.mxu2 }
 0x813   : > { %v6178_v28 = vadd.f32 %v12846_v21, %v6129_v35  ;;  %v6367_v21 = vpop.f32.mrf.mxu0 }
 0x814   : > { %v5917_v1 = vpop.f32.mrf.mxu1 }
 0x815   : > { %v12928_v23 = vadd.f32 %v6178_v28, %v5913_v3  ;;  %v5918_v51 = vadd.f32 %v5917_v1, %v5870_v13  ;;  %v6692_v36 = vpop.f32.mrf.mxu3  ;;  %v12952_v3 = vpop.permute.xlu1 %6796 }
 0x817   : > { %6671 = vmatmul.bf16.gmra.mxu2 %v8960_v46 }
 0x81a   : > { %v6132_v42 = vpop.f32.mrf.mxu2 }
 0x81b   : > { %v6181_v39 = vadd.f32 %v6180_v61, %v6132_v42  ;;  %v12939_v61 = vpop.permute.xlu0 %6816  ;;  %v6369_v54 = vpop.f32.mrf.mxu0 }
 0x81c   : > { %v5920_v8 = vpop.f32.mrf.mxu1 }
 0x81d   : > { %v12934_v27 = vadd.f32 %v6181_v39, %v5916_v43  ;;  %v5921_v11 = vadd.f32 %v5920_v8, %v12704_v29  ;;  %v6695_v2 = vpop.f32.mrf.mxu3 }
 0x81f   : > { %8893 = vmatmul.msk.bf16.gmra.mxu1 %vm5574_vm3, %v6280_v57 }
 0x822   : > { %v6134_v31 = vpop.f32.mrf.mxu2 }
 0x823   : > { %v6183_v60 = vadd.f32 %v6182_v24, %v6134_v31  ;;  %v6372_v32 = vpop.f32.mrf.mxu0  ;;  %v12949_v58 = vpop.permute.xlu0 %6791 }
 0x824   : > { %v5922_v45 = vpop.f32.mrf.mxu1 }
 0x825   : > { %v12941_v9 = vadd.f32 %v6183_v60, %v5918_v51  ;;  %v6697_v15 = vpop.f32.mrf.mxu3 }
 0x827   : > { %6676 = vmatmul.bf16.gmra.mxu2 %v6539_v22 }
 0x82a   : > { %v6137_v55 = vpop.f32.mrf.mxu2 }
 0x82b   : > { %v6186_v29 = vadd.f32 %v6185_v12, %v6137_v55  ;;  %v6374_v26 = vpop.f32.mrf.mxu0  ;;  %v12954_v12 = vpop.permute.xlu2 %6811 }
 0x82c   : > { %v6410_v37 = vpop.f32.mrf.mxu1  ;;  %v12957_v19 = vpop.permute.xlu0 %6786 }
 0x82d   : > { %v12947_v17 = vadd.f32 %v6186_v29, %v5921_v11  ;;  %v6411_v24 = vadd.f32 %v6410_v37, %v6362_v48  ;;  %v6772_v48 = vpop.permute.xlu1 %6771 }
 0x82f   : > { %v6449_v49 = vadd.f32 %v6411_v24, %v12732_v44 }
 0x832   : > { %v6139_v10 = vpop.f32.mrf.mxu2  ;;  %v6700_v52 = vpop.f32.mrf.mxu3 }
 0x833   : > { %v6377_v28 = vpop.f32.mrf.mxu0  ;;  %v12960_v1 = vpop.permute.xlu2 %6806 }
 0x834   : > { %v6412_v34 = vpop.f32.mrf.mxu1 }
 0x835   : > { %v6413_v0 = vadd.f32 %v6412_v34, %v6364_v7  ;;  %v6762_v7 = vpop.permute.xlu0 %6761  ;;  %v6767_v40 = vpop.permute.xlu1 %6766 }
 0x837   : > { %v6450_v62 = vadd.f32 %v6413_v0, %v12760_v50 }
 0x83a   : > { %v6642_v43 = vpop.f32.mrf.mxu2  ;;  %v6702_v35 = vpop.f32.mrf.mxu3 }
 0x83b   : > { %v6691_v38 = vadd.f32 %v6690_v6, %v6642_v43  ;;  %v6379_v11 = vpop.f32.mrf.mxu0  ;;  %v6782_v45 = vpop.permute.xlu2 %6781 }
 0x83c   : > { %v6415_v18 = vpop.f32.mrf.mxu1 }
 0x83d   : > { %v6729_v13 = vadd.f32 %v6691_v38, %v6449_v49  ;;  %v6416_v44 = vadd.f32 %v6415_v18, %v6367_v21 }
 0x83f   : > { %v6451_v46 = vadd.f32 %v6416_v44, %v12770_v53  ;;  %v6834_v50 = vadd.f32 %v6762_v7, %v6729_v13 }
 0x841   : > { %v6849_v60 = vmax.f32 %v6834_v50, 0.0 }
 0x842   : > { %v6644_v51 = vpop.f32.mrf.mxu2  ;;  %v6705_v39 = vpop.f32.mrf.mxu3 }
 0x843   : > { %v6693_v56 = vadd.f32 %v6692_v36, %v6644_v51  ;;  %v6382_v49 = vpop.f32.mrf.mxu0  ;;  %v6777_v13 = vpop.permute.xlu2 %6776 }
 0x844   : > { %v6417_v42 = vpop.f32.mrf.mxu1 }
 0x845   : > { %v6730_v57 = vadd.f32 %v6693_v56, %v6450_v62  ;;  %v6418_v8 = vadd.f32 %v6417_v42, %v6369_v54 }
 0x847   : > { %v6835_v6 = vadd.f32 %v6767_v40, %v6730_v57  ;;  %v6452_v31 = vadd.f32 %v6418_v8, %v12798_v30 }
 0x849   : > { %v6850_v21 = vmax.f32 %v6835_v6, 0.0 }
 0x84a   : > { %v6647_v22 = vpop.f32.mrf.mxu2  ;;  %v6707_v37 = vpop.f32.mrf.mxu3 }
 0x84b   : > { %v6696_v53 = vadd.f32 %v6695_v2, %v6647_v22  ;;  %v12963_v55 = vpack.c.bf16 %v6850_v21, %v6849_v60  ;;  %v6384_v18 = vpop.f32.mrf.mxu0 }
 0x84c   : > { %v6420_v29 = vpop.f32.mrf.mxu1 }
 0x84d   : > { %v6731_v36 = vadd.f32 %v6696_v53, %v6451_v46  ;;  %v6421_v24 = vadd.f32 %v6420_v29, %v6372_v32 }
 0x84f   : > { %v6453_v10 = vadd.f32 %v6421_v24, %v12809_v59  ;;  %v6836_v43 = vadd.f32 %v6772_v48, %v6731_v36 }
 0x851   : > { %v6851_v51 = vmax.f32 %v6836_v43, 0.0 }
 0x852   : > { %v6649_v54 = vpop.f32.mrf.mxu2  ;;  %v6710_v62 = vpop.f32.mrf.mxu3 }
 0x853   : > { %v6698_v34 = vadd.f32 %v6697_v15, %v6649_v54  ;;  %v6387_v57 = vpop.f32.mrf.mxu0 }
 0x854   : > { %v6422_v0 = vpop.f32.mrf.mxu1 }
 0x855   : > { %v6732_v30 = vadd.f32 %v6698_v34, %v6452_v31  ;;  %v6423_v38 = vadd.f32 %v6422_v0, %v6374_v26 }
 0x857   : > { %v6837_v44 = vadd.f32 %v6777_v13, %v6732_v30  ;;  %v6454_v2 = vadd.f32 %v6423_v38, %v12837_v41 }
 0x859   : > { %v6852_v7 = vmax.f32 %v6837_v44, 0.0 }
 0x85a   : > { %v6652_v56 = vpop.f32.mrf.mxu2  ;;  %v6712_v59 = vpop.f32.mrf.mxu3 }
 0x85b   : > { %v6701_v46 = vadd.f32 %v6700_v52, %v6652_v56  ;;  %v12967_v32 = vpack.c.bf16 %v6852_v7, %v6851_v51  ;;  %v6389_v21 = vpop.f32.mrf.mxu0 }
 0x85c   : > { %v6425_v42 = vpop.f32.mrf.mxu1 }
 0x85d   : > { %v6733_v50 = vadd.f32 %v6701_v46, %v6453_v10  ;;  %v6426_v15 = vadd.f32 %v6425_v42, %v6377_v28 }
 0x85f   : > { %v6455_v48 = vadd.f32 %v6426_v15, %v12848_v47  ;;  %v6838_v31 = vadd.f32 %v6782_v45, %v6733_v50 }
 0x861   : > { %v6853_v53 = vmax.f32 %v6838_v31, 0.0 }
 0x862   : > { %v6654_v8 = vpop.f32.mrf.mxu2  ;;  %v6715_v6 = vpop.f32.mrf.mxu3 }
 0x863   : > { %v6703_v26 = vadd.f32 %v6702_v35, %v6654_v8  ;;  %v6392_v34 = vpop.f32.mrf.mxu0 }
 0x864   : > { %v6427_v40 = vpop.f32.mrf.mxu1 }
 0x865   : > { %v6734_v60 = vadd.f32 %v6703_v26, %v6454_v2  ;;  %v6428_v41 = vadd.f32 %v6427_v40, %v6379_v11 }
 0x867   : > { %v6839_v22 = vadd.f32 %v12957_v19, %v6734_v60  ;;  %v6456_v52 = vadd.f32 %v6428_v41, %v12872_v14 }
 0x869   : > { %v6854_v29 = vmax.f32 %v6839_v22, 0.0 }
 0x86a   : > { %v6657_v36 = vpop.f32.mrf.mxu2  ;;  %v6717_v47 = vpop.f32.mrf.mxu3 }
 0x86b   : > { %v6706_v24 = vadd.f32 %v6705_v39, %v6657_v36  ;;  %v12972_v28 = vpack.c.bf16 %v6854_v29, %v6853_v53  ;;  %v6394_v13 = vpop.f32.mrf.mxu0 }
 0x86c   : > { %v6430_v10 = vpop.f32.mrf.mxu1 }
 0x86d   : > { %v6735_v54 = vadd.f32 %v6706_v24, %v6455_v48  ;;  %v6431_v35 = vadd.f32 %v6430_v10, %v6382_v49 }
 0x86f   : > { %v6457_v45 = vadd.f32 %v6431_v35, %v12890_v4  ;;  %v6840_v19 = vadd.f32 %v12949_v58, %v6735_v54 }
 0x871   : > { %v6855_v2 = vmax.f32 %v6840_v19, 0.0 }
 0x872   : > { %v6659_v0 = vpop.f32.mrf.mxu2  ;;  %v6720_v30 = vpop.f32.mrf.mxu3 }
 0x873   : > { %v6708_v11 = vadd.f32 %v6707_v37, %v6659_v0 }
 0x874   : > { %v6432_v43 = vpop.f32.mrf.mxu1 }
 0x875   : > { %v6736_v14 = vadd.f32 %v6708_v11, %v6456_v52  ;;  %v6433_v38 = vadd.f32 %v6432_v43, %v6384_v18 }
 0x877   : > { %v6841_v39 = vadd.f32 %v12952_v3, %v6736_v14  ;;  %v6458_v44 = vadd.f32 %v6433_v38, %v12906_v5 }
 0x879   : > { %v6856_v51 = vmax.f32 %v6841_v39, 0.0 }
 0x87a   : > { %v6662_v7 = vpop.f32.mrf.mxu2  ;;  %v6722_v46 = vpop.f32.mrf.mxu3 }
 0x87b   : > { %v6711_v49 = vadd.f32 %v6710_v62, %v6662_v7  ;;  %v12978_v56 = vpack.c.bf16 %v6856_v51, %v6855_v2  ;;  %v6397_v50 = vpop.f32.mrf.mxu0 }
 0x87c   : > { %v6435_v4 = vpop.f32.mrf.mxu1 }
 0x87d   : > { %v6737_v37 = vadd.f32 %v6711_v49, %v6457_v45  ;;  %v6436_v42 = vadd.f32 %v6435_v4, %v6387_v57 }
 0x87f   : > { %v6459_v58 = vadd.f32 %v6436_v42, %v12915_v20  ;;  %v6842_v3 = vadd.f32 %v12943_v33, %v6737_v37 }
 0x881   : > { %v6857_v60 = vmax.f32 %v6842_v3, 0.0 }
 0x882   : > { %v6664_v15 = vpop.f32.mrf.mxu2  ;;  %v6725_v8 = vpop.f32.mrf.mxu3 }
 0x883   : > { %v6713_v18 = vadd.f32 %v6712_v59, %v6664_v15  ;;  %v6399_v40 = vpop.f32.mrf.mxu0 }
 0x884   : > { %v6437_v48 = vpop.f32.mrf.mxu1 }
 0x885   : > { %v6738_v5 = vadd.f32 %v6713_v18, %v6458_v44  ;;  %v6438_v26 = vadd.f32 %v6437_v48, %v6389_v21 }
 0x887   : > { %v6843_v62 = vadd.f32 %v12960_v1, %v6738_v5  ;;  %v6460_v31 = vadd.f32 %v6438_v26, %v12928_v23  ;;  %v6942_v5 = vpop.permute.xlu1 %6941 }
 0x889   : > { %v6858_v41 = vmax.f32 %v6843_v62, 0.0 }
 0x88a   : > { %v6667_v22 = vpop.f32.mrf.mxu2  ;;  %v6727_v20 = vpop.f32.mrf.mxu3 }
 0x88b   : > { %v6716_v57 = vadd.f32 %v6715_v6, %v6667_v22  ;;  %v6879_v52 = vpack.c.bf16 %v6858_v41, %v6857_v60 }
 0x88c   : > { %v6440_v53 = vpop.f32.mrf.mxu1 }
 0x88d   : > { %v6739_v29 = vadd.f32 %v6716_v57, %v6459_v58  ;;  %v6441_v59 = vadd.f32 %v6440_v53, %v6392_v34  ;;  %v6937_v58 = vpop.permute.xlu0 %6936 }
 0x88f   : > { %v6461_v36 = vadd.f32 %v6441_v59, %v12934_v27  ;;  %v6844_v21 = vadd.f32 %v12954_v12, %v6739_v29 }
 0x891   : > { %v6859_v23 = vmax.f32 %v6844_v21, 0.0 }
 0x892   : > { %v6669_v24 = vpop.f32.mrf.mxu2 }
 0x893   : > { %v6718_v33 = vadd.f32 %v6717_v47, %v6669_v24 }
 0x894   : > { %v6442_v10 = vpop.f32.mrf.mxu1 }
 0x895   : > { %v6740_v54 = vadd.f32 %v6718_v33, %v6460_v31  ;;  %v6443_v43 = vadd.f32 %v6442_v10, %v6394_v13  ;;  %v6932_v18 = vpop.permute.xlu0 %6931 }
 0x897   : > { %v6845_v1 = vadd.f32 %v12939_v61, %v6740_v54  ;;  %v6462_v34 = vadd.f32 %v6443_v43, %v12941_v9 }
 0x899   : > { %v6860_v35 = vmax.f32 %v6845_v1, 0.0 }
 0x89a   : > { %v6672_v45 = vpop.f32.mrf.mxu2 }
 0x89b   : > { %v6880_v0 = vpack.c.bf16 %v6860_v35, %v6859_v23  ;;  %v6721_v11 = vadd.f32 %v6720_v30, %v6672_v45 }
 0x89c   : > { %v6445_v6 = vpop.f32.mrf.mxu1 }
 0x89d   : > { %v6741_v19 = vadd.f32 %v6721_v11, %v6461_v36  ;;  %v6446_v12 = vadd.f32 %v6445_v6, %v6397_v50  ;;  %v6947_v50 = vpop.permute.xlu2 %6946 }
 0x89f   : > { %v6846_v47 = vadd.f32 %v12930_v63, %v6741_v19  ;;  %v6463_v7 = vadd.f32 %v6446_v12, %v12947_v17  ;;  %v9354_v63 = vld [vmem:[%s13046_s10] sm:$0xff]  ;;  %v9357_v17 = vld [vmem:[%s13046_s10 + $0x18] sm:$0xff] }
 0x8a1   : > { %v6861_v61 = vmax.f32 %v6846_v47, 0.0 }
 0x8a2   : > { %v6674_v14 = vpop.f32.mrf.mxu2 }
 0x8a3   : > { %v6723_v27 = vadd.f32 %v6722_v46, %v6674_v14 }
 0x8a4   : > { %v6447_v38 = vpop.f32.mrf.mxu1 }
 0x8a5   : > { %v6742_v39 = vadd.f32 %v6723_v27, %v6462_v34  ;;  %v6927_v15 = vpop.permute.xlu2 %6926 }
 0x8a7   : > { %v6847_v44 = vadd.f32 %v12932_v25, %v6742_v39  ;;  %v9355_v25 = vld [vmem:[%s13046_s10 + $0x8] sm:$0xff] }
 0x8a9   : > { %v6862_v2 = vmax.f32 %v6847_v44, 0.0 }
 0x8aa   : > { %v6677_v51 = vpop.f32.mrf.mxu2 }
 0x8ab   : > { %v6726_v49 = vadd.f32 %v6725_v8, %v6677_v51  ;;  %v6881_v30 = vpack.c.bf16 %v6862_v2, %v6861_v61  ;;  %v6907_v8 = vpop.permute.xlu0 %6906 }
 0x8ad   : > { %v6743_v13 = vadd.f32 %v6726_v49, %v6463_v7  ;;  %v6922_v48 = vpop.permute.xlu2 %6921 }
 0x8af   : > { %v6848_v4 = vadd.f32 %v12945_v16, %v6743_v13  ;;  %v9356_v16 = vld [vmem:[%s13046_s10 + $0x10] sm:$0xff] }
 0x8b1   : > { %v6863_v37 = vmax.f32 %v6848_v4, 0.0 }
 0x8b2   : > { %v6679_v9 = vpop.f32.mrf.mxu2 }
 0x8b3   : > { %v6882_v46 = vpack.c.bf16 %v6863_v37, %v6863_v37  ;;  %v6902_v62 = vpop.permute.xlu0 %6901  ;;  %v9359_v37 = vld [vmem:[%s13048_s12] sm:$0xff] }
 0x8b5   : > { %v6997_v42 = vsel %vm3214_vm1, %v6882_v46, 0  ;;  %v6897_v26 = vpop.permute.xlu2 %6896 }
 0x8b6   : > { %6999 = vmatpush.bf16.msra.mxu0 %v6997_v42 }
 0x8ba   : > { %7000 = vmatpush.bf16.msra.mxu0 %v6881_v30 }
 0x8be   : > { %7001 = vmatpush.bf16.msra.mxu0 %v6880_v0 }
 0x8c2   : > { %7002 = vmatpush.bf16.msra.mxu0 %v6879_v52  ;;  %v6917_v52 = vpop.permute.xlu1 %6916 }
 0x8c6   : > { %7003 = vmatpush.bf16.msra.mxu0 %v12978_v56 }
 0x8ca   : > { %7004 = vmatpush.bf16.msra.mxu0 %v12972_v28  ;;  %v6912_v29 = vpop.permute.xlu1 %6911 }
 0x8ce   : > { %7005 = vmatpush.bf16.msra.mxu0 %v12967_v32  ;;  %v6874_v32 = vld [vmem:[%s13046_s10 + $0x28] sm:$0x3] }
 0x8cf   : > { %v6970_v28 = vunpack.c.l.b16 %v6874_v32 }
 0x8d1   : > { %v6976_v56 = vpack.c.b16 %v6970_v28, %v6970_v28 }
 0x8d2   : > { %7006 = vmatpush.bf16.msra.mxu0 %v12963_v55  ;;  %v9358_v55 = vld [vmem:[%s13046_s10 + $0x20] sm:$0xff]  ;;  %v7061_v9 = vpop.permute.xlu1 %7060 }
 0x8d5   : > { %8993 = vmatmul.msk.bf16.vlgmr.msra.gmra.mxu0 %vm6977_vm4, %v9354_v63  ;;  %v7066_v63 = vpop.permute.xlu2 %7065 }
 0x8e5   : > { %8994 = vmatmul.msk.bf16.gmra.mxu0 %vm6977_vm4, %v9355_v25 }
 0x8f5   : > { %8995 = vmatmul.msk.bf16.gmra.mxu0 %vm6977_vm4, %v9356_v16 }
 0x905   : > { %8996 = vmatmul.msk.bf16.gmra.mxu0 %vm6977_vm4, %v9357_v17 }
 0x915   : > { %8997 = vmatmul.msk.bf16.gmra.mxu0 %vm6977_vm4, %v9358_v55 }
 0x925   : > { %8998 = vmatmul.msk.bf16.gmra.mxu0 %vm6977_vm4, %v6976_v56 }
 0x952   : > { %v7008_v3 = vpop.f32.mrf.mxu0 }
 0x953   : > { %v7009_v40 = vadd.f32 %v7008_v3, %v6897_v26 }
 0x955   : > { %v7037_v41 = vmax.f32 %v7009_v40, 0.0 }
 0x95a   : > { %v7010_v31 = vpop.f32.mrf.mxu0 }
 0x95b   : > { %v7011_v60 = vadd.f32 %v7010_v31, %v6902_v62 }
 0x95d   : > { %v7038_v22 = vmax.f32 %v7011_v60, 0.0 }
 0x95f   : > { %v7050_v57 = vpack.c.bf16 %v7038_v22, %v7037_v41 }
 0x962   : > { %v7013_v53 = vpop.f32.mrf.mxu0 }
 0x963   : > { %v7014_v20 = vadd.f32 %v7013_v53, %v6907_v8 }
 0x965   : > { %v7039_v24 = vmax.f32 %v7014_v20, 0.0 }
 0x96a   : > { %v7015_v59 = vpop.f32.mrf.mxu0 }
 0x96b   : > { %v7016_v36 = vadd.f32 %v7015_v59, %v6912_v29 }
 0x96d   : > { %v7040_v33 = vmax.f32 %v7016_v36, 0.0 }
 0x96f   : > { %v7051_v10 = vpack.c.bf16 %v7040_v33, %v7039_v24 }
 0x972   : > { %v7018_v21 = vpop.f32.mrf.mxu0 }
 0x973   : > { %v7019_v51 = vadd.f32 %v7018_v21, %v6917_v52 }
 0x975   : > { %v7041_v13 = vmax.f32 %v7019_v51, 0.0 }
 0x97a   : > { %v7020_v54 = vpop.f32.mrf.mxu0 }
 0x97b   : > { %v7021_v44 = vadd.f32 %v7020_v54, %v6922_v48 }
 0x97d   : > { %v7042_v49 = vmax.f32 %v7021_v44, 0.0 }
 0x97f   : > { %v7052_v4 = vpack.c.bf16 %v7042_v49, %v7041_v13 }
 0x982   : > { %v7023_v1 = vpop.f32.mrf.mxu0 }
 0x983   : > { %v7024_v47 = vadd.f32 %v7023_v1, %v6927_v15 }
 0x985   : > { %v7043_v7 = vmax.f32 %v7024_v47, 0.0 }
 0x98a   : > { %v7025_v23 = vpop.f32.mrf.mxu0 }
 0x98b   : > { %v7026_v34 = vadd.f32 %v7025_v23, %v6932_v18 }
 0x98d   : > { %v7044_v61 = vmax.f32 %v7026_v34, 0.0 }
 0x98f   : > { %v7053_v30 = vpack.c.bf16 %v7044_v61, %v7043_v7 }
 0x992   : > { %v7028_v35 = vpop.f32.mrf.mxu0 }
 0x993   : > { %v7029_v19 = vadd.f32 %v7028_v35, %v6937_v58 }
 0x995   : > { %v7045_v39 = vmax.f32 %v7029_v19, 0.0 }
 0x99a   : > { %v7030_v45 = vpop.f32.mrf.mxu0 }
 0x99b   : > { %v7031_v11 = vadd.f32 %v7030_v45, %v6942_v5 }
 0x99d   : > { %v7046_v27 = vmax.f32 %v7031_v11, 0.0 }
 0x99f   : > { %v7054_v2 = vpack.c.bf16 %v7046_v27, %v7045_v39 }
 0x9a2   : > { %v7033_v0 = vpop.f32.mrf.mxu0 }
 0x9a3   : > { %v7034_v6 = vadd.f32 %v7033_v0, %v6947_v50 }
 0x9a5   : > { %v7047_v43 = vmax.f32 %v7034_v6, 0.0 }
 0x9a7   : > { %v7055_v14 = vpack.c.bf16 %v7047_v43, %v7047_v43 }
 0x9a9   : > { %v7079_v38 = vsel %vm7077_vm5, %v7055_v14, 0 }
 0x9aa   : > { %7083 = vmatpush.bf16.msra.mxu1 %v7079_v38  ;;  %v7035_v12 = vpop.f32.mrf.mxu0 }
 0x9ae   : > { %7084 = vmatpush.bf16.msra.mxu1 %v7054_v2 }
 0x9b2   : > { %7085 = vmatpush.bf16.msra.mxu1 %v7053_v30 }
 0x9b6   : > { %7086 = vmatpush.bf16.msra.mxu1 %v7052_v4 }
 0x9ba   : > { %7087 = vmatpush.bf16.msra.mxu1 %v7051_v10 }
 0x9be   : > { %7088 = vmatpush.bf16.msra.mxu1 %v7050_v57 }
 0x9c1   : > { %9003 = vmatmul.msk.bf16.vlgmr.msra.gmra.mxu1 %vm7073_vm6, %v9359_v37 }
 0xa3e   : > { %v7090_v46 = vpop.f32.mrf.mxu1 }
 0xa3f   : > { %v7091_v42 = vadd.f32 %v7090_v46, %v7061_v9 }
 0xa41   : > { %7095 = vst [vmem:[%s565_s15] sm:$0xff] %v7091_v42 }
 0xa45   : > { %7103 = sbr.rel (!%p9583_p5) target bundleno = 2642 (0xa52), region = 125 }
 0xa46   : > { %v7092_v25 = vpop.f32.mrf.mxu1 }
 0xa47   : > { %v7093_v16 = vadd.f32 %v7092_v25, %v7066_v63 }
 0xa48   : > { %v7136_v17 = vld [vmem:[%s565_s15] sm:$0xff] (%p9583_p5) }
 0xa49   : > { %7096 = vst [vmem:[%s565_s15 + $0x8] sm:$0xff] %v7093_v16 }
 0xa4a   : > { %7137 = vst [vmem:[%s7105_s7] sm:$0xff] %v7136_v17 }
 0xa50   : > { %v7138_v55 = vld [vmem:[%s565_s15 + $0x8] sm:$0xff] }
 0xa51   : > { %7139 = vst [vmem:[%s7105_s7 + $0x10] sm:$0xff] %v7138_v55 }
 0xa52 PF: > { %s13078_s15 = sld [smem:[#allocation7_spill]]  ;;  %s13080_s29 = smov %s9463_s30 }
 0xa53   : > { %s13079_s23 = sld [smem:[#allocation8_spill]] }
 0xa58   : > { %p22_p13 = scmp.ge.s32.totalorder %s13078_s15, 4  }
 0xa59   : > { %s13081_s30 = smov %s13079_s23 }
 0xa5a   :  { %24 = sbr.rel (!%p22_p13) target bundleno = 5 (0x5), region = 207 }
 0xa5f   :  { %7155 = vsyncpa [#allocation4], 1 }
 0xa60   :  { %7157 = vsyncpa [#allocation4 + $0x1], 1 }

</bundles_post_ra>
